<compile_context>
chip_gen: v5e
topology: v5e:2x2
jax: 0.10.0
libtpu: 0.0.40
codegen_flags: <defaults>
</compile_context>

<pallas_src>
import functools

import jax
import jax.numpy as jnp
from jax import lax
from jax.experimental import pallas as pl
from jax.experimental.pallas import tpu as pltpu

_VMEM_LIMIT = 64 * 1024 * 1024


def _round_up(x, m):
    return ((x + m - 1) // m) * m


# ----------------------------------------------------------------------------
# Kernel 1: conv1 (1x1 as matmul, bn1 folded into the weight) + ReLU, with the
#           SE global-average-pool sum fused in as a per-batch accumulator.
#           x3d: (N, H*W, Cin) bf16, grid = (N, ceil(HW / TQ))
# ----------------------------------------------------------------------------
def _conv1_relu_gap_kernel(x_ref, w_ref, b_ref, y_ref, gsum_ref, *, hw, tq):
    t = pl.program_id(1)
    y = jnp.dot(x_ref[0], w_ref[...], preferred_element_type=jnp.float32)
    y = jnp.maximum(y + b_ref[...], 0.0)
    y_ref[0] = y.astype(y_ref.dtype)

    @pl.when(t == 0)
    def _():
        gsum_ref[...] = jnp.zeros_like(gsum_ref)

    if hw % tq == 0:
        ysum = jnp.sum(y, axis=0, keepdims=True)
    else:  # mask out-of-range rows of the last partial tile before reducing
        rows = t * tq + lax.broadcasted_iota(jnp.int32, (tq, 1), 0)
        ysum = jnp.sum(jnp.where(rows < hw, y, 0.0), axis=0, keepdims=True)
    gsum_ref[...] += ysum[None]


def conv1x1_relu_gap(x3d, w, bias, *, tq=512):
    # tq=1024 is a bit better on v5e/v6e (128 MiB VMEM); 512 is safe everywhere.
    n, hw, cin = x3d.shape
    cout = w.shape[1]
    tq = min(tq, hw)
    kernel = functools.partial(_conv1_relu_gap_kernel, hw=hw, tq=tq)
    return pl.pallas_call(
        kernel,
        out_shape=(jax.ShapeDtypeStruct((n, hw, cout), jnp.bfloat16),
                   jax.ShapeDtypeStruct((n, 1, cout), jnp.float32)),
        grid=(n, pl.cdiv(hw, tq)),
        in_specs=[
            pl.BlockSpec((1, tq, cin), lambda b, t: (b, t, 0)),
            pl.BlockSpec((cin, cout), lambda b, t: (0, 0)),
            pl.BlockSpec((1, cout), lambda b, t: (0, 0)),
        ],
        out_specs=(pl.BlockSpec((1, tq, cout), lambda b, t: (b, t, 0)),
                   pl.BlockSpec((1, 1, cout), lambda b, t: (b, 0, 0))),
        compiler_params=pltpu.CompilerParams(
            dimension_semantics=("parallel", "arbitrary"),
            vmem_limit_bytes=_VMEM_LIMIT),
    )(x3d, w, bias.reshape(1, cout))


# ----------------------------------------------------------------------------
# Kernel 2: shared 3x3 conv (stride, pad=1) + bn2 (scale folded into weight) +
#           ReLU, with the SE channel gate applied in bf16.
#
# Row-tiled: grid = (N, ho // tho).  The per-image input stays VMEM-resident
# (index map ignores the row axis); per tile we build a zero-padded, SE-scaled
# tile in a FLATTENED (rows * w_p, cin) scratch where w_p = round_up(w+2, 16).
# With that layout the tap (ky, kx) for output flat index i is just scratch
# row stride*i + ky*w_p + kx, so each of the 9 taps is a plain offset (or
# strided) window load feeding one MXU matmul - no reshape/relayout copies.
# The accumulator covers tho*w_p rows (a few % of padding waste); junk columns
# are sliced away when writing the output tile.
# ----------------------------------------------------------------------------
def _conv3x3_kernel(x_ref, se_ref, w_ref, b_ref, o_ref, xcol_ref, *,
                    stride, h, w, wo, tho, w_p):
    cin = w_ref.shape[2]
    cout = w_ref.shape[3]
    t = pl.program_id(1)
    r0 = t * tho                       # first output row of this tile
    tin_body = tho * stride            # interior input rows of this tile
    tin_p = tin_body + 2               # + top/bottom halo rows
    se = se_ref[0]                     # (1, cin) bf16 channel gate

    # --- zero only the 1-pixel border (feedback: never the whole scratch) ---
    zpad = jnp.zeros((w_p - w, cin), jnp.bfloat16)
    xcol_ref[pl.ds(0, 1), :] = jnp.zeros((1, cin), jnp.bfloat16)   # left pad, row 0
    for j in range(tin_p):
        # right pad of padded row j, dead columns, and left pad of row j+1
        xcol_ref[pl.ds(j * w_p + w + 1, w_p - w), :] = zpad

    # --- interior rows (always fully inside the image), SE-scaled in bf16 ---
    body = (x_ref[0, pl.ds(r0 * stride, tin_body), :, :] * se).astype(jnp.bfloat16)
    for j in range(tin_body):
        xcol_ref[pl.ds((j + 1) * w_p + 1, w), :] = body[j]

    # --- top halo row (all-zero on the first tile) ---
    top_i = r0 * stride - 1
    top = x_ref[0, pl.ds(jnp.maximum(top_i, 0), 1), :, :][0] * se
    top = jnp.where(top_i >= 0, top, 0.0).astype(jnp.bfloat16)
    xcol_ref[pl.ds(1, w), :] = top

    # --- bottom halo row (all-zero on the last tile) ---
    bot_i = (r0 + tho) * stride
    bot = x_ref[0, pl.ds(jnp.minimum(bot_i, h - 1), 1), :, :][0] * se
    bot = jnp.where(bot_i <= h - 1, bot, 0.0).astype(jnp.bfloat16)
    xcol_ref[pl.ds((tin_body + 1) * w_p + 1, w), :] = bot

    # --- 9 tap matmuls straight off the flat scratch (no copies) -------------
    acc = jnp.zeros((tho * w_p, cout), jnp.float32)
    for ky in range(3):
        for kx in range(3):
            off = ky * w_p + kx
            if stride == 1:
                xt = xcol_ref[pl.ds(off, tho * w_p), :]
            else:
                # TODO(synk): stride>1 uses strided VMEM window loads; only the
                # stride=1 path is exercised by the test below.
                xt = xcol_ref[pl.ds(off, tho * w_p, stride), :]
            acc = acc + jnp.dot(xt, w_ref[ky, kx],
                                preferred_element_type=jnp.float32)

    y = jnp.maximum(acc + b_ref[...], 0.0).astype(o_ref.dtype)
    o_ref[0] = y.reshape(tho, w_p, cout)[:, :wo, :]


def conv3x3_se_relu(x_nhwc, se, w_hwio, bias, *, stride=1,
                    acc_tile_bytes=128 * 1024):
    n, h, w, cin = x_nhwc.shape
    cout = w_hwio.shape[-1]
    if stride > 1:
        assert h % stride == 0 and w % stride == 0, "stride>1 needs even H/W"
    ho = (h + 2 - 3) // stride + 1
    wo = (w + 2 - 3) // stride + 1
    w_p = _round_up(w + 2, 16)

    # largest divisor of ho whose f32 accumulator tile stays near vreg-sized
    cap = max(1, min(32, acc_tile_bytes // (w_p * cout * 4)))
    tho = 1
    for d in range(1, ho + 1):
        if ho % d == 0 and d <= cap:
            tho = d
    tin_p = tho * stride + 2

    kernel = functools.partial(_conv3x3_kernel, stride=stride, h=h, w=w,
                               wo=wo, tho=tho, w_p=w_p)
    return pl.pallas_call(
        kernel,
        out_shape=jax.ShapeDtypeStruct((n, ho, wo, cout), jnp.bfloat16),
        grid=(n, ho // tho),
        in_specs=[
            # whole image per batch, kept resident across the row axis
            pl.BlockSpec((1, h, w, cin), lambda b, t: (b, 0, 0, 0)),
            pl.BlockSpec((1, 1, cin), lambda b, t: (b, 0, 0)),
            pl.BlockSpec((3, 3, cin, cout), lambda b, t: (0, 0, 0, 0)),
            pl.BlockSpec((1, cout), lambda b, t: (0, 0)),
        ],
        out_specs=pl.BlockSpec((1, tho, wo, cout), lambda b, t: (b, t, 0, 0)),
        scratch_shapes=[pltpu.VMEM((tin_p * w_p + 8, cin), jnp.bfloat16)],
        compiler_params=pltpu.CompilerParams(
            dimension_semantics=("parallel", "parallel"),
            vmem_limit_bytes=_VMEM_LIMIT),
    )(x_nhwc, se, w_hwio, bias.reshape(1, cout))


# ----------------------------------------------------------------------------
# Kernel 3: conv3 (1x1, bn3 folded) + (fused downsample conv1x1+bnd | identity
#           residual) + add + ReLU, row-tiled over M = N*Ho*Wo.  bf16 output.
# ----------------------------------------------------------------------------
def _conv3_res_kernel(c_ref, w_ref, b_ref, *rest, has_ds):
    if has_ds:
        xd_ref, wd_ref, bd_ref, o_ref = rest
    else:
        r_ref, o_ref = rest
    y = jnp.dot(c_ref[...], w_ref[...], preferred_element_type=jnp.float32)
    y = y + b_ref[...]
    if has_ds:
        r = jnp.dot(xd_ref[...], wd_ref[...], preferred_element_type=jnp.float32)
        r = r + bd_ref[...]
    else:
        r = r_ref[...].astype(jnp.float32)
    o_ref[...] = jnp.maximum(y + r, 0.0).astype(o_ref.dtype)


def conv1x1_residual_relu(c2d, w, bias, *, xd2d=None, wd=None, bd=None,
                          residual=None, tm=512):
    # tm=1024 is a bit better on v5e/v6e; 512 also fits v7x's smaller VMEM.
    m, k = c2d.shape
    cout = w.shape[1]
    tm = min(tm, m)
    has_ds = xd2d is not None
    inputs = [c2d, w, bias.reshape(1, cout)]
    in_specs = [
        pl.BlockSpec((tm, k), lambda i: (i, 0)),
        pl.BlockSpec((k, cout), lambda i: (0, 0)),
        pl.BlockSpec((1, cout), lambda i: (0, 0)),
    ]
    if has_ds:
        kd = xd2d.shape[1]
        inputs += [xd2d, wd, bd.reshape(1, cout)]
        in_specs += [
            pl.BlockSpec((tm, kd), lambda i: (i, 0)),
            pl.BlockSpec((kd, cout), lambda i: (0, 0)),
            pl.BlockSpec((1, cout), lambda i: (0, 0)),
        ]
    else:
        inputs.append(residual)
        in_specs.append(pl.BlockSpec((tm, cout), lambda i: (i, 0)))
    kernel = functools.partial(_conv3_res_kernel, has_ds=has_ds)
    return pl.pallas_call(
        kernel,
        out_shape=jax.ShapeDtypeStruct((m, cout), jnp.bfloat16),
        grid=(pl.cdiv(m, tm),),
        in_specs=in_specs,
        out_specs=pl.BlockSpec((tm, cout), lambda i: (i, 0)),
        compiler_params=pltpu.CompilerParams(
            dimension_semantics=("parallel",),
            vmem_limit_bytes=_VMEM_LIMIT),
    )(*inputs)


# ----------------------------------------------------------------------------
# Block_Share3x3 forward (glue in plain JAX, hot paths in the kernels above)
# ----------------------------------------------------------------------------
def bn_fold(gamma, beta, mean, var, eps=1e-5):
    scale = gamma / jnp.sqrt(var + eps)
    return scale, beta - mean * scale


def block_forward(x_nchw, weight_oihw, params, *, stride=1, downsample=True):
    x = jnp.transpose(x_nchw, (0, 2, 3, 1))                 # NCHW -> NHWC (f32)
    n, h, w, inp = x.shape
    dim = params["w1"].shape[1]
    oup = params["w3"].shape[1]
    x_bf = x.astype(jnp.bfloat16)

    # half1: conv1(1x1) + bn1(folded) + relu with fused per-batch GAP sum
    s1, b1 = bn_fold(*params["bn1"])
    w1f = (params["w1"] * s1[None, :]).astype(jnp.bfloat16)
    y1, gsum = conv1x1_relu_gap(x_bf.reshape(n, h * w, inp), w1f, b1)

    # SE excitation on the pooled (N, dim) vector: O(N*dim*rd) glue for XLA
    gap = gsum.reshape(n, dim) / float(h * w)
    s_se, b_se = bn_fold(*params["bn_se"])
    z = jnp.maximum(gap @ params["wf1"] * s_se + b_se, 0.0)
    se = jax.nn.sigmoid(z @ params["wf2"] + params["bf2"])   # (N, dim)

    # shared 3x3 conv (stride, pad=1) + bn2(folded) + relu, SE gate fused in
    s2, b2 = bn_fold(*params["bn2"])
    w2f = (jnp.transpose(weight_oihw, (2, 3, 1, 0)) * s2).astype(jnp.bfloat16)
    c = conv3x3_se_relu(y1.reshape(n, h, w, dim),
                        se.astype(jnp.bfloat16).reshape(n, 1, dim),
                        w2f, b2, stride=stride)
    _, ho, wo, _ = c.shape
    m2 = n * ho * wo

    # conv3(1x1, bn3 folded) + (fused downsample | identity) + add + relu
    s3, b3 = bn_fold(*params["bn3"])
    w3f = (params["w3"] * s3[None, :]).astype(jnp.bfloat16)
    if downsample:
        sd, bd = bn_fold(*params["bnd"])
        wdf = (params["wd"] * sd[None, :]).astype(jnp.bfloat16)
        # TODO(synk): for stride > 1 the strided subsample of x is materialized
        # by XLA; fusing it into kernel 3 would save one HBM pass over x.
        xd = x_bf if stride == 1 else x_bf[:, ::stride, ::stride, :]
        out = conv1x1_residual_relu(c.reshape(m2, dim), w3f, b3,
                                    xd2d=xd.reshape(m2, inp), wd=wdf, bd=bd)
    else:
        assert inp == oup and stride == 1, (
            "identity path requires inp == oup and stride == 1")
        out = conv1x1_residual_relu(c.reshape(m2, dim), w3f, b3,
                                    residual=x_bf.reshape(m2, inp))
    return jnp.transpose(out.reshape(n, ho, wo, oup), (0, 3, 1, 2))


# ----------------------------------------------------------------------------
# Pure-JAX reference (full f32 precision) for a numerical sanity check
# ----------------------------------------------------------------------------
def _ref_conv(x, w, stride, pad):
    return lax.conv_general_dilated(
        x, w, (stride, stride), pad,
        dimension_numbers=("NHWC", "HWIO", "NHWC"),
        precision=jax.lax.Precision.HIGHEST)


def ref_forward(x_nchw, weight_oihw, params, *, stride=1, downsample=True):
    x = jnp.transpose(x_nchw, (0, 2, 3, 1))
    s1, b1 = bn_fold(*params["bn1"])
    y = jnp.maximum(_ref_conv(x, params["w1"][None, None], 1, "VALID") * s1 + b1,
                    0.0)
    gap = jnp.mean(y, axis=(1, 2))
    s_se, b_se = bn_fold(*params["bn_se"])
    z = jnp.maximum(gap @ params["wf1"] * s_se + b_se, 0.0)
    se = jax.nn.sigmoid(z @ params["wf2"] + params["bf2"])
    y = y * se[:, None, None, :]
    w2 = jnp.transpose(weight_oihw, (2, 3, 1, 0))
    c = _ref_conv(y, w2, stride, [(1, 1), (1, 1)])
    s2, b2 = bn_fold(*params["bn2"])
    c = jnp.maximum(c * s2 + b2, 0.0)
    s3, b3 = bn_fold(*params["bn3"])
    yo = _ref_conv(c, params["w3"][None, None], 1, "VALID") * s3 + b3
    if downsample:
        sd, bd = bn_fold(*params["bnd"])
        r = _ref_conv(x, params["wd"][None, None], stride, "VALID") * sd + bd
    else:
        r = x
    return jnp.transpose(jnp.maximum(yo + r, 0.0), (0, 3, 1, 2))


# ----------------------------------------------------------------------------
# Deterministic parameter construction (module __init__ shapes)
# ----------------------------------------------------------------------------
def make_params(key, dim, inp, oup, rd_ratio=4):
    rd = max(dim // rd_ratio, 1)
    ks = jax.random.split(key, 11)

    def bn(k, c):
        k1, k2, k3, k4 = jax.random.split(k, 4)
        gamma = 1.0 + 0.1 * jax.random.normal(k1, (c,), jnp.float32)
        beta = 0.1 * jax.random.normal(k2, (c,), jnp.float32)
        mean = 0.1 * jax.random.normal(k3, (c,), jnp.float32)
        var = 1.0 + 0.1 * jnp.abs(jax.random.normal(k4, (c,), jnp.float32))
        return (gamma, beta, mean, var)

    return {
        "w1": 0.1 * jax.random.normal(ks[0], (inp, dim), jnp.float32),
        "bn1": bn(ks[1], dim),
        "wf1": 0.1 * jax.random.normal(ks[2], (dim, rd), jnp.float32),   # SE fc1
        "bn_se": bn(ks[3], rd),
        "wf2": 0.1 * jax.random.normal(ks[4], (rd, dim), jnp.float32),   # SE fc2
        "bf2": 0.1 * jax.random.normal(ks[5], (dim,), jnp.float32),      # SE fc2 bias
        "bn2": bn(ks[6], dim),
        "w3": 0.1 * jax.random.normal(ks[7], (dim, oup), jnp.float32),
        "bn3": bn(ks[8], oup),
        "wd": 0.1 * jax.random.normal(ks[9], (inp, oup), jnp.float32),
        "bnd": bn(ks[10], oup),
    }


if __name__ == "__main__":
    # Block_Share3x3(dim=8, inp=16, oup=32, stride=1, downsample=True)
    dim, inp, oup, stride, downsample = 8, 16, 32, 1, True
    N, H, W = 2, 16, 16

    key = jax.random.PRNGKey(0)
    kx, kw, kp = jax.random.split(key, 3)
    x = jax.random.normal(kx, (N, inp, H, W), jnp.float32)                 # NCHW
    w_shared = 0.1 * jax.random.normal(kw, (dim, dim, 3, 3), jnp.float32)  # OIHW
    params = make_params(kp, dim, inp, oup)

    fwd = jax.jit(functools.partial(block_forward, stride=stride,
                                    downsample=downsample))
    out = jax.block_until_ready(fwd(x, w_shared, params))
    ref = jax.block_until_ready(
        ref_forward(x, w_shared, params, stride=stride, downsample=downsample))

    ho = (H + 2 - 3) // stride + 1
    assert out.shape == (N, oup, ho, ho), out.shape
    out_f = out.astype(jnp.float32)
    max_err = float(jnp.max(jnp.abs(out_f - ref)))
    assert jnp.allclose(out_f, ref, atol=5e-2, rtol=5e-2), max_err

    print("KERNEL_OK")
</pallas_src>

<mosaic_0001>
module attributes {stable_mosaic.version = 11 : i64} {
  func.func @_conv1_relu_gap_kernel(%arg0: i32, %arg1: i32, %arg2: memref<1x256x16xbf16, #tpu.memory_space<vmem>>, %arg3: memref<16x8xbf16, #tpu.memory_space<vmem>>, %arg4: memref<1x8xf32, #tpu.memory_space<vmem>>, %arg5: memref<1x256x8xbf16, #tpu.memory_space<vmem>>, %arg6: memref<1x1x8xf32, #tpu.memory_space<vmem>>) attributes {dimension_semantics = [#tpu.dimension_semantics<parallel>, #tpu.dimension_semantics<arbitrary>], iteration_bounds = array<i64: 2, 1>, scalar_prefetch = 0 : i64, scratch_operands = 0 : i64, tpu.core_type = #tpu.core_type<tc>, window_params = [{transform_indices = @transform_0, window_bounds = array<i64: 1, 256, 16>}, {pipeline_mode = #tpu.pipeline_mode<synchronous>, transform_indices = @transform_1, window_bounds = array<i64: 16, 8>}, {pipeline_mode = #tpu.pipeline_mode<synchronous>, transform_indices = @transform_2, window_bounds = array<i64: 1, 8>}, {transform_indices = @transform_3, window_bounds = array<i64: 1, 256, 8>}, {transform_indices = @transform_4, window_bounds = array<i64: 1, 1, 8>}]} {
    %c0 = arith.constant 0 : index
    %c0_0 = arith.constant 0 : index
    %c0_1 = arith.constant 0 : index
    %0 = vector.load %arg2[%c0, %c0_0, %c0_1] : memref<1x256x16xbf16, #tpu.memory_space<vmem>>, vector<1x256x16xbf16>
    %1 = vector.shape_cast %0 : vector<1x256x16xbf16> to vector<256x16xbf16>
    %c0_2 = arith.constant 0 : index
    %c0_3 = arith.constant 0 : index
    %2 = vector.load %arg3[%c0_2, %c0_3] : memref<16x8xbf16, #tpu.memory_space<vmem>>, vector<16x8xbf16>
    %cst = arith.constant dense<0.000000e+00> : vector<256x8xf32>
    %3 = tpu.matmul %1, %2, %cst {dimension_numbers = #tpu.dot_dimension_numbers<[1], [0], [0], [1], [0, 0, 1, 1], [], []>} : vector<256x16xbf16>, vector<16x8xbf16>, vector<256x8xf32> -> vector<256x8xf32>
    %c0_4 = arith.constant 0 : index
    %c0_5 = arith.constant 0 : index
    %4 = vector.load %arg4[%c0_4, %c0_5] : memref<1x8xf32, #tpu.memory_space<vmem>>, vector<1x8xf32>
    %5 = vector.broadcast %4 : vector<1x8xf32> to vector<256x8xf32>
    %6 = arith.addf %3, %5 : vector<256x8xf32>
    %cst_6 = arith.constant 0.000000e+00 : f32
    %7 = vector.broadcast %cst_6 : f32 to vector<256x8xf32>
    %8 = arith.maximumf %6, %7 : vector<256x8xf32>
    %9 = arith.truncf %8 : vector<256x8xf32> to vector<256x8xbf16>
    %c0_7 = arith.constant 0 : index
    %c0_8 = arith.constant 0 : index
    %c0_9 = arith.constant 0 : index
    %10 = vector.load %arg5[%c0_7, %c0_8, %c0_9] : memref<1x256x8xbf16, #tpu.memory_space<vmem>>, vector<1x256x8xbf16>
    %11 = vector.shape_cast %10 : vector<1x256x8xbf16> to vector<256x8xbf16>
    %12 = vector.shape_cast %9 : vector<256x8xbf16> to vector<1x256x8xbf16>
    tpu.vector_store %arg5[%c0_7, %c0_8, %c0_9], %12 {strides = array<i32>} : memref<1x256x8xbf16, #tpu.memory_space<vmem>>, vector<1x256x8xbf16>,
    %c0_i32 = arith.constant 0 : i32
    %13 = arith.cmpi eq, %arg1, %c0_i32 : i32
    %14 = arith.extui %13 : i1 to i32
    %c0_i32_10 = arith.constant 0 : i32
    %15 = arith.cmpi ne, %14, %c0_i32_10 : i32
    scf.if %15 {
      %cst_18 = arith.constant 0.000000e+00 : f32
      %22 = vector.broadcast %cst_18 : f32 to vector<1x1x8xf32>
      %c0_19 = arith.constant 0 : index
      %c0_20 = arith.constant 0 : index
      %c0_21 = arith.constant 0 : index
      %23 = vector.load %arg6[%c0_19, %c0_20, %c0_21] : memref<1x1x8xf32, #tpu.memory_space<vmem>>, vector<1x1x8xf32>
      tpu.vector_store %arg6[%c0_19, %c0_20, %c0_21], %22 {strides = array<i32>} : memref<1x1x8xf32, #tpu.memory_space<vmem>>, vector<1x1x8xf32>,
    } else {
    }
    %cst_11 = arith.constant dense<0.000000e+00> : vector<8xf32>
    %16 = vector.multi_reduction <add>, %8, %cst_11 [0] : vector<256x8xf32> to vector<8xf32>
    %17 = vector.shape_cast %16 : vector<8xf32> to vector<1x8xf32>
    %c0_12 = arith.constant 0 : index
    %c0_13 = arith.constant 0 : index
    %c0_14 = arith.constant 0 : index
    %18 = vector.load %arg6[%c0_12, %c0_13, %c0_14] : memref<1x1x8xf32, #tpu.memory_space<vmem>>, vector<1x1x8xf32>
    %19 = vector.shape_cast %17 : vector<1x8xf32> to vector<1x1x8xf32>
    %20 = arith.addf %18, %19 : vector<1x1x8xf32>
    %c0_15 = arith.constant 0 : index
    %c0_16 = arith.constant 0 : index
    %c0_17 = arith.constant 0 : index
    %21 = vector.load %arg6[%c0_15, %c0_16, %c0_17] : memref<1x1x8xf32, #tpu.memory_space<vmem>>, vector<1x1x8xf32>
    tpu.vector_store %arg6[%c0_15, %c0_16, %c0_17], %20 {strides = array<i32>} : memref<1x1x8xf32, #tpu.memory_space<vmem>>, vector<1x1x8xf32>,
    return
  }
  func.func @transform_0(%arg0: i32, %arg1: i32) -> (i32, i32, i32) {
    %c0_i32 = arith.constant 0 : i32
    %c0_i32_0 = arith.constant 0 : i32
    return %arg0, %arg1, %c0_i32 : i32, i32, i32
  }
  func.func @transform_1(%arg0: i32, %arg1: i32) -> (i32, i32) {
    %c0_i32 = arith.constant 0 : i32
    %c0_i32_0 = arith.constant 0 : i32
    %c0_i32_1 = arith.constant 0 : i32
    return %c0_i32, %c0_i32_0 : i32, i32
  }
  func.func @transform_2(%arg0: i32, %arg1: i32) -> (i32, i32) {
    %c0_i32 = arith.constant 0 : i32
    %c0_i32_0 = arith.constant 0 : i32
    %c0_i32_1 = arith.constant 0 : i32
    return %c0_i32, %c0_i32_0 : i32, i32
  }
  func.func @transform_3(%arg0: i32, %arg1: i32) -> (i32, i32, i32) {
    %c0_i32 = arith.constant 0 : i32
    %c0_i32_0 = arith.constant 0 : i32
    return %arg0, %arg1, %c0_i32 : i32, i32, i32
  }
  func.func @transform_4(%arg0: i32, %arg1: i32) -> (i32, i32, i32) {
    %c0_i32 = arith.constant 0 : i32
    %c0_i32_0 = arith.constant 0 : i32
    %c0_i32_1 = arith.constant 0 : i32
    return %arg0, %c0_i32, %c0_i32_0 : i32, i32, i32
  }
}

module attributes {stable_mosaic.version = 11 : i64} {
  func.func @_conv3x3_kernel(%arg0: i32, %arg1: i32, %arg2: memref<1x16x16x8xbf16, #tpu.memory_space<vmem>>, %arg3: memref<1x1x8xbf16, #tpu.memory_space<vmem>>, %arg4: memref<3x3x8x8xbf16, #tpu.memory_space<vmem>>, %arg5: memref<1x8xf32, #tpu.memory_space<vmem>>, %arg6: memref<1x16x16x8xbf16, #tpu.memory_space<vmem>>, %arg7: memref<584x8xbf16, #tpu.memory_space<vmem>>) attributes {dimension_semantics = [#tpu.dimension_semantics<parallel>, #tpu.dimension_semantics<parallel>], iteration_bounds = array<i64: 2, 1>, scalar_prefetch = 0 : i64, scratch_operands = 1 : i64, tpu.core_type = #tpu.core_type<tc>, window_params = [{transform_indices = @transform_0, window_bounds = array<i64: 1, 16, 16, 8>}, {transform_indices = @transform_1, window_bounds = array<i64: 1, 1, 8>}, {pipeline_mode = #tpu.pipeline_mode<synchronous>, transform_indices = @transform_2, window_bounds = array<i64: 3, 3, 8, 8>}, {pipeline_mode = #tpu.pipeline_mode<synchronous>, transform_indices = @transform_3, window_bounds = array<i64: 1, 8>}, {transform_indices = @transform_4, window_bounds = array<i64: 1, 16, 16, 8>}]} {
    %c16_i32 = arith.constant 16 : i32
    %0 = arith.muli %arg1, %c16_i32 : i32
    %c0 = arith.constant 0 : index
    %c0_0 = arith.constant 0 : index
    %c0_1 = arith.constant 0 : index
    %1 = vector.load %arg3[%c0, %c0_0, %c0_1] : memref<1x1x8xbf16, #tpu.memory_space<vmem>>, vector<1x1x8xbf16>
    %2 = vector.shape_cast %1 : vector<1x1x8xbf16> to vector<1x8xbf16>
    %cst = arith.constant 0.000000e+00 : bf16
    %3 = vector.broadcast %cst : bf16 to vector<16x8xbf16>
    %cst_2 = arith.constant 0.000000e+00 : bf16
    %4 = vector.broadcast %cst_2 : bf16 to vector<1x8xbf16>
    %c0_3 = arith.constant 0 : index
    %c0_4 = arith.constant 0 : index
    %5 = vector.load %arg7[%c0_3, %c0_4] : memref<584x8xbf16, #tpu.memory_space<vmem>>, vector<1x8xbf16>
    tpu.vector_store %arg7[%c0_3, %c0_4], %4 {strides = array<i32>} : memref<584x8xbf16, #tpu.memory_space<vmem>>, vector<1x8xbf16>,
    %c17 = arith.constant 17 : index
    %c0_5 = arith.constant 0 : index
    %6 = vector.load %arg7[%c17, %c0_5] : memref<584x8xbf16, #tpu.memory_space<vmem>>, vector<16x8xbf16>
    tpu.vector_store %arg7[%c17, %c0_5], %3 {strides = array<i32>} : memref<584x8xbf16, #tpu.memory_space<vmem>>, vector<16x8xbf16>,
    %c49 = arith.constant 49 : index
    %c0_6 = arith.constant 0 : index
    %7 = vector.load %arg7[%c49, %c0_6] : memref<584x8xbf16, #tpu.memory_space<vmem>>, vector<16x8xbf16>
    tpu.vector_store %arg7[%c49, %c0_6], %3 {strides = array<i32>} : memref<584x8xbf16, #tpu.memory_space<vmem>>, vector<16x8xbf16>,
    %c81 = arith.constant 81 : index
    %c0_7 = arith.constant 0 : index
    %8 = vector.load %arg7[%c81, %c0_7] : memref<584x8xbf16, #tpu.memory_space<vmem>>, vector<16x8xbf16>
    tpu.vector_store %arg7[%c81, %c0_7], %3 {strides = array<i32>} : memref<584x8xbf16, #tpu.memory_space<vmem>>, vector<16x8xbf16>,
    %c113 = arith.constant 113 : index
    %c0_8 = arith.constant 0 : index
    %9 = vector.load %arg7[%c113, %c0_8] : memref<584x8xbf16, #tpu.memory_space<vmem>>, vector<16x8xbf16>
    tpu.vector_store %arg7[%c113, %c0_8], %3 {strides = array<i32>} : memref<584x8xbf16, #tpu.memory_space<vmem>>, vector<16x8xbf16>,
    %c145 = arith.constant 145 : index
    %c0_9 = arith.constant 0 : index
    %10 = vector.load %arg7[%c145, %c0_9] : memref<584x8xbf16, #tpu.memory_space<vmem>>, vector<16x8xbf16>
    tpu.vector_store %arg7[%c145, %c0_9], %3 {strides = array<i32>} : memref<584x8xbf16, #tpu.memory_space<vmem>>, vector<16x8xbf16>,
    %c177 = arith.constant 177 : index
    %c0_10 = arith.constant 0 : index
    %11 = vector.load %arg7[%c177, %c0_10] : memref<584x8xbf16, #tpu.memory_space<vmem>>, vector<16x8xbf16>
    tpu.vector_store %arg7[%c177, %c0_10], %3 {strides = array<i32>} : memref<584x8xbf16, #tpu.memory_space<vmem>>, vector<16x8xbf16>,
    %c209 = arith.constant 209 : index
    %c0_11 = arith.constant 0 : index
    %12 = vector.load %arg7[%c209, %c0_11] : memref<584x8xbf16, #tpu.memory_space<vmem>>, vector<16x8xbf16>
    tpu.vector_store %arg7[%c209, %c0_11], %3 {strides = array<i32>} : memref<584x8xbf16, #tpu.memory_space<vmem>>, vector<16x8xbf16>,
    %c241 = arith.constant 241 : index
    %c0_12 = arith.constant 0 : index
    %13 = vector.load %arg7[%c241, %c0_12] : memref<584x8xbf16, #tpu.memory_space<vmem>>, vector<16x8xbf16>
    tpu.vector_store %arg7[%c241, %c0_12], %3 {strides = array<i32>} : memref<584x8xbf16, #tpu.memory_space<vmem>>, vector<16x8xbf16>,
    %c273 = arith.constant 273 : index
    %c0_13 = arith.constant 0 : index
    %14 = vector.load %arg7[%c273, %c0_13] : memref<584x8xbf16, #tpu.memory_space<vmem>>, vector<16x8xbf16>
    tpu.vector_store %arg7[%c273, %c0_13], %3 {strides = array<i32>} : memref<584x8xbf16, #tpu.memory_space<vmem>>, vector<16x8xbf16>,
    %c305 = arith.constant 305 : index
    %c0_14 = arith.constant 0 : index
    %15 = vector.load %arg7[%c305, %c0_14] : memref<584x8xbf16, #tpu.memory_space<vmem>>, vector<16x8xbf16>
    tpu.vector_store %arg7[%c305, %c0_14], %3 {strides = array<i32>} : memref<584x8xbf16, #tpu.memory_space<vmem>>, vector<16x8xbf16>,
    %c337 = arith.constant 337 : index
    %c0_15 = arith.constant 0 : index
    %16 = vector.load %arg7[%c337, %c0_15] : memref<584x8xbf16, #tpu.memory_space<vmem>>, vector<16x8xbf16>
    tpu.vector_store %arg7[%c337, %c0_15], %3 {strides = array<i32>} : memref<584x8xbf16, #tpu.memory_space<vmem>>, vector<16x8xbf16>,
    %c369 = arith.constant 369 : index
    %c0_16 = arith.constant 0 : index
    %17 = vector.load %arg7[%c369, %c0_16] : memref<584x8xbf16, #tpu.memory_space<vmem>>, vector<16x8xbf16>
    tpu.vector_store %arg7[%c369, %c0_16], %3 {strides = array<i32>} : memref<584x8xbf16, #tpu.memory_space<vmem>>, vector<16x8xbf16>,
    %c401 = arith.constant 401 : index
    %c0_17 = arith.constant 0 : index
    %18 = vector.load %arg7[%c401, %c0_17] : memref<584x8xbf16, #tpu.memory_space<vmem>>, vector<16x8xbf16>
    tpu.vector_store %arg7[%c401, %c0_17], %3 {strides = array<i32>} : memref<584x8xbf16, #tpu.memory_space<vmem>>, vector<16x8xbf16>,
    %c433 = arith.constant 433 : index
    %c0_18 = arith.constant 0 : index
    %19 = vector.load %arg7[%c433, %c0_18] : memref<584x8xbf16, #tpu.memory_space<vmem>>, vector<16x8xbf16>
    tpu.vector_store %arg7[%c433, %c0_18], %3 {strides = array<i32>} : memref<584x8xbf16, #tpu.memory_space<vmem>>, vector<16x8xbf16>,
    %c465 = arith.constant 465 : index
    %c0_19 = arith.constant 0 : index
    %20 = vector.load %arg7[%c465, %c0_19] : memref<584x8xbf16, #tpu.memory_space<vmem>>, vector<16x8xbf16>
    tpu.vector_store %arg7[%c465, %c0_19], %3 {strides = array<i32>} : memref<584x8xbf16, #tpu.memory_space<vmem>>, vector<16x8xbf16>,
    %c497 = arith.constant 497 : index
    %c0_20 = arith.constant 0 : index
    %21 = vector.load %arg7[%c497, %c0_20] : memref<584x8xbf16, #tpu.memory_space<vmem>>, vector<16x8xbf16>
    tpu.vector_store %arg7[%c497, %c0_20], %3 {strides = array<i32>} : memref<584x8xbf16, #tpu.memory_space<vmem>>, vector<16x8xbf16>,
    %c529 = arith.constant 529 : index
    %c0_21 = arith.constant 0 : index
    %22 = vector.load %arg7[%c529, %c0_21] : memref<584x8xbf16, #tpu.memory_space<vmem>>, vector<16x8xbf16>
    tpu.vector_store %arg7[%c529, %c0_21], %3 {strides = array<i32>} : memref<584x8xbf16, #tpu.memory_space<vmem>>, vector<16x8xbf16>,
    %c561 = arith.constant 561 : index
    %c0_22 = arith.constant 0 : index
    %23 = vector.load %arg7[%c561, %c0_22] : memref<584x8xbf16, #tpu.memory_space<vmem>>, vector<16x8xbf16>
    tpu.vector_store %arg7[%c561, %c0_22], %3 {strides = array<i32>} : memref<584x8xbf16, #tpu.memory_space<vmem>>, vector<16x8xbf16>,
    %c1_i32 = arith.constant 1 : i32
    %24 = arith.muli %0, %c1_i32 : i32
    %c0_23 = arith.constant 0 : index
    %25 = arith.index_cast %24 : i32 to index
    %c0_24 = arith.constant 0 : index
    %c0_25 = arith.constant 0 : index
    %26 = vector.load %arg2[%c0_23, %25, %c0_24, %c0_25] : memref<1x16x16x8xbf16, #tpu.memory_space<vmem>>, vector<1x16x16x8xbf16>
    %27 = vector.shape_cast %26 : vector<1x16x16x8xbf16> to vector<16x16x8xbf16>
    %28 = vector.shape_cast %2 : vector<1x8xbf16> to vector<1x1x8xbf16>
    %29 = vector.broadcast %28 : vector<1x1x8xbf16> to vector<16x16x8xbf16>
    %30 = arith.mulf %27, %29 : vector<16x16x8xbf16>
    %31 = vector.extract_strided_slice %30 {offsets = [0, 0, 0], sizes = [1, 16, 8], strides = [1, 1, 1]} : vector<16x16x8xbf16> to vector<1x16x8xbf16>
    %32 = vector.shape_cast %31 : vector<1x16x8xbf16> to vector<16x8xbf16>
    %c33 = arith.constant 33 : index
    %c0_26 = arith.constant 0 : index
    %33 = vector.load %arg7[%c33, %c0_26] : memref<584x8xbf16, #tpu.memory_space<vmem>>, vector<16x8xbf16>
    tpu.vector_store %arg7[%c33, %c0_26], %32 {strides = array<i32>} : memref<584x8xbf16, #tpu.memory_space<vmem>>, vector<16x8xbf16>,
    %34 = vector.extract_strided_slice %30 {offsets = [1, 0, 0], sizes = [1, 16, 8], strides = [1, 1, 1]} : vector<16x16x8xbf16> to vector<1x16x8xbf16>
    %35 = vector.shape_cast %34 : vector<1x16x8xbf16> to vector<16x8xbf16>
    %c65 = arith.constant 65 : index
    %c0_27 = arith.constant 0 : index
    %36 = vector.load %arg7[%c65, %c0_27] : memref<584x8xbf16, #tpu.memory_space<vmem>>, vector<16x8xbf16>
    tpu.vector_store %arg7[%c65, %c0_27], %35 {strides = array<i32>} : memref<584x8xbf16, #tpu.memory_space<vmem>>, vector<16x8xbf16>,
    %37 = vector.extract_strided_slice %30 {offsets = [2, 0, 0], sizes = [1, 16, 8], strides = [1, 1, 1]} : vector<16x16x8xbf16> to vector<1x16x8xbf16>
    %38 = vector.shape_cast %37 : vector<1x16x8xbf16> to vector<16x8xbf16>
    %c97 = arith.constant 97 : index
    %c0_28 = arith.constant 0 : index
    %39 = vector.load %arg7[%c97, %c0_28] : memref<584x8xbf16, #tpu.memory_space<vmem>>, vector<16x8xbf16>
    tpu.vector_store %arg7[%c97, %c0_28], %38 {strides = array<i32>} : memref<584x8xbf16, #tpu.memory_space<vmem>>, vector<16x8xbf16>,
    %40 = vector.extract_strided_slice %30 {offsets = [3, 0, 0], sizes = [1, 16, 8], strides = [1, 1, 1]} : vector<16x16x8xbf16> to vector<1x16x8xbf16>
    %41 = vector.shape_cast %40 : vector<1x16x8xbf16> to vector<16x8xbf16>
    %c129 = arith.constant 129 : index
    %c0_29 = arith.constant 0 : index
    %42 = vector.load %arg7[%c129, %c0_29] : memref<584x8xbf16, #tpu.memory_space<vmem>>, vector<16x8xbf16>
    tpu.vector_store %arg7[%c129, %c0_29], %41 {strides = array<i32>} : memref<584x8xbf16, #tpu.memory_space<vmem>>, vector<16x8xbf16>,
    %43 = vector.extract_strided_slice %30 {offsets = [4, 0, 0], sizes = [1, 16, 8], strides = [1, 1, 1]} : vector<16x16x8xbf16> to vector<1x16x8xbf16>
    %44 = vector.shape_cast %43 : vector<1x16x8xbf16> to vector<16x8xbf16>
    %c161 = arith.constant 161 : index
    %c0_30 = arith.constant 0 : index
    %45 = vector.load %arg7[%c161, %c0_30] : memref<584x8xbf16, #tpu.memory_space<vmem>>, vector<16x8xbf16>
    tpu.vector_store %arg7[%c161, %c0_30], %44 {strides = array<i32>} : memref<584x8xbf16, #tpu.memory_space<vmem>>, vector<16x8xbf16>,
    %46 = vector.extract_strided_slice %30 {offsets = [5, 0, 0], sizes = [1, 16, 8], strides = [1, 1, 1]} : vector<16x16x8xbf16> to vector<1x16x8xbf16>
    %47 = vector.shape_cast %46 : vector<1x16x8xbf16> to vector<16x8xbf16>
    %c193 = arith.constant 193 : index
    %c0_31 = arith.constant 0 : index
    %48 = vector.load %arg7[%c193, %c0_31] : memref<584x8xbf16, #tpu.memory_space<vmem>>, vector<16x8xbf16>
    tpu.vector_store %arg7[%c193, %c0_31], %47 {strides = array<i32>} : memref<584x8xbf16, #tpu.memory_space<vmem>>, vector<16x8xbf16>,
    %49 = vector.extract_strided_slice %30 {offsets = [6, 0, 0], sizes = [1, 16, 8], strides = [1, 1, 1]} : vector<16x16x8xbf16> to vector<1x16x8xbf16>
    %50 = vector.shape_cast %49 : vector<1x16x8xbf16> to vector<16x8xbf16>
    %c225 = arith.constant 225 : index
    %c0_32 = arith.constant 0 : index
    %51 = vector.load %arg7[%c225, %c0_32] : memref<584x8xbf16, #tpu.memory_space<vmem>>, vector<16x8xbf16>
    tpu.vector_store %arg7[%c225, %c0_32], %50 {strides = array<i32>} : memref<584x8xbf16, #tpu.memory_space<vmem>>, vector<16x8xbf16>,
    %52 = vector.extract_strided_slice %30 {offsets = [7, 0, 0], sizes = [1, 16, 8], strides = [1, 1, 1]} : vector<16x16x8xbf16> to vector<1x16x8xbf16>
    %53 = vector.shape_cast %52 : vector<1x16x8xbf16> to vector<16x8xbf16>
    %c257 = arith.constant 257 : index
    %c0_33 = arith.constant 0 : index
    %54 = vector.load %arg7[%c257, %c0_33] : memref<584x8xbf16, #tpu.memory_space<vmem>>, vector<16x8xbf16>
    tpu.vector_store %arg7[%c257, %c0_33], %53 {strides = array<i32>} : memref<584x8xbf16, #tpu.memory_space<vmem>>, vector<16x8xbf16>,
    %55 = vector.extract_strided_slice %30 {offsets = [8, 0, 0], sizes = [1, 16, 8], strides = [1, 1, 1]} : vector<16x16x8xbf16> to vector<1x16x8xbf16>
    %56 = vector.shape_cast %55 : vector<1x16x8xbf16> to vector<16x8xbf16>
    %c289 = arith.constant 289 : index
    %c0_34 = arith.constant 0 : index
    %57 = vector.load %arg7[%c289, %c0_34] : memref<584x8xbf16, #tpu.memory_space<vmem>>, vector<16x8xbf16>
    tpu.vector_store %arg7[%c289, %c0_34], %56 {strides = array<i32>} : memref<584x8xbf16, #tpu.memory_space<vmem>>, vector<16x8xbf16>,
    %58 = vector.extract_strided_slice %30 {offsets = [9, 0, 0], sizes = [1, 16, 8], strides = [1, 1, 1]} : vector<16x16x8xbf16> to vector<1x16x8xbf16>
    %59 = vector.shape_cast %58 : vector<1x16x8xbf16> to vector<16x8xbf16>
    %c321 = arith.constant 321 : index
    %c0_35 = arith.constant 0 : index
    %60 = vector.load %arg7[%c321, %c0_35] : memref<584x8xbf16, #tpu.memory_space<vmem>>, vector<16x8xbf16>
    tpu.vector_store %arg7[%c321, %c0_35], %59 {strides = array<i32>} : memref<584x8xbf16, #tpu.memory_space<vmem>>, vector<16x8xbf16>,
    %61 = vector.extract_strided_slice %30 {offsets = [10, 0, 0], sizes = [1, 16, 8], strides = [1, 1, 1]} : vector<16x16x8xbf16> to vector<1x16x8xbf16>
    %62 = vector.shape_cast %61 : vector<1x16x8xbf16> to vector<16x8xbf16>
    %c353 = arith.constant 353 : index
    %c0_36 = arith.constant 0 : index
    %63 = vector.load %arg7[%c353, %c0_36] : memref<584x8xbf16, #tpu.memory_space<vmem>>, vector<16x8xbf16>
    tpu.vector_store %arg7[%c353, %c0_36], %62 {strides = array<i32>} : memref<584x8xbf16, #tpu.memory_space<vmem>>, vector<16x8xbf16>,
    %64 = vector.extract_strided_slice %30 {offsets = [11, 0, 0], sizes = [1, 16, 8], strides = [1, 1, 1]} : vector<16x16x8xbf16> to vector<1x16x8xbf16>
    %65 = vector.shape_cast %64 : vector<1x16x8xbf16> to vector<16x8xbf16>
    %c385 = arith.constant 385 : index
    %c0_37 = arith.constant 0 : index
    %66 = vector.load %arg7[%c385, %c0_37] : memref<584x8xbf16, #tpu.memory_space<vmem>>, vector<16x8xbf16>
    tpu.vector_store %arg7[%c385, %c0_37], %65 {strides = array<i32>} : memref<584x8xbf16, #tpu.memory_space<vmem>>, vector<16x8xbf16>,
    %67 = vector.extract_strided_slice %30 {offsets = [12, 0, 0], sizes = [1, 16, 8], strides = [1, 1, 1]} : vector<16x16x8xbf16> to vector<1x16x8xbf16>
    %68 = vector.shape_cast %67 : vector<1x16x8xbf16> to vector<16x8xbf16>
    %c417 = arith.constant 417 : index
    %c0_38 = arith.constant 0 : index
    %69 = vector.load %arg7[%c417, %c0_38] : memref<584x8xbf16, #tpu.memory_space<vmem>>, vector<16x8xbf16>
    tpu.vector_store %arg7[%c417, %c0_38], %68 {strides = array<i32>} : memref<584x8xbf16, #tpu.memory_space<vmem>>, vector<16x8xbf16>,
    %70 = vector.extract_strided_slice %30 {offsets = [13, 0, 0], sizes = [1, 16, 8], strides = [1, 1, 1]} : vector<16x16x8xbf16> to vector<1x16x8xbf16>
    %71 = vector.shape_cast %70 : vector<1x16x8xbf16> to vector<16x8xbf16>
    %c449 = arith.constant 449 : index
    %c0_39 = arith.constant 0 : index
    %72 = vector.load %arg7[%c449, %c0_39] : memref<584x8xbf16, #tpu.memory_space<vmem>>, vector<16x8xbf16>
    tpu.vector_store %arg7[%c449, %c0_39], %71 {strides = array<i32>} : memref<584x8xbf16, #tpu.memory_space<vmem>>, vector<16x8xbf16>,
    %73 = vector.extract_strided_slice %30 {offsets = [14, 0, 0], sizes = [1, 16, 8], strides = [1, 1, 1]} : vector<16x16x8xbf16> to vector<1x16x8xbf16>
    %74 = vector.shape_cast %73 : vector<1x16x8xbf16> to vector<16x8xbf16>
    %c481 = arith.constant 481 : index
    %c0_40 = arith.constant 0 : index
    %75 = vector.load %arg7[%c481, %c0_40] : memref<584x8xbf16, #tpu.memory_space<vmem>>, vector<16x8xbf16>
    tpu.vector_store %arg7[%c481, %c0_40], %74 {strides = array<i32>} : memref<584x8xbf16, #tpu.memory_space<vmem>>, vector<16x8xbf16>,
    %76 = vector.extract_strided_slice %30 {offsets = [15, 0, 0], sizes = [1, 16, 8], strides = [1, 1, 1]} : vector<16x16x8xbf16> to vector<1x16x8xbf16>
    %77 = vector.shape_cast %76 : vector<1x16x8xbf16> to vector<16x8xbf16>
    %c513 = arith.constant 513 : index
    %c0_41 = arith.constant 0 : index
    %78 = vector.load %arg7[%c513, %c0_41] : memref<584x8xbf16, #tpu.memory_space<vmem>>, vector<16x8xbf16>
    tpu.vector_store %arg7[%c513, %c0_41], %77 {strides = array<i32>} : memref<584x8xbf16, #tpu.memory_space<vmem>>, vector<16x8xbf16>,
    %c1_i32_42 = arith.constant 1 : i32
    %79 = arith.muli %0, %c1_i32_42 : i32
    %c1_i32_43 = arith.constant 1 : i32
    %80 = arith.subi %79, %c1_i32_43 : i32
    %c0_i32 = arith.constant 0 : i32
    %81 = arith.maxsi %80, %c0_i32 : i32
    %c0_44 = arith.constant 0 : index
    %82 = arith.index_cast %81 : i32 to index
    %c0_45 = arith.constant 0 : index
    %c0_46 = arith.constant 0 : index
    %83 = vector.load %arg2[%c0_44, %82, %c0_45, %c0_46] : memref<1x16x16x8xbf16, #tpu.memory_space<vmem>>, vector<1x1x16x8xbf16>
    %84 = vector.shape_cast %83 : vector<1x1x16x8xbf16> to vector<1x16x8xbf16>
    %85 = vector.shape_cast %84 : vector<1x16x8xbf16> to vector<16x8xbf16>
    %86 = vector.broadcast %2 : vector<1x8xbf16> to vector<16x8xbf16>
    %87 = arith.mulf %85, %86 : vector<16x8xbf16>
    %c0_i32_47 = arith.constant 0 : i32
    %88 = arith.cmpi sge, %80, %c0_i32_47 : i32
    %cst_48 = arith.constant 0.000000e+00 : f32
    %89 = arith.truncf %cst_48 : f32 to bf16
    %90 = vector.broadcast %89 : bf16 to vector<16x8xbf16>
    %91 = arith.select %88, %87, %90 : vector<16x8xbf16>
    %c1 = arith.constant 1 : index
    %c0_49 = arith.constant 0 : index
    %92 = vector.load %arg7[%c1, %c0_49] : memref<584x8xbf16, #tpu.memory_space<vmem>>, vector<16x8xbf16>
    tpu.vector_store %arg7[%c1, %c0_49], %91 {strides = array<i32>} : memref<584x8xbf16, #tpu.memory_space<vmem>>, vector<16x8xbf16>,
    %c16_i32_50 = arith.constant 16 : i32
    %93 = arith.addi %0, %c16_i32_50 : i32
    %c1_i32_51 = arith.constant 1 : i32
    %94 = arith.muli %93, %c1_i32_51 : i32
    %c15_i32 = arith.constant 15 : i32
    %95 = arith.minsi %94, %c15_i32 : i32
    %c0_52 = arith.constant 0 : index
    %96 = arith.index_cast %95 : i32 to index
    %c0_53 = arith.constant 0 : index
    %c0_54 = arith.constant 0 : index
    %97 = vector.load %arg2[%c0_52, %96, %c0_53, %c0_54] : memref<1x16x16x8xbf16, #tpu.memory_space<vmem>>, vector<1x1x16x8xbf16>
    %98 = vector.shape_cast %97 : vector<1x1x16x8xbf16> to vector<1x16x8xbf16>
    %99 = vector.shape_cast %98 : vector<1x16x8xbf16> to vector<16x8xbf16>
    %100 = vector.broadcast %2 : vector<1x8xbf16> to vector<16x8xbf16>
    %101 = arith.mulf %99, %100 : vector<16x8xbf16>
    %c15_i32_55 = arith.constant 15 : i32
    %102 = arith.cmpi sle, %94, %c15_i32_55 : i32
    %cst_56 = arith.constant 0.000000e+00 : f32
    %103 = arith.truncf %cst_56 : f32 to bf16
    %104 = vector.broadcast %103 : bf16 to vector<16x8xbf16>
    %105 = arith.select %102, %101, %104 : vector<16x8xbf16>
    %c545 = arith.constant 545 : index
    %c0_57 = arith.constant 0 : index
    %106 = vector.load %arg7[%c545, %c0_57] : memref<584x8xbf16, #tpu.memory_space<vmem>>, vector<16x8xbf16>
    tpu.vector_store %arg7[%c545, %c0_57], %105 {strides = array<i32>} : memref<584x8xbf16, #tpu.memory_space<vmem>>, vector<16x8xbf16>,
    %cst_58 = arith.constant 0.000000e+00 : f32
    %107 = vector.broadcast %cst_58 : f32 to vector<512x8xf32>
    %c0_59 = arith.constant 0 : index
    %c0_60 = arith.constant 0 : index
    %108 = vector.load %arg7[%c0_59, %c0_60] : memref<584x8xbf16, #tpu.memory_space<vmem>>, vector<512x8xbf16>
    %c0_61 = arith.constant 0 : index
    %c0_62 = arith.constant 0 : index
    %c0_63 = arith.constant 0 : index
    %c0_64 = arith.constant 0 : index
    %109 = vector.load %arg4[%c0_61, %c0_62, %c0_63, %c0_64] : memref<3x3x8x8xbf16, #tpu.memory_space<vmem>>, vector<1x1x8x8xbf16>
    %110 = vector.shape_cast %109 : vector<1x1x8x8xbf16> to vector<8x8xbf16>
    %cst_65 = arith.constant dense<0.000000e+00> : vector<512x8xf32>
    %111 = tpu.matmul %108, %110, %cst_65 {dimension_numbers = #tpu.dot_dimension_numbers<[1], [0], [0], [1], [0, 0, 1, 1], [], []>} : vector<512x8xbf16>, vector<8x8xbf16>, vector<512x8xf32> -> vector<512x8xf32>
    %112 = arith.addf %107, %111 : vector<512x8xf32>
    %c1_66 = arith.constant 1 : index
    %c0_67 = arith.constant 0 : index
    %113 = vector.load %arg7[%c1_66, %c0_67] : memref<584x8xbf16, #tpu.memory_space<vmem>>, vector<512x8xbf16>
    %c0_68 = arith.constant 0 : index
    %c1_69 = arith.constant 1 : index
    %c0_70 = arith.constant 0 : index
    %c0_71 = arith.constant 0 : index
    %114 = vector.load %arg4[%c0_68, %c1_69, %c0_70, %c0_71] : memref<3x3x8x8xbf16, #tpu.memory_space<vmem>>, vector<1x1x8x8xbf16>
    %115 = vector.shape_cast %114 : vector<1x1x8x8xbf16> to vector<8x8xbf16>
    %cst_72 = arith.constant dense<0.000000e+00> : vector<512x8xf32>
    %116 = tpu.matmul %113, %115, %cst_72 {dimension_numbers = #tpu.dot_dimension_numbers<[1], [0], [0], [1], [0, 0, 1, 1], [], []>} : vector<512x8xbf16>, vector<8x8xbf16>, vector<512x8xf32> -> vector<512x8xf32>
    %117 = arith.addf %112, %116 : vector<512x8xf32>
    %c2 = arith.constant 2 : index
    %c0_73 = arith.constant 0 : index
    %118 = vector.load %arg7[%c2, %c0_73] : memref<584x8xbf16, #tpu.memory_space<vmem>>, vector<512x8xbf16>
    %c0_74 = arith.constant 0 : index
    %c2_75 = arith.constant 2 : index
    %c0_76 = arith.constant 0 : index
    %c0_77 = arith.constant 0 : index
    %119 = vector.load %arg4[%c0_74, %c2_75, %c0_76, %c0_77] : memref<3x3x8x8xbf16, #tpu.memory_space<vmem>>, vector<1x1x8x8xbf16>
    %120 = vector.shape_cast %119 : vector<1x1x8x8xbf16> to vector<8x8xbf16>
    %cst_78 = arith.constant dense<0.000000e+00> : vector<512x8xf32>
    %121 = tpu.matmul %118, %120, %cst_78 {dimension_numbers = #tpu.dot_dimension_numbers<[1], [0], [0], [1], [0, 0, 1, 1], [], []>} : vector<512x8xbf16>, vector<8x8xbf16>, vector<512x8xf32> -> vector<512x8xf32>
    %122 = arith.addf %117, %121 : vector<512x8xf32>
    %c32 = arith.constant 32 : index
    %c0_79 = arith.constant 0 : index
    %123 = vector.load %arg7[%c32, %c0_79] : memref<584x8xbf16, #tpu.memory_space<vmem>>, vector<512x8xbf16>
    %c1_80 = arith.constant 1 : index
    %c0_81 = arith.constant 0 : index
    %c0_82 = arith.constant 0 : index
    %c0_83 = arith.constant 0 : index
    %124 = vector.load %arg4[%c1_80, %c0_81, %c0_82, %c0_83] : memref<3x3x8x8xbf16, #tpu.memory_space<vmem>>, vector<1x1x8x8xbf16>
    %125 = vector.shape_cast %124 : vector<1x1x8x8xbf16> to vector<8x8xbf16>
    %cst_84 = arith.constant dense<0.000000e+00> : vector<512x8xf32>
    %126 = tpu.matmul %123, %125, %cst_84 {dimension_numbers = #tpu.dot_dimension_numbers<[1], [0], [0], [1], [0, 0, 1, 1], [], []>} : vector<512x8xbf16>, vector<8x8xbf16>, vector<512x8xf32> -> vector<512x8xf32>
    %127 = arith.addf %122, %126 : vector<512x8xf32>
    %c33_85 = arith.constant 33 : index
    %c0_86 = arith.constant 0 : index
    %128 = vector.load %arg7[%c33_85, %c0_86] : memref<584x8xbf16, #tpu.memory_space<vmem>>, vector<512x8xbf16>
    %c1_87 = arith.constant 1 : index
    %c1_88 = arith.constant 1 : index
    %c0_89 = arith.constant 0 : index
    %c0_90 = arith.constant 0 : index
    %129 = vector.load %arg4[%c1_87, %c1_88, %c0_89, %c0_90] : memref<3x3x8x8xbf16, #tpu.memory_space<vmem>>, vector<1x1x8x8xbf16>
    %130 = vector.shape_cast %129 : vector<1x1x8x8xbf16> to vector<8x8xbf16>
    %cst_91 = arith.constant dense<0.000000e+00> : vector<512x8xf32>
    %131 = tpu.matmul %128, %130, %cst_91 {dimension_numbers = #tpu.dot_dimension_numbers<[1], [0], [0], [1], [0, 0, 1, 1], [], []>} : vector<512x8xbf16>, vector<8x8xbf16>, vector<512x8xf32> -> vector<512x8xf32>
    %132 = arith.addf %127, %131 : vector<512x8xf32>
    %c34 = arith.constant 34 : index
    %c0_92 = arith.constant 0 : index
    %133 = vector.load %arg7[%c34, %c0_92] : memref<584x8xbf16, #tpu.memory_space<vmem>>, vector<512x8xbf16>
    %c1_93 = arith.constant 1 : index
    %c2_94 = arith.constant 2 : index
    %c0_95 = arith.constant 0 : index
    %c0_96 = arith.constant 0 : index
    %134 = vector.load %arg4[%c1_93, %c2_94, %c0_95, %c0_96] : memref<3x3x8x8xbf16, #tpu.memory_space<vmem>>, vector<1x1x8x8xbf16>
    %135 = vector.shape_cast %134 : vector<1x1x8x8xbf16> to vector<8x8xbf16>
    %cst_97 = arith.constant dense<0.000000e+00> : vector<512x8xf32>
    %136 = tpu.matmul %133, %135, %cst_97 {dimension_numbers = #tpu.dot_dimension_numbers<[1], [0], [0], [1], [0, 0, 1, 1], [], []>} : vector<512x8xbf16>, vector<8x8xbf16>, vector<512x8xf32> -> vector<512x8xf32>
    %137 = arith.addf %132, %136 : vector<512x8xf32>
    %c64 = arith.constant 64 : index
    %c0_98 = arith.constant 0 : index
    %138 = vector.load %arg7[%c64, %c0_98] : memref<584x8xbf16, #tpu.memory_space<vmem>>, vector<512x8xbf16>
    %c2_99 = arith.constant 2 : index
    %c0_100 = arith.constant 0 : index
    %c0_101 = arith.constant 0 : index
    %c0_102 = arith.constant 0 : index
    %139 = vector.load %arg4[%c2_99, %c0_100, %c0_101, %c0_102] : memref<3x3x8x8xbf16, #tpu.memory_space<vmem>>, vector<1x1x8x8xbf16>
    %140 = vector.shape_cast %139 : vector<1x1x8x8xbf16> to vector<8x8xbf16>
    %cst_103 = arith.constant dense<0.000000e+00> : vector<512x8xf32>
    %141 = tpu.matmul %138, %140, %cst_103 {dimension_numbers = #tpu.dot_dimension_numbers<[1], [0], [0], [1], [0, 0, 1, 1], [], []>} : vector<512x8xbf16>, vector<8x8xbf16>, vector<512x8xf32> -> vector<512x8xf32>
    %142 = arith.addf %137, %141 : vector<512x8xf32>
    %c65_104 = arith.constant 65 : index
    %c0_105 = arith.constant 0 : index
    %143 = vector.load %arg7[%c65_104, %c0_105] : memref<584x8xbf16, #tpu.memory_space<vmem>>, vector<512x8xbf16>
    %c2_106 = arith.constant 2 : index
    %c1_107 = arith.constant 1 : index
    %c0_108 = arith.constant 0 : index
    %c0_109 = arith.constant 0 : index
    %144 = vector.load %arg4[%c2_106, %c1_107, %c0_108, %c0_109] : memref<3x3x8x8xbf16, #tpu.memory_space<vmem>>, vector<1x1x8x8xbf16>
    %145 = vector.shape_cast %144 : vector<1x1x8x8xbf16> to vector<8x8xbf16>
    %cst_110 = arith.constant dense<0.000000e+00> : vector<512x8xf32>
    %146 = tpu.matmul %143, %145, %cst_110 {dimension_numbers = #tpu.dot_dimension_numbers<[1], [0], [0], [1], [0, 0, 1, 1], [], []>} : vector<512x8xbf16>, vector<8x8xbf16>, vector<512x8xf32> -> vector<512x8xf32>
    %147 = arith.addf %142, %146 : vector<512x8xf32>
    %c66 = arith.constant 66 : index
    %c0_111 = arith.constant 0 : index
    %148 = vector.load %arg7[%c66, %c0_111] : memref<584x8xbf16, #tpu.memory_space<vmem>>, vector<512x8xbf16>
    %c2_112 = arith.constant 2 : index
    %c2_113 = arith.constant 2 : index
    %c0_114 = arith.constant 0 : index
    %c0_115 = arith.constant 0 : index
    %149 = vector.load %arg4[%c2_112, %c2_113, %c0_114, %c0_115] : memref<3x3x8x8xbf16, #tpu.memory_space<vmem>>, vector<1x1x8x8xbf16>
    %150 = vector.shape_cast %149 : vector<1x1x8x8xbf16> to vector<8x8xbf16>
    %cst_116 = arith.constant dense<0.000000e+00> : vector<512x8xf32>
    %151 = tpu.matmul %148, %150, %cst_116 {dimension_numbers = #tpu.dot_dimension_numbers<[1], [0], [0], [1], [0, 0, 1, 1], [], []>} : vector<512x8xbf16>, vector<8x8xbf16>, vector<512x8xf32> -> vector<512x8xf32>
    %152 = arith.addf %147, %151 : vector<512x8xf32>
    %c0_117 = arith.constant 0 : index
    %c0_118 = arith.constant 0 : index
    %153 = vector.load %arg5[%c0_117, %c0_118] : memref<1x8xf32, #tpu.memory_space<vmem>>, vector<1x8xf32>
    %154 = vector.broadcast %153 : vector<1x8xf32> to vector<512x8xf32>
    %155 = arith.addf %152, %154 : vector<512x8xf32>
    %cst_119 = arith.constant 0.000000e+00 : f32
    %156 = vector.broadcast %cst_119 : f32 to vector<512x8xf32>
    %157 = arith.maximumf %155, %156 : vector<512x8xf32>
    %158 = arith.truncf %157 : vector<512x8xf32> to vector<512x8xbf16>
    %159 = vector.shape_cast %158 : vector<512x8xbf16> to vector<16x32x8xbf16>
    %160 = vector.extract_strided_slice %159 {offsets = [0, 0, 0], sizes = [16, 16, 8], strides = [1, 1, 1]} : vector<16x32x8xbf16> to vector<16x16x8xbf16>
    %c0_120 = arith.constant 0 : index
    %c0_121 = arith.constant 0 : index
    %c0_122 = arith.constant 0 : index
    %c0_123 = arith.constant 0 : index
    %161 = vector.load %arg6[%c0_120, %c0_121, %c0_122, %c0_123] : memref<1x16x16x8xbf16, #tpu.memory_space<vmem>>, vector<1x16x16x8xbf16>
    %162 = vector.shape_cast %161 : vector<1x16x16x8xbf16> to vector<16x16x8xbf16>
    %163 = vector.shape_cast %160 : vector<16x16x8xbf16> to vector<1x16x16x8xbf16>
    tpu.vector_store %arg6[%c0_120, %c0_121, %c0_122, %c0_123], %163 {strides = array<i32>} : memref<1x16x16x8xbf16, #tpu.memory_space<vmem>>, vector<1x16x16x8xbf16>,
    return
  }
  func.func @transform_0(%arg0: i32, %arg1: i32) -> (i32, i32, i32, i32) {
    %c0_i32 = arith.constant 0 : i32
    %c0_i32_0 = arith.constant 0 : i32
    %c0_i32_1 = arith.constant 0 : i32
    %c0_i32_2 = arith.constant 0 : i32
    return %arg0, %c0_i32, %c0_i32_0, %c0_i32_1 : i32, i32, i32, i32
  }
  func.func @transform_1(%arg0: i32, %arg1: i32) -> (i32, i32, i32) {
    %c0_i32 = arith.constant 0 : i32
    %c0_i32_0 = arith.constant 0 : i32
    %c0_i32_1 = arith.constant 0 : i32
    return %arg0, %c0_i32, %c0_i32_0 : i32, i32, i32
  }
  func.func @transform_2(%arg0: i32, %arg1: i32) -> (i32, i32, i32, i32) {
    %c0_i32 = arith.constant 0 : i32
    %c0_i32_0 = arith.constant 0 : i32
    %c0_i32_1 = arith.constant 0 : i32
    %c0_i32_2 = arith.constant 0 : i32
    %c0_i32_3 = arith.constant 0 : i32
    return %c0_i32, %c0_i32_0, %c0_i32_1, %c0_i32_2 : i32, i32, i32, i32
  }
  func.func @transform_3(%arg0: i32, %arg1: i32) -> (i32, i32) {
    %c0_i32 = arith.constant 0 : i32
    %c0_i32_0 = arith.constant 0 : i32
    %c0_i32_1 = arith.constant 0 : i32
    return %c0_i32, %c0_i32_0 : i32, i32
  }
  func.func @transform_4(%arg0: i32, %arg1: i32) -> (i32, i32, i32, i32) {
    %c0_i32 = arith.constant 0 : i32
    %c0_i32_0 = arith.constant 0 : i32
    %c0_i32_1 = arith.constant 0 : i32
    return %arg0, %arg1, %c0_i32, %c0_i32_0 : i32, i32, i32, i32
  }
}

module attributes {stable_mosaic.version = 11 : i64} {
  func.func @_conv3_res_kernel(%arg0: i32, %arg1: memref<512x8xbf16, #tpu.memory_space<vmem>>, %arg2: memref<8x32xbf16, #tpu.memory_space<vmem>>, %arg3: memref<1x32xf32, #tpu.memory_space<vmem>>, %arg4: memref<512x16xbf16, #tpu.memory_space<vmem>>, %arg5: memref<16x32xbf16, #tpu.memory_space<vmem>>, %arg6: memref<1x32xf32, #tpu.memory_space<vmem>>, %arg7: memref<512x32xbf16, #tpu.memory_space<vmem>>) attributes {dimension_semantics = [#tpu.dimension_semantics<parallel>], iteration_bounds = array<i64: 1>, scalar_prefetch = 0 : i64, scratch_operands = 0 : i64, tpu.core_type = #tpu.core_type<tc>, window_params = [{transform_indices = @transform_0, window_bounds = array<i64: 512, 8>}, {pipeline_mode = #tpu.pipeline_mode<synchronous>, transform_indices = @transform_1, window_bounds = array<i64: 8, 32>}, {pipeline_mode = #tpu.pipeline_mode<synchronous>, transform_indices = @transform_2, window_bounds = array<i64: 1, 32>}, {transform_indices = @transform_3, window_bounds = array<i64: 512, 16>}, {pipeline_mode = #tpu.pipeline_mode<synchronous>, transform_indices = @transform_4, window_bounds = array<i64: 16, 32>}, {pipeline_mode = #tpu.pipeline_mode<synchronous>, transform_indices = @transform_5, window_bounds = array<i64: 1, 32>}, {transform_indices = @transform_6, window_bounds = array<i64: 512, 32>}]} {
    %c0 = arith.constant 0 : index
    %c0_0 = arith.constant 0 : index
    %0 = vector.load %arg1[%c0, %c0_0] : memref<512x8xbf16, #tpu.memory_space<vmem>>, vector<512x8xbf16>
    %c0_1 = arith.constant 0 : index
    %c0_2 = arith.constant 0 : index
    %1 = vector.load %arg2[%c0_1, %c0_2] : memref<8x32xbf16, #tpu.memory_space<vmem>>, vector<8x32xbf16>
    %cst = arith.constant dense<0.000000e+00> : vector<512x32xf32>
    %2 = tpu.matmul %0, %1, %cst {dimension_numbers = #tpu.dot_dimension_numbers<[1], [0], [0], [1], [0, 0, 1, 1], [], []>} : vector<512x8xbf16>, vector<8x32xbf16>, vector<512x32xf32> -> vector<512x32xf32>
    %c0_3 = arith.constant 0 : index
    %c0_4 = arith.constant 0 : index
    %3 = vector.load %arg3[%c0_3, %c0_4] : memref<1x32xf32, #tpu.memory_space<vmem>>, vector<1x32xf32>
    %4 = vector.broadcast %3 : vector<1x32xf32> to vector<512x32xf32>
    %5 = arith.addf %2, %4 : vector<512x32xf32>
    %c0_5 = arith.constant 0 : index
    %c0_6 = arith.constant 0 : index
    %6 = vector.load %arg4[%c0_5, %c0_6] : memref<512x16xbf16, #tpu.memory_space<vmem>>, vector<512x16xbf16>
    %c0_7 = arith.constant 0 : index
    %c0_8 = arith.constant 0 : index
    %7 = vector.load %arg5[%c0_7, %c0_8] : memref<16x32xbf16, #tpu.memory_space<vmem>>, vector<16x32xbf16>
    %cst_9 = arith.constant dense<0.000000e+00> : vector<512x32xf32>
    %8 = tpu.matmul %6, %7, %cst_9 {dimension_numbers = #tpu.dot_dimension_numbers<[1], [0], [0], [1], [0, 0, 1, 1], [], []>} : vector<512x16xbf16>, vector<16x32xbf16>, vector<512x32xf32> -> vector<512x32xf32>
    %c0_10 = arith.constant 0 : index
    %c0_11 = arith.constant 0 : index
    %9 = vector.load %arg6[%c0_10, %c0_11] : memref<1x32xf32, #tpu.memory_space<vmem>>, vector<1x32xf32>
    %10 = vector.broadcast %9 : vector<1x32xf32> to vector<512x32xf32>
    %11 = arith.addf %8, %10 : vector<512x32xf32>
    %12 = arith.addf %5, %11 : vector<512x32xf32>
    %cst_12 = arith.constant 0.000000e+00 : f32
    %13 = vector.broadcast %cst_12 : f32 to vector<512x32xf32>
    %14 = arith.maximumf %12, %13 : vector<512x32xf32>
    %15 = arith.truncf %14 : vector<512x32xf32> to vector<512x32xbf16>
    %c0_13 = arith.constant 0 : index
    %c0_14 = arith.constant 0 : index
    %16 = vector.load %arg7[%c0_13, %c0_14] : memref<512x32xbf16, #tpu.memory_space<vmem>>, vector<512x32xbf16>
    tpu.vector_store %arg7[%c0_13, %c0_14], %15 {strides = array<i32>} : memref<512x32xbf16, #tpu.memory_space<vmem>>, vector<512x32xbf16>,
    return
  }
  func.func @transform_0(%arg0: i32) -> (i32, i32) {
    %c0_i32 = arith.constant 0 : i32
    %c0_i32_0 = arith.constant 0 : i32
    return %arg0, %c0_i32 : i32, i32
  }
  func.func @transform_1(%arg0: i32) -> (i32, i32) {
    %c0_i32 = arith.constant 0 : i32
    %c0_i32_0 = arith.constant 0 : i32
    %c0_i32_1 = arith.constant 0 : i32
    return %c0_i32, %c0_i32_0 : i32, i32
  }
  func.func @transform_2(%arg0: i32) -> (i32, i32) {
    %c0_i32 = arith.constant 0 : i32
    %c0_i32_0 = arith.constant 0 : i32
    %c0_i32_1 = arith.constant 0 : i32
    return %c0_i32, %c0_i32_0 : i32, i32
  }
  func.func @transform_3(%arg0: i32) -> (i32, i32) {
    %c0_i32 = arith.constant 0 : i32
    %c0_i32_0 = arith.constant 0 : i32
    return %arg0, %c0_i32 : i32, i32
  }
  func.func @transform_4(%arg0: i32) -> (i32, i32) {
    %c0_i32 = arith.constant 0 : i32
    %c0_i32_0 = arith.constant 0 : i32
    %c0_i32_1 = arith.constant 0 : i32
    return %c0_i32, %c0_i32_0 : i32, i32
  }
  func.func @transform_5(%arg0: i32) -> (i32, i32) {
    %c0_i32 = arith.constant 0 : i32
    %c0_i32_0 = arith.constant 0 : i32
    %c0_i32_1 = arith.constant 0 : i32
    return %c0_i32, %c0_i32_0 : i32, i32
  }
  func.func @transform_6(%arg0: i32) -> (i32, i32) {
    %c0_i32 = arith.constant 0 : i32
    %c0_i32_0 = arith.constant 0 : i32
    return %arg0, %c0_i32 : i32, i32
  }
}

</mosaic_0001>

<bundles_post_ra>
// kernel: block_forward.3
= control target key start
LH: loop header
LB: loop body
LE: loop exit
PB: predicated region body
PF: predicated region fallthrough
CT: control target
= control target key end

     0   :  { %s991_s15 = smov 0   ;;  %s993_s16 = smov 0   ;;  %s1311_s0 = inlined_call_operand.vmem [shape: bf16[2,256,16], index: 0, kind: input, shape index: {}]   ;;  %s1312_s1 = inlined_call_operand.vmem [shape: bf16[16,8], index: 1, kind: input, shape index: {}]   ;;  %s1313_s2 = inlined_call_operand.vmem [shape: f32[1,8], index: 2, kind: input, shape index: {}]   ;;  %s1314_s3 = inlined_call_operand.vmem [shape: bf16[2,256,8], index: 3, kind: output, shape index: {0}]   ;;  %s1315_s4 = inlined_call_operand.vmem [shape: f32[2,1,8], index: 4, kind: output, shape index: {1}]  }
   0x1   :  { %s995_s17 = smov 0  }
   0x2 LB: > { %s27_s18 = sadd.s32 1, %s959_s16  ;;  %p802_p0 = scmp.ge.s32.totalorder %s963_s17, 1  ;;  %s963_s17 = sphi %s995_s17, %s15_s17   ;;  %s959_s16 = sphi %s993_s16, %s1317_s16   ;;  %s955_s15 = sphi %s991_s15, %s1316_s15  }
   0x3   : > { %p29_p1 = scmp.ge.s32.totalorder %s27_s18, 2  ;;  %p186_p2 = scmp.lt.s32.totalorder %s963_s17, 3 }
   0x5   : > { %s1319_s18 = smov (%p29_p1, %s27_s18), 0  ;;  %p187_p3 = pnand %p802_p0, %p186_p2 }
   0x6   : > { %p224_p4 = scmp.lt.s32.totalorder (!%p187_p3), %s955_s15, 1 }
   0x7   : > { %190 = sbr.rel (%p187_p3) target bundleno = 268 (0x10c), region = 32 }
   0xc   : > { %v911_v0 = vld [vmem:[%s1312_s1] sm:$0xff]  ;;  %s1321_s15 = smov (!%p224_p4, %s955_s15), 1  ;;  %vm371_vm0 = vcmask 130048   ;;  %vm573_vm1 = vcmask 60416   ;;  %vm612_vm2 = vcmask 64512   ;;  %vm610_vm3 = vcmask 57344  }
   0xd   : > { %427 = vmatpush.bf16.msra.mxu0 %v911_v0  ;;  %912 = vmatpush.bf16.msra.mxu1 %v911_v0  ;;  %s893_s21 = sshll.u32 %s1321_s15, 7  ;;  %v1039_v17 = vld [vmem:[%s1313_s2] ss:$0 sm:$0xff]  ;;  %s1264_s6 = scalar_lea.vmem %s1315_s4, %s1321_s15 }
   0xe   : > { %913 = vmatpush.bf16.msra.mxu2 %v911_v0  ;;  %914 = vmatpush.bf16.msra.mxu3 %v911_v0  ;;  %s231_s24 = scalar_lea.vmem %s1311_s0, %s893_s21  ;;  %s1052_s29 = scalar_lea.vmem %s1314_s3, %s893_s21 }
   0xf   : > { %v895_v1 = vld [vmem:[%s231_s24] sm:$0xff]  ;;  %v896_v5 = vld [vmem:[%s231_s24 + $0x8] sm:$0xff]  ;;  %v897_v9 = vld [vmem:[%s231_s24 + $0x10] sm:$0xff] }
  0x10   : > { %v899_v2 = vld [vmem:[%s231_s24 + $0x20] sm:$0xff]  ;;  %875 = vmatmul.msk.bf16.vlgmr.msra.gmra.mxu0 %vm371_vm0, %v895_v1  ;;  %v900_v6 = vld [vmem:[%s231_s24 + $0x28] sm:$0xff]  ;;  %v901_v10 = vld [vmem:[%s231_s24 + $0x30] sm:$0xff] }
  0x11   : > { %v903_v3 = vld [vmem:[%s231_s24 + $0x40] sm:$0xff]  ;;  %879 = vmatmul.msk.bf16.vlgmr.msra.gmra.mxu1 %vm371_vm0, %v899_v2  ;;  %v904_v7 = vld [vmem:[%s231_s24 + $0x48] sm:$0xff]  ;;  %v905_v11 = vld [vmem:[%s231_s24 + $0x50] sm:$0xff] }
  0x12   : > { %v907_v4 = vld [vmem:[%s231_s24 + $0x60] sm:$0xff]  ;;  %883 = vmatmul.msk.bf16.vlgmr.msra.gmra.mxu2 %vm371_vm0, %v903_v3  ;;  %v908_v8 = vld [vmem:[%s231_s24 + $0x68] sm:$0xff]  ;;  %v909_v12 = vld [vmem:[%s231_s24 + $0x70] sm:$0xff] }
  0x13   : > { %887 = vmatmul.msk.bf16.vlgmr.msra.gmra.mxu3 %vm371_vm0, %v907_v4  ;;  %v898_v13 = vld [vmem:[%s231_s24 + $0x18] sm:$0xff] }
  0x14   : > { %v902_v14 = vld [vmem:[%s231_s24 + $0x38] sm:$0xff] }
  0x15   : > { %v906_v15 = vld [vmem:[%s231_s24 + $0x58] sm:$0xff] }
  0x16   : > { %v910_v16 = vld [vmem:[%s231_s24 + $0x78] sm:$0xff] }
  0x20   : > { %876 = vmatmul.msk.bf16.gmra.mxu0 %vm371_vm0, %v896_v5 }
  0x21   : > { %880 = vmatmul.msk.bf16.gmra.mxu1 %vm371_vm0, %v900_v6 }
  0x22   : > { %884 = vmatmul.msk.bf16.gmra.mxu2 %vm371_vm0, %v904_v7 }
  0x23   : > { %888 = vmatmul.msk.bf16.gmra.mxu3 %vm371_vm0, %v908_v8 }
  0x30   : > { %877 = vmatmul.msk.bf16.gmra.mxu0 %vm371_vm0, %v897_v9 }
  0x31   : > { %881 = vmatmul.msk.bf16.gmra.mxu1 %vm371_vm0, %v901_v10 }
  0x32   : > { %885 = vmatmul.msk.bf16.gmra.mxu2 %vm371_vm0, %v905_v11 }
  0x33   : > { %889 = vmatmul.msk.bf16.gmra.mxu3 %vm371_vm0, %v909_v12 }
  0x40   : > { %878 = vmatmul.msk.bf16.gmra.mxu0 %vm371_vm0, %v898_v13 }
  0x41   : > { %882 = vmatmul.msk.bf16.gmra.mxu1 %vm371_vm0, %v902_v14 }
  0x42   : > { %886 = vmatmul.msk.bf16.gmra.mxu2 %vm371_vm0, %v906_v15 }
  0x43   : > { %890 = vmatmul.msk.bf16.gmra.mxu3 %vm371_vm0, %v910_v16 }
  0x8d   : > { %v429_v18 = vpop.f32.mrf.mxu0 }
  0x8e   : > { %v449_v19 = vpop.f32.mrf.mxu1  ;;  %v430_v20 = vadd.f32 %v1039_v17, %v429_v18 }
  0x8f   : > { %v450_v21 = vadd.f32 %v1039_v17, %v449_v19 }
  0x90   : > { %v1043_v22 = vmax.f32 %v430_v20, 0.0 }
  0x91   : > { %v1045_v23 = vmax.f32 %v450_v21, 0.0 }
  0x92   : > { %v541_v24 = vpack.c.bf16 %v1043_v22, %v1043_v22 }
  0x93   : > { %v549_v25 = vpack.c.bf16 %v1045_v23, %v1045_v23 }
  0x94   : > { %574 = vst.msk [vmem:[%s1052_s29] sm:$0xf] %vm573_vm1, %v541_v24 }
  0x95   : > { %v469_v26 = vpop.f32.mrf.mxu2  ;;  %v431_v27 = vpop.f32.mrf.mxu0  ;;  %582 = vst.msk [vmem:[%s1052_s29 + $0x20] sm:$0xf] %vm573_vm1, %v549_v25 }
  0x96   : > { %v451_v28 = vpop.f32.mrf.mxu1  ;;  %v470_v29 = vadd.f32 %v1039_v17, %v469_v26  ;;  %v432_v30 = vadd.f32 %v1039_v17, %v431_v27  ;;  %v489_v32 = vpop.f32.mrf.mxu3 }
  0x97   : > { %v452_v31 = vadd.f32 %v1039_v17, %v451_v28  ;;  %v490_v40 = vadd.f32 %v1039_v17, %v489_v32 }
  0x98   : > { %v1065_v33 = vmax.f32 %v470_v29, 0.0  ;;  %v1067_v34 = vmax.f32 %v432_v30, 0.0 }
  0x99   : > { %v1069_v35 = vmax.f32 %v452_v31, 0.0  ;;  %v1087_v46 = vmax.f32 %v490_v40, 0.0 }
  0x9a   : > { %v557_v36 = vpack.c.bf16 %v1065_v33, %v1065_v33  ;;  %v542_v37 = vpack.c.bf16 %v1067_v34, %v1067_v34 }
  0x9b   : > { %v550_v38 = vpack.c.bf16 %v1069_v35, %v1069_v35  ;;  %v565_v52 = vpack.c.bf16 %v1087_v46, %v1087_v46 }
  0x9c   : > { %590 = vst.msk [vmem:[%s1052_s29 + $0x40] sm:$0xf] %vm573_vm1, %v557_v36 }
  0x9d   : > { %575 = vst.msk [vmem:[%s1052_s29 + $0x4] sm:$0xf] %vm573_vm1, %v542_v37  ;;  %v471_v39 = vpop.f32.mrf.mxu2  ;;  %v434_v41 = vpop.f32.mrf.mxu0 }
  0x9e   : > { %583 = vst.msk [vmem:[%s1052_s29 + $0x24] sm:$0xf] %vm573_vm1, %v550_v38  ;;  %v454_v42 = vpop.f32.mrf.mxu1  ;;  %v472_v43 = vadd.f32 %v1039_v17, %v471_v39  ;;  %v435_v44 = vadd.f32 %v1039_v17, %v434_v41  ;;  %v491_v47 = vpop.f32.mrf.mxu3 }
  0x9f   : > { %v455_v45 = vadd.f32 %v1039_v17, %v454_v42  ;;  %v492_v49 = vadd.f32 %v1039_v17, %v491_v47  ;;  %598 = vst.msk [vmem:[%s1052_s29 + $0x60] sm:$0xf] %vm573_vm1, %v565_v52 }
  0xa0   : > { %v1089_v48 = vmax.f32 %v472_v43, 0.0  ;;  %v1092_v50 = vmax.f32 %v435_v44, 0.0 }
  0xa1   : > { %v1094_v51 = vmax.f32 %v455_v45, 0.0  ;;  %v1100_v54 = vmax.f32 %v492_v49, 0.0  ;;  %v614_v45 = vsel %vm612_vm2, %v1067_v34, 0.0  ;;  %v613_v49 = vsel %vm612_vm2, %v1043_v22, 0.0 }
  0xa2   : > { %v558_v53 = vpack.c.bf16 %v1089_v48, %v1089_v48  ;;  %v543_v55 = vpack.c.bf16 %v1092_v50, %v1092_v50 }
  0xa3   : > { %v551_v56 = vpack.c.bf16 %v1094_v51, %v1094_v51  ;;  %v566_v57 = vpack.c.bf16 %v1100_v54, %v1100_v54 }
  0xa4   : > { %591 = vst.msk [vmem:[%s1052_s29 + $0x44] sm:$0xf] %vm573_vm1, %v558_v53 }
  0xa5   : > { %576 = vst.msk [vmem:[%s1052_s29 + $0x8] sm:$0xf] %vm573_vm1, %v543_v55  ;;  %v474_v58 = vpop.f32.mrf.mxu2  ;;  %v436_v59 = vpop.f32.mrf.mxu0 }
  0xa6   : > { %584 = vst.msk [vmem:[%s1052_s29 + $0x28] sm:$0xf] %vm573_vm1, %v551_v56  ;;  %v456_v60 = vpop.f32.mrf.mxu1  ;;  %v475_v61 = vadd.f32 %v1039_v17, %v474_v58  ;;  %v437_v62 = vadd.f32 %v1039_v17, %v436_v59  ;;  %v494_v0 = vpop.f32.mrf.mxu3  ;;  %v616_v56 = vsel %vm612_vm2, %v1092_v50, 0.0 }
  0xa7   : > { %v457_v63 = vadd.f32 %v1039_v17, %v456_v60  ;;  %599 = vst.msk [vmem:[%s1052_s29 + $0x64] sm:$0xf] %vm573_vm1, %v566_v57  ;;  %v495_v13 = vadd.f32 %v1039_v17, %v494_v0  ;;  %v615_v60 = vadd.f32 %v614_v45, %v613_v49 }
  0xa8   : > { %v1121_v1 = vmax.f32 %v475_v61, 0.0  ;;  %v1123_v2 = vmax.f32 %v437_v62, 0.0 }
  0xa9   : > { %v1125_v3 = vmax.f32 %v457_v63, 0.0  ;;  %v1148_v20 = vmax.f32 %v495_v13, 0.0 }
  0xaa   : > { %v559_v4 = vpack.c.bf16 %v1121_v1, %v1121_v1  ;;  %v544_v5 = vpack.c.bf16 %v1123_v2, %v1123_v2  ;;  %v618_v62 = vsel %vm612_vm2, %v1123_v2, 0.0 }
  0xab   : > { %v552_v6 = vpack.c.bf16 %v1125_v3, %v1125_v3  ;;  %v567_v27 = vpack.c.bf16 %v1148_v20, %v1148_v20 }
  0xac   : > { %592 = vst.msk [vmem:[%s1052_s29 + $0x48] sm:$0xf] %vm573_vm1, %v559_v4  ;;  %v617_v4 = vadd.f32 %v616_v56, %v615_v60 }
  0xad   : > { %577 = vst.msk [vmem:[%s1052_s29 + $0xc] sm:$0xf] %vm573_vm1, %v544_v5  ;;  %v476_v7 = vpop.f32.mrf.mxu2  ;;  %v439_v8 = vpop.f32.mrf.mxu0 }
  0xae   : > { %585 = vst.msk [vmem:[%s1052_s29 + $0x2c] sm:$0xf] %vm573_vm1, %v552_v6  ;;  %v459_v9 = vpop.f32.mrf.mxu1  ;;  %v477_v10 = vadd.f32 %v1039_v17, %v476_v7  ;;  %v440_v11 = vadd.f32 %v1039_v17, %v439_v8  ;;  %v496_v14 = vpop.f32.mrf.mxu3  ;;  %v619_v2 = vadd.f32 %v618_v62, %v617_v4 }
  0xaf   : > { %v460_v12 = vadd.f32 %v1039_v17, %v459_v9  ;;  %v497_v16 = vadd.f32 %v1039_v17, %v496_v14  ;;  %600 = vst.msk [vmem:[%s1052_s29 + $0x68] sm:$0xf] %vm573_vm1, %v567_v27 }
  0xb0   : > { %v1143_v15 = vmax.f32 %v477_v10, 0.0  ;;  %v513_v18 = vmax.f32 %v440_v11, 0.0 }
  0xb1   : > { %v1146_v19 = vmax.f32 %v460_v12, 0.0  ;;  %v1152_v24 = vmax.f32 %v497_v16, 0.0 }
  0xb2   : > { %v560_v21 = vpack.c.bf16 %v1143_v15, %v1143_v15  ;;  %v545_v25 = vpack.c.bf16 %v513_v18, %v513_v18  ;;  %v620_v7 = vsel %vm612_vm2, %v513_v18, 0.0 }
  0xb3   : > { %v553_v26 = vpack.c.bf16 %v1146_v19, %v1146_v19  ;;  %v568_v28 = vpack.c.bf16 %v1152_v24, %v1152_v24  ;;  %v621_v14 = vadd.f32 %v620_v7, %v619_v2 }
  0xb4   : > { %593 = vst.msk [vmem:[%s1052_s29 + $0x4c] sm:$0xf] %vm573_vm1, %v560_v21 }
  0xb5   : > { %578 = vst.msk [vmem:[%s1052_s29 + $0x10] sm:$0xf] %vm573_vm1, %v545_v25  ;;  %v479_v29 = vpop.f32.mrf.mxu2  ;;  %v441_v30 = vpop.f32.mrf.mxu0 }
  0xb6   : > { %586 = vst.msk [vmem:[%s1052_s29 + $0x30] sm:$0xf] %vm573_vm1, %v553_v26  ;;  %v461_v31 = vpop.f32.mrf.mxu1  ;;  %v480_v32 = vadd.f32 %v1039_v17, %v479_v29  ;;  %v442_v36 = vadd.f32 %v1039_v17, %v441_v30  ;;  %v499_v38 = vpop.f32.mrf.mxu3 }
  0xb7   : > { %v462_v37 = vadd.f32 %v1039_v17, %v461_v31  ;;  %601 = vst.msk [vmem:[%s1052_s29 + $0x6c] sm:$0xf] %vm573_vm1, %v568_v28  ;;  %v500_v34 = vadd.f32 %v1039_v17, %v499_v38 }
  0xb8   : > { %v1171_v39 = vmax.f32 %v480_v32, 0.0  ;;  %v514_v40 = vmax.f32 %v442_v36, 0.0 }
  0xb9   : > { %v1175_v41 = vmax.f32 %v462_v37, 0.0  ;;  %v1204_v50 = vmax.f32 %v500_v34, 0.0 }
  0xba   : > { %v561_v42 = vpack.c.bf16 %v1171_v39, %v1171_v39  ;;  %v546_v43 = vpack.c.bf16 %v514_v40, %v514_v40  ;;  %v622_v12 = vsel %vm612_vm2, %v514_v40, 0.0 }
  0xbb   : > { %v554_v44 = vpack.c.bf16 %v1175_v41, %v1175_v41  ;;  %v569_v10 = vpack.c.bf16 %v1204_v50, %v1204_v50  ;;  %v623_v29 = vadd.f32 %v622_v12, %v621_v14  ;;  %v650_v14 = vsel %vm612_vm2, %v1143_v15, 0.0 }
  0xbc   : > { %594 = vst.msk [vmem:[%s1052_s29 + $0x50] sm:$0xf] %vm573_vm1, %v561_v42  ;;  %v662_v15 = vsel %vm612_vm2, %v1100_v54, 0.0 }
  0xbd   : > { %579 = vst.msk [vmem:[%s1052_s29 + $0x14] sm:$0xf] %vm573_vm1, %v546_v43  ;;  %v481_v47 = vpop.f32.mrf.mxu2  ;;  %v444_v52 = vpop.f32.mrf.mxu0 }
  0xbe   : > { %587 = vst.msk [vmem:[%s1052_s29 + $0x34] sm:$0xf] %vm573_vm1, %v554_v44  ;;  %v464_v53 = vpop.f32.mrf.mxu1  ;;  %v482_v55 = vadd.f32 %v1039_v17, %v481_v47  ;;  %v445_v57 = vadd.f32 %v1039_v17, %v444_v52  ;;  %v501_v59 = vpop.f32.mrf.mxu3  ;;  %v628_v44 = vsel %vm612_vm2, %v1045_v23, 0.0  ;;  %v630_v52 = vsel %vm612_vm2, %v1069_v35, 0.0 }
  0xbf   : > { %v465_v58 = vadd.f32 %v1039_v17, %v464_v53  ;;  %v502_v22 = vadd.f32 %v1039_v17, %v501_v59  ;;  %602 = vst.msk [vmem:[%s1052_s29 + $0x70] sm:$0xf] %vm573_vm1, %v569_v10  ;;  %v634_v35 = vsel %vm612_vm2, %v1125_v3, 0.0 }
  0xc0   : > { %v1197_v61 = vmax.f32 %v482_v55, 0.0  ;;  %v515_v63 = vmax.f32 %v445_v57, 0.0 }
  0xc1   : > { %v1202_v0 = vmax.f32 %v465_v58, 0.0  ;;  %v1208_v6 = vmax.f32 %v502_v22, 0.0  ;;  %v632_v58 = vsel %vm612_vm2, %v1094_v51, 0.0  ;;  %v638_v51 = vsel %vm612_vm2, %v1175_v41, 0.0 }
  0xc2   : > { %v562_v5 = vpack.c.bf16 %v1197_v61, %v1197_v61  ;;  %v547_v8 = vpack.c.bf16 %v515_v63, %v515_v63  ;;  %v624_v25 = vsel %vm612_vm2, %v515_v63, 0.0  ;;  %v644_v41 = vsel %vm612_vm2, %v1065_v33, 0.0 }
  0xc3   : > { %v555_v9 = vpack.c.bf16 %v1202_v0, %v1202_v0  ;;  %v570_v11 = vpack.c.bf16 %v1208_v6, %v1208_v6  ;;  %v625_v36 = vadd.f32 %v624_v25, %v623_v29  ;;  %v640_v3 = vsel %vm612_vm2, %v1202_v0, 0.0 }
  0xc4   : > { %595 = vst.msk [vmem:[%s1052_s29 + $0x54] sm:$0xf] %vm573_vm1, %v562_v5  ;;  %v636_v5 = vsel %vm612_vm2, %v1146_v19, 0.0  ;;  %v654_v33 = vsel %vm612_vm2, %v1197_v61, 0.0  ;;  %v666_v61 = vsel %vm612_vm2, %v1152_v24, 0.0 }
  0xc5   : > { %580 = vst.msk [vmem:[%s1052_s29 + $0x18] sm:$0xf] %vm573_vm1, %v547_v8  ;;  %v484_v13 = vpop.f32.mrf.mxu2  ;;  %v446_v16 = vpop.f32.mrf.mxu0 }
  0xc6   : > { %588 = vst.msk [vmem:[%s1052_s29 + $0x38] sm:$0xf] %vm573_vm1, %v555_v9  ;;  %v466_v18 = vpop.f32.mrf.mxu1  ;;  %v485_v21 = vadd.f32 %v1039_v17, %v484_v13  ;;  %v447_v26 = vadd.f32 %v1039_v17, %v446_v16  ;;  %v504_v28 = vpop.f32.mrf.mxu3  ;;  %v965_v9 = vmov 0.0   ;;  %v648_v13 = vsel %vm612_vm2, %v1121_v1, 0.0 }
  0xc7   : > { %v467_v27 = vadd.f32 %v1039_v17, %v466_v18  ;;  %603 = vst.msk [vmem:[%s1052_s29 + $0x74] sm:$0xf] %vm573_vm1, %v570_v11  ;;  %v505_v53 = vadd.f32 %v1039_v17, %v504_v28  ;;  %v646_v11 = vsel %vm612_vm2, %v1089_v48, 0.0  ;;  %v652_v18 = vsel %vm612_vm2, %v1171_v39, 0.0 }
  0xc8   : > { %v531_v30 = vmax.f32 %v485_v21, 0.0  ;;  %v516_v31 = vmax.f32 %v447_v26, 0.0  ;;  %611 = vst.msk [vmem:[%s1264_s6] sm:$0x1] %vm610_vm3, %v965_v9  ;;  %v660_v1 = vsel %vm612_vm2, %v1087_v46, 0.0  ;;  %v664_v39 = vsel %vm612_vm2, %v1148_v20, 0.0 }
  0xc9   : > { %v524_v32 = vmax.f32 %v467_v27, 0.0  ;;  %v539_v34 = vmax.f32 %v505_v53, 0.0  ;;  %v670_v46 = vsel %vm612_vm2, %v1208_v6, 0.0 }
  0xca   : > { %v563_v37 = vpack.c.bf16 %v531_v30, %v531_v30  ;;  %v548_v38 = vpack.c.bf16 %v516_v31, %v516_v31  ;;  %v626_v40 = vsel %vm612_vm2, %v516_v31, 0.0  ;;  %v656_v26 = vsel %vm612_vm2, %v531_v30, 0.0 }
  0xcb   : > { %v556_v42 = vpack.c.bf16 %v524_v32, %v524_v32  ;;  %v627_v43 = vadd.f32 %v626_v40, %v625_v36  ;;  %v571_v62 = vpack.c.bf16 %v539_v34, %v539_v34  ;;  %v642_v19 = vsel %vm612_vm2, %v524_v32, 0.0 }
  0xcc   : > { %596 = vst.msk [vmem:[%s1052_s29 + $0x58] sm:$0xf] %vm573_vm1, %v563_v37  ;;  %v668_v36 = vsel %vm612_vm2, %v1204_v50, 0.0  ;;  %v672_v54 = vsel %vm612_vm2, %v539_v34, 0.0 }
  0xcd   : > { %581 = vst.msk [vmem:[%s1052_s29 + $0x1c] sm:$0xf] %vm573_vm1, %v548_v38  ;;  %v486_v45 = vpop.f32.mrf.mxu2  ;;  %v629_v47 = vadd.f32 %v628_v44, %v627_v43 }
  0xce   : > { %589 = vst.msk [vmem:[%s1052_s29 + $0x3c] sm:$0xf] %vm573_vm1, %v556_v42  ;;  %v487_v49 = vadd.f32 %v1039_v17, %v486_v45  ;;  %v506_v55 = vpop.f32.mrf.mxu3 }
  0xcf   : > { %v631_v56 = vadd.f32 %v630_v52, %v629_v47  ;;  %v507_v23 = vadd.f32 %v1039_v17, %v506_v55  ;;  %604 = vst.msk [vmem:[%s1052_s29 + $0x78] sm:$0xf] %vm573_vm1, %v571_v62 }
  0xd0   : > { %v532_v57 = vmax.f32 %v487_v49, 0.0  ;;  %v682_v49 = vld [vmem:[%s1264_s6] sm:$0x1] }
  0xd1   : > { %v633_v59 = vadd.f32 %v632_v58, %v631_v56  ;;  %v540_v22 = vmax.f32 %v507_v23, 0.0 }
  0xd2   : > { %v564_v60 = vpack.c.bf16 %v532_v57, %v532_v57  ;;  %v658_v27 = vsel %vm612_vm2, %v532_v57, 0.0 }
  0xd3   : > { %v635_v63 = vadd.f32 %v634_v35, %v633_v59  ;;  %v572_v4 = vpack.c.bf16 %v540_v22, %v540_v22  ;;  %v674_v20 = vsel %vm612_vm2, %v540_v22, 0.0 }
  0xd4   : > { %597 = vst.msk [vmem:[%s1052_s29 + $0x5c] sm:$0xf] %vm573_vm1, %v564_v60 }
  0xd5   : > { %v637_v17 = vadd.f32 %v636_v5, %v635_v63  ;;  %605 = vst.msk [vmem:[%s1052_s29 + $0x7c] sm:$0xf] %vm573_vm1, %v572_v4 }
  0xd7   : > { %v639_v7 = vadd.f32 %v638_v51, %v637_v17 }
  0xd9   : > { %v641_v8 = vadd.f32 %v640_v3, %v639_v7 }
  0xdb   : > { %v643_v2 = vadd.f32 %v642_v19, %v641_v8 }
  0xdd   : > { %v645_v10 = vadd.f32 %v644_v41, %v643_v2 }
  0xdf   : > { %v647_v12 = vadd.f32 %v646_v11, %v645_v10 }
  0xe1   : > { %v649_v0 = vadd.f32 %v648_v13, %v647_v12 }
  0xe3   : > { %v651_v16 = vadd.f32 %v650_v14, %v649_v0 }
  0xe5   : > { %v653_v21 = vadd.f32 %v652_v18, %v651_v16 }
  0xe7   : > { %v655_v25 = vadd.f32 %v654_v33, %v653_v21 }
  0xe9   : > { %v657_v48 = vadd.f32 %v656_v26, %v655_v25 }
  0xeb   : > { %v659_v28 = vadd.f32 %v658_v27, %v657_v48 }
  0xed   : > { %v661_v29 = vadd.f32 %v660_v1, %v659_v28 }
  0xef   : > { %v663_v31 = vadd.f32 %v662_v15, %v661_v29 }
  0xf1   : > { %v665_v32 = vadd.f32 %v664_v39, %v663_v31 }
  0xf3   : > { %v667_v30 = vadd.f32 %v666_v61, %v665_v32 }
  0xf5   : > { %v669_v37 = vadd.f32 %v668_v36, %v667_v30 }
  0xf7   : > { %v671_v38 = vadd.f32 %v670_v46, %v669_v37 }
  0xf9   : > { %v673_v40 = vadd.f32 %v672_v54, %v671_v38 }
  0xfb   : > { %v675_v42 = vadd.f32 %v674_v20, %v673_v40 }
  0xfd   : > { %v676_v43 = vrot.slane %v675_v42, 4 }
  0xff   : > { %v677_v44 = vadd.f32 %v676_v43, %v675_v42 }
 0x101   : > { %v678_v45 = vrot.slane %v677_v44, 2 }
 0x103   : > { %v679_v24 = vadd.f32 %v678_v45, %v677_v44 }
 0x105   : > { %v680_v47 = vrot.slane %v679_v24, 1 }
 0x107   : > { %v681_v52 = vadd.f32 %v680_v47, %v679_v24 }
 0x109   : > { %v683_v50 = vadd.f32 %v682_v49, %v681_v52 }
 0x10b   : > { %685 = vst.msk [vmem:[%s1264_s6] sm:$0x1] %vm610_vm3, %v683_v50 }
 0x10c PF: > { %s15_s17 = sadd.s32 1, %s963_s17   ;;  %s1316_s15 = smov %s959_s16 }
 0x10d   : > { %p12_p5 = scmp.ge.s32.totalorder %s15_s17, 4   ;;  %s1317_s16 = smov %s1319_s18 }
 0x10f   :  { %14 = sbr.rel (!%p12_p5) target bundleno = 2 (0x2), region = 78 }

// kernel: block_forward.5
= control target key start
LH: loop header
LB: loop body
LE: loop exit
PB: predicated region body
PF: predicated region fallthrough
CT: control target
= control target key end

     0   :  { %vm351_vm0 = vcmask 1043456   ;;  %vm254_vm1 = vcmask 64512   ;;  %vm760_vm2 = vcmask 130048   ;;  %s2221_s0 = inlined_call_operand.vmem [shape: bf16[512,8], index: 0, kind: input, shape index: {}]   ;;  %s2222_s1 = inlined_call_operand.vmem [shape: bf16[8,32], index: 1, kind: input, shape index: {}]   ;;  %s2223_s2 = inlined_call_operand.vmem [shape: f32[1,32], index: 2, kind: input, shape index: {}]   ;;  %s2224_s3 = inlined_call_operand.vmem [shape: bf16[512,16], index: 3, kind: input, shape index: {}]   ;;  %s2225_s4 = inlined_call_operand.vmem [shape: bf16[16,32], index: 4, kind: input, shape index: {}]   ;;  %s2226_s5 = inlined_call_operand.vmem [shape: f32[1,32], index: 5, kind: input, shape index: {}]   ;;  %s2227_s6 = inlined_call_operand.hbm [shape: bf16[512,32], index: 6, kind: output, shape index: {}]  }
   0x1   :  { %v89_v0 = vld [vmem:[%s2222_s1] sm:$0xf] }
   0x2   :  { %v1689_v1 = vld [vmem:[%s2225_s4] sm:$0xff]  ;;  %v353_v2 = vsel %vm351_vm0, %v89_v0, 0 }
   0x3   :  { %v1625_v3 = vld [vmem:[%s2221_s0] sm:$0xff]  ;;  %362 = vmatpush.bf16.msra.mxu0 %v353_v2  ;;  %1690 = vmatpush.bf16.msra.mxu2 %v353_v2 }
   0x4   :  { %v1641_v4 = vld [vmem:[%s2221_s0 + $0x80] sm:$0xff]  ;;  %864 = vmatpush.bf16.msra.mxu1 %v1689_v1  ;;  %1691 = vmatpush.bf16.msra.mxu3 %v1689_v1 }
   0x5   :  { %v1657_v5 = vld [vmem:[%s2224_s3] sm:$0xff] }
   0x6   :  { %v1673_v6 = vld [vmem:[%s2224_s3 + $0x80] sm:$0xff]  ;;  %1429 = vmatmul.msk.bf16.vlgmr.msra.gmra.mxu0 %vm254_vm1, %v1625_v3  ;;  %1445 = vmatmul.msk.bf16.vlgmr.msra.gmra.mxu2 %vm254_vm1, %v1641_v4 }
   0x7   :  { %11 = vsyncpa [#allocation3], 0  ;;  %1593 = vmatmul.msk.bf16.vlgmr.msra.gmra.mxu1 %vm760_vm2, %v1657_v5  ;;  %1609 = vmatmul.msk.bf16.vlgmr.msra.gmra.mxu3 %vm760_vm2, %v1673_v6  ;;  %v1626_v7 = vld [vmem:[%s2221_s0 + $0x8] sm:$0xff]  ;;  %v1627_v11 = vld [vmem:[%s2221_s0 + $0x10] sm:$0xff]  ;;  %vm1218_vm3 = vcmask 257024   ;;  %s1289_s1 = sshll.u32 %s2227_s6, 4  ;;  %s1290_s1 = int_to_ptr.hbm [resolvable:$true] %s1289_s1 }
   0x8   :  { %v1642_v8 = vld [vmem:[%s2221_s0 + $0x88] sm:$0xff]  ;;  %v1643_v12 = vld [vmem:[%s2221_s0 + $0x90] sm:$0xff]  ;;  %v1628_v15 = vld [vmem:[%s2221_s0 + $0x18] sm:$0xff]  ;;  %s1726_s7 = smov 64   ;;  %s1727_s4 = smov 4  }
   0x9   :  { %v1658_v9 = vld [vmem:[%s2224_s3 + $0x8] sm:$0xff]  ;;  %v1659_v13 = vld [vmem:[%s2224_s3 + $0x10] sm:$0xff]  ;;  %v1644_v16 = vld [vmem:[%s2221_s0 + $0x98] sm:$0xff] }
   0xa   :  { %v1674_v10 = vld [vmem:[%s2224_s3 + $0x88] sm:$0xff]  ;;  %v1675_v14 = vld [vmem:[%s2224_s3 + $0x90] sm:$0xff]  ;;  %v1660_v17 = vld [vmem:[%s2224_s3 + $0x18] sm:$0xff] }
   0xb   :  { %v1676_v18 = vld [vmem:[%s2224_s3 + $0x98] sm:$0xff]  ;;  %v1629_v19 = vld [vmem:[%s2221_s0 + $0x20] sm:$0xff]  ;;  %v1630_v23 = vld [vmem:[%s2221_s0 + $0x28] sm:$0xff] }
   0xc   :  { %v1645_v20 = vld [vmem:[%s2221_s0 + $0xa0] sm:$0xff]  ;;  %v1646_v24 = vld [vmem:[%s2221_s0 + $0xa8] sm:$0xff]  ;;  %v1631_v27 = vld [vmem:[%s2221_s0 + $0x30] sm:$0xff] }
   0xd   :  { %v1661_v21 = vld [vmem:[%s2224_s3 + $0x20] sm:$0xff]  ;;  %v1662_v25 = vld [vmem:[%s2224_s3 + $0x28] sm:$0xff]  ;;  %v1647_v28 = vld [vmem:[%s2221_s0 + $0xb0] sm:$0xff] }
   0xe   :  { %v1677_v22 = vld [vmem:[%s2224_s3 + $0xa0] sm:$0xff]  ;;  %v1678_v26 = vld [vmem:[%s2224_s3 + $0xa8] sm:$0xff]  ;;  %v1663_v29 = vld [vmem:[%s2224_s3 + $0x30] sm:$0xff] }
   0xf   :  { %v1679_v30 = vld [vmem:[%s2224_s3 + $0xb0] sm:$0xff]  ;;  %v1632_v31 = vld [vmem:[%s2221_s0 + $0x38] sm:$0xff]  ;;  %v1900_v35 = vld [vmem:[%s2223_s2] ss:$0 sm:$0xff] }
  0x10   :  { %v1648_v32 = vld [vmem:[%s2221_s0 + $0xb8] sm:$0xff]  ;;  %v1905_v36 = vld [vmem:[%s2226_s5] ss:$0 sm:$0xff]  ;;  %v1634_v0 = vld [vmem:[%s2221_s0 + $0x48] sm:$0xff] }
  0x11   :  { %v1664_v33 = vld [vmem:[%s2224_s3 + $0x38] sm:$0xff]  ;;  %v1633_v37 = vld [vmem:[%s2221_s0 + $0x40] sm:$0xff]  ;;  %v1650_v1 = vld [vmem:[%s2221_s0 + $0xc8] sm:$0xff] }
  0x12   :  { %v1680_v34 = vld [vmem:[%s2224_s3 + $0xb8] sm:$0xff]  ;;  %v1649_v38 = vld [vmem:[%s2221_s0 + $0xc0] sm:$0xff]  ;;  %v1666_v5 = vld [vmem:[%s2224_s3 + $0x48] sm:$0xff] }
  0x13   :  { %v1665_v40 = vld [vmem:[%s2224_s3 + $0x40] sm:$0xff]  ;;  %v1682_v6 = vld [vmem:[%s2224_s3 + $0xc8] sm:$0xff] }
  0x14   :  { %v1681_v41 = vld [vmem:[%s2224_s3 + $0xc0] sm:$0xff] }
  0x16   :  { %1430 = vmatmul.msk.bf16.gmra.mxu0 %vm254_vm1, %v1626_v7  ;;  %1446 = vmatmul.msk.bf16.gmra.mxu2 %vm254_vm1, %v1642_v8 }
  0x17   :  { %1594 = vmatmul.msk.bf16.gmra.mxu1 %vm760_vm2, %v1658_v9  ;;  %1610 = vmatmul.msk.bf16.gmra.mxu3 %vm760_vm2, %v1674_v10 }
  0x26   :  { %1431 = vmatmul.msk.bf16.gmra.mxu0 %vm254_vm1, %v1627_v11  ;;  %1447 = vmatmul.msk.bf16.gmra.mxu2 %vm254_vm1, %v1643_v12 }
  0x27   :  { %1595 = vmatmul.msk.bf16.gmra.mxu1 %vm760_vm2, %v1659_v13  ;;  %1611 = vmatmul.msk.bf16.gmra.mxu3 %vm760_vm2, %v1675_v14 }
  0x36   :  { %1432 = vmatmul.msk.bf16.gmra.mxu0 %vm254_vm1, %v1628_v15  ;;  %1448 = vmatmul.msk.bf16.gmra.mxu2 %vm254_vm1, %v1644_v16 }
  0x37   :  { %1596 = vmatmul.msk.bf16.gmra.mxu1 %vm760_vm2, %v1660_v17  ;;  %1612 = vmatmul.msk.bf16.gmra.mxu3 %vm760_vm2, %v1676_v18 }
  0x46   :  { %1433 = vmatmul.msk.bf16.gmra.mxu0 %vm254_vm1, %v1629_v19  ;;  %1449 = vmatmul.msk.bf16.gmra.mxu2 %vm254_vm1, %v1645_v20 }
  0x47   :  { %1597 = vmatmul.msk.bf16.gmra.mxu1 %vm760_vm2, %v1661_v21  ;;  %1613 = vmatmul.msk.bf16.gmra.mxu3 %vm760_vm2, %v1677_v22 }
  0x56   :  { %1434 = vmatmul.msk.bf16.gmra.mxu0 %vm254_vm1, %v1630_v23  ;;  %1450 = vmatmul.msk.bf16.gmra.mxu2 %vm254_vm1, %v1646_v24 }
  0x57   :  { %1598 = vmatmul.msk.bf16.gmra.mxu1 %vm760_vm2, %v1662_v25  ;;  %1614 = vmatmul.msk.bf16.gmra.mxu3 %vm760_vm2, %v1678_v26 }
  0x66   :  { %1435 = vmatmul.msk.bf16.gmra.mxu0 %vm254_vm1, %v1631_v27  ;;  %1451 = vmatmul.msk.bf16.gmra.mxu2 %vm254_vm1, %v1647_v28 }
  0x67   :  { %1599 = vmatmul.msk.bf16.gmra.mxu1 %vm760_vm2, %v1663_v29  ;;  %1615 = vmatmul.msk.bf16.gmra.mxu3 %vm760_vm2, %v1679_v30 }
  0x76   :  { %1436 = vmatmul.msk.bf16.gmra.mxu0 %vm254_vm1, %v1632_v31  ;;  %1452 = vmatmul.msk.bf16.gmra.mxu2 %vm254_vm1, %v1648_v32  ;;  %v1635_v32 = vld [vmem:[%s2221_s0 + $0x50] sm:$0xff] }
  0x77   :  { %1600 = vmatmul.msk.bf16.gmra.mxu1 %vm760_vm2, %v1664_v33  ;;  %1616 = vmatmul.msk.bf16.gmra.mxu3 %vm760_vm2, %v1680_v34  ;;  %v1651_v33 = vld [vmem:[%s2221_s0 + $0xd0] sm:$0xff] }
  0x83   :  { %v364_v39 = vpop.f32.mrf.mxu0 }
  0x84   :  { %v365_v42 = vadd.f32 %v1900_v35, %v364_v39  ;;  %v866_v43 = vpop.f32.mrf.mxu1  ;;  %v1667_v39 = vld [vmem:[%s2224_s3 + $0x50] sm:$0xff] }
  0x85   :  { %v867_v44 = vadd.f32 %v1905_v36, %v866_v43 }
  0x86   :  { %1437 = vmatmul.msk.bf16.gmra.mxu0 %vm254_vm1, %v1633_v37  ;;  %1453 = vmatmul.msk.bf16.gmra.mxu2 %vm254_vm1, %v1649_v38 }
  0x87   :  { %v1026_v45 = vadd.f32 %v867_v44, %v365_v42  ;;  %1601 = vmatmul.msk.bf16.gmra.mxu1 %vm760_vm2, %v1665_v40  ;;  %1617 = vmatmul.msk.bf16.gmra.mxu3 %vm760_vm2, %v1681_v41  ;;  %v1683_v40 = vld [vmem:[%s2224_s3 + $0xd0] sm:$0xff] }
  0x89   :  { %v1090_v46 = vmax.f32 %v1026_v45, 0.0  ;;  %v444_v47 = vpop.f32.mrf.mxu2 }
  0x8a   :  { %v445_v48 = vadd.f32 %v1900_v35, %v444_v47  ;;  %v946_v49 = vpop.f32.mrf.mxu3 }
  0x8b   :  { %v1154_v50 = vpack.c.bf16 %v1090_v46, %v1090_v46  ;;  %v947_v51 = vadd.f32 %v1905_v36, %v946_v49  ;;  %v366_v52 = vpop.f32.mrf.mxu0 }
  0x8c   :  { %v367_v53 = vadd.f32 %v1900_v35, %v366_v52  ;;  %v868_v54 = vpop.f32.mrf.mxu1 }
  0x8d   :  { %1219 = vst.msk [vmem:[#allocation2] sm:$0xf] %vm1218_vm3, %v1154_v50  ;;  %v1058_v55 = vadd.f32 %v947_v51, %v445_v48  ;;  %v869_v56 = vadd.f32 %v1905_v36, %v868_v54 }
  0x8f   :  { %v1122_v57 = vmax.f32 %v1058_v55, 0.0  ;;  %v1027_v58 = vadd.f32 %v869_v56, %v367_v53 }
  0x91   :  { %v1186_v59 = vpack.c.bf16 %v1122_v57, %v1122_v57  ;;  %v1091_v60 = vmax.f32 %v1027_v58, 0.0  ;;  %v446_v61 = vpop.f32.mrf.mxu2 }
  0x92   :  { %v447_v62 = vadd.f32 %v1900_v35, %v446_v61  ;;  %v948_v63 = vpop.f32.mrf.mxu3 }
  0x93   :  { %1251 = vst.msk [vmem:[#allocation2 + $0x80] sm:$0xf] %vm1218_vm3, %v1186_v59  ;;  %v1155_v2 = vpack.c.bf16 %v1091_v60, %v1091_v60  ;;  %v949_v3 = vadd.f32 %v1905_v36, %v948_v63  ;;  %v369_v4 = vpop.f32.mrf.mxu0 }
  0x94   :  { %v370_v7 = vadd.f32 %v1900_v35, %v369_v4  ;;  %v871_v8 = vpop.f32.mrf.mxu1 }
  0x95   :  { %1220 = vst.msk [vmem:[#allocation2 + $0x4] sm:$0xf] %vm1218_vm3, %v1155_v2  ;;  %v1059_v9 = vadd.f32 %v949_v3, %v447_v62  ;;  %v872_v10 = vadd.f32 %v1905_v36, %v871_v8  ;;  %v1636_v2 = vld [vmem:[%s2221_s0 + $0x58] sm:$0xff] }
  0x96   :  { %1438 = vmatmul.msk.bf16.gmra.mxu0 %vm254_vm1, %v1634_v0  ;;  %1454 = vmatmul.msk.bf16.gmra.mxu2 %vm254_vm1, %v1650_v1  ;;  %v1652_v3 = vld [vmem:[%s2221_s0 + $0xd8] sm:$0xff] }
  0x97   :  { %v1123_v11 = vmax.f32 %v1059_v9, 0.0  ;;  %v1028_v12 = vadd.f32 %v872_v10, %v370_v7  ;;  %1602 = vmatmul.msk.bf16.gmra.mxu1 %vm760_vm2, %v1666_v5  ;;  %1618 = vmatmul.msk.bf16.gmra.mxu3 %vm760_vm2, %v1682_v6  ;;  %v1668_v7 = vld [vmem:[%s2224_s3 + $0x58] sm:$0xff] }
  0x98   :  { %v1684_v8 = vld [vmem:[%s2224_s3 + $0xd8] sm:$0xff] }
  0x99   :  { %v1187_v13 = vpack.c.bf16 %v1123_v11, %v1123_v11  ;;  %v1092_v14 = vmax.f32 %v1028_v12, 0.0  ;;  %v449_v15 = vpop.f32.mrf.mxu2 }
  0x9a   :  { %v450_v16 = vadd.f32 %v1900_v35, %v449_v15  ;;  %v951_v17 = vpop.f32.mrf.mxu3 }
  0x9b   :  { %1252 = vst.msk [vmem:[#allocation2 + $0x84] sm:$0xf] %vm1218_vm3, %v1187_v13  ;;  %v1156_v18 = vpack.c.bf16 %v1092_v14, %v1092_v14  ;;  %v952_v19 = vadd.f32 %v1905_v36, %v951_v17  ;;  %v371_v20 = vpop.f32.mrf.mxu0 }
  0x9c   :  { %v372_v21 = vadd.f32 %v1900_v35, %v371_v20  ;;  %v873_v22 = vpop.f32.mrf.mxu1 }
  0x9d   :  { %1221 = vst.msk [vmem:[#allocation2 + $0x8] sm:$0xf] %vm1218_vm3, %v1156_v18  ;;  %v1060_v23 = vadd.f32 %v952_v19, %v450_v16  ;;  %v874_v24 = vadd.f32 %v1905_v36, %v873_v22 }
  0x9f   :  { %v1124_v25 = vmax.f32 %v1060_v23, 0.0  ;;  %v1029_v26 = vadd.f32 %v874_v24, %v372_v21 }
  0xa1   :  { %v1188_v27 = vpack.c.bf16 %v1124_v25, %v1124_v25  ;;  %v1093_v28 = vmax.f32 %v1029_v26, 0.0  ;;  %v451_v29 = vpop.f32.mrf.mxu2 }
  0xa2   :  { %v452_v30 = vadd.f32 %v1900_v35, %v451_v29  ;;  %v953_v31 = vpop.f32.mrf.mxu3 }
  0xa3   :  { %1253 = vst.msk [vmem:[#allocation2 + $0x88] sm:$0xf] %vm1218_vm3, %v1188_v27  ;;  %v1157_v34 = vpack.c.bf16 %v1093_v28, %v1093_v28  ;;  %v954_v37 = vadd.f32 %v1905_v36, %v953_v31  ;;  %v374_v38 = vpop.f32.mrf.mxu0 }
  0xa4   :  { %v375_v41 = vadd.f32 %v1900_v35, %v374_v38  ;;  %v876_v42 = vpop.f32.mrf.mxu1 }
  0xa5   :  { %1222 = vst.msk [vmem:[#allocation2 + $0xc] sm:$0xf] %vm1218_vm3, %v1157_v34  ;;  %v1061_v43 = vadd.f32 %v954_v37, %v452_v30  ;;  %v877_v44 = vadd.f32 %v1905_v36, %v876_v42  ;;  %v1637_v34 = vld [vmem:[%s2221_s0 + $0x60] sm:$0xff] }
  0xa6   :  { %1439 = vmatmul.msk.bf16.gmra.mxu0 %vm254_vm1, %v1635_v32  ;;  %1455 = vmatmul.msk.bf16.gmra.mxu2 %vm254_vm1, %v1651_v33  ;;  %v1653_v37 = vld [vmem:[%s2221_s0 + $0xe0] sm:$0xff] }
  0xa7   :  { %v1125_v45 = vmax.f32 %v1061_v43, 0.0  ;;  %v1030_v46 = vadd.f32 %v877_v44, %v375_v41  ;;  %1603 = vmatmul.msk.bf16.gmra.mxu1 %vm760_vm2, %v1667_v39  ;;  %1619 = vmatmul.msk.bf16.gmra.mxu3 %vm760_vm2, %v1683_v40  ;;  %v1669_v41 = vld [vmem:[%s2224_s3 + $0x60] sm:$0xff] }
  0xa8   :  { %v1685_v42 = vld [vmem:[%s2224_s3 + $0xe0] sm:$0xff] }
  0xa9   :  { %v1189_v47 = vpack.c.bf16 %v1125_v45, %v1125_v45  ;;  %v1094_v48 = vmax.f32 %v1030_v46, 0.0  ;;  %v454_v49 = vpop.f32.mrf.mxu2 }
  0xaa   :  { %v455_v50 = vadd.f32 %v1900_v35, %v454_v49  ;;  %v956_v51 = vpop.f32.mrf.mxu3 }
  0xab   :  { %1254 = vst.msk [vmem:[#allocation2 + $0x8c] sm:$0xf] %vm1218_vm3, %v1189_v47  ;;  %v1158_v52 = vpack.c.bf16 %v1094_v48, %v1094_v48  ;;  %v957_v53 = vadd.f32 %v1905_v36, %v956_v51  ;;  %v376_v54 = vpop.f32.mrf.mxu0 }
  0xac   :  { %v377_v55 = vadd.f32 %v1900_v35, %v376_v54  ;;  %v878_v56 = vpop.f32.mrf.mxu1 }
  0xad   :  { %1223 = vst.msk [vmem:[#allocation2 + $0x10] sm:$0xf] %vm1218_vm3, %v1158_v52  ;;  %v1062_v57 = vadd.f32 %v957_v53, %v455_v50  ;;  %v879_v58 = vadd.f32 %v1905_v36, %v878_v56 }
  0xaf   :  { %v1126_v59 = vmax.f32 %v1062_v57, 0.0  ;;  %v1031_v60 = vadd.f32 %v879_v58, %v377_v55 }
  0xb1   :  { %v1190_v61 = vpack.c.bf16 %v1126_v59, %v1126_v59  ;;  %v1095_v62 = vmax.f32 %v1031_v60, 0.0  ;;  %v456_v63 = vpop.f32.mrf.mxu2 }
  0xb2   :  { %v457_v0 = vadd.f32 %v1900_v35, %v456_v63  ;;  %v958_v1 = vpop.f32.mrf.mxu3 }
  0xb3   :  { %1255 = vst.msk [vmem:[#allocation2 + $0x90] sm:$0xf] %vm1218_vm3, %v1190_v61  ;;  %v1159_v4 = vpack.c.bf16 %v1095_v62, %v1095_v62  ;;  %v959_v5 = vadd.f32 %v1905_v36, %v958_v1  ;;  %v379_v6 = vpop.f32.mrf.mxu0 }
  0xb4   :  { %v380_v9 = vadd.f32 %v1900_v35, %v379_v6  ;;  %v881_v10 = vpop.f32.mrf.mxu1 }
  0xb5   :  { %1224 = vst.msk [vmem:[#allocation2 + $0x14] sm:$0xf] %vm1218_vm3, %v1159_v4  ;;  %v1063_v11 = vadd.f32 %v959_v5, %v457_v0  ;;  %v882_v12 = vadd.f32 %v1905_v36, %v881_v10  ;;  %v1638_v4 = vld [vmem:[%s2221_s0 + $0x68] sm:$0xff] }
  0xb6   :  { %1440 = vmatmul.msk.bf16.gmra.mxu0 %vm254_vm1, %v1636_v2  ;;  %1456 = vmatmul.msk.bf16.gmra.mxu2 %vm254_vm1, %v1652_v3  ;;  %v1654_v5 = vld [vmem:[%s2221_s0 + $0xe8] sm:$0xff] }
  0xb7   :  { %v1127_v13 = vmax.f32 %v1063_v11, 0.0  ;;  %v1032_v14 = vadd.f32 %v882_v12, %v380_v9  ;;  %1604 = vmatmul.msk.bf16.gmra.mxu1 %vm760_vm2, %v1668_v7  ;;  %1620 = vmatmul.msk.bf16.gmra.mxu3 %vm760_vm2, %v1684_v8  ;;  %v1670_v9 = vld [vmem:[%s2224_s3 + $0x68] sm:$0xff] }
  0xb8   :  { %v1686_v10 = vld [vmem:[%s2224_s3 + $0xe8] sm:$0xff] }
  0xb9   :  { %v1191_v15 = vpack.c.bf16 %v1127_v13, %v1127_v13  ;;  %v1096_v16 = vmax.f32 %v1032_v14, 0.0  ;;  %v459_v17 = vpop.f32.mrf.mxu2 }
  0xba   :  { %v460_v18 = vadd.f32 %v1900_v35, %v459_v17  ;;  %v961_v19 = vpop.f32.mrf.mxu3 }
  0xbb   :  { %1256 = vst.msk [vmem:[#allocation2 + $0x94] sm:$0xf] %vm1218_vm3, %v1191_v15  ;;  %v1160_v20 = vpack.c.bf16 %v1096_v16, %v1096_v16  ;;  %v962_v21 = vadd.f32 %v1905_v36, %v961_v19  ;;  %v381_v22 = vpop.f32.mrf.mxu0 }
  0xbc   :  { %v382_v23 = vadd.f32 %v1900_v35, %v381_v22  ;;  %v883_v24 = vpop.f32.mrf.mxu1 }
  0xbd   :  { %1225 = vst.msk [vmem:[#allocation2 + $0x18] sm:$0xf] %vm1218_vm3, %v1160_v20  ;;  %v1064_v25 = vadd.f32 %v962_v21, %v460_v18  ;;  %v884_v26 = vadd.f32 %v1905_v36, %v883_v24 }
  0xbf   :  { %v1128_v27 = vmax.f32 %v1064_v25, 0.0  ;;  %v1033_v28 = vadd.f32 %v884_v26, %v382_v23 }
  0xc1   :  { %v1192_v29 = vpack.c.bf16 %v1128_v27, %v1128_v27  ;;  %v1097_v30 = vmax.f32 %v1033_v28, 0.0  ;;  %v461_v31 = vpop.f32.mrf.mxu2 }
  0xc2   :  { %v462_v32 = vadd.f32 %v1900_v35, %v461_v31  ;;  %v963_v33 = vpop.f32.mrf.mxu3 }
  0xc3   :  { %1257 = vst.msk [vmem:[#allocation2 + $0x98] sm:$0xf] %vm1218_vm3, %v1192_v29  ;;  %v1161_v38 = vpack.c.bf16 %v1097_v30, %v1097_v30  ;;  %v964_v39 = vadd.f32 %v1905_v36, %v963_v33  ;;  %v384_v40 = vpop.f32.mrf.mxu0 }
  0xc4   :  { %v385_v43 = vadd.f32 %v1900_v35, %v384_v40  ;;  %v886_v44 = vpop.f32.mrf.mxu1 }
  0xc5   :  { %1226 = vst.msk [vmem:[#allocation2 + $0x1c] sm:$0xf] %vm1218_vm3, %v1161_v38  ;;  %v1065_v45 = vadd.f32 %v964_v39, %v462_v32  ;;  %v887_v46 = vadd.f32 %v1905_v36, %v886_v44  ;;  %v1639_v38 = vld [vmem:[%s2221_s0 + $0x70] sm:$0xff] }
  0xc6   :  { %1441 = vmatmul.msk.bf16.gmra.mxu0 %vm254_vm1, %v1637_v34  ;;  %1457 = vmatmul.msk.bf16.gmra.mxu2 %vm254_vm1, %v1653_v37  ;;  %v1655_v39 = vld [vmem:[%s2221_s0 + $0xf0] sm:$0xff] }
  0xc7   :  { %v1129_v47 = vmax.f32 %v1065_v45, 0.0  ;;  %v1034_v48 = vadd.f32 %v887_v46, %v385_v43  ;;  %1605 = vmatmul.msk.bf16.gmra.mxu1 %vm760_vm2, %v1669_v41  ;;  %1621 = vmatmul.msk.bf16.gmra.mxu3 %vm760_vm2, %v1685_v42  ;;  %v1671_v43 = vld [vmem:[%s2224_s3 + $0x70] sm:$0xff] }
  0xc8   :  { %v1687_v44 = vld [vmem:[%s2224_s3 + $0xf0] sm:$0xff] }
  0xc9   :  { %v1193_v49 = vpack.c.bf16 %v1129_v47, %v1129_v47  ;;  %v1098_v50 = vmax.f32 %v1034_v48, 0.0  ;;  %v464_v51 = vpop.f32.mrf.mxu2 }
  0xca   :  { %v465_v52 = vadd.f32 %v1900_v35, %v464_v51  ;;  %v966_v53 = vpop.f32.mrf.mxu3 }
  0xcb   :  { %1258 = vst.msk [vmem:[#allocation2 + $0x9c] sm:$0xf] %vm1218_vm3, %v1193_v49  ;;  %v1162_v54 = vpack.c.bf16 %v1098_v50, %v1098_v50  ;;  %v967_v55 = vadd.f32 %v1905_v36, %v966_v53  ;;  %v386_v56 = vpop.f32.mrf.mxu0 }
  0xcc   :  { %v387_v57 = vadd.f32 %v1900_v35, %v386_v56  ;;  %v888_v58 = vpop.f32.mrf.mxu1 }
  0xcd   :  { %1227 = vst.msk [vmem:[#allocation2 + $0x20] sm:$0xf] %vm1218_vm3, %v1162_v54  ;;  %v1066_v59 = vadd.f32 %v967_v55, %v465_v52  ;;  %v889_v60 = vadd.f32 %v1905_v36, %v888_v58 }
  0xcf   :  { %v1130_v61 = vmax.f32 %v1066_v59, 0.0  ;;  %v1035_v62 = vadd.f32 %v889_v60, %v387_v57 }
  0xd1   :  { %v1194_v63 = vpack.c.bf16 %v1130_v61, %v1130_v61  ;;  %v1099_v0 = vmax.f32 %v1035_v62, 0.0  ;;  %v466_v1 = vpop.f32.mrf.mxu2 }
  0xd2   :  { %v467_v2 = vadd.f32 %v1900_v35, %v466_v1  ;;  %v968_v3 = vpop.f32.mrf.mxu3 }
  0xd3   :  { %1259 = vst.msk [vmem:[#allocation2 + $0xa0] sm:$0xf] %vm1218_vm3, %v1194_v63  ;;  %v1163_v6 = vpack.c.bf16 %v1099_v0, %v1099_v0  ;;  %v969_v7 = vadd.f32 %v1905_v36, %v968_v3  ;;  %v389_v8 = vpop.f32.mrf.mxu0 }
  0xd4   :  { %v390_v11 = vadd.f32 %v1900_v35, %v389_v8  ;;  %v891_v12 = vpop.f32.mrf.mxu1 }
  0xd5   :  { %1228 = vst.msk [vmem:[#allocation2 + $0x24] sm:$0xf] %vm1218_vm3, %v1163_v6  ;;  %v1067_v13 = vadd.f32 %v969_v7, %v467_v2  ;;  %v892_v14 = vadd.f32 %v1905_v36, %v891_v12  ;;  %v1640_v6 = vld [vmem:[%s2221_s0 + $0x78] sm:$0xff] }
  0xd6   :  { %1442 = vmatmul.msk.bf16.gmra.mxu0 %vm254_vm1, %v1638_v4  ;;  %1458 = vmatmul.msk.bf16.gmra.mxu2 %vm254_vm1, %v1654_v5  ;;  %v1656_v7 = vld [vmem:[%s2221_s0 + $0xf8] sm:$0xff] }
  0xd7   :  { %v1131_v15 = vmax.f32 %v1067_v13, 0.0  ;;  %v1036_v16 = vadd.f32 %v892_v14, %v390_v11  ;;  %1606 = vmatmul.msk.bf16.gmra.mxu1 %vm760_vm2, %v1670_v9  ;;  %1622 = vmatmul.msk.bf16.gmra.mxu3 %vm760_vm2, %v1686_v10  ;;  %v1672_v11 = vld [vmem:[%s2224_s3 + $0x78] sm:$0xff] }
  0xd8   :  { %v1688_v12 = vld [vmem:[%s2224_s3 + $0xf8] sm:$0xff] }
  0xd9   :  { %v1195_v17 = vpack.c.bf16 %v1131_v15, %v1131_v15  ;;  %v1100_v18 = vmax.f32 %v1036_v16, 0.0  ;;  %v469_v19 = vpop.f32.mrf.mxu2 }
  0xda   :  { %v470_v20 = vadd.f32 %v1900_v35, %v469_v19  ;;  %v971_v21 = vpop.f32.mrf.mxu3 }
  0xdb   :  { %1260 = vst.msk [vmem:[#allocation2 + $0xa4] sm:$0xf] %vm1218_vm3, %v1195_v17  ;;  %v1164_v22 = vpack.c.bf16 %v1100_v18, %v1100_v18  ;;  %v972_v23 = vadd.f32 %v1905_v36, %v971_v21  ;;  %v391_v24 = vpop.f32.mrf.mxu0 }
  0xdc   :  { %v392_v25 = vadd.f32 %v1900_v35, %v391_v24  ;;  %v893_v26 = vpop.f32.mrf.mxu1 }
  0xdd   :  { %1229 = vst.msk [vmem:[#allocation2 + $0x28] sm:$0xf] %vm1218_vm3, %v1164_v22  ;;  %v1068_v27 = vadd.f32 %v972_v23, %v470_v20  ;;  %v894_v28 = vadd.f32 %v1905_v36, %v893_v26 }
  0xdf   :  { %v1132_v29 = vmax.f32 %v1068_v27, 0.0  ;;  %v1037_v30 = vadd.f32 %v894_v28, %v392_v25 }
  0xe1   :  { %v1196_v31 = vpack.c.bf16 %v1132_v29, %v1132_v29  ;;  %v1101_v32 = vmax.f32 %v1037_v30, 0.0  ;;  %v471_v33 = vpop.f32.mrf.mxu2 }
  0xe2   :  { %v472_v34 = vadd.f32 %v1900_v35, %v471_v33  ;;  %v973_v37 = vpop.f32.mrf.mxu3 }
  0xe3   :  { %1261 = vst.msk [vmem:[#allocation2 + $0xa8] sm:$0xf] %vm1218_vm3, %v1196_v31  ;;  %v1165_v40 = vpack.c.bf16 %v1101_v32, %v1101_v32  ;;  %v974_v41 = vadd.f32 %v1905_v36, %v973_v37  ;;  %v394_v42 = vpop.f32.mrf.mxu0 }
  0xe4   :  { %v395_v45 = vadd.f32 %v1900_v35, %v394_v42  ;;  %v896_v46 = vpop.f32.mrf.mxu1 }
  0xe5   :  { %1230 = vst.msk [vmem:[#allocation2 + $0x2c] sm:$0xf] %vm1218_vm3, %v1165_v40  ;;  %v1069_v47 = vadd.f32 %v974_v41, %v472_v34  ;;  %v897_v48 = vadd.f32 %v1905_v36, %v896_v46 }
  0xe6   :  { %1443 = vmatmul.msk.bf16.gmra.mxu0 %vm254_vm1, %v1639_v38  ;;  %1459 = vmatmul.msk.bf16.gmra.mxu2 %vm254_vm1, %v1655_v39 }
  0xe7   :  { %v1133_v49 = vmax.f32 %v1069_v47, 0.0  ;;  %v1038_v50 = vadd.f32 %v897_v48, %v395_v45  ;;  %1607 = vmatmul.msk.bf16.gmra.mxu1 %vm760_vm2, %v1671_v43  ;;  %1623 = vmatmul.msk.bf16.gmra.mxu3 %vm760_vm2, %v1687_v44 }
  0xe9   :  { %v1197_v51 = vpack.c.bf16 %v1133_v49, %v1133_v49  ;;  %v1102_v52 = vmax.f32 %v1038_v50, 0.0  ;;  %v474_v53 = vpop.f32.mrf.mxu2 }
  0xea   :  { %v475_v54 = vadd.f32 %v1900_v35, %v474_v53  ;;  %v976_v55 = vpop.f32.mrf.mxu3 }
  0xeb   :  { %1262 = vst.msk [vmem:[#allocation2 + $0xac] sm:$0xf] %vm1218_vm3, %v1197_v51  ;;  %v1166_v56 = vpack.c.bf16 %v1102_v52, %v1102_v52  ;;  %v977_v57 = vadd.f32 %v1905_v36, %v976_v55  ;;  %v396_v58 = vpop.f32.mrf.mxu0 }
  0xec   :  { %v397_v59 = vadd.f32 %v1900_v35, %v396_v58  ;;  %v898_v60 = vpop.f32.mrf.mxu1 }
  0xed   :  { %1231 = vst.msk [vmem:[#allocation2 + $0x30] sm:$0xf] %vm1218_vm3, %v1166_v56  ;;  %v1070_v61 = vadd.f32 %v977_v57, %v475_v54  ;;  %v899_v62 = vadd.f32 %v1905_v36, %v898_v60 }
  0xef   :  { %v1134_v63 = vmax.f32 %v1070_v61, 0.0  ;;  %v1039_v0 = vadd.f32 %v899_v62, %v397_v59 }
  0xf1   :  { %v1198_v1 = vpack.c.bf16 %v1134_v63, %v1134_v63  ;;  %v1103_v2 = vmax.f32 %v1039_v0, 0.0  ;;  %v476_v3 = vpop.f32.mrf.mxu2 }
  0xf2   :  { %v477_v4 = vadd.f32 %v1900_v35, %v476_v3  ;;  %v978_v5 = vpop.f32.mrf.mxu3 }
  0xf3   :  { %1263 = vst.msk [vmem:[#allocation2 + $0xb0] sm:$0xf] %vm1218_vm3, %v1198_v1  ;;  %v1167_v8 = vpack.c.bf16 %v1103_v2, %v1103_v2  ;;  %v979_v9 = vadd.f32 %v1905_v36, %v978_v5  ;;  %v399_v10 = vpop.f32.mrf.mxu0 }
  0xf4   :  { %v400_v13 = vadd.f32 %v1900_v35, %v399_v10  ;;  %v901_v14 = vpop.f32.mrf.mxu1 }
  0xf5   :  { %1232 = vst.msk [vmem:[#allocation2 + $0x34] sm:$0xf] %vm1218_vm3, %v1167_v8  ;;  %v1071_v15 = vadd.f32 %v979_v9, %v477_v4  ;;  %v902_v16 = vadd.f32 %v1905_v36, %v901_v14 }
  0xf6   :  { %1444 = vmatmul.msk.bf16.gmra.mxu0 %vm254_vm1, %v1640_v6  ;;  %1460 = vmatmul.msk.bf16.gmra.mxu2 %vm254_vm1, %v1656_v7 }
  0xf7   :  { %v1135_v17 = vmax.f32 %v1071_v15, 0.0  ;;  %v1040_v18 = vadd.f32 %v902_v16, %v400_v13  ;;  %1608 = vmatmul.msk.bf16.gmra.mxu1 %vm760_vm2, %v1672_v11  ;;  %1624 = vmatmul.msk.bf16.gmra.mxu3 %vm760_vm2, %v1688_v12 }
  0xf9   :  { %v1199_v19 = vpack.c.bf16 %v1135_v17, %v1135_v17  ;;  %v1104_v20 = vmax.f32 %v1040_v18, 0.0  ;;  %v479_v21 = vpop.f32.mrf.mxu2 }
  0xfa   :  { %v480_v22 = vadd.f32 %v1900_v35, %v479_v21  ;;  %v981_v23 = vpop.f32.mrf.mxu3 }
  0xfb   :  { %1264 = vst.msk [vmem:[#allocation2 + $0xb4] sm:$0xf] %vm1218_vm3, %v1199_v19  ;;  %v1168_v24 = vpack.c.bf16 %v1104_v20, %v1104_v20  ;;  %v982_v25 = vadd.f32 %v1905_v36, %v981_v23  ;;  %v401_v26 = vpop.f32.mrf.mxu0 }
  0xfc   :  { %v402_v27 = vadd.f32 %v1900_v35, %v401_v26  ;;  %v903_v28 = vpop.f32.mrf.mxu1 }
  0xfd   :  { %1233 = vst.msk [vmem:[#allocation2 + $0x38] sm:$0xf] %vm1218_vm3, %v1168_v24  ;;  %v1072_v29 = vadd.f32 %v982_v25, %v480_v22  ;;  %v904_v30 = vadd.f32 %v1905_v36, %v903_v28 }
  0xff   :  { %v1136_v31 = vmax.f32 %v1072_v29, 0.0  ;;  %v1041_v32 = vadd.f32 %v904_v30, %v402_v27 }
 0x101   :  { %v1200_v33 = vpack.c.bf16 %v1136_v31, %v1136_v31  ;;  %v1105_v34 = vmax.f32 %v1041_v32, 0.0  ;;  %v481_v37 = vpop.f32.mrf.mxu2 }
 0x102   :  { %v482_v38 = vadd.f32 %v1900_v35, %v481_v37  ;;  %v983_v39 = vpop.f32.mrf.mxu3 }
 0x103   :  { %1265 = vst.msk [vmem:[#allocation2 + $0xb8] sm:$0xf] %vm1218_vm3, %v1200_v33  ;;  %v1169_v40 = vpack.c.bf16 %v1105_v34, %v1105_v34  ;;  %v984_v41 = vadd.f32 %v1905_v36, %v983_v39  ;;  %v404_v42 = vpop.f32.mrf.mxu0 }
 0x104   :  { %v405_v43 = vadd.f32 %v1900_v35, %v404_v42  ;;  %v906_v44 = vpop.f32.mrf.mxu1 }
 0x105   :  { %1234 = vst.msk [vmem:[#allocation2 + $0x3c] sm:$0xf] %vm1218_vm3, %v1169_v40  ;;  %v1073_v45 = vadd.f32 %v984_v41, %v482_v38  ;;  %v907_v46 = vadd.f32 %v1905_v36, %v906_v44 }
 0x107   :  { %v1137_v47 = vmax.f32 %v1073_v45, 0.0  ;;  %v1042_v48 = vadd.f32 %v907_v46, %v405_v43 }
 0x109   :  { %v1201_v49 = vpack.c.bf16 %v1137_v47, %v1137_v47  ;;  %v1106_v50 = vmax.f32 %v1042_v48, 0.0  ;;  %v484_v51 = vpop.f32.mrf.mxu2 }
 0x10a   :  { %v485_v52 = vadd.f32 %v1900_v35, %v484_v51  ;;  %v986_v53 = vpop.f32.mrf.mxu3 }
 0x10b   :  { %1266 = vst.msk [vmem:[#allocation2 + $0xbc] sm:$0xf] %vm1218_vm3, %v1201_v49  ;;  %v1170_v54 = vpack.c.bf16 %v1106_v50, %v1106_v50  ;;  %v987_v55 = vadd.f32 %v1905_v36, %v986_v53  ;;  %v406_v56 = vpop.f32.mrf.mxu0 }
 0x10c   :  { %v407_v57 = vadd.f32 %v1900_v35, %v406_v56  ;;  %v908_v58 = vpop.f32.mrf.mxu1 }
 0x10d   :  { %1235 = vst.msk [vmem:[#allocation2 + $0x40] sm:$0xf] %vm1218_vm3, %v1170_v54  ;;  %v1074_v59 = vadd.f32 %v987_v55, %v485_v52  ;;  %v909_v60 = vadd.f32 %v1905_v36, %v908_v58 }
 0x10f   :  { %v1138_v61 = vmax.f32 %v1074_v59, 0.0  ;;  %v1043_v62 = vadd.f32 %v909_v60, %v407_v57 }
 0x111   :  { %v1202_v63 = vpack.c.bf16 %v1138_v61, %v1138_v61  ;;  %v1107_v0 = vmax.f32 %v1043_v62, 0.0  ;;  %v486_v1 = vpop.f32.mrf.mxu2 }
 0x112   :  { %v487_v2 = vadd.f32 %v1900_v35, %v486_v1  ;;  %v988_v3 = vpop.f32.mrf.mxu3 }
 0x113   :  { %1267 = vst.msk [vmem:[#allocation2 + $0xc0] sm:$0xf] %vm1218_vm3, %v1202_v63  ;;  %v1171_v4 = vpack.c.bf16 %v1107_v0, %v1107_v0  ;;  %v989_v5 = vadd.f32 %v1905_v36, %v988_v3  ;;  %v409_v6 = vpop.f32.mrf.mxu0 }
 0x114   :  { %v410_v7 = vadd.f32 %v1900_v35, %v409_v6  ;;  %v911_v8 = vpop.f32.mrf.mxu1 }
 0x115   :  { %1236 = vst.msk [vmem:[#allocation2 + $0x44] sm:$0xf] %vm1218_vm3, %v1171_v4  ;;  %v1075_v9 = vadd.f32 %v989_v5, %v487_v2  ;;  %v912_v10 = vadd.f32 %v1905_v36, %v911_v8 }
 0x117   :  { %v1139_v11 = vmax.f32 %v1075_v9, 0.0  ;;  %v1044_v12 = vadd.f32 %v912_v10, %v410_v7 }
 0x119   :  { %v1203_v13 = vpack.c.bf16 %v1139_v11, %v1139_v11  ;;  %v1108_v14 = vmax.f32 %v1044_v12, 0.0  ;;  %v489_v15 = vpop.f32.mrf.mxu2 }
 0x11a   :  { %v490_v16 = vadd.f32 %v1900_v35, %v489_v15  ;;  %v991_v17 = vpop.f32.mrf.mxu3 }
 0x11b   :  { %1268 = vst.msk [vmem:[#allocation2 + $0xc4] sm:$0xf] %vm1218_vm3, %v1203_v13  ;;  %v1172_v18 = vpack.c.bf16 %v1108_v14, %v1108_v14  ;;  %v992_v19 = vadd.f32 %v1905_v36, %v991_v17  ;;  %v411_v20 = vpop.f32.mrf.mxu0 }
 0x11c   :  { %v412_v21 = vadd.f32 %v1900_v35, %v411_v20  ;;  %v913_v22 = vpop.f32.mrf.mxu1 }
 0x11d   :  { %1237 = vst.msk [vmem:[#allocation2 + $0x48] sm:$0xf] %vm1218_vm3, %v1172_v18  ;;  %v1076_v23 = vadd.f32 %v992_v19, %v490_v16  ;;  %v914_v24 = vadd.f32 %v1905_v36, %v913_v22 }
 0x11f   :  { %v1140_v25 = vmax.f32 %v1076_v23, 0.0  ;;  %v1045_v26 = vadd.f32 %v914_v24, %v412_v21 }
 0x121   :  { %v1204_v27 = vpack.c.bf16 %v1140_v25, %v1140_v25  ;;  %v1109_v28 = vmax.f32 %v1045_v26, 0.0  ;;  %v491_v29 = vpop.f32.mrf.mxu2 }
 0x122   :  { %v492_v30 = vadd.f32 %v1900_v35, %v491_v29  ;;  %v993_v31 = vpop.f32.mrf.mxu3 }
 0x123   :  { %1269 = vst.msk [vmem:[#allocation2 + $0xc8] sm:$0xf] %vm1218_vm3, %v1204_v27  ;;  %v1173_v32 = vpack.c.bf16 %v1109_v28, %v1109_v28  ;;  %v994_v33 = vadd.f32 %v1905_v36, %v993_v31  ;;  %v414_v34 = vpop.f32.mrf.mxu0 }
 0x124   :  { %v415_v37 = vadd.f32 %v1900_v35, %v414_v34  ;;  %v916_v38 = vpop.f32.mrf.mxu1 }
 0x125   :  { %1238 = vst.msk [vmem:[#allocation2 + $0x4c] sm:$0xf] %vm1218_vm3, %v1173_v32  ;;  %v1077_v39 = vadd.f32 %v994_v33, %v492_v30  ;;  %v917_v40 = vadd.f32 %v1905_v36, %v916_v38 }
 0x127   :  { %v1141_v41 = vmax.f32 %v1077_v39, 0.0  ;;  %v1046_v42 = vadd.f32 %v917_v40, %v415_v37 }
 0x129   :  { %v1205_v43 = vpack.c.bf16 %v1141_v41, %v1141_v41  ;;  %v1110_v44 = vmax.f32 %v1046_v42, 0.0  ;;  %v494_v45 = vpop.f32.mrf.mxu2 }
 0x12a   :  { %v495_v46 = vadd.f32 %v1900_v35, %v494_v45  ;;  %v996_v47 = vpop.f32.mrf.mxu3 }
 0x12b   :  { %1270 = vst.msk [vmem:[#allocation2 + $0xcc] sm:$0xf] %vm1218_vm3, %v1205_v43  ;;  %v1174_v48 = vpack.c.bf16 %v1110_v44, %v1110_v44  ;;  %v997_v49 = vadd.f32 %v1905_v36, %v996_v47  ;;  %v416_v50 = vpop.f32.mrf.mxu0 }
 0x12c   :  { %v417_v51 = vadd.f32 %v1900_v35, %v416_v50  ;;  %v918_v52 = vpop.f32.mrf.mxu1 }
 0x12d   :  { %1239 = vst.msk [vmem:[#allocation2 + $0x50] sm:$0xf] %vm1218_vm3, %v1174_v48  ;;  %v1078_v53 = vadd.f32 %v997_v49, %v495_v46  ;;  %v919_v54 = vadd.f32 %v1905_v36, %v918_v52 }
 0x12f   :  { %v1142_v55 = vmax.f32 %v1078_v53, 0.0  ;;  %v1047_v56 = vadd.f32 %v919_v54, %v417_v51 }
 0x131   :  { %v1206_v57 = vpack.c.bf16 %v1142_v55, %v1142_v55  ;;  %v1111_v58 = vmax.f32 %v1047_v56, 0.0  ;;  %v496_v59 = vpop.f32.mrf.mxu2 }
 0x132   :  { %v497_v60 = vadd.f32 %v1900_v35, %v496_v59  ;;  %v998_v61 = vpop.f32.mrf.mxu3 }
 0x133   :  { %1271 = vst.msk [vmem:[#allocation2 + $0xd0] sm:$0xf] %vm1218_vm3, %v1206_v57  ;;  %v1175_v62 = vpack.c.bf16 %v1111_v58, %v1111_v58  ;;  %v999_v63 = vadd.f32 %v1905_v36, %v998_v61  ;;  %v419_v0 = vpop.f32.mrf.mxu0 }
 0x134   :  { %v420_v1 = vadd.f32 %v1900_v35, %v419_v0  ;;  %v921_v2 = vpop.f32.mrf.mxu1 }
 0x135   :  { %1240 = vst.msk [vmem:[#allocation2 + $0x54] sm:$0xf] %vm1218_vm3, %v1175_v62  ;;  %v1079_v3 = vadd.f32 %v999_v63, %v497_v60  ;;  %v922_v4 = vadd.f32 %v1905_v36, %v921_v2 }
 0x137   :  { %v1143_v5 = vmax.f32 %v1079_v3, 0.0  ;;  %v1048_v6 = vadd.f32 %v922_v4, %v420_v1 }
 0x139   :  { %v1207_v7 = vpack.c.bf16 %v1143_v5, %v1143_v5  ;;  %v1112_v8 = vmax.f32 %v1048_v6, 0.0  ;;  %v499_v9 = vpop.f32.mrf.mxu2 }
 0x13a   :  { %v500_v10 = vadd.f32 %v1900_v35, %v499_v9  ;;  %v1001_v11 = vpop.f32.mrf.mxu3 }
 0x13b   :  { %1272 = vst.msk [vmem:[#allocation2 + $0xd4] sm:$0xf] %vm1218_vm3, %v1207_v7  ;;  %v1176_v12 = vpack.c.bf16 %v1112_v8, %v1112_v8  ;;  %v1002_v13 = vadd.f32 %v1905_v36, %v1001_v11  ;;  %v421_v14 = vpop.f32.mrf.mxu0 }
 0x13c   :  { %v422_v15 = vadd.f32 %v1900_v35, %v421_v14  ;;  %v923_v16 = vpop.f32.mrf.mxu1 }
 0x13d   :  { %1241 = vst.msk [vmem:[#allocation2 + $0x58] sm:$0xf] %vm1218_vm3, %v1176_v12  ;;  %v1080_v17 = vadd.f32 %v1002_v13, %v500_v10  ;;  %v924_v18 = vadd.f32 %v1905_v36, %v923_v16 }
 0x13f   :  { %v1144_v19 = vmax.f32 %v1080_v17, 0.0  ;;  %v1049_v20 = vadd.f32 %v924_v18, %v422_v15 }
 0x141   :  { %v1208_v21 = vpack.c.bf16 %v1144_v19, %v1144_v19  ;;  %v1113_v22 = vmax.f32 %v1049_v20, 0.0  ;;  %v501_v23 = vpop.f32.mrf.mxu2 }
 0x142   :  { %v502_v24 = vadd.f32 %v1900_v35, %v501_v23  ;;  %v1003_v25 = vpop.f32.mrf.mxu3 }
 0x143   :  { %1273 = vst.msk [vmem:[#allocation2 + $0xd8] sm:$0xf] %vm1218_vm3, %v1208_v21  ;;  %v1177_v26 = vpack.c.bf16 %v1113_v22, %v1113_v22  ;;  %v1004_v27 = vadd.f32 %v1905_v36, %v1003_v25  ;;  %v424_v28 = vpop.f32.mrf.mxu0 }
 0x144   :  { %v425_v29 = vadd.f32 %v1900_v35, %v424_v28  ;;  %v926_v30 = vpop.f32.mrf.mxu1 }
 0x145   :  { %1242 = vst.msk [vmem:[#allocation2 + $0x5c] sm:$0xf] %vm1218_vm3, %v1177_v26  ;;  %v1081_v31 = vadd.f32 %v1004_v27, %v502_v24  ;;  %v927_v32 = vadd.f32 %v1905_v36, %v926_v30  ;;  %v1697_v26 = vld [vmem:[%s2226_s5] ss:$0 sm:$0xff] }
 0x147   :  { %v1145_v33 = vmax.f32 %v1081_v31, 0.0  ;;  %v1050_v34 = vadd.f32 %v927_v32, %v425_v29 }
 0x149   :  { %v1209_v37 = vpack.c.bf16 %v1145_v33, %v1145_v33  ;;  %v1114_v38 = vmax.f32 %v1050_v34, 0.0  ;;  %v504_v39 = vpop.f32.mrf.mxu2 }
 0x14a   :  { %v505_v40 = vadd.f32 %v1900_v35, %v504_v39  ;;  %v1006_v41 = vpop.f32.mrf.mxu3 }
 0x14b   :  { %1274 = vst.msk [vmem:[#allocation2 + $0xdc] sm:$0xf] %vm1218_vm3, %v1209_v37  ;;  %v1178_v42 = vpack.c.bf16 %v1114_v38, %v1114_v38  ;;  %v1007_v43 = vadd.f32 %v1905_v36, %v1006_v41  ;;  %v426_v44 = vpop.f32.mrf.mxu0 }
 0x14c   :  { %v427_v45 = vadd.f32 %v1900_v35, %v426_v44  ;;  %v928_v46 = vpop.f32.mrf.mxu1 }
 0x14d   :  { %1243 = vst.msk [vmem:[#allocation2 + $0x60] sm:$0xf] %vm1218_vm3, %v1178_v42  ;;  %v1082_v47 = vadd.f32 %v1007_v43, %v505_v40  ;;  %v929_v48 = vadd.f32 %v1905_v36, %v928_v46 }
 0x14f   :  { %v1146_v49 = vmax.f32 %v1082_v47, 0.0  ;;  %v1051_v50 = vadd.f32 %v929_v48, %v427_v45 }
 0x151   :  { %v1210_v51 = vpack.c.bf16 %v1146_v49, %v1146_v49  ;;  %v1115_v52 = vmax.f32 %v1051_v50, 0.0  ;;  %v506_v53 = vpop.f32.mrf.mxu2 }
 0x152   :  { %v507_v54 = vadd.f32 %v1900_v35, %v506_v53  ;;  %v1008_v55 = vpop.f32.mrf.mxu3 }
 0x153   :  { %1275 = vst.msk [vmem:[#allocation2 + $0xe0] sm:$0xf] %vm1218_vm3, %v1210_v51  ;;  %v1179_v56 = vpack.c.bf16 %v1115_v52, %v1115_v52  ;;  %v1009_v57 = vadd.f32 %v1905_v36, %v1008_v55  ;;  %v429_v58 = vpop.f32.mrf.mxu0 }
 0x154   :  { %v430_v59 = vadd.f32 %v1900_v35, %v429_v58  ;;  %v931_v60 = vpop.f32.mrf.mxu1 }
 0x155   :  { %1244 = vst.msk [vmem:[#allocation2 + $0x64] sm:$0xf] %vm1218_vm3, %v1179_v56  ;;  %v1083_v61 = vadd.f32 %v1009_v57, %v507_v54  ;;  %v932_v62 = vadd.f32 %v1905_v36, %v931_v60 }
 0x157   :  { %v1147_v63 = vmax.f32 %v1083_v61, 0.0  ;;  %v1052_v0 = vadd.f32 %v932_v62, %v430_v59 }
 0x159   :  { %v1211_v1 = vpack.c.bf16 %v1147_v63, %v1147_v63  ;;  %v1116_v2 = vmax.f32 %v1052_v0, 0.0  ;;  %v509_v3 = vpop.f32.mrf.mxu2 }
 0x15a   :  { %v510_v4 = vadd.f32 %v1900_v35, %v509_v3  ;;  %v1011_v5 = vpop.f32.mrf.mxu3 }
 0x15b   :  { %1276 = vst.msk [vmem:[#allocation2 + $0xe4] sm:$0xf] %vm1218_vm3, %v1211_v1  ;;  %v1180_v6 = vpack.c.bf16 %v1116_v2, %v1116_v2  ;;  %v1012_v7 = vadd.f32 %v1905_v36, %v1011_v5  ;;  %v431_v8 = vpop.f32.mrf.mxu0 }
 0x15c   :  { %v432_v9 = vadd.f32 %v1900_v35, %v431_v8  ;;  %v933_v10 = vpop.f32.mrf.mxu1 }
 0x15d   :  { %1245 = vst.msk [vmem:[#allocation2 + $0x68] sm:$0xf] %vm1218_vm3, %v1180_v6  ;;  %v1084_v11 = vadd.f32 %v1012_v7, %v510_v4  ;;  %v934_v12 = vadd.f32 %v1905_v36, %v933_v10 }
 0x15f   :  { %v1148_v13 = vmax.f32 %v1084_v11, 0.0  ;;  %v1053_v14 = vadd.f32 %v934_v12, %v432_v9 }
 0x161   :  { %v1212_v15 = vpack.c.bf16 %v1148_v13, %v1148_v13  ;;  %v1117_v16 = vmax.f32 %v1053_v14, 0.0  ;;  %v511_v17 = vpop.f32.mrf.mxu2 }
 0x162   :  { %v512_v18 = vadd.f32 %v1900_v35, %v511_v17  ;;  %v1013_v19 = vpop.f32.mrf.mxu3 }
 0x163   :  { %1277 = vst.msk [vmem:[#allocation2 + $0xe8] sm:$0xf] %vm1218_vm3, %v1212_v15  ;;  %v1181_v20 = vpack.c.bf16 %v1117_v16, %v1117_v16  ;;  %v1014_v21 = vadd.f32 %v1905_v36, %v1013_v19  ;;  %v434_v22 = vpop.f32.mrf.mxu0  ;;  %v1698_v36 = vld [vmem:[%s2223_s2] ss:$0 sm:$0xff]  ;;  %s1725_s2 = smov [#allocation2]  }
 0x164   :  { %v435_v23 = vadd.f32 %v1900_v35, %v434_v22  ;;  %v936_v24 = vpop.f32.mrf.mxu1  ;;  %s1287_s5 = sshll.u32 %s1725_s2, 4  ;;  %s1288_s5 = int_to_ptr.vmem [resolvable:$true] %s1287_s5 }
 0x165   :  { %1246 = vst.msk [vmem:[#allocation2 + $0x6c] sm:$0xf] %vm1218_vm3, %v1181_v20  ;;  %v1085_v25 = vadd.f32 %v1014_v21, %v512_v18  ;;  %v937_v27 = vadd.f32 %v1697_v26, %v936_v24 }
 0x167   :  { %v1149_v28 = vmax.f32 %v1085_v25, 0.0  ;;  %v1054_v29 = vadd.f32 %v937_v27, %v435_v23 }
 0x169   :  { %v1213_v30 = vpack.c.bf16 %v1149_v28, %v1149_v28  ;;  %v1118_v31 = vmax.f32 %v1054_v29, 0.0  ;;  %v514_v32 = vpop.f32.mrf.mxu2 }
 0x16a   :  { %v515_v33 = vadd.f32 %v1698_v36, %v514_v32  ;;  %v1016_v35 = vpop.f32.mrf.mxu3 }
 0x16b   :  { %1278 = vst.msk [vmem:[#allocation2 + $0xec] sm:$0xf] %vm1218_vm3, %v1213_v30  ;;  %v1182_v34 = vpack.c.bf16 %v1118_v31, %v1118_v31  ;;  %v1017_v37 = vadd.f32 %v1697_v26, %v1016_v35  ;;  %v436_v38 = vpop.f32.mrf.mxu0 }
 0x16c   :  { %v437_v39 = vadd.f32 %v1698_v36, %v436_v38  ;;  %v938_v40 = vpop.f32.mrf.mxu1 }
 0x16d   :  { %1247 = vst.msk [vmem:[#allocation2 + $0x70] sm:$0xf] %vm1218_vm3, %v1182_v34  ;;  %v1086_v41 = vadd.f32 %v1017_v37, %v515_v33  ;;  %v939_v42 = vadd.f32 %v1697_v26, %v938_v40 }
 0x16f   :  { %v1150_v43 = vmax.f32 %v1086_v41, 0.0  ;;  %v1055_v44 = vadd.f32 %v939_v42, %v437_v39 }
 0x171   :  { %v1214_v45 = vpack.c.bf16 %v1150_v43, %v1150_v43  ;;  %v1119_v46 = vmax.f32 %v1055_v44, 0.0  ;;  %v516_v47 = vpop.f32.mrf.mxu2 }
 0x172   :  { %v517_v48 = vadd.f32 %v1698_v36, %v516_v47  ;;  %v1018_v49 = vpop.f32.mrf.mxu3 }
 0x173   :  { %1279 = vst.msk [vmem:[#allocation2 + $0xf0] sm:$0xf] %vm1218_vm3, %v1214_v45  ;;  %v1183_v50 = vpack.c.bf16 %v1119_v46, %v1119_v46  ;;  %v1019_v51 = vadd.f32 %v1697_v26, %v1018_v49  ;;  %v439_v52 = vpop.f32.mrf.mxu0 }
 0x174   :  { %v440_v53 = vadd.f32 %v1698_v36, %v439_v52  ;;  %v941_v54 = vpop.f32.mrf.mxu1 }
 0x175   :  { %1248 = vst.msk [vmem:[#allocation2 + $0x74] sm:$0xf] %vm1218_vm3, %v1183_v50  ;;  %v1087_v55 = vadd.f32 %v1019_v51, %v517_v48  ;;  %v942_v56 = vadd.f32 %v1697_v26, %v941_v54 }
 0x177   :  { %v1151_v57 = vmax.f32 %v1087_v55, 0.0  ;;  %v1056_v58 = vadd.f32 %v942_v56, %v440_v53 }
 0x179   :  { %v1215_v59 = vpack.c.bf16 %v1151_v57, %v1151_v57  ;;  %v1120_v60 = vmax.f32 %v1056_v58, 0.0  ;;  %v519_v61 = vpop.f32.mrf.mxu2 }
 0x17a   :  { %v520_v62 = vadd.f32 %v1698_v36, %v519_v61  ;;  %v1021_v63 = vpop.f32.mrf.mxu3 }
 0x17b   :  { %1280 = vst.msk [vmem:[#allocation2 + $0xf4] sm:$0xf] %vm1218_vm3, %v1215_v59  ;;  %v1184_v0 = vpack.c.bf16 %v1120_v60, %v1120_v60  ;;  %v1022_v1 = vadd.f32 %v1697_v26, %v1021_v63  ;;  %v441_v2 = vpop.f32.mrf.mxu0 }
 0x17c   :  { %v442_v3 = vadd.f32 %v1698_v36, %v441_v2  ;;  %v943_v4 = vpop.f32.mrf.mxu1 }
 0x17d   :  { %1249 = vst.msk [vmem:[#allocation2 + $0x78] sm:$0xf] %vm1218_vm3, %v1184_v0  ;;  %v1088_v5 = vadd.f32 %v1022_v1, %v520_v62  ;;  %v944_v6 = vadd.f32 %v1697_v26, %v943_v4 }
 0x17f   :  { %v1152_v7 = vmax.f32 %v1088_v5, 0.0  ;;  %v1057_v8 = vadd.f32 %v944_v6, %v442_v3 }
 0x181   :  { %v1216_v9 = vpack.c.bf16 %v1152_v7, %v1152_v7  ;;  %v1121_v10 = vmax.f32 %v1057_v8, 0.0  ;;  %v521_v11 = vpop.f32.mrf.mxu2 }
 0x182   :  { %v522_v12 = vadd.f32 %v1698_v36, %v521_v11  ;;  %v1023_v13 = vpop.f32.mrf.mxu3 }
 0x183   :  { %1281 = vst.msk [vmem:[#allocation2 + $0xf8] sm:$0xf] %vm1218_vm3, %v1216_v9  ;;  %v1185_v14 = vpack.c.bf16 %v1121_v10, %v1121_v10  ;;  %v1024_v15 = vadd.f32 %v1697_v26, %v1023_v13 }
 0x185   :  { %1250 = vst.msk [vmem:[#allocation2 + $0x7c] sm:$0xf] %vm1218_vm3, %v1185_v14  ;;  %v1089_v16 = vadd.f32 %v1024_v15, %v522_v12 }
 0x187   :  { %v1153_v17 = vmax.f32 %v1089_v16, 0.0 }
 0x189   :  { %v1217_v18 = vpack.c.bf16 %v1153_v17, %v1153_v17 }
 0x18b   :  { %1282 = vst.msk [vmem:[#allocation2 + $0xfc] sm:$0xf] %vm1218_vm3, %v1217_v18 }
 0x18c   :  { %1295 = dma.vmem_to_hbm [thread:$0]  %s1288_s5, 4096, %s1290_s1, [#allocation3], %s1726_s7, %s1726_s7, %s1727_s4  }
 0x18d   :  { %1723 = dma.done.wait [#allocation3], 4096  }
 0x18e   :  { %1724 = vsyncadd [#allocation3], 4294963200 }
 0x18f   :  { %1300 = vsyncpa [#allocation3], 1 }

// kernel: block_forward.4
= control target key start
LH: loop header
LB: loop body
LE: loop exit
PB: predicated region body
PF: predicated region fallthrough
CT: control target
= control target key end

     0   :  { %s7065_s15 = smov 0   ;;  %s7067_s16 = smov 0   ;;  %s8721_s0 = inlined_call_operand.vmem [shape: bf16[2,16,16,8], index: 0, kind: input, shape index: {}]   ;;  %s8722_s1 = inlined_call_operand.vmem [shape: bf16[2,1,8], index: 1, kind: input, shape index: {}]   ;;  %s8723_s2 = inlined_call_operand.vmem [shape: bf16[3,3,8,8], index: 2, kind: input, shape index: {}]   ;;  %s8724_s3 = inlined_call_operand.vmem [shape: f32[1,8], index: 3, kind: input, shape index: {}]   ;;  %s8725_s4 = inlined_call_operand.vmem [shape: bf16[2,16,16,8], index: 4, kind: output, shape index: {}]  }
   0x1   :  { %s7069_s17 = smov 0  }
   0x2 LB: > { %s26_s18 = sadd.s32 1, %s7033_s16  ;;  %p5734_p0 = scmp.ge.s32.totalorder %s7037_s17, 1  ;;  %s7037_s17 = sphi %s7069_s17, %s14_s17   ;;  %s7033_s16 = sphi %s7067_s16, %s8740_s16   ;;  %s7029_s15 = sphi %s7065_s15, %s8739_s15  }
   0x3   : > { %p28_p1 = scmp.ge.s32.totalorder %s26_s18, 2  ;;  %p184_p2 = scmp.lt.s32.totalorder %s7037_s17, 3 }
   0x5   : > { %s8742_s18 = smov (%p28_p1, %s26_s18), 0  ;;  %p185_p3 = pnand %p5734_p0, %p184_p2 }
   0x7   : > { %188 = sbr.rel (%p185_p3) target bundleno = 1346 (0x542), region = 36 }
   0xc   : > { %v5741_v0 = vld [vmem:[%s8723_s2 + $0x4] sm:$0xf]  ;;  %vm1629_vm0 = vcmask 1043456   ;;  %vm240_vm1 = vcmask 57344   ;;  %vm241_vm2 = vsmask.f32 256 }
   0xd   : > { %v1631_v1 = vsel %vm1629_vm0, %v5741_v0, 0  ;;  %vm7090_vm3 = vmand %vm240_vm1, %vm241_vm2  ;;  %v243_v3 = vld [vmem:[#allocation2] sm:$0x1]  ;;  %vm246_vm4 = vcmask 60416   ;;  %vm247_vm5 = vsmask.f32 7938 }
   0xe   : > { %1640 = vmatpush.bf16.msra.mxu0 %v1631_v1  ;;  %6928 = vmatpush.bf16.msra.mxu1 %v1631_v1  ;;  %v244_v4 = vsel %vm7090_vm3, 0, %v243_v3  ;;  %vm7097_vm6 = vmand %vm246_vm4, %vm247_vm5  ;;  %v249_v6 = vld [vmem:[#allocation2 + $0x8] sm:$0xf]  ;;  %vm512_vm7 = vsmask.f32 4368  ;;  %v7039_v8 = vmov 0  }
   0xf   : > { %6929 = vmatpush.bf16.msra.mxu2 %v1631_v1  ;;  %6930 = vmatpush.bf16.msra.mxu3 %v1631_v1  ;;  %245 = vst [vmem:[#allocation2] sm:$0x1] %v244_v4  ;;  %v250_v7 = vsel %vm7097_vm6, 0, %v249_v6  ;;  %v7104_v9 = vrot.slane %v7039_v8, 7  ;;  %vm7107_vm8 = vmor %vm241_vm2, %vm512_vm7  ;;  %p218_p4 = scmp.lt.s32.totalorder %s7029_s15, 1  ;;  %vm1532_vm10 = vcmask 64512  }
  0x10   : > { %251 = vst [vmem:[#allocation2 + $0x8] sm:$0xf] %v250_v7  ;;  %v7134_v13 = vld [vmem:[#allocation2 + $0x40] sm:$0x1]  ;;  %v7144_v15 = vld [vmem:[#allocation2 + $0x48] sm:$0xf] }
  0x11   : > { %253 = vst.msk [vmem:[#allocation2 + $0xc] sm:$0xf] %vm246_vm4, %v7039_v8  ;;  %v7115_v11 = vrot.slane %v7104_v9, 4  ;;  %s8744_s15 = smov (!%p218_p4, %s7029_s15), 1  ;;  %v7146_v16 = vld [vmem:[#allocation2 + $0x80] sm:$0x1] }
  0x12   : > { %260 = vst.msk [vmem:[#allocation2 + $0x1c] sm:$0xf] %vm246_vm4, %v7039_v8  ;;  %s6667_s21 = sshll.u32 %s8744_s15, 7  ;;  %s225_s24 = scalar_lea.vmem %s8722_s1, %s8744_s15  ;;  %v7148_v17 = vld [vmem:[#allocation2 + $0x88] sm:$0xf]  ;;  %v276_v34 = vsel %vm7090_vm3, 0, %v7134_v13 }
  0x13   : > { %8733 = vst [vmem:[#allocation3_spill] sm:$0xff] %v7115_v11  ;;  %v981_v12 = vsel %vm7107_vm8, %v7115_v11, %v7104_v9  ;;  %s7142_s27 = scalar_lea.vmem %s8721_s0, %s6667_s21  ;;  %v239_v14 = vld [vmem:[%s225_s24] sm:$0x1]  ;;  %v7161_v27 = vld [vmem:[#allocation2 + $0xc8] sm:$0xf]  ;;  %v279_v38 = vsel %vm7097_vm6, 0, %v7144_v15 }
  0x14   : > { %267 = vst.msk [vmem:[#allocation2 + $0x2c] sm:$0xf] %vm246_vm4, %v7039_v8  ;;  %v6904_v19 = vld [vmem:[%s7142_s27 + $0x18] sm:$0xff]   ;;  %v412_v20 = vpack.i.b16 %v239_v14, %v239_v14  ;;  %v7154_v22 = vld [vmem:[#allocation2 + $0xc0] sm:$0x1]  ;;  %v304_v40 = vsel %vm7090_vm3, 0, %v7146_v16 }
  0x15   : > { %989 = vst.msk [vmem:[#allocation2 + $0x4] sm:$0xf] %vm246_vm4, %v981_v12  ;;  %v6908_v21 = vld [vmem:[%s7142_s27 + $0x38] sm:$0xff]   ;;  %v6840_v25 = vunpack.c.l.bf16 %v6904_v19  ;;  %v6841_v26 = vunpack.c.h.bf16 %v6904_v19  ;;  %v6827_v33 = vld [vmem:[%s7142_s27] sm:$0xff]   ;;  %v307_v41 = vsel %vm7097_vm6, 0, %v7148_v17  ;;  %v332_v43 = vsel %vm7090_vm3, 0, %v7154_v22 }
  0x16   : > { %1036 = vst.msk [vmem:[#allocation2 + $0x114] sm:$0xf] %vm246_vm4, %v981_v12  ;;  %v986_v18 = vld [vmem:[#allocation2] sm:$0xf]  ;;  %v414_v29 = vperm.slane %v412_v20, 0  ;;  %v6856_v30 = vunpack.c.l.bf16 %v6908_v21  ;;  %v6857_v31 = vunpack.c.h.bf16 %v6908_v21  ;;  %v6912_v32 = vld [vmem:[%s7142_s27 + $0x58] sm:$0xff]   ;;  %v6828_v37 = vunpack.c.l.bf16 %v6827_v33 }
  0x17   : > { %274 = vst.msk [vmem:[#allocation2 + $0x3c] sm:$0xf] %vm246_vm4, %v7039_v8  ;;  %v987_v23 = vsel %vm7097_vm6, %v7104_v9, %v986_v18  ;;  %v990_v24 = vld [vmem:[#allocation2 + $0x8] sm:$0x1]  ;;  %v6872_v35 = vunpack.c.l.bf16 %v6912_v32  ;;  %v6873_v36 = vunpack.c.h.bf16 %v6912_v32  ;;  %v7185_v42 = vld [vmem:[%s7142_s27 + $0x20] sm:$0xff]   ;;  %v335_v44 = vsel %vm7097_vm6, 0, %v7161_v27 }
  0x18   : > { %281 = vst.msk [vmem:[#allocation2 + $0x4c] sm:$0xf] %vm246_vm4, %v7039_v8  ;;  %v991_v28 = vsel %vm7090_vm3, %v7115_v11, %v990_v24  ;;  %v7176_v39 = vunpack.c.l.bf16 %v414_v29  ;;  %vm1271_vm9 = vsmask.f32 7424  ;;  %v6829_v45 = vunpack.c.h.bf16 %v6827_v33  ;;  %v7197_v47 = vld [vmem:[%s7142_s27 + $0x40] sm:$0xff]  }
  0x19   : > { %988 = vst [vmem:[#allocation2] sm:$0xf] %v987_v23  ;;  %v6844_v46 = vunpack.c.l.bf16 %v7185_v42  ;;  %v7205_v52 = vld [vmem:[#allocation2 + $0x10] sm:$0x1]  ;;  %v6845_v56 = vunpack.c.h.bf16 %v7185_v42  ;;  %v6860_v60 = vunpack.c.l.bf16 %v7197_v47  ;;  %vm1980_vm11 = vcmask 1046528  }
  0x1a   : > { %992 = vst [vmem:[#allocation2 + $0x8] sm:$0x1] %v991_v28  ;;  %v454_v48 = vmul.f32 %v6840_v25, %v7176_v39  ;;  %v455_v49 = vmul.f32 %v6841_v26, %v7176_v39  ;;  %v462_v50 = vmul.f32 %v6856_v30, %v7176_v39  ;;  %v463_v51 = vmul.f32 %v6857_v31, %v7176_v39  ;;  %v7309_v42 = vld [vmem:[#allocation2 + $0x50] sm:$0x1] }
  0x1b   : > { %288 = vst.msk [vmem:[#allocation2 + $0x5c] sm:$0xf] %vm246_vm4, %v7039_v8  ;;  %v470_v53 = vmul.f32 %v6872_v35, %v7176_v39  ;;  %v471_v54 = vmul.f32 %v6873_v36, %v7176_v39  ;;  %v448_v55 = vmul.f32 %v6828_v37, %v7176_v39  ;;  %v255_v1 = vsel %vm7090_vm3, 0, %v7205_v52 }
  0x1c   : > { %295 = vst.msk [vmem:[#allocation2 + $0x6c] sm:$0xf] %vm246_vm4, %v7039_v8  ;;  %v7215_v57 = vpack.c.bf16 %v454_v48, %v454_v48  ;;  %v487_v58 = vpack.c.bf16 %v455_v49, %v455_v49  ;;  %v7217_v59 = vpack.c.bf16 %v462_v50, %v462_v50  ;;  %v495_v62 = vpack.c.bf16 %v463_v51, %v463_v51 }
  0x1d   : > { %302 = vst.msk [vmem:[#allocation2 + $0x7c] sm:$0xf] %vm246_vm4, %v7039_v8  ;;  %v7222_v63 = vpack.c.bf16 %v470_v53, %v470_v53  ;;  %v7224_v0 = vpack.c.bf16 %v471_v54, %v471_v54  ;;  %v449_v12 = vmul.f32 %v6829_v45, %v7176_v39  ;;  %v7238_v20 = vpack.c.bf16 %v448_v55, %v448_v55  ;;  %v5930_v55 = vld [vmem:[%s8723_s2 + $0x8] sm:$0xf] }
  0x1e   : > { %309 = vst.msk [vmem:[#allocation2 + $0x8c] sm:$0xf] %vm246_vm4, %v7039_v8  ;;  %v596_v7 = vshrl.u32 %v7215_v57, 16  ;;  %v604_v14 = vshrl.u32 %v487_v58, 16  ;;  %v607_v18 = vshll.u32 %v487_v58, 16  ;;  %v704_v19 = vshrl.u32 %v7217_v59, 16 }
  0x1f   : > { %316 = vst.msk [vmem:[#allocation2 + $0x9c] sm:$0xf] %vm246_vm4, %v7039_v8  ;;  %v456_v25 = vmul.f32 %v6844_v46, %v7176_v39  ;;  %v599_v26 = vshll.u32 %v7215_v57, 16  ;;  %v712_v30 = vshrl.u32 %v495_v62, 16  ;;  %v715_v35 = vshll.u32 %v495_v62, 16 }
  0x20   : > { %v6891_v61 = vld [vmem:[#allocation2] sm:$0xff]   ;;  %323 = vst.msk [vmem:[#allocation2 + $0xac] sm:$0xf] %vm246_vm4, %v7039_v8  ;;  %v598_v24 = vrot.slane %v596_v7, 7  ;;  %v7247_v28 = vrot.slane %v604_v14, 7  ;;  %v7249_v29 = vrot.slane %v704_v19, 7  ;;  %v481_v57 = vpack.c.bf16 %v449_v12, %v449_v12 }
  0x21   : > { %v7229_v3 = vld [vmem:[#allocation2 + $0x8] sm:$0xff]  ;;  %v1273_v4 = vshrl.u32 %v6891_v61, 16  ;;  %v1275_v6 = vshll.u32 %v6891_v61, 16  ;;  %330 = vst.msk [vmem:[#allocation2 + $0xbc] sm:$0xf] %vm246_vm4, %v7039_v8  ;;  %v707_v45 = vshll.u32 %v7217_v59, 16  ;;  %v457_v15 = vmul.f32 %v6845_v56, %v7176_v39 }
  0x22   : > { %337 = vst.msk [vmem:[#allocation2 + $0xcc] sm:$0xf] %vm246_vm4, %v7039_v8  ;;  %v1280_v23 = vshll.u32 %v7229_v3, 16  ;;  %v602_v33 = vrot.slane %v598_v24, 4  ;;  %v609_v36 = vor.u32 %v607_v18, %v7247_v28  ;;  %v611_v37 = vrot.slane %v7247_v28, 4 }
  0x23   : > { %v1277_v21 = vrot.slane %v1275_v6, 1  ;;  %344 = vst.msk [vmem:[#allocation2 + $0xdc] sm:$0xf] %vm246_vm4, %v7039_v8  ;;  %v710_v46 = vrot.slane %v7249_v29, 4  ;;  %v7265_v49 = vrot.slane %v712_v30, 7  ;;  %v812_v50 = vshrl.u32 %v7222_v63, 16 }
  0x24   : > { %351 = vst.msk [vmem:[#allocation2 + $0xec] sm:$0xf] %vm246_vm4, %v7039_v8  ;;  %v7251_v32 = vrot.slane %v1280_v23, 1  ;;  %v815_v51 = vshll.u32 %v7222_v63, 16  ;;  %v610_v53 = vsel %vm7107_vm8, %v602_v33, %v609_v36  ;;  %v820_v54 = vshrl.u32 %v7224_v0, 16 }
  0x25   : > { %v1278_v31 = vor.u32 %v1277_v21, %v1273_v4  ;;  %358 = vst.msk [vmem:[#allocation2 + $0xfc] sm:$0xf] %vm246_vm4, %v7039_v8  ;;  %v717_v13 = vor.u32 %v715_v35, %v7265_v49  ;;  %v814_v58 = vrot.slane %v812_v50, 7  ;;  %v2143_v59 = vsel %vm1629_vm0, %v5930_v55, 0  ;;  %v5963_v62 = vld [vmem:[%s8723_s2 + $0xc] sm:$0xf] }
  0x26   : > { %365 = vst.msk [vmem:[#allocation2 + $0x10c] sm:$0xf] %vm246_vm4, %v7039_v8  ;;  %v7289_v61 = vrot.slane %v820_v54, 7  ;;  %2152 = vmatpush.bf16.msrb.mxu2 %v2143_v59  ;;  %v515_v63 = vshrl.u32 %v7238_v20, 16  ;;  %v2637_v7 = vsel %vm1629_vm0, %v5963_v62, 0  ;;  %v7321_v18 = vpack.c.bf16 %v456_v25, %v456_v25  ;;  %v6913_v55 = vld [vmem:[%s7142_s27 + $0x60] sm:$0xff]  }
  0x27   : > { %v1283_v48 = vsel %vm1271_vm9, %v1278_v31, %v7251_v32  ;;  %372 = vst.msk [vmem:[#allocation2 + $0x11c] sm:$0xf] %vm246_vm4, %v7039_v8  ;;  %v823_v8 = vshll.u32 %v7224_v0, 16  ;;  %v601_v0 = vor.u32 %v599_v26, %v598_v24  ;;  %v718_v4 = vsel %vm7107_vm8, %v710_v46, %v717_v13  ;;  %v1104_v12 = vld [vmem:[%s8723_s2] sm:$0xf]  ;;  %2646 = vmatpush.bf16.msrb.mxu3 %v2637_v7 }
  0x28   : > { %5866 = vmatmul.msk.bf16.vlgmr.msra.gmra.mxu0 %vm1532_vm10, %v1283_v48  ;;  %277 = vst [vmem:[#allocation2 + $0x40] sm:$0x1] %v276_v34  ;;  %v719_v34 = vrot.slane %v7265_v49, 4  ;;  %v818_v6 = vrot.slane %v814_v58, 4  ;;  %v1835_v56 = vsel %vm1629_vm0, %v1104_v12, 0  ;;  %v517_v17 = vrot.slane %v515_v63, 7 }
  0x29   : > { %280 = vst [vmem:[#allocation2 + $0x48] sm:$0xf] %v279_v38  ;;  %v6861_v38 = vunpack.c.h.bf16 %v7197_v47  ;;  %v825_v16 = vor.u32 %v823_v8, %v7289_v61  ;;  %v6124_v14 = vld [vmem:[%s8723_s2 + $0x10] sm:$0xf]  ;;  %1844 = vmatpush.bf16.msrb.mxu1 %v1835_v56  ;;  %v489_v21 = vpack.c.bf16 %v457_v15, %v457_v15  ;;  %v518_v24 = vshll.u32 %v7238_v20, 16 }
  0x2a   : > { %618 = vst.msk [vmem:[#allocation2 + $0x44] sm:$0xf] %vm246_vm4, %v610_v53  ;;  %v3395_v19 = vsel %vm1629_vm0, %v6124_v14, 0  ;;  %v526_v25 = vshll.u32 %v481_v57, 16  ;;  %v1284_v26 = vshrl.u32 %v7229_v3, 16  ;;  %v709_v31 = vor.u32 %v707_v45, %v7249_v29 }
  0x2b   : > { %305 = vst [vmem:[#allocation2 + $0x80] sm:$0x1] %v304_v40  ;;  %v827_v40 = vrot.slane %v7289_v61, 4  ;;  %v826_v23 = vsel %vm7107_vm8, %v818_v6, %v825_v16  ;;  %3404 = vmatpush.bf16.msrb.mxu0 %v3395_v19  ;;  %v521_v33 = vrot.slane %v517_v17, 4  ;;  %v464_v20 = vmul.f32 %v6860_v60, %v7176_v39  ;;  %v7357_v48 = vld [vmem:[#allocation2 + $0xd0] sm:$0x1] }
  0x2c   : > { %308 = vst [vmem:[#allocation2 + $0x88] sm:$0xf] %v307_v41  ;;  %v523_v41 = vshrl.u32 %v481_v57, 16  ;;  %v817_v46 = vor.u32 %v815_v51, %v814_v58  ;;  %v283_v27 = vsel %vm7090_vm3, 0, %v7309_v42  ;;  %v631_v29 = vshrl.u32 %v489_v21, 16 }
  0x2d   : > { %726 = vst.msk [vmem:[#allocation2 + $0x84] sm:$0xf] %vm246_vm4, %v718_v4  ;;  %v634_v45 = vshll.u32 %v489_v21, 16  ;;  %v520_v51 = vor.u32 %v518_v24, %v517_v17  ;;  %v465_v54 = vmul.f32 %v6861_v38, %v7176_v39  ;;  %v7360_v8 = vpack.c.bf16 %v464_v20, %v464_v20 }
  0x2e   : > { %333 = vst [vmem:[#allocation2 + $0xc0] sm:$0x1] %v332_v43  ;;  %v7338_v22 = vrot.slane %v523_v41, 7  ;;  %v7340_v43 = vld [vmem:[#allocation2 + $0x90] sm:$0x1]  ;;  %v626_v13 = vshll.u32 %v7321_v18, 16  ;;  %v6876_v4 = vunpack.c.l.bf16 %v6913_v55  ;;  %v6877_v42 = vunpack.c.h.bf16 %v6913_v55 }
  0x2f   : > { %v615_v30 = vld [vmem:[#allocation2 + $0x40] sm:$0xf]  ;;  %336 = vst [vmem:[#allocation2 + $0xc8] sm:$0xf] %v335_v44  ;;  %v623_v44 = vshrl.u32 %v7321_v18, 16  ;;  %v7372_v58 = vrot.slane %v631_v29, 7  ;;  %v497_v52 = vpack.c.bf16 %v465_v54, %v465_v54 }
  0x30   : > { %v616_v35 = vsel %vm7097_vm6, %v601_v0, %v615_v30  ;;  %v619_v36 = vld [vmem:[#allocation2 + $0x48] sm:$0x1]  ;;  %834 = vst.msk [vmem:[#allocation2 + $0xc4] sm:$0xf] %vm246_vm4, %v826_v23  ;;  %v528_v60 = vor.u32 %v526_v25, %v7338_v22  ;;  %v311_v63 = vsel %vm7090_vm3, 0, %v7340_v43  ;;  %v731_v0 = vshrl.u32 %v7360_v8, 16 }
  0x31   : > { %617 = vst [vmem:[#allocation2 + $0x40] sm:$0xf] %v616_v35  ;;  %v620_v47 = vsel %vm7090_vm3, %v611_v37, %v619_v36  ;;  %v625_v53 = vrot.slane %v623_v44, 7  ;;  %v636_v38 = vor.u32 %v634_v45, %v7372_v58  ;;  %v339_v49 = vsel %vm7090_vm3, 0, %v7357_v48  ;;  %v285_v23 = vld [vmem:[#allocation2 + $0x58] sm:$0xf] }
  0x32   : > { %621 = vst [vmem:[#allocation2 + $0x48] sm:$0x1] %v620_v47  ;;  %v723_v50 = vld [vmem:[#allocation2 + $0x80] sm:$0xf]  ;;  %v529_v37 = vsel %vm7107_vm8, %v521_v33, %v528_v60  ;;  %v739_v7 = vshrl.u32 %v497_v52, 16  ;;  %v742_v12 = vshll.u32 %v497_v52, 16  ;;  %v472_v18 = vmul.f32 %v6876_v4, %v7176_v39 }
  0x33   : > { %v724_v28 = vsel %vm7097_vm6, %v709_v31, %v723_v50  ;;  %v727_v57 = vld [vmem:[#allocation2 + $0x88] sm:$0x1]  ;;  %256 = vst [vmem:[#allocation2 + $0x10] sm:$0x1] %v255_v1  ;;  %v629_v62 = vrot.slane %v625_v53, 4  ;;  %v733_v14 = vrot.slane %v731_v0, 7  ;;  %v628_v17 = vor.u32 %v626_v13, %v625_v53 }
  0x34   : > { %725 = vst [vmem:[#allocation2 + $0x80] sm:$0xf] %v724_v28  ;;  %v728_v59 = vsel %vm7090_vm3, %v719_v34, %v727_v57  ;;  %v7381_v1 = vld [vmem:[#allocation2 + $0x18] sm:$0xf]  ;;  %v7398_v41 = vrot.slane %v739_v7, 7  ;;  %v473_v21 = vmul.f32 %v6877_v42, %v7176_v39  ;;  %v734_v61 = vshll.u32 %v7360_v8, 16 }
  0x35   : > { %729 = vst [vmem:[#allocation2 + $0x88] sm:$0x1] %v728_v59  ;;  %v831_v15 = vld [vmem:[#allocation2 + $0xc0] sm:$0xf]  ;;  %v637_v56 = vsel %vm7107_vm8, %v629_v62, %v636_v38  ;;  %v504_v25 = vpack.c.bf16 %v472_v18, %v472_v18  ;;  %v258_v30 = vsel %vm7097_vm6, 0, %v7381_v1  ;;  %v286_v47 = vsel %vm7097_vm6, 0, %v285_v23 }
  0x36   : > { %v832_v34 = vsel %vm7097_vm6, %v817_v46, %v831_v15  ;;  %v835_v6 = vld [vmem:[#allocation2 + $0xc8] sm:$0x1]  ;;  %537 = vst.msk [vmem:[#allocation2 + $0x14] sm:$0xf] %vm246_vm4, %v529_v37  ;;  %v744_v20 = vor.u32 %v742_v12, %v7398_v41  ;;  %v505_v35 = vpack.c.bf16 %v473_v21, %v473_v21  ;;  %v313_v15 = vld [vmem:[#allocation2 + $0x98] sm:$0xf] }
  0x37   : > { %833 = vst [vmem:[#allocation2 + $0xc0] sm:$0xf] %v832_v34  ;;  %v836_v16 = vsel %vm7090_vm3, %v827_v40, %v835_v6  ;;  %v737_v40 = vrot.slane %v733_v14, 4  ;;  %v839_v44 = vshrl.u32 %v504_v25, 16  ;;  %v842_v13 = vshll.u32 %v504_v25, 16 }
  0x38   : > { %v6676_v19 = vld [vmem:[#allocation2 + $0x40] sm:$0xff]  ;;  %837 = vst [vmem:[#allocation2 + $0xc8] sm:$0x1] %v836_v16  ;;  %v847_v50 = vshrl.u32 %v505_v35, 16  ;;  %v850_v42 = vshll.u32 %v505_v35, 16  ;;  %v6902_v16 = vld [vmem:[%s7142_s27 + $0x8] sm:$0xff]  }
  0x39   : > { %v7401_v24 = vld [vmem:[#allocation2 + $0x48] sm:$0xff]  ;;  %284 = vst [vmem:[#allocation2 + $0x50] sm:$0x1] %v283_v27  ;;  %v1336_v31 = vshll.u32 %v6676_v19, 16  ;;  %v1340_v33 = vshrl.u32 %v6676_v19, 16  ;;  %v745_v48 = vsel %vm7107_vm8, %v737_v40, %v744_v20  ;;  %v530_v21 = vrot.slane %v7338_v22, 4 }
  0x3a   : > { %v534_v43 = vld [vmem:[#allocation2 + $0x10] sm:$0xf]  ;;  %645 = vst.msk [vmem:[#allocation2 + $0x54] sm:$0xf] %vm246_vm4, %v637_v56  ;;  %v1344_v36 = vshll.u32 %v7401_v24, 16  ;;  %v1348_v45 = vshrl.u32 %v7401_v24, 16  ;;  %v6832_v22 = vunpack.c.l.bf16 %v6902_v16 }
  0x3b   : > { %v6684_v46 = vld [vmem:[#allocation2 + $0x80] sm:$0xff]  ;;  %v535_v27 = vsel %vm7097_vm6, %v520_v51, %v534_v43  ;;  %312 = vst [vmem:[#allocation2 + $0x90] sm:$0x1] %v311_v63  ;;  %v7414_v60 = vrot.slane %v1336_v31, 1  ;;  %v841_v51 = vrot.slane %v839_v44, 7  ;;  %v736_v63 = vor.u32 %v734_v61, %v733_v14 }
  0x3c   : > { %v6685_v29 = vld [vmem:[#allocation2 + $0x88] sm:$0xff]  ;;  %536 = vst [vmem:[#allocation2 + $0x10] sm:$0xf] %v535_v27  ;;  %v1346_v53 = vrot.slane %v1344_v36, 1  ;;  %v1400_v54 = vshll.u32 %v6684_v46, 16  ;;  %v1404_v8 = vshrl.u32 %v6684_v46, 16  ;;  %v1286_v14 = vor.u32 %v1284_v26, %v7251_v32 }
  0x3d   : > { %753 = vst.msk [vmem:[#allocation2 + $0x94] sm:$0xf] %vm246_vm4, %v745_v48  ;;  %v1342_v55 = vor.u32 %v1340_v33, %v7414_v60  ;;  %v1408_v28 = vshll.u32 %v6685_v29, 16  ;;  %v1412_v37 = vshrl.u32 %v6685_v29, 16  ;;  %v845_v52 = vrot.slane %v841_v51, 4  ;;  %v6906_v33 = vld [vmem:[%s7142_s27 + $0x28] sm:$0xff]  }
  0x3e   : > { %v6692_v57 = vld [vmem:[#allocation2 + $0xc0] sm:$0xff]  ;;  %340 = vst [vmem:[#allocation2 + $0xd0] sm:$0x1] %v339_v49  ;;  %v7421_v59 = vrot.slane %v1400_v54, 1  ;;  %v7425_v1 = vrot.slane %v847_v50, 7  ;;  %v844_v19 = vor.u32 %v842_v13, %v841_v51  ;;  %v7448_v32 = vor.u32 %v1348_v45, %v1346_v53 }
  0x3f   : > { %v7423_v62 = vld [vmem:[#allocation2 + $0xc8] sm:$0xff]  ;;  %259 = vst [vmem:[#allocation2 + $0x18] sm:$0xf] %v258_v30  ;;  %v1347_v38 = vsel %vm1271_vm9, %v1342_v55, %v1346_v53  ;;  %v1410_v0 = vrot.slane %v1408_v28, 1  ;;  %v1464_v4 = vshll.u32 %v6692_v57, 16  ;;  %v1468_v34 = vshrl.u32 %v6692_v57, 16 }
  0x40   : > { %v642_v6 = vld [vmem:[#allocation2 + $0x50] sm:$0xf]  ;;  %5874 = vmatmul.msk.bf16.vlgmr.msra.gmra.mxu1 %vm1532_vm10, %v1347_v38  ;;  %v1406_v49 = vor.u32 %v1404_v8, %v7421_v59  ;;  %v1472_v7 = vshll.u32 %v7423_v62, 16  ;;  %287 = vst [vmem:[#allocation2 + $0x58] sm:$0xf] %v286_v47  ;;  %v852_v40 = vor.u32 %v850_v42, %v7425_v1  ;;  %v314_v26 = vsel %vm7097_vm6, 0, %v313_v15 }
  0x41   : > { %v643_v12 = vsel %vm7097_vm6, %v628_v17, %v642_v6  ;;  %v7434_v56 = vrot.slane %v1464_v4, 1  ;;  %v341_v25 = vld [vmem:[#allocation2 + $0xd8] sm:$0xf]  ;;  %v261_v30 = vld [vmem:[#allocation2 + $0x20] sm:$0x1]  ;;  %v7454_v20 = vor.u32 %v1412_v37, %v1410_v0  ;;  %v638_v46 = vrot.slane %v7372_v58, 4 }
  0x42   : > { %644 = vst [vmem:[#allocation2 + $0x50] sm:$0xf] %v643_v12  ;;  %v750_v18 = vld [vmem:[#allocation2 + $0x90] sm:$0xf]  ;;  %v1411_v23 = vsel %vm1271_vm9, %v1406_v49, %v1410_v0  ;;  %v1474_v24 = vrot.slane %v1472_v7, 1  ;;  %v853_v35 = vsel %vm7107_vm8, %v845_v52, %v852_v40  ;;  %v1476_v47 = vshrl.u32 %v7423_v62, 16 }
  0x43   : > { %v7441_v61 = vld [vmem:[#allocation2 + $0x10] sm:$0xff]  ;;  %v751_v17 = vsel %vm7097_vm6, %v736_v63, %v750_v18  ;;  %5882 = vmatmul.msk.bf16.vlgmr.msra.gmra.mxu2 %vm1532_vm10, %v1411_v23  ;;  %v1470_v3 = vor.u32 %v1468_v34, %v7434_v56  ;;  %v289_v31 = vld [vmem:[#allocation2 + $0x60] sm:$0x1]  ;;  %315 = vst [vmem:[#allocation2 + $0x98] sm:$0xf] %v314_v26  ;;  %v342_v45 = vsel %vm7097_vm6, 0, %v341_v25  ;;  %v6833_v53 = vunpack.c.h.bf16 %v6902_v16 }
  0x44   : > { %752 = vst [vmem:[#allocation2 + $0x90] sm:$0xf] %v751_v17  ;;  %v1288_v43 = vshll.u32 %v7441_v61, 16  ;;  %v746_v50 = vrot.slane %v7398_v41, 4  ;;  %v317_v54 = vld [vmem:[#allocation2 + $0xa0] sm:$0x1]  ;;  %v450_v55 = vmul.f32 %v6832_v22, %v7176_v39  ;;  %v6848_v28 = vunpack.c.l.bf16 %v6906_v33 }
  0x45   : > { %v858_v36 = vld [vmem:[#allocation2 + $0xd0] sm:$0xf]  ;;  %v1475_v27 = vsel %vm1271_vm9, %v1470_v3, %v1474_v24  ;;  %861 = vst.msk [vmem:[#allocation2 + $0xd4] sm:$0xf] %vm246_vm4, %v853_v35  ;;  %v262_v51 = vsel %vm7090_vm3, 0, %v261_v30  ;;  %v6849_v57 = vunpack.c.h.bf16 %v6906_v33  ;;  %v451_v62 = vmul.f32 %v6833_v53, %v7176_v39  ;;  %v6910_v4 = vld [vmem:[%s7142_s27 + $0x48] sm:$0xff]  }
  0x46   : > { %v859_v44 = vsel %vm7097_vm6, %v844_v19, %v858_v36  ;;  %v538_v29 = vld [vmem:[#allocation2 + $0x18] sm:$0x1]  ;;  %5890 = vmatmul.msk.bf16.vlgmr.msra.gmra.mxu3 %vm1532_vm10, %v1475_v27  ;;  %v7467_v48 = vrot.slane %v1288_v43, 1  ;;  %343 = vst [vmem:[#allocation2 + $0xd8] sm:$0xf] %v342_v45  ;;  %v290_v63 = vsel %vm7090_vm3, 0, %v289_v31  ;;  %v1478_v52 = vor.u32 %v1476_v47, %v1474_v24 }
  0x47   : > { %860 = vst [vmem:[#allocation2 + $0xd0] sm:$0xf] %v859_v44  ;;  %v539_v58 = vsel %vm7090_vm3, %v530_v21, %v538_v29  ;;  %v646_v8 = vld [vmem:[#allocation2 + $0x58] sm:$0x1]  ;;  %v482_v15 = vpack.c.bf16 %v450_v55, %v450_v55  ;;  %v458_v38 = vmul.f32 %v6848_v28, %v7176_v39  ;;  %v318_v0 = vsel %vm7090_vm3, 0, %v317_v54 }
  0x48   : > { %540 = vst [vmem:[#allocation2 + $0x18] sm:$0x1] %v539_v58  ;;  %v1291_v37 = vsel %vm1271_vm9, %v1286_v14, %v7467_v48  ;;  %v647_v41 = vsel %vm7090_vm3, %v638_v46, %v646_v8  ;;  %v1292_v49 = vshrl.u32 %v7441_v61, 16  ;;  %v854_v7 = vrot.slane %v7425_v1, 4 }
  0x49   : > { %v7477_v13 = vld [vmem:[#allocation2 + $0x50] sm:$0xff]  ;;  %5867 = vmatmul.msk.bf16.gmra.mxu0 %vm1532_vm10, %v1291_v37  ;;  %648 = vst [vmem:[#allocation2 + $0x58] sm:$0x1] %v647_v41  ;;  %v483_v12 = vpack.c.bf16 %v451_v62, %v451_v62  ;;  %v542_v16 = vshrl.u32 %v482_v15, 16  ;;  %v545_v14 = vshll.u32 %v482_v15, 16  ;;  %v459_v18 = vmul.f32 %v6849_v57, %v7176_v39 }
  0x4a   : > { %v1352_v34 = vshll.u32 %v7477_v13, 16  ;;  %263 = vst [vmem:[#allocation2 + $0x20] sm:$0x1] %v262_v51  ;;  %v754_v42 = vld [vmem:[#allocation2 + $0x98] sm:$0x1]  ;;  %v490_v19 = vpack.c.bf16 %v458_v38, %v458_v38  ;;  %v1356_v24 = vshrl.u32 %v7477_v13, 16  ;;  %v6864_v30 = vunpack.c.l.bf16 %v6910_v4 }
  0x4b   : > { %v6686_v6 = vld [vmem:[#allocation2 + $0x90] sm:$0xff]  ;;  %291 = vst [vmem:[#allocation2 + $0x60] sm:$0x1] %v290_v63  ;;  %v755_v17 = vsel %vm7090_vm3, %v746_v50, %v754_v42  ;;  %v544_v40 = vrot.slane %v542_v16, 7  ;;  %v550_v25 = vshrl.u32 %v483_v12, 16  ;;  %v553_v31 = vshll.u32 %v483_v12, 16 }
  0x4c   : > { %v1354_v21 = vrot.slane %v1352_v34, 1  ;;  %v1416_v23 = vshll.u32 %v6686_v6, 16  ;;  %319 = vst [vmem:[#allocation2 + $0xa0] sm:$0x1] %v318_v0  ;;  %v1420_v1 = vshrl.u32 %v6686_v6, 16  ;;  %v6865_v33 = vunpack.c.h.bf16 %v6910_v4 }
  0x4d   : > { %756 = vst [vmem:[#allocation2 + $0x98] sm:$0x1] %v755_v17  ;;  %v862_v35 = vld [vmem:[#allocation2 + $0xd8] sm:$0x1]  ;;  %v547_v46 = vor.u32 %v545_v14, %v544_v40  ;;  %v650_v27 = vshrl.u32 %v490_v19, 16  ;;  %v548_v45 = vrot.slane %v544_v40, 4  ;;  %v1294_v50 = vor.u32 %v1292_v49, %v7467_v48 }
  0x4e   : > { %v6694_v61 = vld [vmem:[#allocation2 + $0xd0] sm:$0xff]  ;;  %v1355_v3 = vsel %vm1271_vm9, %v7448_v32, %v1354_v21  ;;  %v1418_v26 = vrot.slane %v1416_v23, 1  ;;  %v863_v32 = vsel %vm7090_vm3, %v854_v7, %v862_v35  ;;  %v7509_v53 = vrot.slane %v550_v25, 7  ;;  %v345_v49 = vld [vmem:[#allocation2 + $0xe0] sm:$0x1]  ;;  %v6914_v40 = vld [vmem:[%s7142_s27 + $0x68] sm:$0xff]  }
  0x4f   : > { %v7498_v22 = vld [vmem:[#allocation2 + $0x18] sm:$0xff]  ;;  %v1480_v43 = vshll.u32 %v6694_v61, 16  ;;  %v1484_v36 = vshrl.u32 %v6694_v61, 16  ;;  %864 = vst [vmem:[#allocation2 + $0xd8] sm:$0x1] %v863_v32  ;;  %v491_v8 = vpack.c.bf16 %v459_v18, %v459_v18  ;;  %v466_v28 = vmul.f32 %v6864_v30, %v7176_v39 }
  0x50   : > { %5875 = vmatmul.msk.bf16.gmra.mxu1 %vm1532_vm10, %v1355_v3  ;;  %v1419_v44 = vsel %vm1271_vm9, %v7454_v20, %v1418_v26  ;;  %v1296_v47 = vshll.u32 %v7498_v22, 16  ;;  %v7504_v29 = vld [vmem:[#allocation2 + $0x58] sm:$0xff]  ;;  %v555_v37 = vor.u32 %v553_v31, %v7509_v53  ;;  %v652_v48 = vrot.slane %v650_v27, 7  ;;  %v264_v25 = vld [vmem:[#allocation2 + $0x28] sm:$0xf] }
  0x51   : > { %v1482_v58 = vrot.slane %v1480_v43, 1  ;;  %v561_v54 = vld [vmem:[#allocation2 + $0x20] sm:$0xf]  ;;  %v1360_v55 = vshll.u32 %v7504_v29, 16  ;;  %v467_v13 = vmul.f32 %v6865_v33, %v7176_v39  ;;  %v1358_v41 = vor.u32 %v1356_v24, %v1354_v21 }
  0x52   : > { %v1298_v51 = vrot.slane %v1296_v47, 1  ;;  %v562_v20 = vsel %vm7097_vm6, %v547_v46, %v561_v54  ;;  %v1422_v63 = vor.u32 %v1420_v1, %v1418_v26  ;;  %v1300_v15 = vshrl.u32 %v7498_v22, 16  ;;  %v669_v6 = vld [vmem:[#allocation2 + $0x60] sm:$0xf] }
  0x53   : > { %5883 = vmatmul.msk.bf16.gmra.mxu2 %vm1532_vm10, %v1419_v44  ;;  %v1483_v57 = vsel %vm1271_vm9, %v1478_v52, %v1482_v58  ;;  %563 = vst [vmem:[#allocation2 + $0x20] sm:$0xf] %v562_v20  ;;  %v653_v38 = vshll.u32 %v490_v19, 16  ;;  %v7522_v0 = vor.u32 %v1484_v36, %v1482_v58  ;;  %v556_v4 = vsel %vm7107_vm8, %v548_v45, %v555_v37  ;;  %v777_v45 = vld [vmem:[#allocation2 + $0xa0] sm:$0xf] }
  0x54   : > { %v7519_v62 = vld [vmem:[#allocation2 + $0x98] sm:$0xff]  ;;  %v658_v34 = vshrl.u32 %v491_v8, 16  ;;  %v661_v52 = vshll.u32 %v491_v8, 16  ;;  %v1299_v7 = vsel %vm1271_vm9, %v1294_v50, %v1298_v51  ;;  %v7528_v12 = vrot.slane %v1360_v55, 1  ;;  %564 = vst.msk [vmem:[#allocation2 + $0x24] sm:$0xf] %vm246_vm4, %v556_v4 }
  0x55   : > { %v1424_v42 = vshll.u32 %v7519_v62, 16  ;;  %v655_v16 = vor.u32 %v653_v38, %v652_v48  ;;  %v656_v14 = vrot.slane %v652_v48, 4  ;;  %v498_v19 = vpack.c.bf16 %v466_v28, %v466_v28  ;;  %v292_v28 = vld [vmem:[#allocation2 + $0x68] sm:$0xf] }
  0x56   : > { %5891 = vmatmul.msk.bf16.gmra.mxu3 %vm1532_vm10, %v1483_v57  ;;  %v7532_v18 = vrot.slane %v658_v34, 7  ;;  %v499_v21 = vpack.c.bf16 %v467_v13, %v467_v13  ;;  %v7536_v24 = vld [vmem:[#allocation2 + $0xd8] sm:$0xff]  ;;  %v7538_v17 = vor.u32 %v1300_v15, %v1298_v51  ;;  %v346_v1 = vsel %vm7090_vm3, 0, %v345_v49  ;;  %v348_v34 = vld [vmem:[#allocation2 + $0xe8] sm:$0xf] }
  0x57   : > { %v7534_v23 = vrot.slane %v1424_v42, 1  ;;  %v670_v61 = vsel %vm7097_vm6, %v655_v16, %v669_v6  ;;  %v758_v3 = vshrl.u32 %v498_v19, 16  ;;  %v761_v26 = vshll.u32 %v498_v19, 16  ;;  %347 = vst [vmem:[#allocation2 + $0xe0] sm:$0x1] %v346_v1  ;;  %v6903_v6 = vld [vmem:[%s7142_s27 + $0x10] sm:$0xff]  }
  0x58   : > { %v663_v30 = vor.u32 %v661_v52, %v7532_v18  ;;  %671 = vst [vmem:[#allocation2 + $0x60] sm:$0xf] %v670_v61  ;;  %v766_v31 = vshrl.u32 %v499_v21, 16  ;;  %v1363_v33 = vsel %vm1271_vm9, %v1358_v41, %v7528_v12  ;;  %v1488_v43 = vshll.u32 %v7536_v24, 16  ;;  %v320_v41 = vld [vmem:[#allocation2 + $0xa8] sm:$0xf] }
  0x59   : > { %5868 = vmatmul.msk.bf16.gmra.mxu0 %vm1532_vm10, %v1299_v7  ;;  %v1364_v35 = vshrl.u32 %v7504_v29, 16  ;;  %v769_v36 = vshll.u32 %v499_v21, 16  ;;  %v760_v27 = vrot.slane %v758_v3, 7  ;;  %v6880_v47 = vunpack.c.l.bf16 %v6914_v40  ;;  %v268_v52 = vld [vmem:[#allocation2 + $0x30] sm:$0x1] }
  0x5a   : > { %v664_v46 = vsel %vm7107_vm8, %v656_v14, %v663_v30  ;;  %v7553_v44 = vrot.slane %v766_v31, 7  ;;  %v1427_v32 = vsel %vm1271_vm9, %v1422_v63, %v7534_v23  ;;  %v1428_v58 = vshrl.u32 %v7519_v62, 16 }
  0x5b   : > { %672 = vst.msk [vmem:[#allocation2 + $0x64] sm:$0xf] %vm246_vm4, %v664_v46  ;;  %v6881_v50 = vunpack.c.h.bf16 %v6914_v40  ;;  %v265_v29 = vsel %vm7097_vm6, 0, %v264_v25  ;;  %v7561_v54 = vld [vmem:[#allocation2 + $0x20] sm:$0xff]  ;;  %v763_v8 = vor.u32 %v761_v26, %v760_v27  ;;  %v764_v51 = vrot.slane %v760_v27, 4 }
  0x5c   : > { %v771_v55 = vor.u32 %v769_v36, %v7553_v44  ;;  %v474_v20 = vmul.f32 %v6880_v47, %v7176_v39  ;;  %266 = vst [vmem:[#allocation2 + $0x28] sm:$0xf] %v265_v29  ;;  %v7565_v57 = vrot.slane %v1488_v43, 1  ;;  %v1492_v48 = vshrl.u32 %v7536_v24, 16 }
  0x5d   : > { %v475_v37 = vmul.f32 %v6881_v50, %v7176_v39  ;;  %v557_v13 = vrot.slane %v7509_v53, 4  ;;  %v1304_v63 = vshll.u32 %v7561_v54, 16  ;;  %v778_v38 = vsel %vm7097_vm6, %v763_v8, %v777_v45 }
  0x5e   : > { %v772_v15 = vsel %vm7107_vm8, %v764_v51, %v771_v55  ;;  %v506_v4 = vpack.c.bf16 %v474_v20, %v474_v20  ;;  %779 = vst [vmem:[#allocation2 + $0xa0] sm:$0xf] %v778_v38  ;;  %v1308_v7 = vshrl.u32 %v7561_v54, 16  ;;  %v293_v53 = vsel %vm7097_vm6, 0, %v292_v28  ;;  %v885_v31 = vld [vmem:[#allocation2 + $0xe0] sm:$0xf] }
  0x5f   : > { %v507_v49 = vpack.c.bf16 %v475_v37, %v475_v37  ;;  %v665_v42 = vrot.slane %v7532_v18, 4  ;;  %v7581_v16 = vrot.slane %v1304_v63, 1  ;;  %780 = vst.msk [vmem:[#allocation2 + $0xa4] sm:$0xf] %vm246_vm4, %v772_v15  ;;  %v321_v21 = vsel %vm7097_vm6, 0, %v320_v41 }
  0x60   : > { %5876 = vmatmul.msk.bf16.gmra.mxu1 %vm1532_vm10, %v1363_v33  ;;  %v866_v14 = vshrl.u32 %v506_v4, 16  ;;  %v869_v19 = vshll.u32 %v506_v4, 16  ;;  %294 = vst [vmem:[#allocation2 + $0x68] sm:$0xf] %v293_v53  ;;  %v6836_v40 = vunpack.c.l.bf16 %v6903_v6  ;;  %v6837_v25 = vunpack.c.h.bf16 %v6903_v6  ;;  %v296_v37 = vld [vmem:[#allocation2 + $0x70] sm:$0x1] }
  0x61   : > { %v874_v61 = vshrl.u32 %v507_v49, 16  ;;  %v877_v1 = vshll.u32 %v507_v49, 16  ;;  %v1491_v18 = vsel %vm1271_vm9, %v7522_v0, %v7565_v57  ;;  %v1366_v3 = vor.u32 %v1364_v35, %v7528_v12  ;;  %322 = vst [vmem:[#allocation2 + $0xa8] sm:$0xf] %v321_v21  ;;  %v6907_v35 = vld [vmem:[%s7142_s27 + $0x30] sm:$0xff]  }
  0x62   : > { %v7590_v30 = vld [vmem:[#allocation2 + $0x60] sm:$0xff]  ;;  %v868_v26 = vrot.slane %v866_v14, 7  ;;  %v349_v36 = vsel %vm7097_vm6, 0, %v348_v34  ;;  %v269_v46 = vsel %vm7090_vm3, 0, %v268_v52  ;;  %v452_v27 = vmul.f32 %v6836_v40, %v7176_v39  ;;  %v6911_v21 = vld [vmem:[%s7142_s27 + $0x50] sm:$0xff]  }
  0x63   : > { %5884 = vmatmul.msk.bf16.gmra.mxu2 %vm1532_vm10, %v1427_v32  ;;  %v876_v33 = vrot.slane %v874_v61, 7  ;;  %v565_v43 = vld [vmem:[#allocation2 + $0x28] sm:$0x1]  ;;  %v1368_v0 = vshll.u32 %v7590_v30, 16  ;;  %350 = vst [vmem:[#allocation2 + $0xe8] sm:$0xf] %v349_v36  ;;  %v1307_v45 = vsel %vm1271_vm9, %v7538_v17, %v7581_v16  ;;  %v453_v8 = vmul.f32 %v6837_v25, %v7176_v39 }
  0x64   : > { %v871_v47 = vor.u32 %v869_v19, %v868_v26  ;;  %v872_v32 = vrot.slane %v868_v26, 4  ;;  %v566_v12 = vsel %vm7090_vm3, %v557_v13, %v565_v43  ;;  %v773_v29 = vrot.slane %v7553_v44, 4  ;;  %270 = vst [vmem:[#allocation2 + $0x30] sm:$0x1] %v269_v46 }
  0x65   : > { %v879_v50 = vor.u32 %v877_v1, %v876_v33  ;;  %567 = vst [vmem:[#allocation2 + $0x28] sm:$0x1] %v566_v12  ;;  %v7608_v51 = vrot.slane %v1368_v0, 1  ;;  %v881_v20 = vrot.slane %v876_v33, 4  ;;  %v484_v28 = vpack.c.bf16 %v452_v27, %v452_v27  ;;  %v324_v0 = vld [vmem:[#allocation2 + $0xb0] sm:$0x1] }
  0x66   : > { %5892 = vmatmul.msk.bf16.gmra.mxu3 %vm1532_vm10, %v1491_v18  ;;  %v886_v55 = vsel %vm7097_vm6, %v871_v47, %v885_v31  ;;  %v7612_v13 = vld [vmem:[#allocation2 + $0xa0] sm:$0xff]  ;;  %v485_v41 = vpack.c.bf16 %v453_v8, %v453_v8  ;;  %v6852_v63 = vunpack.c.l.bf16 %v6907_v35  ;;  %v6853_v44 = vunpack.c.h.bf16 %v6907_v35 }
  0x67   : > { %v880_v17 = vsel %vm7107_vm8, %v872_v32, %v879_v50  ;;  %887 = vst [vmem:[#allocation2 + $0xe0] sm:$0xf] %v886_v55  ;;  %v1430_v15 = vor.u32 %v1428_v58, %v7534_v23  ;;  %v673_v38 = vld [vmem:[#allocation2 + $0x68] sm:$0x1]  ;;  %v569_v4 = vshrl.u32 %v484_v28, 16  ;;  %v572_v34 = vshll.u32 %v484_v28, 16 }
  0x68   : > { %888 = vst.msk [vmem:[#allocation2 + $0xe4] sm:$0xf] %vm246_vm4, %v880_v17  ;;  %v1432_v52 = vshll.u32 %v7612_v13, 16  ;;  %v674_v6 = vsel %vm7090_vm3, %v665_v42, %v673_v38  ;;  %v781_v49 = vld [vmem:[#allocation2 + $0xa8] sm:$0x1]  ;;  %v577_v53 = vshrl.u32 %v485_v41, 16  ;;  %v460_v19 = vmul.f32 %v6852_v63, %v7176_v39 }
  0x69   : > { %5869 = vmatmul.msk.bf16.gmra.mxu0 %vm1532_vm10, %v1307_v45  ;;  %v297_v14 = vsel %vm7090_vm3, 0, %v296_v37  ;;  %675 = vst [vmem:[#allocation2 + $0x68] sm:$0x1] %v674_v6  ;;  %v782_v62 = vsel %vm7090_vm3, %v773_v29, %v781_v49  ;;  %v571_v23 = vrot.slane %v569_v4, 7  ;;  %v580_v58 = vshll.u32 %v485_v41, 16 }
  0x6a   : > { %v1371_v61 = vsel %vm1271_vm9, %v1366_v3, %v7608_v51  ;;  %v7632_v1 = vrot.slane %v1432_v52, 1  ;;  %783 = vst [vmem:[#allocation2 + $0xa8] sm:$0x1] %v782_v62  ;;  %v889_v42 = vld [vmem:[#allocation2 + $0xe8] sm:$0x1]  ;;  %v7634_v40 = vrot.slane %v577_v53, 7  ;;  %v461_v25 = vmul.f32 %v6853_v44, %v7176_v39 }
  0x6b   : > { %v890_v26 = vsel %vm7090_vm3, %v881_v20, %v889_v42  ;;  %v574_v31 = vor.u32 %v572_v34, %v571_v23  ;;  %v575_v33 = vrot.slane %v571_v23, 4  ;;  %298 = vst [vmem:[#allocation2 + $0x70] sm:$0x1] %v297_v14  ;;  %v492_v43 = vpack.c.bf16 %v460_v19, %v460_v19  ;;  %v588_v46 = vld [vmem:[#allocation2 + $0x30] sm:$0xf] }
  0x6c   : > { %v7637_v18 = vld [vmem:[#allocation2 + $0x28] sm:$0xff]  ;;  %v1494_v3 = vor.u32 %v1492_v48, %v7565_v57  ;;  %891 = vst [vmem:[#allocation2 + $0xe8] sm:$0x1] %v890_v26  ;;  %v582_v36 = vor.u32 %v580_v58, %v7634_v40  ;;  %v493_v27 = vpack.c.bf16 %v461_v25, %v461_v25  ;;  %v6868_v47 = vunpack.c.l.bf16 %v6911_v21 }
  0x6d   : > { %v1435_v32 = vsel %vm1271_vm9, %v1430_v15, %v7632_v1  ;;  %v1312_v12 = vshll.u32 %v7637_v18, 16  ;;  %v589_v35 = vsel %vm7097_vm6, %v574_v31, %v588_v46  ;;  %v677_v45 = vshrl.u32 %v492_v43, 16 }
  0x6e   : > { %v583_v57 = vsel %vm7107_vm8, %v575_v33, %v582_v36  ;;  %590 = vst [vmem:[#allocation2 + $0x30] sm:$0xf] %v589_v35  ;;  %v680_v48 = vshll.u32 %v492_v43, 16  ;;  %v685_v50 = vshrl.u32 %v493_v27, 16  ;;  %v688_v29 = vshll.u32 %v493_v27, 16 }
  0x6f   : > { %v7651_v24 = vld [vmem:[#allocation2 + $0xe0] sm:$0xff]  ;;  %v1310_v8 = vor.u32 %v1308_v7, %v7581_v16  ;;  %591 = vst.msk [vmem:[#allocation2 + $0x34] sm:$0xf] %vm246_vm4, %v583_v57  ;;  %v679_v55 = vrot.slane %v677_v45, 7  ;;  %v325_v20 = vsel %vm7090_vm3, 0, %v324_v0  ;;  %v6869_v28 = vunpack.c.h.bf16 %v6911_v21 }
  0x70   : > { %5877 = vmatmul.msk.bf16.gmra.mxu1 %vm1532_vm10, %v1371_v61  ;;  %v1496_v37 = vshll.u32 %v7651_v24, 16  ;;  %v7662_v17 = vrot.slane %v1312_v12, 1  ;;  %v7664_v41 = vld [vmem:[#allocation2 + $0x68] sm:$0xff]  ;;  %v7666_v63 = vrot.slane %v685_v50, 7  ;;  %326 = vst [vmem:[#allocation2 + $0xb0] sm:$0x1] %v325_v20  ;;  %v468_v44 = vmul.f32 %v6868_v47, %v7176_v39 }
  0x71   : > { %v682_v7 = vor.u32 %v680_v48, %v679_v55  ;;  %v683_v16 = vrot.slane %v679_v55, 4  ;;  %v1372_v38 = vshrl.u32 %v7590_v30, 16  ;;  %v7671_v4 = vld [vmem:[#allocation2 + $0xa8] sm:$0xff]  ;;  %v1376_v6 = vshll.u32 %v7664_v41, 16  ;;  %v352_v61 = vld [vmem:[#allocation2 + $0xf0] sm:$0x1] }
  0x72   : > { %v1498_v15 = vrot.slane %v1496_v37, 1  ;;  %v690_v34 = vor.u32 %v688_v29, %v7666_v63  ;;  %v696_v52 = vld [vmem:[#allocation2 + $0x70] sm:$0xf]  ;;  %v469_v53 = vmul.f32 %v6869_v28, %v7176_v39  ;;  %v500_v14 = vpack.c.bf16 %v468_v44, %v468_v44  ;;  %v271_v36 = vld [vmem:[#allocation2 + $0x38] sm:$0xf] }
  0x73   : > { %5885 = vmatmul.msk.bf16.gmra.mxu2 %vm1532_vm10, %v1435_v32  ;;  %v697_v49 = vsel %vm7097_vm6, %v682_v7, %v696_v52  ;;  %v1315_v23 = vsel %vm1271_vm9, %v1310_v8, %v7662_v17  ;;  %v1436_v30 = vshrl.u32 %v7612_v13, 16  ;;  %v1440_v42 = vshll.u32 %v7671_v4, 16  ;;  %v7687_v25 = vld [vmem:[#allocation2 + $0xe8] sm:$0xff]  ;;  %v299_v8 = vld [vmem:[#allocation2 + $0x78] sm:$0xf] }
  0x74   : > { %v1499_v62 = vsel %vm1271_vm9, %v1494_v3, %v1498_v15  ;;  %v691_v58 = vsel %vm7107_vm8, %v683_v16, %v690_v34  ;;  %698 = vst [vmem:[#allocation2 + $0x70] sm:$0xf] %v697_v49  ;;  %v501_v19 = vpack.c.bf16 %v469_v53, %v469_v53  ;;  %v785_v21 = vshrl.u32 %v500_v14, 16  ;;  %v6915_v3 = vld [vmem:[%s7142_s27 + $0x70] sm:$0xff]   ;;  %v327_v37 = vld [vmem:[#allocation2 + $0xb8] sm:$0xf] }
  0x75   : > { %699 = vst.msk [vmem:[#allocation2 + $0x74] sm:$0xf] %vm246_vm4, %v691_v58  ;;  %v788_v26 = vshll.u32 %v500_v14, 16  ;;  %v1374_v13 = vor.u32 %v1372_v38, %v7608_v51  ;;  %v7691_v31 = vrot.slane %v1376_v6, 1  ;;  %v1438_v46 = vor.u32 %v1436_v30, %v7632_v1  ;;  %v355_v38 = vld [vmem:[#allocation2 + $0xf8] sm:$0xf] }
  0x76   : > { %5893 = vmatmul.msk.bf16.gmra.mxu3 %vm1532_vm10, %v1499_v62  ;;  %v787_v33 = vrot.slane %v785_v21, 7  ;;  %v793_v43 = vshrl.u32 %v501_v19, 16  ;;  %v7695_v27 = vld [vmem:[#allocation2 + $0x30] sm:$0xff]  ;;  %v1316_v0 = vshrl.u32 %v7637_v18, 16  ;;  %v796_v47 = vshll.u32 %v501_v19, 16 }
  0x77   : > { %v804_v32 = vld [vmem:[#allocation2 + $0xb0] sm:$0xf]  ;;  %v353_v12 = vsel %vm7090_vm3, 0, %v352_v61  ;;  %v1500_v35 = vshrl.u32 %v7651_v24, 16  ;;  %v7703_v48 = vrot.slane %v1440_v42, 1  ;;  %v1504_v1 = vshll.u32 %v7687_v25, 16 }
  0x78   : > { %v790_v51 = vor.u32 %v788_v26, %v787_v33  ;;  %v791_v45 = vrot.slane %v787_v33, 4  ;;  %v7701_v57 = vrot.slane %v793_v43, 7  ;;  %354 = vst [vmem:[#allocation2 + $0xf0] sm:$0x1] %v353_v12  ;;  %v6884_v50 = vunpack.c.l.bf16 %v6915_v3 }
  0x79   : > { %5870 = vmatmul.msk.bf16.gmra.mxu0 %vm1532_vm10, %v1315_v23  ;;  %v6885_v29 = vunpack.c.h.bf16 %v6915_v3  ;;  %v1379_v55 = vsel %vm1271_vm9, %v1374_v13, %v7691_v31  ;;  %v272_v28 = vsel %vm7097_vm6, 0, %v271_v36  ;;  %v1320_v44 = vshll.u32 %v7695_v27, 16  ;;  %v359_v23 = vld [vmem:[#allocation2 + $0x100] sm:$0x1] }
  0x7a   : > { %v798_v20 = vor.u32 %v796_v47, %v7701_v57  ;;  %v805_v24 = vsel %vm7097_vm6, %v790_v51, %v804_v32  ;;  %v476_v7 = vmul.f32 %v6884_v50, %v7176_v39  ;;  %v1502_v34 = vor.u32 %v1500_v35, %v1498_v15  ;;  %273 = vst [vmem:[#allocation2 + $0x38] sm:$0xf] %v272_v28  ;;  %v6916_v15 = vld [vmem:[%s7142_s27 + $0x78] sm:$0xff]  }
  0x7b   : > { %806 = vst [vmem:[#allocation2 + $0xb0] sm:$0xf] %v805_v24  ;;  %v477_v16 = vmul.f32 %v6885_v29, %v7176_v39  ;;  %v300_v6 = vsel %vm7097_vm6, 0, %v299_v8  ;;  %v1443_v49 = vsel %vm1271_vm9, %v1438_v46, %v7703_v48  ;;  %v7723_v53 = vrot.slane %v1504_v1, 1 }
  0x7c   : > { %v799_v52 = vsel %vm7107_vm8, %v791_v45, %v798_v20  ;;  %v508_v14 = vpack.c.bf16 %v476_v7, %v476_v7  ;;  %v1318_v30 = vor.u32 %v1316_v0, %v7662_v17  ;;  %v7728_v58 = vld [vmem:[#allocation2 + $0x70] sm:$0xff]  ;;  %v1380_v19 = vshrl.u32 %v7664_v41, 16  ;;  %301 = vst [vmem:[#allocation2 + $0x78] sm:$0xf] %v300_v6 }
  0x7d   : > { %807 = vst.msk [vmem:[#allocation2 + $0xb4] sm:$0xf] %vm246_vm4, %v799_v52  ;;  %v509_v62 = vpack.c.bf16 %v477_v16, %v477_v16  ;;  %v328_v21 = vsel %vm7097_vm6, 0, %v327_v37  ;;  %v356_v61 = vsel %vm7097_vm6, 0, %v355_v38  ;;  %v7735_v42 = vrot.slane %v1320_v44, 1 }
  0x7e   : > { %v893_v26 = vshrl.u32 %v508_v14, 16  ;;  %v896_v13 = vshll.u32 %v508_v14, 16  ;;  %v584_v17 = vrot.slane %v7634_v40, 4  ;;  %329 = vst [vmem:[#allocation2 + $0xb8] sm:$0xf] %v328_v21  ;;  %v360_v3 = vsel %vm7090_vm3, 0, %v359_v23 }
  0x7f   : > { %v901_v33 = vshrl.u32 %v509_v62, 16  ;;  %v904_v43 = vshll.u32 %v509_v62, 16  ;;  %v6888_v36 = vunpack.c.l.bf16 %v6916_v15  ;;  %v1507_v46 = vsel %vm1271_vm9, %v1502_v34, %v7723_v53  ;;  %357 = vst [vmem:[#allocation2 + $0xf8] sm:$0xf] %v356_v61  ;;  %v912_v12 = vld [vmem:[#allocation2 + $0xf0] sm:$0xf] }
  0x80   : > { %5878 = vmatmul.msk.bf16.gmra.mxu1 %vm1532_vm10, %v1379_v55  ;;  %v895_v0 = vrot.slane %v893_v26, 7  ;;  %v1384_v32 = vshll.u32 %v7728_v58, 16  ;;  %v692_v35 = vrot.slane %v7666_v63, 4  ;;  %361 = vst [vmem:[#allocation2 + $0x100] sm:$0x1] %v360_v3  ;;  %v1323_v40 = vsel %vm1271_vm9, %v1318_v30, %v7735_v42 }
  0x81   : > { %v903_v47 = vrot.slane %v901_v33, 7  ;;  %v478_v51 = vmul.f32 %v6888_v36, %v7176_v39  ;;  %v592_v29 = vld [vmem:[#allocation2 + $0x38] sm:$0x1]  ;;  %v1382_v8 = vor.u32 %v1380_v19, %v7691_v31  ;;  %v800_v63 = vrot.slane %v7701_v57, 4 }
  0x82   : > { %v898_v45 = vor.u32 %v896_v13, %v895_v0  ;;  %v899_v1 = vrot.slane %v895_v0, 4  ;;  %v593_v20 = vsel %vm7090_vm3, %v584_v17, %v592_v29  ;;  %v1444_v28 = vshrl.u32 %v7671_v4, 16 }
  0x83   : > { %5886 = vmatmul.msk.bf16.gmra.mxu2 %vm1532_vm10, %v1443_v49  ;;  %v906_v50 = vor.u32 %v904_v43, %v903_v47  ;;  %v510_v24 = vpack.c.bf16 %v478_v51, %v478_v51  ;;  %594 = vst [vmem:[#allocation2 + $0x38] sm:$0x1] %v593_v20  ;;  %v700_v7 = vld [vmem:[#allocation2 + $0x78] sm:$0x1]  ;;  %v908_v16 = vrot.slane %v903_v47, 4  ;;  %v1386_v31 = vrot.slane %v1384_v32, 1 }
  0x84   : > { %v6690_v55 = vld [vmem:[#allocation2 + $0xb0] sm:$0xff]  ;;  %v913_v44 = vsel %vm7097_vm6, %v898_v45, %v912_v12  ;;  %v701_v57 = vsel %vm7090_vm3, %v692_v35, %v700_v7  ;;  %v1446_v62 = vor.u32 %v1444_v28, %v7703_v48  ;;  %v1324_v61 = vshrl.u32 %v7695_v27, 16 }
  0x85   : > { %v907_v37 = vsel %vm7107_vm8, %v899_v1, %v906_v50  ;;  %v1448_v38 = vshll.u32 %v6690_v55, 16  ;;  %914 = vst [vmem:[#allocation2 + $0xf0] sm:$0xf] %v913_v44  ;;  %v920_v34 = vshrl.u32 %v510_v24, 16  ;;  %v808_v4 = vld [vmem:[#allocation2 + $0xb8] sm:$0x1]  ;;  %v1387_v19 = vsel %vm1271_vm9, %v1382_v8, %v1386_v31 }
  0x86   : > { %5894 = vmatmul.msk.bf16.gmra.mxu3 %vm1532_vm10, %v1507_v46  ;;  %915 = vst.msk [vmem:[#allocation2 + $0xf4] sm:$0xf] %vm246_vm4, %v907_v37  ;;  %v923_v52 = vshll.u32 %v510_v24, 16  ;;  %v809_v6 = vsel %vm7090_vm3, %v800_v63, %v808_v4  ;;  %v916_v49 = vld [vmem:[#allocation2 + $0xf8] sm:$0x1]  ;;  %v1508_v26 = vshrl.u32 %v7687_v25, 16  ;;  %v1326_v3 = vor.u32 %v1324_v61, %v7735_v42 }
  0x87   : > { %702 = vst [vmem:[#allocation2 + $0x78] sm:$0x1] %v701_v57  ;;  %v7764_v14 = vrot.slane %v920_v34, 7  ;;  %v1450_v23 = vrot.slane %v1448_v38, 1  ;;  %v917_v15 = vsel %vm7090_vm3, %v908_v16, %v916_v49  ;;  %v939_v30 = vld [vmem:[#allocation2 + $0x100] sm:$0xf] }
  0x88   : > { %810 = vst [vmem:[#allocation2 + $0xb8] sm:$0x1] %v809_v6  ;;  %v1510_v25 = vor.u32 %v1508_v26, %v7723_v53  ;;  %v1388_v12 = vshrl.u32 %v7728_v58, 16  ;;  %v1452_v42 = vshrl.u32 %v6690_v55, 16  ;;  %v6920_v4 = vld [vmem:[#allocation2 + $0x10] sm:$0xff]  }
  0x89   : > { %5871 = vmatmul.msk.bf16.gmra.mxu0 %vm1532_vm10, %v1323_v40  ;;  %918 = vst [vmem:[#allocation2 + $0xf8] sm:$0x1] %v917_v15  ;;  %v925_v21 = vor.u32 %v923_v52, %v7764_v14  ;;  %v1451_v33 = vsel %vm1271_vm9, %v1446_v62, %v1450_v23  ;;  %v6314_v6 = vld [vmem:[%s8723_s2 + $0x18] sm:$0xf]  ;;  %v6475_v49 = vld [vmem:[%s8723_s2 + $0x1c] sm:$0xf] }
  0x8a   : > { %v7773_v13 = vld [vmem:[#allocation2 + $0x38] sm:$0xff]  ;;  %v1390_v1 = vor.u32 %v1388_v12, %v1386_v31  ;;  %v1454_v29 = vor.u32 %v1452_v42, %v1450_v23  ;;  %v4228_v15 = vsel %vm1629_vm0, %v6314_v6, 0  ;;  %v3041_v61 = vshll.u32 %v6920_v4, 16  ;;  %v6917_v42 = vld [vmem:[#allocation2] sm:$0xf0]  ;;  %v6959_v6 = vld [vmem:[#allocation2 + $0x10] sm:$0xff] }
  0x8b   : > { %v940_v48 = vsel %vm7097_vm6, %v925_v21, %v939_v30  ;;  %v1328_v17 = vshll.u32 %v7773_v13, 16  ;;  %v1332_v28 = vshrl.u32 %v7773_v13, 16  ;;  %v6281_v30 = vld [vmem:[%s8723_s2 + $0x14] sm:$0xf]  ;;  %v6732_v21 = vld [vmem:[#allocation2 + $0x18] sm:$0xff]  ;;  %4237 = vmatpush.bf16.msra.mxu2 %v4228_v15 }
  0x8c   : > { %941 = vst [vmem:[#allocation2 + $0x100] sm:$0xf] %v940_v48  ;;  %v3734_v26 = vsel %vm1629_vm0, %v6281_v30, 0 }
  0x8d   : > { %v6698_v43 = vld [vmem:[#allocation2 + $0xf0] sm:$0xff]  ;;  %v1330_v0 = vrot.slane %v1328_v17, 1  ;;  %3743 = vmatpush.bf16.msra.mxu1 %v3734_v26 }
  0x8e   : > { %v7781_v36 = vld [vmem:[#allocation2 + $0x78] sm:$0xff]  ;;  %v1512_v46 = vshll.u32 %v6698_v43, 16  ;;  %v1516_v63 = vshrl.u32 %v6698_v43, 16 }
  0x8f   : > { %v6691_v47 = vld [vmem:[#allocation2 + $0xb8] sm:$0xff]  ;;  %v1392_v35 = vshll.u32 %v7781_v36, 16  ;;  %v1331_v51 = vsel %vm1271_vm9, %v1326_v3, %v1330_v0  ;;  %v1334_v7 = vor.u32 %v1332_v28, %v1330_v0  ;;  %v1396_v38 = vshrl.u32 %v7781_v36, 16 }
  0x90   : > { %5879 = vmatmul.msk.bf16.gmra.mxu1 %vm1532_vm10, %v1387_v19  ;;  %v1514_v32 = vrot.slane %v1512_v46, 1  ;;  %v1456_v45 = vshll.u32 %v6691_v47, 16  ;;  %v6699_v50 = vld [vmem:[#allocation2 + $0xf8] sm:$0xff]  ;;  %v1460_v52 = vshrl.u32 %v6691_v47, 16  ;;  %v6632_v19 = vld [vmem:[%s8723_s2 + $0x20] sm:$0xf] }
  0x91   : > { %v1394_v53 = vrot.slane %v1392_v35, 1  ;;  %v1520_v24 = vshll.u32 %v6699_v50, 16  ;;  %v1339_v34 = vsel %vm1271_vm9, %v1334_v7, %v7414_v60  ;;  %v4986_v60 = vsel %vm1629_vm0, %v6475_v49, 0 }
  0x92   : > { %v1515_v40 = vsel %vm1271_vm9, %v1510_v25, %v1514_v32  ;;  %v1458_v8 = vrot.slane %v1456_v45, 1  ;;  %v1518_v44 = vor.u32 %v1516_v63, %v1514_v32  ;;  %4995 = vmatpush.bf16.msra.mxu3 %v4986_v60  ;;  %v5325_v48 = vsel %vm1629_vm0, %v6632_v19, 0  ;;  %v6918_v45 = vld [vmem:[#allocation2] sm:$0xe] }
  0x93   : > { %5887 = vmatmul.msk.bf16.gmra.mxu2 %vm1532_vm10, %v1451_v33  ;;  %v1395_v20 = vsel %vm1271_vm9, %v1390_v1, %v1394_v53  ;;  %v1522_v55 = vrot.slane %v1520_v24, 1  ;;  %v1105_v16 = vld [vmem:[#allocation2 + $0x100] sm:$0x1]  ;;  %v1398_v62 = vor.u32 %v1396_v38, %v1394_v53  ;;  %5334 = vmatpush.bf16.msra.mxu0 %v5325_v48  ;;  %v1524_v17 = vshrl.u32 %v6699_v50, 16 }
  0x94   : > { %v1459_v37 = vsel %vm1271_vm9, %v1454_v29, %v1458_v8  ;;  %v1237_v57 = vunpack.c.l.b16 %v1105_v16  ;;  %v1462_v33 = vor.u32 %v1460_v52, %v1458_v8  ;;  %v3039_v25 = vshrl.u32 %v6920_v4, 16  ;;  %v6957_v29 = vld [vmem:[#allocation2 + $0x8] sm:$0xff]  ;;  %v6700_v16 = vld [vmem:[#allocation2 + $0x10] sm:$0xff] }
  0x95   : > { %v1523_v31 = vsel %vm1271_vm9, %v1518_v44, %v1522_v55  ;;  %v1403_v43 = vsel %vm1271_vm9, %v1398_v62, %v7421_v59  ;;  %v3043_v46 = vrot.slane %v3041_v61, 1  ;;  %v3046_v0 = vshll.u32 %v6732_v21, 16  ;;  %v6734_v52 = vld [vmem:[#allocation2 + $0x28] sm:$0xff] }
  0x96   : > { %5895 = vmatmul.msk.bf16.gmra.mxu3 %vm1532_vm10, %v1515_v40  ;;  %v7808_v23 = vpack.c.b16 %v1237_v57, %v1237_v57  ;;  %v1467_v47 = vsel %vm1271_vm9, %v1462_v33, %v7434_v56  ;;  %v1526_v32 = vor.u32 %v1524_v17, %v1522_v55  ;;  %v6919_v53 = vor.u32 %v6918_v45, %v6917_v42  ;;  %v6733_v56 = vld [vmem:[#allocation2 + $0x20] sm:$0xff]  ;;  %v6701_v33 = vld [vmem:[#allocation2 + $0x18] sm:$0xff] }
  0x97   : > { %v3048_v40 = vrot.slane %v3046_v0, 1  ;;  %v1982_v8 = vrot.slane %v6957_v29, 1  ;;  %v3050_v24 = vshrl.u32 %v6732_v21, 16  ;;  %v3054_v28 = vshll.u32 %v6733_v56, 16  ;;  %v6735_v0 = vld [vmem:[#allocation2 + $0x30] sm:$0xff] }
  0x98   : > { %v1528_v3 = vshll.u32 %v7808_v23, 16  ;;  %v1981_v50 = vrot.slane %v6919_v53, 1  ;;  %v1984_v49 = vrot.slane %v6959_v6, 1  ;;  %v3058_v30 = vshrl.u32 %v6733_v56, 16  ;;  %v6702_v56 = vld [vmem:[#allocation2 + $0x20] sm:$0xff] }
  0x99   : > { %5872 = vmatmul.msk.bf16.gmra.mxu0 %vm1532_vm10, %v1331_v51  ;;  %v3044_v51 = vor.u32 %v3043_v46, %v3039_v25  ;;  %v3052_v55 = vor.u32 %v3050_v24, %v3048_v40  ;;  %v3056_v7 = vrot.slane %v3054_v28, 1  ;;  %v3062_v19 = vshll.u32 %v6734_v52, 16 }
  0x9a   : > { %v1530_v12 = vrot.slane %v1528_v3, 1  ;;  %v1983_v44 = vsel %vm1980_vm11, %v1981_v50, %v1982_v8  ;;  %v1985_v21 = vsel %vm1980_vm11, %v1982_v8, %v1984_v49 }
  0x9b   : > { %v3049_v1 = vsel %vm1271_vm9, %v3044_v51, %v3048_v40  ;;  %v3060_v26 = vor.u32 %v3058_v30, %v3056_v7  ;;  %v3064_v48 = vrot.slane %v3062_v19, 1  ;;  %v3066_v40 = vshrl.u32 %v6734_v52, 16 }
  0x9c   : > { %v1531_v59 = vsel %vm1271_vm9, %v1526_v32, %v1530_v12 }
  0x9d   : > { %v3065_v25 = vsel %vm1271_vm9, %v3060_v26, %v3064_v48 }
  0xa0   : > { %5880 = vmatmul.msk.bf16.gmra.mxu1 %vm1532_vm10, %v1395_v20 }
  0xa3   : > { %5888 = vmatmul.msk.bf16.gmra.mxu2 %vm1532_vm10, %v1459_v37  ;;  %v6958_v37 = vld [vmem:[#allocation2] sm:$0xff]  }
  0xa5   : > { %v7826_v35 = vpop.f32.mrf.mxu0 }
  0xa6   : > { %5896 = vmatmul.msk.bf16.gmra.mxu3 %vm1532_vm10, %v1523_v31 }
  0xa9   : > { %5873 = vmatmul.msk.bf16.gmra.mxu0 %vm1532_vm10, %v1339_v34  ;;  %v3057_v34 = vsel %vm1271_vm9, %v3052_v55, %v3056_v7 }
  0xad   : > { %v7833_v20 = vpop.f32.mrf.mxu0 }
  0xb0   : > { %5881 = vmatmul.msk.bf16.gmra.mxu1 %vm1532_vm10, %v1403_v43 }
  0xb3   : > { %5889 = vmatmul.msk.bf16.gmra.mxu2 %vm1532_vm10, %v1467_v47  ;;  %v1986_v47 = vrot.slane %v7498_v22, 1 }
  0xb5   : > { %v1987_v42 = vsel %vm1980_vm11, %v1984_v49, %v1986_v47 }
  0xb6   : > { %5897 = vmatmul.msk.bf16.gmra.mxu3 %vm1532_vm10, %v1531_v59  ;;  %v3070_v59 = vshll.u32 %v6735_v0, 16 }
  0xb8   : > { %v3072_v53 = vrot.slane %v3070_v59, 1 }
  0xb9   : > { %6249 = vmatmul.msk.bf16.vlgmr.msrb.gmra.mxu0 %vm1532_vm10, %v3049_v1  ;;  %v3068_v1 = vor.u32 %v3066_v40, %v3064_v48  ;;  %v6737_v48 = vld [vmem:[#allocation2 + $0x40] sm:$0xff] }
  0xbb   : > { %v3073_v24 = vsel %vm1271_vm9, %v3068_v1, %v3072_v53 }
  0xbd   : > { %v7835_v63 = vpop.f32.mrf.mxu1 }
  0xc0   : > { %5898 = vmatmul.msk.bf16.vlgmr.msrb.gmra.mxu1 %vm1532_vm10, %v6958_v37  ;;  %v6736_v37 = vld [vmem:[#allocation2 + $0x38] sm:$0xff] }
  0xc3   : > { %5931 = vmatmul.msk.bf16.vlgmr.msrb.gmra.mxu2 %vm1532_vm10, %v1983_v44  ;;  %v1988_v44 = vrot.slane %v7561_v54, 1 }
  0xc5   : > { %v7840_v31 = vpop.f32.mrf.mxu1  ;;  %v1989_v52 = vsel %vm1980_vm11, %v1986_v47, %v1988_v44 }
  0xc6   : > { %v7842_v38 = vpop.f32.mrf.mxu2  ;;  %v1647_v57 = vpop.f32.mrf.mxu0  ;;  %6092 = vmatmul.msk.bf16.vlgmr.msrb.gmra.mxu3 %vm1532_vm10, %v6700_v16 }
  0xc7   : > { %v3074_v57 = vshrl.u32 %v6735_v0, 16  ;;  %v3086_v0 = vshll.u32 %v6737_v48, 16 }
  0xc9   : > { %v7846_v4 = vpop.f32.mrf.mxu3  ;;  %6250 = vmatmul.msk.bf16.gmra.mxu0 %vm1532_vm10, %v3057_v34  ;;  %v3078_v34 = vshll.u32 %v6736_v37, 16  ;;  %v3076_v49 = vor.u32 %v3074_v57, %v3072_v53  ;;  %v3088_v59 = vrot.slane %v3086_v0, 1 }
  0xcd   : > { %v1679_v62 = vpop.f32.mrf.mxu1 }
  0xce   : > { %v7849_v15 = vpop.f32.mrf.mxu2  ;;  %v1648_v60 = vpop.f32.mrf.mxu0  ;;  %v3080_v62 = vrot.slane %v3078_v34, 1 }
  0xcf   : > { %v6703_v60 = vld [vmem:[#allocation2 + $0x28] sm:$0xff] }
  0xd0   : > { %5899 = vmatmul.msk.bf16.gmra.mxu1 %vm1532_vm10, %v6957_v29  ;;  %v3081_v26 = vsel %vm1271_vm9, %v3076_v49, %v3080_v62 }
  0xd1   : > { %v7853_v61 = vpop.f32.mrf.mxu3 }
  0xd3   : > { %5932 = vmatmul.msk.bf16.gmra.mxu2 %vm1532_vm10, %v1985_v21 }
  0xd5   : > { %v1680_v43 = vpop.f32.mrf.mxu1 }
  0xd6   : > { %v1711_v17 = vpop.f32.mrf.mxu2  ;;  %v7856_v3 = vpop.f32.mrf.mxu0  ;;  %6093 = vmatmul.msk.bf16.gmra.mxu3 %vm1532_vm10, %v6701_v33  ;;  %v1990_v33 = vrot.slane %v7637_v18, 1 }
  0xd8   : > { %v1991_v47 = vsel %vm1980_vm11, %v1988_v44, %v1990_v33 }
  0xd9   : > { %v1743_v46 = vpop.f32.mrf.mxu3  ;;  %6251 = vmatmul.msk.bf16.gmra.mxu0 %vm1532_vm10, %v3065_v25 }
  0xda   : > { %v3082_v46 = vshrl.u32 %v6736_v37, 16 }
  0xdc   : > { %v3084_v40 = vor.u32 %v3082_v46, %v3080_v62 }
  0xdd   : > { %v7862_v32 = vpop.f32.mrf.mxu1 }
  0xde   : > { %v1712_v12 = vpop.f32.mrf.mxu2  ;;  %v7864_v51 = vpop.f32.mrf.mxu0 }
  0xe0   : > { %5900 = vmatmul.msk.bf16.gmra.mxu1 %vm1532_vm10, %v6959_v6 }
  0xe1   : > { %v1744_v45 = vpop.f32.mrf.mxu3 }
  0xe3   : > { %5933 = vmatmul.msk.bf16.gmra.mxu2 %vm1532_vm10, %v1987_v42  ;;  %v6704_v42 = vld [vmem:[#allocation2 + $0x30] sm:$0xff] }
  0xe5   : > { %v7869_v50 = vpop.f32.mrf.mxu1 }
  0xe6   : > { %v7871_v29 = vpop.f32.mrf.mxu2  ;;  %v1655_v8 = vpop.f32.mrf.mxu0  ;;  %6094 = vmatmul.msk.bf16.gmra.mxu3 %vm1532_vm10, %v6702_v56  ;;  %v3089_v56 = vsel %vm1271_vm9, %v3084_v40, %v3088_v59 }
  0xe7   : > { %v6738_v8 = vld [vmem:[#allocation2 + $0x48] sm:$0xff] }
  0xe8   : > { %v3094_v57 = vshll.u32 %v6738_v8, 16 }
  0xe9   : > { %v7875_v28 = vpop.f32.mrf.mxu3  ;;  %6252 = vmatmul.msk.bf16.gmra.mxu0 %vm1532_vm10, %v3073_v24  ;;  %v1992_v24 = vrot.slane %v7695_v27, 1 }
  0xea   : > { %v3096_v62 = vrot.slane %v3094_v57, 1 }
  0xeb   : > { %v1993_v34 = vsel %vm1980_vm11, %v1990_v33, %v1992_v24  ;;  %v1994_v33 = vrot.slane %v7773_v13, 1 }
  0xed   : > { %v1687_v55 = vpop.f32.mrf.mxu1  ;;  %v1995_v40 = vsel %vm1980_vm11, %v1992_v24, %v1994_v33  ;;  %v6960_v24 = vld [vmem:[#allocation2 + $0x40] sm:$0xff] }
  0xee   : > { %v7879_v7 = vpop.f32.mrf.mxu2  ;;  %v1656_v16 = vpop.f32.mrf.mxu0 }
  0xef   : > { %v3090_v16 = vshrl.u32 %v6737_v48, 16 }
  0xf0   : > { %5901 = vmatmul.msk.bf16.gmra.mxu1 %vm1532_vm10, %v7498_v22 }
  0xf1   : > { %v7884_v6 = vpop.f32.mrf.mxu3  ;;  %v3092_v49 = vor.u32 %v3090_v16, %v3088_v59 }
  0xf3   : > { %5934 = vmatmul.msk.bf16.gmra.mxu2 %vm1532_vm10, %v1989_v52 }
  0xf5   : > { %v1688_v30 = vpop.f32.mrf.mxu1 }
  0xf6   : > { %v1719_v19 = vpop.f32.mrf.mxu2  ;;  %v7887_v21 = vpop.f32.mrf.mxu0  ;;  %6095 = vmatmul.msk.bf16.gmra.mxu3 %vm1532_vm10, %v6703_v60  ;;  %v6705_v60 = vld [vmem:[#allocation2 + $0x38] sm:$0xff] }
  0xf9   : > { %6253 = vmatmul.msk.bf16.gmra.mxu0 %vm1532_vm10, %v3081_v26  ;;  %v1751_v22 = vpop.f32.mrf.mxu3 }
  0xfa   : > { %v3097_v22 = vsel %vm1271_vm9, %v3092_v49, %v3096_v62 }
  0xfd   : > { %v7893_v43 = vpop.f32.mrf.mxu1 }
  0xfe   : > { %v1720_v17 = vpop.f32.mrf.mxu2  ;;  %v7895_v25 = vpop.f32.mrf.mxu0 }
 0x100   : > { %5902 = vmatmul.msk.bf16.gmra.mxu1 %vm1532_vm10, %v7561_v54 }
 0x101   : > { %v1752_v12 = vpop.f32.mrf.mxu3 }
 0x103   : > { %5935 = vmatmul.msk.bf16.gmra.mxu2 %vm1532_vm10, %v1991_v47  ;;  %v3098_v47 = vshrl.u32 %v6738_v8, 16 }
 0x105   : > { %v7901_v45 = vpop.f32.mrf.mxu1  ;;  %v3100_v59 = vor.u32 %v3098_v47, %v3096_v62 }
 0x106   : > { %v7903_v1 = vpop.f32.mrf.mxu2  ;;  %v1663_v53 = vpop.f32.mrf.mxu0  ;;  %6096 = vmatmul.msk.bf16.gmra.mxu3 %vm1532_vm10, %v6704_v42 }
 0x109   : > { %6254 = vmatmul.msk.bf16.gmra.mxu0 %vm1532_vm10, %v3089_v56  ;;  %v7908_v54 = vpop.f32.mrf.mxu3  ;;  %v6706_v56 = vld [vmem:[#allocation2 + $0x40] sm:$0xff] }
 0x10d   : > { %v1695_v37 = vpop.f32.mrf.mxu1 }
 0x10e   : > { %v7911_v44 = vpop.f32.mrf.mxu2  ;;  %v1664_v55 = vpop.f32.mrf.mxu0 }
 0x110   : > { %5903 = vmatmul.msk.bf16.gmra.mxu1 %vm1532_vm10, %v7637_v18  ;;  %v6739_v18 = vld [vmem:[#allocation2 + $0x50] sm:$0xff] }
 0x111   : > { %v7916_v52 = vpop.f32.mrf.mxu3  ;;  %v3102_v12 = vshll.u32 %v6739_v18, 16 }
 0x113   : > { %5936 = vmatmul.msk.bf16.gmra.mxu2 %vm1532_vm10, %v1993_v34  ;;  %v3104_v42 = vrot.slane %v3102_v12, 1  ;;  %v1996_v34 = vrot.slane %v6960_v24, 1  ;;  %v6707_v12 = vld [vmem:[#allocation2 + $0x48] sm:$0xff] }
 0x115   : > { %v1696_v30 = vpop.f32.mrf.mxu1  ;;  %v3105_v57 = vsel %vm1271_vm9, %v3100_v59, %v3104_v42 }
 0x116   : > { %v1727_v19 = vpop.f32.mrf.mxu2  ;;  %v7919_v26 = vpop.f32.mrf.mxu0  ;;  %6097 = vmatmul.msk.bf16.gmra.mxu3 %vm1532_vm10, %v6705_v60  ;;  %v3106_v30 = vshrl.u32 %v6739_v18, 16  ;;  %v6741_v18 = vld [vmem:[#allocation2 + $0x60] sm:$0xff] }
 0x119   : > { %6255 = vmatmul.msk.bf16.gmra.mxu0 %vm1532_vm10, %v3097_v22  ;;  %v1759_v48 = vpop.f32.mrf.mxu3  ;;  %v1997_v22 = vsel %vm1980_vm11, %v1994_v33, %v1996_v34 }
 0x11a   : > { %v3108_v48 = vor.u32 %v3106_v30, %v3104_v42  ;;  %v3118_v30 = vshll.u32 %v6741_v18, 16 }
 0x11d   : > { %v7925_v17 = vpop.f32.mrf.mxu1 }
 0x11e   : > { %v1728_v46 = vpop.f32.mrf.mxu2  ;;  %v7927_v0 = vpop.f32.mrf.mxu0 }
 0x120   : > { %5904 = vmatmul.msk.bf16.gmra.mxu1 %vm1532_vm10, %v7695_v27  ;;  %v6740_v27 = vld [vmem:[#allocation2 + $0x58] sm:$0xff] }
 0x121   : > { %v1760_v53 = vpop.f32.mrf.mxu3  ;;  %v3110_v19 = vshll.u32 %v6740_v27, 16 }
 0x123   : > { %5937 = vmatmul.msk.bf16.gmra.mxu2 %vm1532_vm10, %v1995_v40  ;;  %v3112_v46 = vrot.slane %v3110_v19, 1 }
 0x125   : > { %v7933_v37 = vpop.f32.mrf.mxu1 }
 0x126   : > { %v7935_v55 = vpop.f32.mrf.mxu2  ;;  %v1671_v16 = vpop.f32.mrf.mxu0  ;;  %6098 = vmatmul.msk.bf16.gmra.mxu3 %vm1532_vm10, %v6706_v56  ;;  %v3113_v56 = vsel %vm1271_vm9, %v3108_v48, %v3112_v46 }
 0x127   : > { %v6961_v16 = vld [vmem:[#allocation2 + $0x48] sm:$0xff] }
 0x128   : > { %v1998_v33 = vrot.slane %v6961_v16, 1 }
 0x129   : > { %6256 = vmatmul.msk.bf16.gmra.mxu0 %vm1532_vm10, %v3105_v57  ;;  %v7940_v8 = vpop.f32.mrf.mxu3 }
 0x12a   : > { %8734 = vst [vmem:[#allocation4_spill] sm:$0xff] %v7940_v8  ;;  %v1999_v19 = vsel %vm1980_vm11, %v1996_v34, %v1998_v33 }
 0x12d   : > { %v1703_v49 = vpop.f32.mrf.mxu1 }
 0x12e   : > { %v7942_v62 = vpop.f32.mrf.mxu2  ;;  %v1672_v60 = vpop.f32.mrf.mxu0 }
 0x12f   : > { %v3114_v60 = vshrl.u32 %v6740_v27, 16  ;;  %v6742_v27 = vld [vmem:[#allocation2 + $0x68] sm:$0xff] }
 0x130   : > { %5905 = vmatmul.msk.bf16.gmra.mxu1 %vm1532_vm10, %v7773_v13  ;;  %v3126_v8 = vshll.u32 %v6742_v27, 16 }
 0x131   : > { %v7947_v47 = vpop.f32.mrf.mxu3 }
 0x132   : > { %8735 = vst [vmem:[#allocation5_spill] sm:$0xff] %v7947_v47 }
 0x133   : > { %5938 = vmatmul.msk.bf16.gmra.mxu2 %vm1532_vm10, %v1997_v22  ;;  %v3116_v22 = vor.u32 %v3114_v60, %v3112_v46  ;;  %v6962_v46 = vld [vmem:[#allocation2 + $0x50] sm:$0xff] }
 0x134   : > { %v2000_v60 = vrot.slane %v6962_v46, 1 }
 0x135   : > { %v1704_v40 = vpop.f32.mrf.mxu1 }
 0x136   : > { %v1735_v59 = vpop.f32.mrf.mxu2  ;;  %v3406_v53 = vpop.f32.mrf.mxu0  ;;  %6099 = vmatmul.msk.bf16.gmra.mxu3 %vm1532_vm10, %v6707_v12  ;;  %v3120_v40 = vrot.slane %v3118_v30, 1  ;;  %v6708_v12 = vld [vmem:[#allocation2 + $0x50] sm:$0xff] }
 0x139   : > { %6257 = vmatmul.msk.bf16.gmra.mxu0 %vm1532_vm10, %v3113_v56  ;;  %v1767_v13 = vpop.f32.mrf.mxu3 }
 0x13d   : > { %v1846_v42 = vpop.f32.mrf.mxu1 }
 0x13e   : > { %v1736_v57 = vpop.f32.mrf.mxu2  ;;  %v3408_v49 = vpop.f32.mrf.mxu0  ;;  %v1847_v59 = vadd.f32 %v1846_v42, %v7826_v35  ;;  %v3122_v42 = vshrl.u32 %v6741_v18, 16 }
 0x13f   : > { %v3121_v57 = vsel %vm1271_vm9, %v3116_v22, %v3120_v40 }
 0x140   : > { %5906 = vmatmul.msk.bf16.gmra.mxu1 %vm1532_vm10, %v6960_v24 }
 0x141   : > { %v1768_v48 = vpop.f32.mrf.mxu3 }
 0x143   : > { %5939 = vmatmul.msk.bf16.gmra.mxu2 %vm1532_vm10, %v1999_v19 }
 0x145   : > { %v1848_v56 = vpop.f32.mrf.mxu1 }
 0x146   : > { %v2154_v13 = vpop.f32.mrf.mxu2  ;;  %v3411_v11 = vpop.f32.mrf.mxu0  ;;  %6100 = vmatmul.msk.bf16.gmra.mxu3 %vm1532_vm10, %v6708_v12  ;;  %v1849_v30 = vadd.f32 %v1848_v56, %v7833_v20  ;;  %v2001_v12 = vsel %vm1980_vm11, %v1998_v33, %v2000_v60  ;;  %v6963_v33 = vld [vmem:[#allocation2 + $0x58] sm:$0xff] }
 0x147   : > { %v2282_v47 = vadd.f32 %v2154_v13, %v1847_v59  ;;  %v3124_v59 = vor.u32 %v3122_v42, %v3120_v40  ;;  %v3128_v13 = vrot.slane %v3126_v8, 1  ;;  %v2002_v8 = vrot.slane %v6963_v33, 1 }
 0x149   : > { %6258 = vmatmul.msk.bf16.gmra.mxu0 %vm1532_vm10, %v3121_v57  ;;  %v2648_v24 = vpop.f32.mrf.mxu3  ;;  %v3129_v18 = vsel %vm1271_vm9, %v3124_v59, %v3128_v13 }
 0x14a   : > { %v2776_v34 = vadd.f32 %v2648_v24, %v2282_v47  ;;  %v6709_v24 = vld [vmem:[#allocation2 + $0x58] sm:$0xff] }
 0x14c   : > { %v7961_v11 = vadd.f32 %v3406_v53, %v2776_v34  ;;  %v6743_v53 = vld [vmem:[#allocation2 + $0x70] sm:$0xff] }
 0x14d   : > { %v1851_v19 = vpop.f32.mrf.mxu1  ;;  %v3134_v42 = vshll.u32 %v6743_v53, 16 }
 0x14e   : > { %v2156_v48 = vpop.f32.mrf.mxu2  ;;  %v3412_v35 = vpop.f32.mrf.mxu0 }
 0x14f   : > { %v2283_v22 = vadd.f32 %v2156_v48, %v1849_v30  ;;  %v3130_v48 = vshrl.u32 %v6742_v27, 16  ;;  %v6744_v27 = vld [vmem:[#allocation2 + $0x78] sm:$0xff] }
 0x150   : > { %5907 = vmatmul.msk.bf16.gmra.mxu1 %vm1532_vm10, %v6961_v16 }
 0x151   : > { %v2650_v57 = vpop.f32.mrf.mxu3 }
 0x152   : > { %v2777_v47 = vadd.f32 %v2650_v57, %v2283_v22  ;;  %v2003_v22 = vsel %vm1980_vm11, %v2000_v60, %v2002_v8  ;;  %v6710_v57 = vld [vmem:[#allocation2 + $0x60] sm:$0xff] }
 0x153   : > { %5940 = vmatmul.msk.bf16.gmra.mxu2 %vm1532_vm10, %v2001_v12  ;;  %v3132_v12 = vor.u32 %v3130_v48, %v3128_v13  ;;  %v6964_v13 = vld [vmem:[#allocation2 + $0x60] sm:$0xff] }
 0x154   : > { %v7967_v35 = vadd.f32 %v3408_v49, %v2777_v47  ;;  %v3136_v49 = vrot.slane %v3134_v42, 1 }
 0x155   : > { %v1852_v20 = vpop.f32.mrf.mxu1 }
 0x156   : > { %v2159_v56 = vpop.f32.mrf.mxu2  ;;  %v3414_v19 = vpop.f32.mrf.mxu0  ;;  %6101 = vmatmul.msk.bf16.gmra.mxu3 %vm1532_vm10, %v6709_v24 }
 0x159   : > { %6259 = vmatmul.msk.bf16.gmra.mxu0 %vm1532_vm10, %v3129_v18  ;;  %v2653_v16 = vpop.f32.mrf.mxu3  ;;  %v3137_v18 = vsel %vm1271_vm9, %v3132_v12, %v3136_v49 }
 0x15d   : > { %v1854_v40 = vpop.f32.mrf.mxu1 }
 0x15e   : > { %v2160_v34 = vpop.f32.mrf.mxu2  ;;  %v3416_v30 = vpop.f32.mrf.mxu0  ;;  %v1855_v47 = vadd.f32 %v1854_v40, %v7856_v3  ;;  %v3138_v40 = vshrl.u32 %v6743_v53, 16 }
 0x15f   : > { %v2004_v34 = vrot.slane %v6964_v13, 1 }
 0x160   : > { %5908 = vmatmul.msk.bf16.gmra.mxu1 %vm1532_vm10, %v6962_v46 }
 0x161   : > { %v2654_v59 = vpop.f32.mrf.mxu3 }
 0x162   : > { %v3142_v59 = vshll.u32 %v6744_v27, 16 }
 0x163   : > { %5941 = vmatmul.msk.bf16.gmra.mxu2 %vm1532_vm10, %v2003_v22 }
 0x165   : > { %v1856_v24 = vpop.f32.mrf.mxu1 }
 0x166   : > { %v2162_v20 = vpop.f32.mrf.mxu2  ;;  %v3419_v56 = vpop.f32.mrf.mxu0  ;;  %6102 = vmatmul.msk.bf16.gmra.mxu3 %vm1532_vm10, %v6710_v57  ;;  %v1857_v48 = vadd.f32 %v1856_v24, %v7864_v51  ;;  %v2005_v57 = vsel %vm1980_vm11, %v2002_v8, %v2004_v34  ;;  %v2006_v8 = vrot.slane %v7664_v41, 1 }
 0x167   : > { %v2284_v16 = vadd.f32 %v2162_v20, %v1855_v47  ;;  %v3140_v47 = vor.u32 %v3138_v40, %v3136_v49  ;;  %v3144_v20 = vrot.slane %v3142_v59, 1 }
 0x168   : > { %v2007_v59 = vsel %vm1980_vm11, %v2004_v34, %v2006_v8 }
 0x169   : > { %6260 = vmatmul.msk.bf16.gmra.mxu0 %vm1532_vm10, %v3137_v18  ;;  %v2656_v46 = vpop.f32.mrf.mxu3  ;;  %v3145_v53 = vsel %vm1271_vm9, %v3140_v47, %v3144_v20  ;;  %v6712_v47 = vld [vmem:[#allocation2 + $0x70] sm:$0xff] }
 0x16a   : > { %v2778_v60 = vadd.f32 %v2656_v46, %v2284_v16  ;;  %v6711_v46 = vld [vmem:[#allocation2 + $0x68] sm:$0xff] }
 0x16c   : > { %v7979_v56 = vadd.f32 %v3414_v19, %v2778_v60  ;;  %v6745_v19 = vld [vmem:[#allocation2 + $0x80] sm:$0xff] }
 0x16d   : > { %v1859_v42 = vpop.f32.mrf.mxu1  ;;  %v3150_v40 = vshll.u32 %v6745_v19, 16 }
 0x16e   : > { %v2164_v22 = vpop.f32.mrf.mxu2  ;;  %v3420_v3 = vpop.f32.mrf.mxu0 }
 0x16f   : > { %v2285_v12 = vadd.f32 %v2164_v22, %v1857_v48  ;;  %v3146_v22 = vshrl.u32 %v6744_v27, 16  ;;  %v6746_v27 = vld [vmem:[#allocation2 + $0x88] sm:$0xff] }
 0x170   : > { %5909 = vmatmul.msk.bf16.gmra.mxu1 %vm1532_vm10, %v6963_v33 }
 0x171   : > { %v2658_v18 = vpop.f32.mrf.mxu3 }
 0x172   : > { %v2779_v16 = vadd.f32 %v2658_v18, %v2285_v12  ;;  %v3148_v12 = vor.u32 %v3146_v22, %v3144_v20  ;;  %v2008_v20 = vrot.slane %v7728_v58, 1  ;;  %v3158_v22 = vshll.u32 %v6746_v27, 16 }
 0x173   : > { %5942 = vmatmul.msk.bf16.gmra.mxu2 %vm1532_vm10, %v2005_v57 }
 0x174   : > { %v7985_v3 = vadd.f32 %v3416_v30, %v2779_v16  ;;  %v3152_v30 = vrot.slane %v3150_v40, 1 }
 0x175   : > { %v1860_v51 = vpop.f32.mrf.mxu1 }
 0x176   : > { %v2167_v24 = vpop.f32.mrf.mxu2  ;;  %v3422_v42 = vpop.f32.mrf.mxu0  ;;  %6103 = vmatmul.msk.bf16.gmra.mxu3 %vm1532_vm10, %v6711_v46  ;;  %v3153_v51 = vsel %vm1271_vm9, %v3148_v12, %v3152_v30  ;;  %v6965_v12 = vld [vmem:[#allocation2 + $0x68] sm:$0xff] }
 0x179   : > { %6261 = vmatmul.msk.bf16.gmra.mxu0 %vm1532_vm10, %v3145_v53  ;;  %v2661_v33 = vpop.f32.mrf.mxu3 }
 0x17d   : > { %v1862_v49 = vpop.f32.mrf.mxu1 }
 0x17e   : > { %v2168_v60 = vpop.f32.mrf.mxu2  ;;  %v3424_v48 = vpop.f32.mrf.mxu0  ;;  %v1863_v18 = vadd.f32 %v1862_v49, %v7887_v21  ;;  %v3154_v49 = vshrl.u32 %v6745_v19, 16 }
 0x180   : > { %5910 = vmatmul.msk.bf16.gmra.mxu1 %vm1532_vm10, %v6964_v13 }
 0x181   : > { %v2662_v57 = vpop.f32.mrf.mxu3 }
 0x182   : > { %v2009_v57 = vsel %vm1980_vm11, %v2006_v8, %v2008_v20 }
 0x183   : > { %5943 = vmatmul.msk.bf16.gmra.mxu2 %vm1532_vm10, %v2007_v59 }
 0x185   : > { %v1864_v16 = vpop.f32.mrf.mxu1 }
 0x186   : > { %v2170_v46 = vpop.f32.mrf.mxu2  ;;  %v3427_v41 = vpop.f32.mrf.mxu0  ;;  %6104 = vmatmul.msk.bf16.gmra.mxu3 %vm1532_vm10, %v6712_v47  ;;  %v1865_v53 = vadd.f32 %v1864_v16, %v7895_v25  ;;  %v3156_v47 = vor.u32 %v3154_v49, %v3152_v30  ;;  %v6713_v25 = vld [vmem:[#allocation2 + $0x78] sm:$0xff]  ;;  %v2010_v30 = vrot.slane %v7781_v36, 1 }
 0x187   : > { %v2286_v24 = vadd.f32 %v2170_v46, %v1863_v18  ;;  %v3160_v18 = vrot.slane %v3158_v22, 1 }
 0x188   : > { %v2011_v49 = vsel %vm1980_vm11, %v2008_v20, %v2010_v30 }
 0x189   : > { %6262 = vmatmul.msk.bf16.gmra.mxu0 %vm1532_vm10, %v3153_v51  ;;  %v2664_v13 = vpop.f32.mrf.mxu3  ;;  %v3161_v19 = vsel %vm1271_vm9, %v3156_v47, %v3160_v18 }
 0x18a   : > { %v2780_v34 = vadd.f32 %v2664_v13, %v2286_v24  ;;  %v6747_v13 = vld [vmem:[#allocation2 + $0x90] sm:$0xff] }
 0x18c   : > { %v7999_v40 = vadd.f32 %v3422_v42, %v2780_v34 }
 0x18d   : > { %v1867_v33 = vpop.f32.mrf.mxu1 }
 0x18e   : > { %v2172_v60 = vpop.f32.mrf.mxu2  ;;  %v3428_v21 = vpop.f32.mrf.mxu0 }
 0x18f   : > { %v2287_v59 = vadd.f32 %v2172_v60, %v1865_v53  ;;  %v3162_v60 = vshrl.u32 %v6746_v27, 16  ;;  %v3166_v21 = vshll.u32 %v6747_v13, 16 }
 0x190   : > { %5911 = vmatmul.msk.bf16.gmra.mxu1 %vm1532_vm10, %v6965_v12  ;;  %v6714_v12 = vld [vmem:[#allocation2 + $0x80] sm:$0xff] }
 0x191   : > { %v2666_v46 = vpop.f32.mrf.mxu3  ;;  %v3168_v22 = vrot.slane %v3166_v21, 1 }
 0x192   : > { %v2781_v41 = vadd.f32 %v2666_v46, %v2287_v59 }
 0x193   : > { %5944 = vmatmul.msk.bf16.gmra.mxu2 %vm1532_vm10, %v2009_v57 }
 0x194   : > { %v8005_v42 = vadd.f32 %v3424_v48, %v2781_v41  ;;  %v3164_v48 = vor.u32 %v3162_v60, %v3160_v18 }
 0x195   : > { %v1868_v16 = vpop.f32.mrf.mxu1 }
 0x196   : > { %v2175_v51 = vpop.f32.mrf.mxu2  ;;  %v3430_v24 = vpop.f32.mrf.mxu0  ;;  %6105 = vmatmul.msk.bf16.gmra.mxu3 %vm1532_vm10, %v6713_v25  ;;  %v3169_v25 = vsel %vm1271_vm9, %v3164_v48, %v3168_v22  ;;  %v6966_v16 = vld [vmem:[#allocation2 + $0x80] sm:$0xff] }
 0x197   : > { %v2012_v51 = vrot.slane %v6966_v16, 1 }
 0x199   : > { %6263 = vmatmul.msk.bf16.gmra.mxu0 %vm1532_vm10, %v3161_v19  ;;  %v2669_v8 = vpop.f32.mrf.mxu3  ;;  %v2013_v48 = vsel %vm1980_vm11, %v2010_v30, %v2012_v51 }
 0x19d   : > { %v1870_v34 = vpop.f32.mrf.mxu1 }
 0x19e   : > { %v2176_v53 = vpop.f32.mrf.mxu2  ;;  %v3432_v33 = vpop.f32.mrf.mxu0  ;;  %v1871_v57 = vadd.f32 %v1870_v34, %v7919_v26  ;;  %v3170_v34 = vshrl.u32 %v6747_v13, 16 }
 0x1a0   : > { %5912 = vmatmul.msk.bf16.gmra.mxu1 %vm1532_vm10, %v7728_v58  ;;  %v6748_v58 = vld [vmem:[#allocation2 + $0x98] sm:$0xff] }
 0x1a1   : > { %v2670_v59 = vpop.f32.mrf.mxu3  ;;  %v3174_v60 = vshll.u32 %v6748_v58, 16 }
 0x1a2   : > { %v3172_v59 = vor.u32 %v3170_v34, %v3168_v22  ;;  %v6967_v22 = vld [vmem:[#allocation2 + $0x88] sm:$0xff] }
 0x1a3   : > { %5945 = vmatmul.msk.bf16.gmra.mxu2 %vm1532_vm10, %v2011_v49 }
 0x1a5   : > { %v1872_v47 = vpop.f32.mrf.mxu1 }
 0x1a6   : > { %v2178_v46 = vpop.f32.mrf.mxu2  ;;  %v3435_v41 = vpop.f32.mrf.mxu0  ;;  %6106 = vmatmul.msk.bf16.gmra.mxu3 %vm1532_vm10, %v6714_v12  ;;  %v1873_v19 = vadd.f32 %v1872_v47, %v7927_v0  ;;  %v3176_v12 = vrot.slane %v3174_v60, 1  ;;  %v6715_v0 = vld [vmem:[#allocation2 + $0x88] sm:$0xff] }
 0x1a7   : > { %v2288_v27 = vadd.f32 %v2178_v46, %v1871_v57 }
 0x1a8   : > { %v3177_v13 = vsel %vm1271_vm9, %v3172_v59, %v3176_v12 }
 0x1a9   : > { %6264 = vmatmul.msk.bf16.gmra.mxu0 %vm1532_vm10, %v3169_v25  ;;  %v2672_v20 = vpop.f32.mrf.mxu3 }
 0x1aa   : > { %v2782_v18 = vadd.f32 %v2672_v20, %v2288_v27  ;;  %v2014_v27 = vrot.slane %v6967_v22, 1 }
 0x1ac   : > { %v8019_v21 = vadd.f32 %v3430_v24, %v2782_v18 }
 0x1ad   : > { %v1875_v8 = vpop.f32.mrf.mxu1 }
 0x1ae   : > { %v2180_v53 = vpop.f32.mrf.mxu2  ;;  %v3436_v26 = vpop.f32.mrf.mxu0  ;;  %v3178_v8 = vshrl.u32 %v6748_v58, 16  ;;  %v6750_v58 = vld [vmem:[#allocation2 + $0xa8] sm:$0xff] }
 0x1af   : > { %v2289_v49 = vadd.f32 %v2180_v53, %v1873_v19  ;;  %v2015_v26 = vsel %vm1980_vm11, %v2012_v51, %v2014_v27 }
 0x1b0   : > { %5913 = vmatmul.msk.bf16.gmra.mxu1 %vm1532_vm10, %v7781_v36  ;;  %v6749_v36 = vld [vmem:[#allocation2 + $0xa0] sm:$0xff]  ;;  %v3180_v34 = vor.u32 %v3178_v8, %v3176_v12  ;;  %v6968_v12 = vld [vmem:[#allocation2 + $0x90] sm:$0xff]  ;;  %v3190_v8 = vshll.u32 %v6750_v58, 16 }
 0x1b1   : > { %v2674_v57 = vpop.f32.mrf.mxu3  ;;  %v3182_v53 = vshll.u32 %v6749_v36, 16 }
 0x1b2   : > { %v2783_v46 = vadd.f32 %v2674_v57, %v2289_v49  ;;  %v6716_v49 = vld [vmem:[#allocation2 + $0x90] sm:$0xff] }
 0x1b3   : > { %5946 = vmatmul.msk.bf16.gmra.mxu2 %vm1532_vm10, %v2013_v48 }
 0x1b4   : > { %v8026_v24 = vadd.f32 %v3432_v33, %v2783_v46  ;;  %v3184_v33 = vrot.slane %v3182_v53, 1 }
 0x1b5   : > { %v1876_v47 = vpop.f32.mrf.mxu1 }
 0x1b6   : > { %v2183_v41 = vpop.f32.mrf.mxu2  ;;  %v3438_v25 = vpop.f32.mrf.mxu0  ;;  %6107 = vmatmul.msk.bf16.gmra.mxu3 %vm1532_vm10, %v6715_v0  ;;  %v3185_v0 = vsel %vm1271_vm9, %v3180_v34, %v3184_v33 }
 0x1b7   : > { %v2016_v41 = vrot.slane %v6968_v12, 1 }
 0x1b9   : > { %6265 = vmatmul.msk.bf16.gmra.mxu0 %vm1532_vm10, %v3177_v13  ;;  %v2677_v30 = vpop.f32.mrf.mxu3  ;;  %v2017_v34 = vsel %vm1980_vm11, %v2014_v27, %v2016_v41  ;;  %v6969_v27 = vld [vmem:[#allocation2 + $0x98] sm:$0xff] }
 0x1bd   : > { %v1878_v20 = vpop.f32.mrf.mxu1 }
 0x1be   : > { %v2184_v18 = vpop.f32.mrf.mxu2  ;;  %v3440_v19 = vpop.f32.mrf.mxu0  ;;  %v1879_v48 = vadd.f32 %v1878_v20, %v7835_v63  ;;  %v3186_v20 = vshrl.u32 %v6749_v36, 16 }
 0x1c0   : > { %5914 = vmatmul.msk.bf16.gmra.mxu1 %vm1532_vm10, %v6966_v16 }
 0x1c1   : > { %v2678_v60 = vpop.f32.mrf.mxu3 }
 0x1c2   : > { %v3188_v60 = vor.u32 %v3186_v20, %v3184_v33  ;;  %v2018_v33 = vrot.slane %v6969_v27, 1 }
 0x1c3   : > { %5947 = vmatmul.msk.bf16.gmra.mxu2 %vm1532_vm10, %v2015_v26 }
 0x1c5   : > { %v1880_v59 = vpop.f32.mrf.mxu1 }
 0x1c6   : > { %v2186_v57 = vpop.f32.mrf.mxu2  ;;  %v3443_v46 = vpop.f32.mrf.mxu0  ;;  %6108 = vmatmul.msk.bf16.gmra.mxu3 %vm1532_vm10, %v6716_v49  ;;  %v1881_v13 = vadd.f32 %v1880_v59, %v7840_v31  ;;  %v3192_v49 = vrot.slane %v3190_v8, 1 }
 0x1c7   : > { %v2290_v47 = vadd.f32 %v2186_v57, %v1879_v48  ;;  %v6717_v46 = vld [vmem:[#allocation2 + $0x98] sm:$0xff] }
 0x1c8   : > { %v3193_v36 = vsel %vm1271_vm9, %v3188_v60, %v3192_v49 }
 0x1c9   : > { %6266 = vmatmul.msk.bf16.gmra.mxu0 %vm1532_vm10, %v3185_v0  ;;  %v2680_v16 = vpop.f32.mrf.mxu3 }
 0x1ca   : > { %v2784_v51 = vadd.f32 %v2680_v16, %v2290_v47 }
 0x1cc   : > { %v8038_v53 = vadd.f32 %v3438_v25, %v2784_v51  ;;  %v6751_v25 = vld [vmem:[#allocation2 + $0xb0] sm:$0xff] }
 0x1cd   : > { %v1883_v30 = vpop.f32.mrf.mxu1 }
 0x1ce   : > { %v2188_v18 = vpop.f32.mrf.mxu2  ;;  %v3444_v63 = vpop.f32.mrf.mxu0  ;;  %v3194_v30 = vshrl.u32 %v6750_v58, 16  ;;  %v6752_v58 = vld [vmem:[#allocation2 + $0xb8] sm:$0xff] }
 0x1cf   : > { %v2291_v26 = vadd.f32 %v2188_v18, %v1881_v13  ;;  %v3198_v18 = vshll.u32 %v6751_v25, 16  ;;  %v2019_v63 = vsel %vm1980_vm11, %v2016_v41, %v2018_v33 }
 0x1d0   : > { %5915 = vmatmul.msk.bf16.gmra.mxu1 %vm1532_vm10, %v6967_v22  ;;  %v3196_v20 = vor.u32 %v3194_v30, %v3192_v49  ;;  %v6970_v49 = vld [vmem:[#allocation2 + $0xa0] sm:$0xff]  ;;  %v3206_v30 = vshll.u32 %v6752_v58, 16 }
 0x1d1   : > { %v2682_v48 = vpop.f32.mrf.mxu3 }
 0x1d2   : > { %v2785_v57 = vadd.f32 %v2682_v48, %v2291_v26  ;;  %v6718_v26 = vld [vmem:[#allocation2 + $0xa0] sm:$0xff] }
 0x1d3   : > { %5948 = vmatmul.msk.bf16.gmra.mxu2 %vm1532_vm10, %v2017_v34 }
 0x1d4   : > { %v8044_v47 = vadd.f32 %v3440_v19, %v2785_v57  ;;  %v3200_v19 = vrot.slane %v3198_v18, 1 }
 0x1d5   : > { %v1884_v31 = vpop.f32.mrf.mxu1 }
 0x1d6   : > { %v2191_v59 = vpop.f32.mrf.mxu2  ;;  %v3446_v0 = vpop.f32.mrf.mxu0  ;;  %6109 = vmatmul.msk.bf16.gmra.mxu3 %vm1532_vm10, %v6717_v46  ;;  %v3201_v46 = vsel %vm1271_vm9, %v3196_v20, %v3200_v19 }
 0x1d7   : > { %v2020_v59 = vrot.slane %v6970_v49, 1 }
 0x1d9   : > { %6267 = vmatmul.msk.bf16.gmra.mxu0 %vm1532_vm10, %v3193_v36  ;;  %v2685_v22 = vpop.f32.mrf.mxu3  ;;  %v2021_v20 = vsel %vm1980_vm11, %v2018_v33, %v2020_v59  ;;  %v6971_v33 = vld [vmem:[#allocation2 + $0xa8] sm:$0xff] }
 0x1dd   : > { %v1886_v16 = vpop.f32.mrf.mxu1 }
 0x1de   : > { %v2192_v51 = vpop.f32.mrf.mxu2  ;;  %v3448_v13 = vpop.f32.mrf.mxu0  ;;  %v1887_v34 = vadd.f32 %v1886_v16, %v7862_v32  ;;  %v3202_v16 = vshrl.u32 %v6751_v25, 16 }
 0x1e0   : > { %5916 = vmatmul.msk.bf16.gmra.mxu1 %vm1532_vm10, %v6968_v12 }
 0x1e1   : > { %v2686_v8 = vpop.f32.mrf.mxu3 }
 0x1e2   : > { %v3204_v8 = vor.u32 %v3202_v16, %v3200_v19  ;;  %v2022_v19 = vrot.slane %v6971_v33, 1 }
 0x1e3   : > { %5949 = vmatmul.msk.bf16.gmra.mxu2 %vm1532_vm10, %v2019_v63 }
 0x1e5   : > { %v1888_v60 = vpop.f32.mrf.mxu1 }
 0x1e6   : > { %v2194_v48 = vpop.f32.mrf.mxu2  ;;  %v3451_v57 = vpop.f32.mrf.mxu0  ;;  %6110 = vmatmul.msk.bf16.gmra.mxu3 %vm1532_vm10, %v6718_v26  ;;  %v1889_v36 = vadd.f32 %v1888_v60, %v7869_v50  ;;  %v3208_v26 = vrot.slane %v3206_v30, 1 }
 0x1e7   : > { %v2292_v31 = vadd.f32 %v2194_v48, %v1887_v34  ;;  %v6719_v57 = vld [vmem:[#allocation2 + $0xa8] sm:$0xff] }
 0x1e8   : > { %v3209_v25 = vsel %vm1271_vm9, %v3204_v8, %v3208_v26 }
 0x1e9   : > { %6268 = vmatmul.msk.bf16.gmra.mxu0 %vm1532_vm10, %v3201_v46  ;;  %v2688_v12 = vpop.f32.mrf.mxu3 }
 0x1ea   : > { %v2786_v41 = vadd.f32 %v2688_v12, %v2292_v31 }
 0x1ec   : > { %v8056_v18 = vadd.f32 %v3446_v0, %v2786_v41  ;;  %v6753_v0 = vld [vmem:[#allocation2 + $0xc0] sm:$0xff] }
 0x1ed   : > { %v1891_v22 = vpop.f32.mrf.mxu1 }
 0x1ee   : > { %v2196_v51 = vpop.f32.mrf.mxu2  ;;  %v3452_v32 = vpop.f32.mrf.mxu0  ;;  %v3210_v22 = vshrl.u32 %v6752_v58, 16  ;;  %v6754_v58 = vld [vmem:[#allocation2 + $0xc8] sm:$0xff] }
 0x1ef   : > { %v2293_v63 = vadd.f32 %v2196_v51, %v1889_v36  ;;  %v3214_v51 = vshll.u32 %v6753_v0, 16  ;;  %v2023_v32 = vsel %vm1980_vm11, %v2020_v59, %v2022_v19 }
 0x1f0   : > { %5917 = vmatmul.msk.bf16.gmra.mxu1 %vm1532_vm10, %v6969_v27  ;;  %v3212_v16 = vor.u32 %v3210_v22, %v3208_v26  ;;  %v6972_v26 = vld [vmem:[#allocation2 + $0xb0] sm:$0xff]  ;;  %v3222_v22 = vshll.u32 %v6754_v58, 16 }
 0x1f1   : > { %v2690_v34 = vpop.f32.mrf.mxu3 }
 0x1f2   : > { %v2787_v48 = vadd.f32 %v2690_v34, %v2293_v63  ;;  %v6720_v63 = vld [vmem:[#allocation2 + $0xb0] sm:$0xff] }
 0x1f3   : > { %5950 = vmatmul.msk.bf16.gmra.mxu2 %vm1532_vm10, %v2021_v20 }
 0x1f4   : > { %v8062_v31 = vadd.f32 %v3448_v13, %v2787_v48  ;;  %v3216_v13 = vrot.slane %v3214_v51, 1 }
 0x1f5   : > { %v1892_v50 = vpop.f32.mrf.mxu1 }
 0x1f6   : > { %v2199_v60 = vpop.f32.mrf.mxu2  ;;  %v3454_v46 = vpop.f32.mrf.mxu0  ;;  %6111 = vmatmul.msk.bf16.gmra.mxu3 %vm1532_vm10, %v6719_v57  ;;  %v3217_v57 = vsel %vm1271_vm9, %v3212_v16, %v3216_v13 }
 0x1f7   : > { %v2024_v60 = vrot.slane %v6972_v26, 1 }
 0x1f9   : > { %6269 = vmatmul.msk.bf16.gmra.mxu0 %vm1532_vm10, %v3209_v25  ;;  %v2693_v27 = vpop.f32.mrf.mxu3  ;;  %v2025_v16 = vsel %vm1980_vm11, %v2022_v19, %v2024_v60  ;;  %v6973_v19 = vld [vmem:[#allocation2 + $0xb8] sm:$0xff] }
 0x1fd   : > { %v1894_v12 = vpop.f32.mrf.mxu1 }
 0x1fe   : > { %v2200_v41 = vpop.f32.mrf.mxu2  ;;  %v3456_v36 = vpop.f32.mrf.mxu0  ;;  %v1895_v20 = vadd.f32 %v1894_v12, %v7893_v43  ;;  %v3218_v12 = vshrl.u32 %v6753_v0, 16 }
 0x200   : > { %5918 = vmatmul.msk.bf16.gmra.mxu1 %vm1532_vm10, %v6970_v49 }
 0x201   : > { %v2694_v30 = vpop.f32.mrf.mxu3 }
 0x202   : > { %v3220_v30 = vor.u32 %v3218_v12, %v3216_v13  ;;  %v2026_v13 = vrot.slane %v6973_v19, 1 }
 0x203   : > { %5951 = vmatmul.msk.bf16.gmra.mxu2 %vm1532_vm10, %v2023_v32 }
 0x205   : > { %v1896_v8 = vpop.f32.mrf.mxu1 }
 0x206   : > { %v2202_v34 = vpop.f32.mrf.mxu2  ;;  %v3459_v48 = vpop.f32.mrf.mxu0  ;;  %6112 = vmatmul.msk.bf16.gmra.mxu3 %vm1532_vm10, %v6720_v63  ;;  %v1897_v25 = vadd.f32 %v1896_v8, %v7901_v45  ;;  %v3224_v63 = vrot.slane %v3222_v22, 1 }
 0x207   : > { %v2294_v50 = vadd.f32 %v2202_v34, %v1895_v20  ;;  %v6721_v48 = vld [vmem:[#allocation2 + $0xb8] sm:$0xff] }
 0x208   : > { %v3225_v0 = vsel %vm1271_vm9, %v3220_v30, %v3224_v63 }
 0x209   : > { %6270 = vmatmul.msk.bf16.gmra.mxu0 %vm1532_vm10, %v3217_v57  ;;  %v2696_v49 = vpop.f32.mrf.mxu3 }
 0x20a   : > { %v2788_v59 = vadd.f32 %v2696_v49, %v2294_v50 }
 0x20c   : > { %v8074_v51 = vadd.f32 %v3454_v46, %v2788_v59  ;;  %v6755_v46 = vld [vmem:[#allocation2 + $0xd0] sm:$0xff] }
 0x20d   : > { %v1899_v27 = vpop.f32.mrf.mxu1 }
 0x20e   : > { %v2204_v41 = vpop.f32.mrf.mxu2  ;;  %v3460_v43 = vpop.f32.mrf.mxu0  ;;  %v3226_v27 = vshrl.u32 %v6754_v58, 16  ;;  %v6756_v58 = vld [vmem:[#allocation2 + $0xd8] sm:$0xff] }
 0x20f   : > { %v2295_v32 = vadd.f32 %v2204_v41, %v1897_v25  ;;  %v3230_v41 = vshll.u32 %v6755_v46, 16  ;;  %v2027_v43 = vsel %vm1980_vm11, %v2024_v60, %v2026_v13 }
 0x210   : > { %5919 = vmatmul.msk.bf16.gmra.mxu1 %vm1532_vm10, %v6971_v33  ;;  %v3228_v12 = vor.u32 %v3226_v27, %v3224_v63  ;;  %v6974_v63 = vld [vmem:[#allocation2 + $0xc0] sm:$0xff]  ;;  %v3238_v27 = vshll.u32 %v6756_v58, 16 }
 0x211   : > { %v2698_v20 = vpop.f32.mrf.mxu3 }
 0x212   : > { %v2789_v34 = vadd.f32 %v2698_v20, %v2295_v32  ;;  %v6722_v32 = vld [vmem:[#allocation2 + $0xc0] sm:$0xff] }
 0x213   : > { %5952 = vmatmul.msk.bf16.gmra.mxu2 %vm1532_vm10, %v2025_v16 }
 0x214   : > { %v8080_v50 = vadd.f32 %v3456_v36, %v2789_v34  ;;  %v3232_v36 = vrot.slane %v3230_v41, 1 }
 0x215   : > { %v1900_v45 = vpop.f32.mrf.mxu1 }
 0x216   : > { %v2207_v8 = vpop.f32.mrf.mxu2  ;;  %v3462_v57 = vpop.f32.mrf.mxu0  ;;  %6113 = vmatmul.msk.bf16.gmra.mxu3 %vm1532_vm10, %v6721_v48  ;;  %v3233_v48 = vsel %vm1271_vm9, %v3228_v12, %v3232_v36 }
 0x217   : > { %v2028_v8 = vrot.slane %v6974_v63, 1 }
 0x219   : > { %6271 = vmatmul.msk.bf16.gmra.mxu0 %vm1532_vm10, %v3225_v0  ;;  %v2701_v33 = vpop.f32.mrf.mxu3  ;;  %v2029_v12 = vsel %vm1980_vm11, %v2026_v13, %v2028_v8  ;;  %v6975_v13 = vld [vmem:[#allocation2 + $0xc8] sm:$0xff] }
 0x21d   : > { %v1902_v49 = vpop.f32.mrf.mxu1 }
 0x21e   : > { %v2208_v59 = vpop.f32.mrf.mxu2  ;;  %v3464_v25 = vpop.f32.mrf.mxu0  ;;  %v1903_v16 = vadd.f32 %v1902_v49, %v7925_v17  ;;  %v3234_v49 = vshrl.u32 %v6755_v46, 16 }
 0x220   : > { %5920 = vmatmul.msk.bf16.gmra.mxu1 %vm1532_vm10, %v6972_v26 }
 0x221   : > { %v2702_v22 = vpop.f32.mrf.mxu3 }
 0x222   : > { %v3236_v22 = vor.u32 %v3234_v49, %v3232_v36  ;;  %v2030_v36 = vrot.slane %v6975_v13, 1 }
 0x223   : > { %5953 = vmatmul.msk.bf16.gmra.mxu2 %vm1532_vm10, %v2027_v43 }
 0x225   : > { %v1904_v30 = vpop.f32.mrf.mxu1 }
 0x226   : > { %v2210_v20 = vpop.f32.mrf.mxu2  ;;  %v3467_v34 = vpop.f32.mrf.mxu0  ;;  %6114 = vmatmul.msk.bf16.gmra.mxu3 %vm1532_vm10, %v6722_v32  ;;  %v1905_v0 = vadd.f32 %v1904_v30, %v7933_v37  ;;  %v3240_v32 = vrot.slane %v3238_v27, 1 }
 0x227   : > { %v2296_v45 = vadd.f32 %v2210_v20, %v1903_v16  ;;  %v6723_v34 = vld [vmem:[#allocation2 + $0xc8] sm:$0xff] }
 0x228   : > { %v3241_v46 = vsel %vm1271_vm9, %v3236_v22, %v3240_v32 }
 0x229   : > { %6272 = vmatmul.msk.bf16.gmra.mxu0 %vm1532_vm10, %v3233_v48  ;;  %v2704_v26 = vpop.f32.mrf.mxu3 }
 0x22a   : > { %v2790_v60 = vadd.f32 %v2704_v26, %v2296_v45 }
 0x22c   : > { %v8092_v41 = vadd.f32 %v3462_v57, %v2790_v60  ;;  %v6757_v57 = vld [vmem:[#allocation2 + $0xe0] sm:$0xff] }
 0x22d   : > { %v1907_v33 = vpop.f32.mrf.mxu1 }
 0x22e   : > { %v2212_v59 = vpop.f32.mrf.mxu2  ;;  %v3468_v17 = vpop.f32.mrf.mxu0  ;;  %v3242_v33 = vshrl.u32 %v6756_v58, 16  ;;  %v6758_v58 = vld [vmem:[#allocation2 + $0xe8] sm:$0xff] }
 0x22f   : > { %v2297_v43 = vadd.f32 %v2212_v59, %v1905_v0  ;;  %v3246_v59 = vshll.u32 %v6757_v57, 16  ;;  %v2031_v17 = vsel %vm1980_vm11, %v2028_v8, %v2030_v36 }
 0x230   : > { %5921 = vmatmul.msk.bf16.gmra.mxu1 %vm1532_vm10, %v6973_v19  ;;  %v3244_v49 = vor.u32 %v3242_v33, %v3240_v32  ;;  %v6976_v32 = vld [vmem:[#allocation2 + $0xd0] sm:$0xff]  ;;  %v3254_v33 = vshll.u32 %v6758_v58, 16 }
 0x231   : > { %v2706_v16 = vpop.f32.mrf.mxu3 }
 0x232   : > { %v2791_v20 = vadd.f32 %v2706_v16, %v2297_v43  ;;  %v6724_v43 = vld [vmem:[#allocation2 + $0xd0] sm:$0xff] }
 0x233   : > { %5954 = vmatmul.msk.bf16.gmra.mxu2 %vm1532_vm10, %v2029_v12 }
 0x234   : > { %v8098_v45 = vadd.f32 %v3464_v25, %v2791_v20  ;;  %v3248_v25 = vrot.slane %v3246_v59, 1 }
 0x235   : > { %v1908_v37 = vpop.f32.mrf.mxu1 }
 0x236   : > { %v2215_v30 = vpop.f32.mrf.mxu2  ;;  %v3470_v48 = vpop.f32.mrf.mxu0  ;;  %6115 = vmatmul.msk.bf16.gmra.mxu3 %vm1532_vm10, %v6723_v34  ;;  %v3249_v34 = vsel %vm1271_vm9, %v3244_v49, %v3248_v25 }
 0x237   : > { %v2032_v30 = vrot.slane %v6976_v32, 1 }
 0x239   : > { %6273 = vmatmul.msk.bf16.gmra.mxu0 %vm1532_vm10, %v3241_v46  ;;  %v2709_v19 = vpop.f32.mrf.mxu3  ;;  %v2033_v49 = vsel %vm1980_vm11, %v2030_v36, %v2032_v30 }
 0x23d   : > { %v1910_v26 = vpop.f32.mrf.mxu1 }
 0x23e   : > { %v2216_v60 = vpop.f32.mrf.mxu2  ;;  %v3472_v0 = vpop.f32.mrf.mxu0  ;;  %v1911_v12 = vadd.f32 %v1910_v26, %v7842_v38  ;;  %v3250_v26 = vshrl.u32 %v6757_v57, 16 }
 0x240   : > { %5922 = vmatmul.msk.bf16.gmra.mxu1 %vm1532_vm10, %v6974_v63 }
 0x241   : > { %v2710_v27 = vpop.f32.mrf.mxu3 }
 0x242   : > { %v3252_v27 = vor.u32 %v3250_v26, %v3248_v25  ;;  %v6977_v25 = vld [vmem:[%s7142_s27 + $0x78] sm:$0xff]   ;;  %v3258_v26 = vshrl.u32 %v6758_v58, 16  ;;  %v926_v58 = vrot.slane %v7764_v14, 4  ;;  %s8312_s27 = scalar_lea.vmem %s8725_s4, %s6667_s21 }
 0x243   : > { %5955 = vmatmul.msk.bf16.gmra.mxu2 %vm1532_vm10, %v2031_v17 }
 0x245   : > { %v1912_v22 = vpop.f32.mrf.mxu1 }
 0x246   : > { %v2218_v16 = vpop.f32.mrf.mxu2  ;;  %v3475_v20 = vpop.f32.mrf.mxu0  ;;  %6116 = vmatmul.msk.bf16.gmra.mxu3 %vm1532_vm10, %v6724_v43  ;;  %v1913_v46 = vadd.f32 %v1912_v22, %v7849_v15  ;;  %v3256_v43 = vrot.slane %v3254_v33, 1  ;;  %v6725_v15 = vld [vmem:[#allocation2 + $0xd8] sm:$0xff] }
 0x247   : > { %v2298_v37 = vadd.f32 %v2218_v16, %v1911_v12 }
 0x248   : > { %v3257_v57 = vsel %vm1271_vm9, %v3252_v27, %v3256_v43  ;;  %v3260_v27 = vor.u32 %v3258_v26, %v3256_v43 }
 0x249   : > { %6274 = vmatmul.msk.bf16.gmra.mxu0 %vm1532_vm10, %v3249_v34  ;;  %v2712_v63 = vpop.f32.mrf.mxu3 }
 0x24a   : > { %v2792_v8 = vadd.f32 %v2712_v63, %v2298_v37  ;;  %v6889_v37 = vunpack.c.h.bf16 %v6977_v25  ;;  %v6978_v63 = vld [vmem:[#allocation2 + $0xd8] sm:$0xff] }
 0x24c   : > { %v8110_v59 = vadd.f32 %v3470_v48, %v2792_v8  ;;  %v2034_v8 = vrot.slane %v6978_v63, 1 }
 0x24d   : > { %v1915_v19 = vpop.f32.mrf.mxu1 }
 0x24e   : > { %v2220_v60 = vpop.f32.mrf.mxu2  ;;  %v3476_v38 = vpop.f32.mrf.mxu0  ;;  %v479_v19 = vmul.f32 %v6889_v37, %v7176_v39 }
 0x24f   : > { %v2299_v17 = vadd.f32 %v2220_v60, %v1913_v46 }
 0x250   : > { %5923 = vmatmul.msk.bf16.gmra.mxu1 %vm1532_vm10, %v6975_v13  ;;  %v6759_v13 = vld [vmem:[#allocation2 + $0xf0] sm:$0xff] }
 0x251   : > { %v2714_v12 = vpop.f32.mrf.mxu3  ;;  %v3262_v33 = vshll.u32 %v6759_v13, 16 }
 0x252   : > { %v2793_v16 = vadd.f32 %v2714_v12, %v2299_v17  ;;  %v511_v17 = vpack.c.bf16 %v479_v19, %v479_v19  ;;  %v6760_v19 = vld [vmem:[#allocation2 + $0xf8] sm:$0xff] }
 0x253   : > { %5956 = vmatmul.msk.bf16.gmra.mxu2 %vm1532_vm10, %v2033_v49  ;;  %v3264_v12 = vrot.slane %v3262_v33, 1 }
 0x254   : > { %v8116_v48 = vadd.f32 %v3472_v0, %v2793_v16  ;;  %v2035_v0 = vsel %vm1980_vm11, %v2032_v30, %v2034_v8  ;;  %v928_v49 = vshrl.u32 %v511_v17, 16 }
 0x255   : > { %v1916_v22 = vpop.f32.mrf.mxu1 }
 0x256   : > { %v2223_v20 = vpop.f32.mrf.mxu2  ;;  %v3478_v34 = vpop.f32.mrf.mxu0  ;;  %6117 = vmatmul.msk.bf16.gmra.mxu3 %vm1532_vm10, %v6725_v15  ;;  %v930_v15 = vrot.slane %v928_v49, 7  ;;  %v6726_v22 = vld [vmem:[#allocation2 + $0xe0] sm:$0xff] }
 0x257   : > { %v931_v20 = vshll.u32 %v511_v17, 16  ;;  %v362_v17 = vld [vmem:[#allocation2 + $0x108] sm:$0xf] }
 0x258   : > { %v363_v10 = vsel %vm7097_vm6, 0, %v362_v17 }
 0x259   : > { %6275 = vmatmul.msk.bf16.gmra.mxu0 %vm1532_vm10, %v3257_v57  ;;  %v2717_v36 = vpop.f32.mrf.mxu3  ;;  %v933_v37 = vor.u32 %v931_v20, %v930_v15  ;;  %364 = vst [vmem:[#allocation2 + $0x108] sm:$0xf] %v363_v10 }
 0x25b   : > { %v934_v43 = vsel %vm7107_vm8, %v926_v58, %v933_v37 }
 0x25c   : > { %942 = vst.msk [vmem:[#allocation2 + $0x104] sm:$0xf] %vm246_vm4, %v934_v43 }
 0x25d   : > { %v1918_v46 = vpop.f32.mrf.mxu1 }
 0x25e   : > { %v2224_v60 = vpop.f32.mrf.mxu2  ;;  %v3480_v38 = vpop.f32.mrf.mxu0  ;;  %v1919_v39 = vadd.f32 %v1918_v46, %v7871_v29 }
 0x25f   : > { %v6979_v60 = vld [vmem:[#allocation2 + $0xe0] sm:$0xff] }
 0x260   : > { %5924 = vmatmul.msk.bf16.gmra.mxu1 %vm1532_vm10, %v6976_v32  ;;  %v3265_v32 = vsel %vm1271_vm9, %v3260_v27, %v3264_v12  ;;  %v2036_v14 = vrot.slane %v6979_v60, 1  ;;  %v3266_v27 = vshrl.u32 %v6759_v13, 16  ;;  %v943_v43 = vld [vmem:[#allocation2 + $0x108] sm:$0x1] }
 0x261   : > { %v2718_v16 = vpop.f32.mrf.mxu3 }
 0x262   : > { %v3270_v16 = vshll.u32 %v6760_v19, 16  ;;  %v3268_v58 = vor.u32 %v3266_v27, %v3264_v12  ;;  %v366_v12 = vld [vmem:[#allocation2 + $0x110] sm:$0x1] }
 0x263   : > { %5957 = vmatmul.msk.bf16.gmra.mxu2 %vm1532_vm10, %v2035_v0 }
 0x265   : > { %v1920_v57 = vpop.f32.mrf.mxu1 }
 0x266   : > { %v2226_v36 = vpop.f32.mrf.mxu2  ;;  %v3483_v25 = vpop.f32.mrf.mxu0  ;;  %6118 = vmatmul.msk.bf16.gmra.mxu3 %vm1532_vm10, %v6726_v22  ;;  %v1921_v26 = vadd.f32 %v1920_v57, %v7879_v7 }
 0x267   : > { %v2300_v30 = vadd.f32 %v2226_v36, %v1919_v39  ;;  %v2037_v39 = vsel %vm1980_vm11, %v2034_v8, %v2036_v14  ;;  %v3272_v36 = vrot.slane %v3270_v16, 1  ;;  %v6727_v25 = vld [vmem:[#allocation2 + $0xe8] sm:$0xff]  ;;  %v6761_v8 = vld [vmem:[#allocation2 + $0x100] sm:$0xff] }
 0x268   : > { %v3278_v27 = vshll.u32 %v6761_v8, 16 }
 0x269   : > { %6276 = vmatmul.msk.bf16.gmra.mxu0 %vm1532_vm10, %v3265_v32  ;;  %v2720_v29 = vpop.f32.mrf.mxu3  ;;  %v935_v32 = vrot.slane %v930_v15, 4  ;;  %v367_v15 = vsel %vm7090_vm3, 0, %v366_v12 }
 0x26a   : > { %v2794_v46 = vadd.f32 %v2720_v29, %v2300_v30  ;;  %368 = vst [vmem:[#allocation2 + $0x110] sm:$0x1] %v367_v15  ;;  %v3282_v15 = vshrl.u32 %v6761_v8, 16 }
 0x26c   : > { %v8136_v22 = vadd.f32 %v3478_v34, %v2794_v46  ;;  %v3273_v34 = vsel %vm1271_vm9, %v3268_v58, %v3272_v36 }
 0x26d   : > { %v1923_v33 = vpop.f32.mrf.mxu1 }
 0x26e   : > { %v2228_v0 = vpop.f32.mrf.mxu2  ;;  %v3484_v49 = vpop.f32.mrf.mxu0 }
 0x26f   : > { %v2301_v20 = vadd.f32 %v2228_v0, %v1921_v26  ;;  %v6980_v26 = vld [vmem:[#allocation2 + $0xe8] sm:$0xff]  ;;  %v3274_v49 = vshrl.u32 %v6760_v19, 16 }
 0x270   : > { %5925 = vmatmul.msk.bf16.gmra.mxu1 %vm1532_vm10, %v6978_v63  ;;  %v944_v63 = vsel %vm7090_vm3, %v935_v32, %v943_v43  ;;  %v2038_v33 = vrot.slane %v6980_v26, 1  ;;  %v6981_v43 = vld [vmem:[#allocation2 + $0xf0] sm:$0xff] }
 0x271   : > { %v2722_v7 = vpop.f32.mrf.mxu3  ;;  %945 = vst [vmem:[#allocation2 + $0x108] sm:$0x1] %v944_v63  ;;  %v3276_v10 = vor.u32 %v3274_v49, %v3272_v36  ;;  %v1033_v58 = vld [vmem:[#allocation2 + $0x110] sm:$0xf]  ;;  %v2040_v63 = vrot.slane %v6981_v43, 1 }
 0x272   : > { %v2795_v57 = vadd.f32 %v2722_v7, %v2301_v20  ;;  %v2039_v16 = vsel %vm1980_vm11, %v2036_v14, %v2038_v33  ;;  %v3280_v20 = vrot.slane %v3278_v27, 1  ;;  %v6728_v7 = vld [vmem:[#allocation2 + $0xf0] sm:$0xff] }
 0x273   : > { %5958 = vmatmul.msk.bf16.gmra.mxu2 %vm1532_vm10, %v2037_v39  ;;  %v2041_v27 = vsel %vm1980_vm11, %v2038_v33, %v2040_v63 }
 0x274   : > { %v8142_v29 = vadd.f32 %v3480_v38, %v2795_v57  ;;  %v1034_v57 = vsel %vm7097_vm6, %v7104_v9, %v1033_v58 }
 0x275   : > { %v1924_v13 = vpop.f32.mrf.mxu1  ;;  %1035 = vst [vmem:[#allocation2 + $0x110] sm:$0xf] %v1034_v57 }
 0x276   : > { %v2231_v37 = vpop.f32.mrf.mxu2  ;;  %v3486_v30 = vpop.f32.mrf.mxu0  ;;  %6119 = vmatmul.msk.bf16.gmra.mxu3 %vm1532_vm10, %v6727_v25 }
 0x278   : > { %v6762_v36 = vld [vmem:[#allocation2 + $0x108] sm:$0xff] }
 0x279   : > { %6277 = vmatmul.msk.bf16.gmra.mxu0 %vm1532_vm10, %v3273_v34  ;;  %v2725_v46 = vpop.f32.mrf.mxu3 }
 0x27c   : > { %v2872_v58 = vld [vmem:[#allocation2 + $0x110] sm:$0x1] }
 0x27d   : > { %v1926_v17 = vpop.f32.mrf.mxu1 }
 0x27e   : > { %v2232_v38 = vpop.f32.mrf.mxu2  ;;  %v3488_v0 = vpop.f32.mrf.mxu0  ;;  %v1927_v25 = vadd.f32 %v1926_v17, %v7903_v1  ;;  %v3286_v17 = vshll.u32 %v6762_v36, 16 }
 0x280   : > { %5926 = vmatmul.msk.bf16.gmra.mxu1 %vm1532_vm10, %v6979_v60  ;;  %v3281_v60 = vsel %vm1271_vm9, %v3276_v10, %v3280_v20  ;;  %v3288_v10 = vrot.slane %v3286_v17, 1 }
 0x281   : > { %v2726_v39 = vpop.f32.mrf.mxu3 }
 0x283   : > { %5959 = vmatmul.msk.bf16.gmra.mxu2 %vm1532_vm10, %v2039_v16  ;;  %v3284_v16 = vor.u32 %v3282_v15, %v3280_v20  ;;  %v6982_v20 = vld [vmem:[#allocation2 + $0xf8] sm:$0xff]  ;;  %v6730_v15 = vld [vmem:[#allocation2 + $0x100] sm:$0xff] }
 0x285   : > { %v1928_v13 = vpop.f32.mrf.mxu1  ;;  %v3289_v8 = vsel %vm1271_vm9, %v3284_v16, %v3288_v10 }
 0x286   : > { %v2234_v19 = vpop.f32.mrf.mxu2  ;;  %v3491_v32 = vpop.f32.mrf.mxu0  ;;  %6120 = vmatmul.msk.bf16.gmra.mxu3 %vm1532_vm10, %v6728_v7  ;;  %v1929_v9 = vadd.f32 %v1928_v13, %v7911_v44  ;;  %v6729_v44 = vld [vmem:[#allocation2 + $0xf8] sm:$0xff] }
 0x287   : > { %v2302_v14 = vadd.f32 %v2234_v19, %v1927_v25  ;;  %v2042_v32 = vrot.slane %v6982_v20, 1 }
 0x289   : > { %6278 = vmatmul.msk.bf16.gmra.mxu0 %vm1532_vm10, %v3281_v60  ;;  %v2728_v37 = vpop.f32.mrf.mxu3 }
 0x28a   : > { %v2796_v34 = vadd.f32 %v2728_v37, %v2302_v14 }
 0x28c   : > { %v8161_v38 = vadd.f32 %v3486_v30, %v2796_v34  ;;  %v3004_v30 = vunpack.c.l.b16 %v2872_v58  ;;  %v3290_v34 = vshrl.u32 %v6762_v36, 16 }
 0x28d   : > { %v1931_v12 = vpop.f32.mrf.mxu1 }
 0x28e   : > { %v2236_v1 = vpop.f32.mrf.mxu2  ;;  %v3492_v46 = vpop.f32.mrf.mxu0  ;;  %v3292_v12 = vor.u32 %v3290_v34, %v3288_v10  ;;  %v6926_v10 = vld [vmem:[#allocation2 + $0x20] sm:$0xe] }
 0x28f   : > { %v2303_v49 = vadd.f32 %v2236_v1, %v1929_v9 }
 0x290   : > { %5927 = vmatmul.msk.bf16.gmra.mxu1 %vm1532_vm10, %v6980_v26  ;;  %v8171_v26 = vpack.c.b16 %v3004_v30, %v3004_v30 }
 0x291   : > { %v2730_v39 = vpop.f32.mrf.mxu3 }
 0x292   : > { %v2797_v7 = vadd.f32 %v2730_v39, %v2303_v49  ;;  %v3294_v9 = vshll.u32 %v8171_v26, 16 }
 0x293   : > { %5960 = vmatmul.msk.bf16.gmra.mxu2 %vm1532_vm10, %v2041_v27 }
 0x294   : > { %v8167_v19 = vadd.f32 %v3488_v0, %v2797_v7  ;;  %v2043_v0 = vsel %vm1980_vm11, %v2040_v63, %v2042_v32  ;;  %v3296_v1 = vrot.slane %v3294_v9, 1  ;;  %v6925_v63 = vld [vmem:[#allocation2 + $0x20] sm:$0xf0]  ;;  %v2044_v7 = vrot.slane %v7808_v23, 1  ;;  %v6922_v23 = vld [vmem:[#allocation2 + $0x10] sm:$0xe] }
 0x295   : > { %v1932_v57 = vpop.f32.mrf.mxu1  ;;  %v6927_v30 = vor.u32 %v6926_v10, %v6925_v63 }
 0x296   : > { %v2239_v25 = vpop.f32.mrf.mxu2  ;;  %v3494_v13 = vpop.f32.mrf.mxu0  ;;  %6121 = vmatmul.msk.bf16.gmra.mxu3 %vm1532_vm10, %v6729_v44  ;;  %v3297_v39 = vsel %vm1271_vm9, %v3292_v12, %v3296_v1  ;;  %v6731_v1 = vld [vmem:[#allocation2 + $0x108] sm:$0xff] }
 0x297   : > { %v5163_v34 = vrot.slane %v6927_v30, 1 }
 0x299   : > { %6279 = vmatmul.msk.bf16.gmra.mxu0 %vm1532_vm10, %v3289_v8  ;;  %v2733_v33 = vpop.f32.mrf.mxu3  ;;  %v8183_v8 = vld [vmem:[#allocation2 + $0x28] sm:$0xff] }
 0x29a   : > { %v5164_v9 = vrot.slane %v8183_v8, 1 }
 0x29d   : > { %v1934_v60 = vpop.f32.mrf.mxu1 }
 0x29e   : > { %v2240_v14 = vpop.f32.mrf.mxu2  ;;  %v3496_v37 = vpop.f32.mrf.mxu0  ;;  %v1935_v17 = vadd.f32 %v1934_v60, %v7935_v55 }
 0x29f   : > { %v2045_v14 = vsel %vm1980_vm11, %v2042_v32, %v2044_v7 }
 0x2a0   : > { %5928 = vmatmul.msk.bf16.gmra.mxu1 %vm1532_vm10, %v6981_v43 }
 0x2a1   : > { %v2734_v46 = vpop.f32.mrf.mxu3 }
 0x2a3   : > { %5961 = vmatmul.msk.bf16.gmra.mxu2 %vm1532_vm10, %v2043_v0  ;;  %v6921_v0 = vld [vmem:[#allocation2 + $0x10] sm:$0xf0] }
 0x2a5   : > { %v1936_v49 = vpop.f32.mrf.mxu1 }
 0x2a6   : > { %v2242_v27 = vpop.f32.mrf.mxu2  ;;  %v3499_v16 = vpop.f32.mrf.mxu0  ;;  %6122 = vmatmul.msk.bf16.gmra.mxu3 %vm1532_vm10, %v6730_v15  ;;  %v1937_v44 = vadd.f32 %v1936_v49, %v7942_v62  ;;  %v6923_v15 = vor.u32 %v6922_v23, %v6921_v0  ;;  %v5165_v49 = vsel %vm1980_vm11, %v5163_v34, %v5164_v9 }
 0x2a7   : > { %v2304_v36 = vadd.f32 %v2242_v27, %v1935_v17  ;;  %v6924_v27 = vld [vmem:[#allocation2 + $0x20] sm:$0xff]   ;;  %v6983_v16 = vld [vmem:[#allocation2 + $0x18] sm:$0xff] }
 0x2a8   : > { %v3572_v32 = vrot.slane %v6923_v15, 1 }
 0x2a9   : > { %6280 = vmatmul.msk.bf16.gmra.mxu0 %vm1532_vm10, %v3297_v39  ;;  %v2736_v43 = vpop.f32.mrf.mxu3  ;;  %v3573_v39 = vrot.slane %v6983_v16, 1 }
 0x2aa   : > { %v2798_v58 = vadd.f32 %v2736_v43, %v2304_v36  ;;  %v4632_v36 = vshll.u32 %v6924_v27, 16 }
 0x2ab   : > { %v3574_v10 = vsel %vm1980_vm11, %v3572_v32, %v3573_v39 }
 0x2ac   : > { %v8185_v33 = vadd.f32 %v3494_v13, %v2798_v58  ;;  %v4630_v58 = vshrl.u32 %v6924_v27, 16  ;;  %v4634_v7 = vrot.slane %v4632_v36, 1 }
 0x2ad   : > { %v1939_v57 = vpop.f32.mrf.mxu1 }
 0x2ae   : > { %v2244_v55 = vpop.f32.mrf.mxu2  ;;  %v3500_v25 = vpop.f32.mrf.mxu0  ;;  %v4635_v30 = vor.u32 %v4634_v7, %v4630_v58 }
 0x2af   : > { %v2305_v60 = vadd.f32 %v2244_v55, %v1937_v44  ;;  %v4637_v44 = vshll.u32 %v8183_v8, 16  ;;  %v6763_v25 = vld [vmem:[#allocation2 + $0x20] sm:$0xff] }
 0x2b0   : > { %5929 = vmatmul.msk.bf16.gmra.mxu1 %vm1532_vm10, %v6982_v20 }
 0x2b1   : > { %v2738_v12 = vpop.f32.mrf.mxu3 }
 0x2b2   : > { %v2799_v62 = vadd.f32 %v2738_v12, %v2305_v60  ;;  %v4639_v60 = vrot.slane %v4637_v44, 1 }
 0x2b3   : > { %5962 = vmatmul.msk.bf16.gmra.mxu2 %vm1532_vm10, %v2045_v14 }
 0x2b4   : > { %v8192_v20 = vadd.f32 %v3496_v37, %v2799_v62  ;;  %v6796_v37 = vld [vmem:[#allocation2 + $0x30] sm:$0xff]  ;;  %v4640_v23 = vsel %vm1271_vm9, %v4635_v30, %v4639_v60 }
 0x2b5   : > { %v1940_v46 = vpop.f32.mrf.mxu1  ;;  %v5166_v14 = vrot.slane %v6796_v37, 1 }
 0x2b6   : > { %v2247_v17 = vpop.f32.mrf.mxu2  ;;  %v3502_v13 = vpop.f32.mrf.mxu0  ;;  %6123 = vmatmul.msk.bf16.gmra.mxu3 %vm1532_vm10, %v6731_v1 }
 0x2b7   : > { %v5167_v46 = vsel %vm1980_vm11, %v5164_v9, %v5166_v14  ;;  %v6984_v17 = vld [vmem:[#allocation2 + $0x20] sm:$0xff]  ;;  %v6797_v9 = vld [vmem:[#allocation2 + $0x38] sm:$0xff] }
 0x2b9   : > { %6633 = vmatmul.msk.bf16.vlgmr.msra.gmra.mxu0 %vm1532_vm10, %v5165_v49  ;;  %v2741_v43 = vpop.f32.mrf.mxu3  ;;  %v3575_v49 = vrot.slane %v6984_v17, 1 }
 0x2ba   : > { %v4641_v43 = vshrl.u32 %v8183_v8, 16 }
 0x2bd   : > { %v1942_v63 = vpop.f32.mrf.mxu1 }
 0x2be   : > { %v2248_v57 = vpop.f32.mrf.mxu2  ;;  %v3504_v55 = vpop.f32.mrf.mxu0  ;;  %v1943_v0 = vadd.f32 %v1942_v63, %v7846_v4  ;;  %v3576_v4 = vsel %vm1980_vm11, %v3573_v39, %v3575_v49  ;;  %v4645_v63 = vshll.u32 %v6796_v37, 16 }
 0x2bf   : > { %v6764_v57 = vld [vmem:[#allocation2 + $0x28] sm:$0xff] }
 0x2c0   : > { %6282 = vmatmul.msk.bf16.vlgmr.msra.gmra.mxu1 %vm1532_vm10, %v3574_v10  ;;  %v4647_v30 = vrot.slane %v4645_v63, 1 }
 0x2c1   : > { %v2742_v34 = vpop.f32.mrf.mxu3 }
 0x2c2   : > { %v5168_v34 = vrot.slane %v6797_v9, 1 }
 0x2c3   : > { %6443 = vmatmul.msk.bf16.vlgmr.msra.gmra.mxu2 %vm1532_vm10, %v6763_v25  ;;  %v4643_v25 = vor.u32 %v4641_v43, %v4639_v60  ;;  %v6985_v60 = vld [vmem:[#allocation2 + $0x28] sm:$0xff]  ;;  %v6765_v43 = vld [vmem:[#allocation2 + $0x30] sm:$0xff] }
 0x2c5   : > { %v1944_v12 = vpop.f32.mrf.mxu1  ;;  %v4648_v39 = vsel %vm1271_vm9, %v4643_v25, %v4647_v30 }
 0x2c6   : > { %v2250_v62 = vpop.f32.mrf.mxu2  ;;  %v3507_v1 = vpop.f32.mrf.mxu0  ;;  %6600 = vmatmul.msk.bf16.vlgmr.msra.gmra.mxu3 %vm1532_vm10, %v4640_v23  ;;  %v1945_v16 = vadd.f32 %v1944_v12, %v7853_v61 }
 0x2c7   : > { %v2306_v15 = vadd.f32 %v2250_v62, %v1943_v0  ;;  %v5169_v62 = vsel %vm1980_vm11, %v5166_v14, %v5168_v34  ;;  %v3577_v1 = vrot.slane %v6985_v60, 1  ;;  %v4657_v60 = vshrl.u32 %v6797_v9, 16 }
 0x2c9   : > { %6634 = vmatmul.msk.bf16.gmra.mxu0 %vm1532_vm10, %v5167_v46  ;;  %v2744_v27 = vpop.f32.mrf.mxu3  ;;  %v3578_v17 = vsel %vm1980_vm11, %v3575_v49, %v3577_v1 }
 0x2ca   : > { %v2800_v32 = vadd.f32 %v2744_v27, %v2306_v15  ;;  %v4649_v27 = vshrl.u32 %v6796_v37, 16 }
 0x2cc   : > { %v8208_v7 = vadd.f32 %v3502_v13, %v2800_v32  ;;  %v4653_v32 = vshll.u32 %v6797_v9, 16 }
 0x2cd   : > { %v1947_v36 = vpop.f32.mrf.mxu1 }
 0x2ce   : > { %v2252_v10 = vpop.f32.mrf.mxu2  ;;  %v3508_v58 = vpop.f32.mrf.mxu0  ;;  %v4655_v14 = vrot.slane %v4653_v32, 1 }
 0x2cf   : > { %v2307_v44 = vadd.f32 %v2252_v10, %v1945_v16 }
 0x2d0   : > { %6283 = vmatmul.msk.bf16.gmra.mxu1 %vm1532_vm10, %v3576_v4  ;;  %v6798_v4 = vld [vmem:[#allocation2 + $0x40] sm:$0xff] }
 0x2d1   : > { %v2746_v0 = vpop.f32.mrf.mxu3  ;;  %v5170_v63 = vrot.slane %v6798_v4, 1 }
 0x2d2   : > { %v2801_v61 = vadd.f32 %v2746_v0, %v2307_v44 }
 0x2d3   : > { %6444 = vmatmul.msk.bf16.gmra.mxu2 %vm1532_vm10, %v6764_v57  ;;  %v5171_v25 = vsel %vm1980_vm11, %v5168_v34, %v5170_v63 }
 0x2d4   : > { %v8214_v13 = vadd.f32 %v3504_v55, %v2801_v61  ;;  %v4651_v55 = vor.u32 %v4649_v27, %v4647_v30  ;;  %v6986_v30 = vld [vmem:[#allocation2 + $0x30] sm:$0xff]  ;;  %v6799_v27 = vld [vmem:[#allocation2 + $0x48] sm:$0xff] }
 0x2d5   : > { %v1948_v8 = vpop.f32.mrf.mxu1  ;;  %v3579_v61 = vrot.slane %v6986_v30, 1 }
 0x2d6   : > { %v2255_v23 = vpop.f32.mrf.mxu2  ;;  %v3510_v12 = vpop.f32.mrf.mxu0  ;;  %6601 = vmatmul.msk.bf16.gmra.mxu3 %vm1532_vm10, %v4648_v39  ;;  %v4656_v44 = vsel %vm1271_vm9, %v4651_v55, %v4655_v14 }
 0x2d9   : > { %6635 = vmatmul.msk.bf16.gmra.mxu0 %vm1532_vm10, %v5169_v62  ;;  %v2749_v46 = vpop.f32.mrf.mxu3 }
 0x2da   : > { %v4661_v46 = vshll.u32 %v6798_v4, 16 }
 0x2dc   : > { %v4663_v55 = vrot.slane %v4661_v46, 1 }
 0x2dd   : > { %v1950_v15 = vpop.f32.mrf.mxu1 }
 0x2de   : > { %v2256_v16 = vpop.f32.mrf.mxu2  ;;  %v3512_v36 = vpop.f32.mrf.mxu0  ;;  %v1951_v58 = vadd.f32 %v1950_v15, %v7875_v28  ;;  %v3580_v28 = vsel %vm1980_vm11, %v3577_v1, %v3579_v61 }
 0x2df   : > { %v6766_v16 = vld [vmem:[#allocation2 + $0x38] sm:$0xff] }
 0x2e0   : > { %6284 = vmatmul.msk.bf16.gmra.mxu1 %vm1532_vm10, %v3578_v17 }
 0x2e1   : > { %v2750_v10 = vpop.f32.mrf.mxu3 }
 0x2e2   : > { %v5172_v10 = vrot.slane %v6799_v27, 1 }
 0x2e3   : > { %6445 = vmatmul.msk.bf16.gmra.mxu2 %vm1532_vm10, %v6765_v43  ;;  %v4659_v43 = vor.u32 %v4657_v60, %v4655_v14  ;;  %v6987_v14 = vld [vmem:[#allocation2 + $0x38] sm:$0xff]  ;;  %v6767_v60 = vld [vmem:[#allocation2 + $0x40] sm:$0xff] }
 0x2e5   : > { %v1952_v57 = vpop.f32.mrf.mxu1  ;;  %v4664_v1 = vsel %vm1271_vm9, %v4659_v43, %v4663_v55 }
 0x2e6   : > { %v2258_v49 = vpop.f32.mrf.mxu2  ;;  %v3515_v37 = vpop.f32.mrf.mxu0  ;;  %6602 = vmatmul.msk.bf16.gmra.mxu3 %vm1532_vm10, %v4656_v44  ;;  %v1953_v23 = vadd.f32 %v1952_v57, %v7884_v6 }
 0x2e7   : > { %v2308_v0 = vadd.f32 %v2258_v49, %v1951_v58  ;;  %v5173_v49 = vsel %vm1980_vm11, %v5170_v63, %v5172_v10  ;;  %v3581_v37 = vrot.slane %v6987_v14, 1  ;;  %v4673_v14 = vshrl.u32 %v6799_v27, 16 }
 0x2e9   : > { %6636 = vmatmul.msk.bf16.gmra.mxu0 %vm1532_vm10, %v5171_v25  ;;  %v2752_v39 = vpop.f32.mrf.mxu3  ;;  %v3582_v30 = vsel %vm1980_vm11, %v3579_v61, %v3581_v37 }
 0x2ea   : > { %v2802_v8 = vadd.f32 %v2752_v39, %v2308_v0  ;;  %v4665_v39 = vshrl.u32 %v6798_v4, 16 }
 0x2ec   : > { %v8228_v34 = vadd.f32 %v3510_v12, %v2802_v8  ;;  %v4669_v8 = vshll.u32 %v6799_v27, 16 }
 0x2ed   : > { %v1955_v62 = vpop.f32.mrf.mxu1 }
 0x2ee   : > { %v2260_v15 = vpop.f32.mrf.mxu2  ;;  %v3516_v17 = vpop.f32.mrf.mxu0  ;;  %v4671_v63 = vrot.slane %v4669_v8, 1 }
 0x2ef   : > { %v2309_v32 = vadd.f32 %v2260_v15, %v1953_v23 }
 0x2f0   : > { %6285 = vmatmul.msk.bf16.gmra.mxu1 %vm1532_vm10, %v3580_v28  ;;  %v6800_v28 = vld [vmem:[#allocation2 + $0x50] sm:$0xff] }
 0x2f1   : > { %v2754_v58 = vpop.f32.mrf.mxu3  ;;  %v5174_v46 = vrot.slane %v6800_v28, 1 }
 0x2f2   : > { %v2803_v6 = vadd.f32 %v2754_v58, %v2309_v32 }
 0x2f3   : > { %6446 = vmatmul.msk.bf16.gmra.mxu2 %vm1532_vm10, %v6766_v16  ;;  %v5175_v43 = vsel %vm1980_vm11, %v5172_v10, %v5174_v46 }
 0x2f4   : > { %v8234_v12 = vadd.f32 %v3512_v36, %v2803_v6  ;;  %v4667_v36 = vor.u32 %v4665_v39, %v4663_v55  ;;  %v6988_v55 = vld [vmem:[#allocation2 + $0x40] sm:$0xff]  ;;  %v6801_v39 = vld [vmem:[#allocation2 + $0x58] sm:$0xff] }
 0x2f5   : > { %v1956_v9 = vpop.f32.mrf.mxu1  ;;  %v3583_v6 = vrot.slane %v6988_v55, 1 }
 0x2f6   : > { %v2263_v44 = vpop.f32.mrf.mxu2  ;;  %v3518_v57 = vpop.f32.mrf.mxu0  ;;  %6603 = vmatmul.msk.bf16.gmra.mxu3 %vm1532_vm10, %v4664_v1  ;;  %v4672_v32 = vsel %vm1271_vm9, %v4667_v36, %v4671_v63 }
 0x2f9   : > { %6637 = vmatmul.msk.bf16.gmra.mxu0 %vm1532_vm10, %v5173_v49  ;;  %v2757_v25 = vpop.f32.mrf.mxu3 }
 0x2fa   : > { %v4677_v25 = vshll.u32 %v6800_v28, 16 }
 0x2fc   : > { %v4679_v36 = vrot.slane %v4677_v25, 1 }
 0x2fd   : > { %v1958_v0 = vpop.f32.mrf.mxu1 }
 0x2fe   : > { %v2264_v23 = vpop.f32.mrf.mxu2  ;;  %v3520_v62 = vpop.f32.mrf.mxu0  ;;  %v1959_v17 = vadd.f32 %v1958_v0, %v7908_v54  ;;  %v3584_v54 = vsel %vm1980_vm11, %v3581_v37, %v3583_v6 }
 0x2ff   : > { %v6768_v23 = vld [vmem:[#allocation2 + $0x48] sm:$0xff] }
 0x300   : > { %6286 = vmatmul.msk.bf16.gmra.mxu1 %vm1532_vm10, %v3582_v30 }
 0x301   : > { %v2758_v15 = vpop.f32.mrf.mxu3 }
 0x302   : > { %v5176_v15 = vrot.slane %v6801_v39, 1 }
 0x303   : > { %6447 = vmatmul.msk.bf16.gmra.mxu2 %vm1532_vm10, %v6767_v60  ;;  %v4675_v60 = vor.u32 %v4673_v14, %v4671_v63  ;;  %v6989_v63 = vld [vmem:[#allocation2 + $0x48] sm:$0xff]  ;;  %v6769_v14 = vld [vmem:[#allocation2 + $0x50] sm:$0xff] }
 0x305   : > { %v1960_v16 = vpop.f32.mrf.mxu1  ;;  %v4680_v37 = vsel %vm1271_vm9, %v4675_v60, %v4679_v36 }
 0x306   : > { %v2266_v61 = vpop.f32.mrf.mxu2  ;;  %v3523_v4 = vpop.f32.mrf.mxu0  ;;  %6604 = vmatmul.msk.bf16.gmra.mxu3 %vm1532_vm10, %v4672_v32  ;;  %v1961_v44 = vadd.f32 %v1960_v16, %v7916_v52 }
 0x307   : > { %v2310_v58 = vadd.f32 %v2266_v61, %v1959_v17  ;;  %v5177_v61 = vsel %vm1980_vm11, %v5174_v46, %v5176_v15  ;;  %v3585_v4 = vrot.slane %v6989_v63, 1 }
 0x309   : > { %6638 = vmatmul.msk.bf16.gmra.mxu0 %vm1532_vm10, %v5175_v43  ;;  %v2760_v1 = vpop.f32.mrf.mxu3  ;;  %v3586_v55 = vsel %vm1980_vm11, %v3583_v6, %v3585_v4 }
 0x30a   : > { %v2804_v9 = vadd.f32 %v2760_v1, %v2310_v58  ;;  %v4681_v1 = vshrl.u32 %v6800_v28, 16 }
 0x30c   : > { %v8248_v10 = vadd.f32 %v3518_v57, %v2804_v9  ;;  %v4685_v9 = vshll.u32 %v6801_v39, 16 }
 0x30d   : > { %v1963_v49 = vpop.f32.mrf.mxu1 }
 0x30e   : > { %v2268_v0 = vpop.f32.mrf.mxu2  ;;  %v3524_v30 = vpop.f32.mrf.mxu0  ;;  %v4687_v46 = vrot.slane %v4685_v9, 1 }
 0x30f   : > { %v2311_v8 = vadd.f32 %v2268_v0, %v1961_v44  ;;  %v8736_v30 = vld [vmem:[#allocation4_spill] sm:$0xff] }
 0x310   : > { %6287 = vmatmul.msk.bf16.gmra.mxu1 %vm1532_vm10, %v3584_v54  ;;  %v6802_v54 = vld [vmem:[#allocation2 + $0x60] sm:$0xff] }
 0x311   : > { %v2762_v17 = vpop.f32.mrf.mxu3  ;;  %v5178_v25 = vrot.slane %v6802_v54, 1 }
 0x312   : > { %v2805_v52 = vadd.f32 %v2762_v17, %v2311_v8 }
 0x313   : > { %6448 = vmatmul.msk.bf16.gmra.mxu2 %vm1532_vm10, %v6768_v23  ;;  %v5179_v17 = vsel %vm1980_vm11, %v5176_v15, %v5178_v25 }
 0x314   : > { %v8254_v57 = vadd.f32 %v3520_v62, %v2805_v52  ;;  %v4683_v62 = vor.u32 %v4681_v1, %v4679_v36  ;;  %v6990_v36 = vld [vmem:[#allocation2 + $0x50] sm:$0xff]  ;;  %v4693_v1 = vshll.u32 %v6802_v54, 16 }
 0x315   : > { %v1964_v27 = vpop.f32.mrf.mxu1 }
 0x316   : > { %v2271_v32 = vpop.f32.mrf.mxu2  ;;  %v3526_v16 = vpop.f32.mrf.mxu0  ;;  %6605 = vmatmul.msk.bf16.gmra.mxu3 %vm1532_vm10, %v4680_v37  ;;  %v4688_v23 = vsel %vm1271_vm9, %v4683_v62, %v4687_v46  ;;  %v3587_v37 = vrot.slane %v6990_v36, 1 }
 0x319   : > { %6639 = vmatmul.msk.bf16.gmra.mxu0 %vm1532_vm10, %v5177_v61  ;;  %v2765_v43 = vpop.f32.mrf.mxu3  ;;  %v8737_v61 = vld [vmem:[#allocation5_spill] sm:$0xff] }
 0x31d   : > { %v1966_v58 = vpop.f32.mrf.mxu1 }
 0x31e   : > { %v2272_v44 = vpop.f32.mrf.mxu2  ;;  %v3528_v49 = vpop.f32.mrf.mxu0  ;;  %v1967_v8 = vadd.f32 %v1966_v58, %v8736_v30  ;;  %v3588_v58 = vsel %vm1980_vm11, %v3585_v4, %v3587_v37 }
 0x320   : > { %6288 = vmatmul.msk.bf16.gmra.mxu1 %vm1532_vm10, %v3586_v55  ;;  %v4689_v55 = vshrl.u32 %v6801_v39, 16 }
 0x321   : > { %v2766_v0 = vpop.f32.mrf.mxu3 }
 0x322   : > { %v6770_v0 = vld [vmem:[#allocation2 + $0x58] sm:$0xff]  ;;  %v4691_v30 = vor.u32 %v4689_v55, %v4687_v46 }
 0x323   : > { %6449 = vmatmul.msk.bf16.gmra.mxu2 %vm1532_vm10, %v6769_v14  ;;  %v8268_v14 = vld [vmem:[#allocation2 + $0x68] sm:$0xff]  ;;  %v6991_v46 = vld [vmem:[#allocation2 + $0x58] sm:$0xff] }
 0x324   : > { %v3589_v36 = vrot.slane %v6991_v46, 1  ;;  %v8296_v46 = vld [vmem:[%s8724_s3] ss:$0 sm:$0xff] }
 0x325   : > { %v1968_v60 = vpop.f32.mrf.mxu1 }
 0x326   : > { %v2274_v6 = vpop.f32.mrf.mxu2  ;;  %v3531_v28 = vpop.f32.mrf.mxu0  ;;  %6606 = vmatmul.msk.bf16.gmra.mxu3 %vm1532_vm10, %v4688_v23  ;;  %v1969_v63 = vadd.f32 %v1968_v60, %v8737_v61  ;;  %v5180_v23 = vrot.slane %v8268_v14, 1  ;;  %v3590_v61 = vsel %vm1980_vm11, %v3587_v37, %v3589_v36 }
 0x327   : > { %v2312_v52 = vadd.f32 %v2274_v6, %v1967_v8  ;;  %v4695_v8 = vrot.slane %v4693_v1, 1  ;;  %v8283_v1 = vld [vmem:[#allocation2 + $0x70] sm:$0xff] }
 0x329   : > { %6640 = vmatmul.msk.bf16.gmra.mxu0 %vm1532_vm10, %v5179_v17  ;;  %v2768_v27 = vpop.f32.mrf.mxu3  ;;  %v4696_v39 = vsel %vm1271_vm9, %v4691_v30, %v4695_v8 }
 0x32a   : > { %v2806_v32 = vadd.f32 %v2768_v27, %v2312_v52 }
 0x32c   : > { %v8270_v15 = vadd.f32 %v3526_v16, %v2806_v32  ;;  %v5181_v16 = vsel %vm1980_vm11, %v5178_v25, %v5180_v23  ;;  %v6771_v25 = vld [vmem:[#allocation2 + $0x60] sm:$0xff] }
 0x32d   : > { %v1971_v43 = vpop.f32.mrf.mxu1 }
 0x32e   : > { %v2276_v9 = vpop.f32.mrf.mxu2  ;;  %v3532_v44 = vpop.f32.mrf.mxu0  ;;  %v4701_v43 = vshll.u32 %v8268_v14, 16 }
 0x32f   : > { %v2313_v62 = vadd.f32 %v2276_v9, %v1969_v63  ;;  %v4697_v63 = vshrl.u32 %v6802_v54, 16  ;;  %v5182_v44 = vrot.slane %v8283_v1, 1 }
 0x330   : > { %6289 = vmatmul.msk.bf16.gmra.mxu1 %vm1532_vm10, %v3588_v58  ;;  %v4703_v9 = vrot.slane %v4701_v43, 1 }
 0x331   : > { %v2770_v60 = vpop.f32.mrf.mxu3 }
 0x332   : > { %v2807_v4 = vadd.f32 %v2770_v60, %v2313_v62 }
 0x333   : > { %6450 = vmatmul.msk.bf16.gmra.mxu2 %vm1532_vm10, %v6770_v0 }
 0x334   : > { %v8277_v52 = vadd.f32 %v3528_v49, %v2807_v4  ;;  %v4699_v49 = vor.u32 %v4697_v63, %v4695_v8  ;;  %v5183_v4 = vsel %vm1980_vm11, %v5180_v23, %v5182_v44  ;;  %v6992_v8 = vld [vmem:[#allocation2 + $0x60] sm:$0xff]  ;;  %v4705_v23 = vshrl.u32 %v8268_v14, 16 }
 0x335   : > { %v1972_v6 = vpop.f32.mrf.mxu1 }
 0x336   : > { %v2279_v28 = vpop.f32.mrf.mxu2  ;;  %v5336_v17 = vpop.f32.mrf.mxu0  ;;  %6607 = vmatmul.msk.bf16.gmra.mxu3 %vm1532_vm10, %v4696_v39  ;;  %v4704_v0 = vsel %vm1271_vm9, %v4699_v49, %v4703_v9  ;;  %v3591_v6 = vrot.slane %v6992_v8, 1  ;;  %v6772_v49 = vld [vmem:[#allocation2 + $0x68] sm:$0xff] }
 0x339   : > { %6641 = vmatmul.msk.bf16.gmra.mxu0 %vm1532_vm10, %v5181_v16  ;;  %v2773_v27 = vpop.f32.mrf.mxu3 }
 0x33d   : > { %v3745_v32 = vpop.f32.mrf.mxu1 }
 0x33e   : > { %v2280_v58 = vpop.f32.mrf.mxu2  ;;  %v5338_v55 = vpop.f32.mrf.mxu0  ;;  %v3873_v54 = vadd.f32 %v3745_v32, %v7961_v11  ;;  %v3592_v11 = vsel %vm1980_vm11, %v3589_v36, %v3591_v6  ;;  %v4709_v32 = vshll.u32 %v8283_v1, 16 }
 0x340   : > { %6290 = vmatmul.msk.bf16.gmra.mxu1 %vm1532_vm10, %v3590_v61  ;;  %v4711_v36 = vrot.slane %v4709_v32, 1 }
 0x341   : > { %v2774_v62 = vpop.f32.mrf.mxu3 }
 0x343   : > { %6451 = vmatmul.msk.bf16.gmra.mxu2 %vm1532_vm10, %v6771_v25  ;;  %v8302_v25 = vld [vmem:[#allocation2 + $0x78] sm:$0xff] }
 0x344   : > { %v5184_v14 = vrot.slane %v8302_v25, 1 }
 0x345   : > { %v3747_v37 = vpop.f32.mrf.mxu1 }
 0x346   : > { %v4239_v30 = vpop.f32.mrf.mxu2  ;;  %v5341_v60 = vpop.f32.mrf.mxu0  ;;  %6608 = vmatmul.msk.bf16.gmra.mxu3 %vm1532_vm10, %v4704_v0  ;;  %v3874_v63 = vadd.f32 %v3747_v37, %v7967_v35 }
 0x347   : > { %v4367_v39 = vadd.f32 %v4239_v30, %v3873_v54  ;;  %v4707_v54 = vor.u32 %v4705_v23, %v4703_v9 }
 0x349   : > { %6642 = vmatmul.msk.bf16.gmra.mxu0 %vm1532_vm10, %v5183_v4  ;;  %v4997_v28 = vpop.f32.mrf.mxu3  ;;  %v4712_v60 = vsel %vm1271_vm9, %v4707_v54, %v4711_v36 }
 0x34a   : > { %v5125_v16 = vadd.f32 %v4997_v28, %v4367_v39  ;;  %v5185_v28 = vsel %vm1980_vm11, %v5182_v44, %v5184_v14 }
 0x34c   : > { %v5464_v61 = vadd.f32 %v5336_v17, %v5125_v16 }
 0x34d   : > { %v3750_v27 = vpop.f32.mrf.mxu1 }
 0x34e   : > { %v4241_v43 = vpop.f32.mrf.mxu2  ;;  %v5342_v58 = vpop.f32.mrf.mxu0  ;;  %v5500_v62 = vadd.f32 %v8296_v46, %v5464_v61  ;;  %v6993_v27 = vld [vmem:[#allocation2 + $0x68] sm:$0xff] }
 0x34f   : > { %v4368_v0 = vadd.f32 %v4241_v43, %v3874_v63  ;;  %v4717_v58 = vshll.u32 %v8302_v25, 16 }
 0x350   : > { %6291 = vmatmul.msk.bf16.gmra.mxu1 %vm1532_vm10, %v3592_v11  ;;  %v5532_v30 = vmax.f32 %v5500_v62, 0.0  ;;  %v3593_v11 = vrot.slane %v6993_v27, 1  ;;  %v8327_v62 = vld [vmem:[#allocation2 + $0x80] sm:$0xff] }
 0x351   : > { %v4999_v35 = vpop.f32.mrf.mxu3 }
 0x352   : > { %v5564_v17 = vpack.c.bf16 %v5532_v30, %v5532_v30  ;;  %v5126_v37 = vadd.f32 %v4999_v35, %v4368_v0  ;;  %v3594_v43 = vsel %vm1980_vm11, %v3591_v6, %v3593_v11  ;;  %v6773_v0 = vld [vmem:[#allocation2 + $0x70] sm:$0xff]  ;;  %v4719_v30 = vrot.slane %v4717_v58, 1  ;;  %v8341_v58 = vld [vmem:[#allocation2 + $0x88] sm:$0xff] }
 0x353   : > { %6452 = vmatmul.msk.bf16.gmra.mxu2 %vm1532_vm10, %v6772_v49  ;;  %v5186_v35 = vrot.slane %v8327_v62, 1 }
 0x354   : > { %5596 = vst.msk [vmem:[%s8312_s27] sm:$0xf] %vm246_vm4, %v5564_v17  ;;  %v5465_v9 = vadd.f32 %v5338_v55, %v5126_v37  ;;  %v4713_v55 = vshrl.u32 %v8283_v1, 16 }
 0x355   : > { %v3751_v4 = vpop.f32.mrf.mxu1 }
 0x356   : > { %v4244_v39 = vpop.f32.mrf.mxu2  ;;  %v5344_v8 = vpop.f32.mrf.mxu0  ;;  %v5501_v16 = vadd.f32 %v8296_v46, %v5465_v9  ;;  %6609 = vmatmul.msk.bf16.gmra.mxu3 %vm1532_vm10, %v4712_v60  ;;  %v4715_v54 = vor.u32 %v4713_v55, %v4711_v36  ;;  %v5187_v9 = vsel %vm1980_vm11, %v5184_v14, %v5186_v35  ;;  %v6994_v36 = vld [vmem:[#allocation2 + $0x70] sm:$0xff] }
 0x358   : > { %v5533_v23 = vmax.f32 %v5501_v16, 0.0  ;;  %v4720_v1 = vsel %vm1271_vm9, %v4715_v54, %v4719_v30 }
 0x359   : > { %6643 = vmatmul.msk.bf16.gmra.mxu0 %vm1532_vm10, %v5185_v28  ;;  %v5002_v32 = vpop.f32.mrf.mxu3  ;;  %v3595_v28 = vrot.slane %v6994_v36, 1 }
 0x35a   : > { %v5565_v61 = vpack.c.bf16 %v5533_v23, %v5533_v23 }
 0x35b   : > { %v3596_v32 = vsel %vm1980_vm11, %v3593_v11, %v3595_v28 }
 0x35c   : > { %5597 = vst.msk [vmem:[%s8312_s27 + $0x4] sm:$0xf] %vm246_vm4, %v5565_v61  ;;  %v4721_v61 = vshrl.u32 %v8302_v25, 16  ;;  %v5188_v25 = vrot.slane %v8341_v58, 1 }
 0x35d   : > { %v3753_v63 = vpop.f32.mrf.mxu1 }
 0x35e   : > { %v4245_v44 = vpop.f32.mrf.mxu2  ;;  %v5346_v49 = vpop.f32.mrf.mxu0  ;;  %v3875_v37 = vadd.f32 %v3753_v63, %v7979_v56  ;;  %v4725_v56 = vshll.u32 %v8327_v62, 16 }
 0x35f   : > { %v6774_v44 = vld [vmem:[#allocation2 + $0x78] sm:$0xff] }
 0x360   : > { %6292 = vmatmul.msk.bf16.gmra.mxu1 %vm1532_vm10, %v3594_v43  ;;  %v4727_v11 = vrot.slane %v4725_v56, 1 }
 0x361   : > { %v5003_v17 = vpop.f32.mrf.mxu3 }
 0x362   : > { %v4723_v17 = vor.u32 %v4721_v61, %v4719_v30  ;;  %v5189_v30 = vsel %vm1980_vm11, %v5186_v35, %v5188_v25 }
 0x363   : > { %6453 = vmatmul.msk.bf16.gmra.mxu2 %vm1532_vm10, %v6773_v0 }
 0x365   : > { %v3755_v6 = vpop.f32.mrf.mxu1 }
 0x366   : > { %v4247_v60 = vpop.f32.mrf.mxu2  ;;  %v5349_v4 = vpop.f32.mrf.mxu0  ;;  %6610 = vmatmul.msk.bf16.gmra.mxu3 %vm1532_vm10, %v4720_v1  ;;  %v3876_v43 = vadd.f32 %v3755_v6, %v7985_v3  ;;  %v4728_v6 = vsel %vm1271_vm9, %v4723_v17, %v4727_v11 }
 0x367   : > { %v4369_v39 = vadd.f32 %v4247_v60, %v3875_v37 }
 0x369   : > { %6644 = vmatmul.msk.bf16.gmra.mxu0 %vm1532_vm10, %v5187_v9  ;;  %v5005_v16 = vpop.f32.mrf.mxu3 }
 0x36a   : > { %v5127_v27 = vadd.f32 %v5005_v16, %v4369_v39  ;;  %v6995_v16 = vld [vmem:[#allocation2 + $0x78] sm:$0xff] }
 0x36c   : > { %v5466_v63 = vadd.f32 %v5344_v8, %v5127_v27  ;;  %v3597_v27 = vrot.slane %v6995_v16, 1 }
 0x36d   : > { %v3758_v23 = vpop.f32.mrf.mxu1 }
 0x36e   : > { %v4249_v14 = vpop.f32.mrf.mxu2  ;;  %v5350_v55 = vpop.f32.mrf.mxu0  ;;  %v5502_v0 = vadd.f32 %v8296_v46, %v5466_v63  ;;  %v3598_v63 = vsel %vm1980_vm11, %v3595_v28, %v3597_v27 }
 0x36f   : > { %v4370_v54 = vadd.f32 %v4249_v14, %v3876_v43  ;;  %v4733_v43 = vshll.u32 %v8341_v58, 16  ;;  %v8359_v55 = vld [vmem:[#allocation2 + $0x90] sm:$0xff] }
 0x370   : > { %6293 = vmatmul.msk.bf16.gmra.mxu1 %vm1532_vm10, %v3596_v32  ;;  %v5534_v1 = vmax.f32 %v5502_v0, 0.0  ;;  %v5190_v17 = vrot.slane %v8359_v55, 1 }
 0x371   : > { %v5007_v37 = vpop.f32.mrf.mxu3 }
 0x372   : > { %v5566_v3 = vpack.c.bf16 %v5534_v1, %v5534_v1  ;;  %v5128_v8 = vadd.f32 %v5007_v37, %v4370_v54  ;;  %v4735_v54 = vrot.slane %v4733_v43, 1 }
 0x373   : > { %6454 = vmatmul.msk.bf16.gmra.mxu2 %vm1532_vm10, %v6774_v44  ;;  %v6775_v44 = vld [vmem:[#allocation2 + $0x80] sm:$0xff] }
 0x374   : > { %5598 = vst.msk [vmem:[%s8312_s27 + $0x8] sm:$0xf] %vm246_vm4, %v5566_v3  ;;  %v5467_v4 = vadd.f32 %v5346_v49, %v5128_v8  ;;  %v4729_v49 = vshrl.u32 %v8327_v62, 16 }
 0x375   : > { %v3759_v60 = vpop.f32.mrf.mxu1 }
 0x376   : > { %v4252_v9 = vpop.f32.mrf.mxu2  ;;  %v5352_v39 = vpop.f32.mrf.mxu0  ;;  %v5503_v36 = vadd.f32 %v8296_v46, %v5467_v4  ;;  %6611 = vmatmul.msk.bf16.gmra.mxu3 %vm1532_vm10, %v4728_v6  ;;  %v4731_v0 = vor.u32 %v4729_v49, %v4727_v11  ;;  %v5191_v6 = vsel %vm1980_vm11, %v5188_v25, %v5190_v17  ;;  %v6996_v11 = vld [vmem:[#allocation2 + $0x80] sm:$0xff]  ;;  %v6776_v49 = vld [vmem:[#allocation2 + $0x88] sm:$0xff] }
 0x377   : > { %v3599_v4 = vrot.slane %v6996_v11, 1 }
 0x378   : > { %v5535_v23 = vmax.f32 %v5503_v36, 0.0  ;;  %v4736_v62 = vsel %vm1271_vm9, %v4731_v0, %v4735_v54 }
 0x379   : > { %6645 = vmatmul.msk.bf16.gmra.mxu0 %vm1532_vm10, %v5189_v30  ;;  %v5010_v32 = vpop.f32.mrf.mxu3  ;;  %v3600_v16 = vsel %vm1980_vm11, %v3597_v27, %v3599_v4 }
 0x37a   : > { %v5567_v61 = vpack.c.bf16 %v5535_v23, %v5535_v23  ;;  %v4737_v23 = vshrl.u32 %v8341_v58, 16 }
 0x37c   : > { %5599 = vst.msk [vmem:[%s8312_s27 + $0xc] sm:$0xf] %vm246_vm4, %v5567_v61 }
 0x37d   : > { %v3761_v56 = vpop.f32.mrf.mxu1 }
 0x37e   : > { %v4253_v35 = vpop.f32.mrf.mxu2  ;;  %v5354_v14 = vpop.f32.mrf.mxu0  ;;  %v3877_v37 = vadd.f32 %v3761_v56, %v7999_v40  ;;  %v4741_v40 = vshll.u32 %v8359_v55, 16 }
 0x380   : > { %6294 = vmatmul.msk.bf16.gmra.mxu1 %vm1532_vm10, %v3598_v63  ;;  %v8373_v63 = vld [vmem:[#allocation2 + $0x98] sm:$0xff]  ;;  %v4743_v27 = vrot.slane %v4741_v40, 1 }
 0x381   : > { %v5011_v1 = vpop.f32.mrf.mxu3  ;;  %v5192_v58 = vrot.slane %v8373_v63, 1  ;;  %v4749_v40 = vshll.u32 %v8373_v63, 16 }
 0x383   : > { %6455 = vmatmul.msk.bf16.gmra.mxu2 %vm1532_vm10, %v6775_v44  ;;  %v4739_v44 = vor.u32 %v4737_v23, %v4735_v54  ;;  %v5193_v54 = vsel %vm1980_vm11, %v5190_v17, %v5192_v58 }
 0x385   : > { %v3763_v28 = vpop.f32.mrf.mxu1 }
 0x386   : > { %v4255_v3 = vpop.f32.mrf.mxu2  ;;  %v5357_v8 = vpop.f32.mrf.mxu0  ;;  %6612 = vmatmul.msk.bf16.gmra.mxu3 %vm1532_vm10, %v4736_v62  ;;  %v3878_v61 = vadd.f32 %v3763_v28, %v8005_v42  ;;  %v4744_v62 = vsel %vm1271_vm9, %v4739_v44, %v4743_v27 }
 0x387   : > { %v4371_v60 = vadd.f32 %v4255_v3, %v3877_v37 }
 0x389   : > { %6646 = vmatmul.msk.bf16.gmra.mxu0 %vm1532_vm10, %v5191_v6  ;;  %v5013_v9 = vpop.f32.mrf.mxu3 }
 0x38a   : > { %v5129_v30 = vadd.f32 %v5013_v9, %v4371_v60  ;;  %v6997_v60 = vld [vmem:[#allocation2 + $0x88] sm:$0xff] }
 0x38b   : > { %v3601_v11 = vrot.slane %v6997_v60, 1 }
 0x38c   : > { %v5468_v32 = vadd.f32 %v5352_v39, %v5129_v30 }
 0x38d   : > { %v3766_v36 = vpop.f32.mrf.mxu1  ;;  %v3602_v23 = vsel %vm1980_vm11, %v3599_v4, %v3601_v11 }
 0x38e   : > { %v4257_v25 = vpop.f32.mrf.mxu2  ;;  %v5358_v56 = vpop.f32.mrf.mxu0  ;;  %v5504_v43 = vadd.f32 %v8296_v46, %v5468_v32 }
 0x38f   : > { %v4372_v35 = vadd.f32 %v4257_v25, %v3878_v61  ;;  %v8391_v61 = vld [vmem:[#allocation2 + $0xa0] sm:$0xff]  ;;  %v6777_v25 = vld [vmem:[#allocation2 + $0x90] sm:$0xff] }
 0x390   : > { %6295 = vmatmul.msk.bf16.gmra.mxu1 %vm1532_vm10, %v3600_v16  ;;  %v5536_v0 = vmax.f32 %v5504_v43, 0.0  ;;  %v5194_v43 = vrot.slane %v8391_v61, 1 }
 0x391   : > { %v5015_v1 = vpop.f32.mrf.mxu3 }
 0x392   : > { %v5568_v42 = vpack.c.bf16 %v5536_v0, %v5536_v0  ;;  %v5130_v39 = vadd.f32 %v5015_v1, %v4372_v35 }
 0x393   : > { %6456 = vmatmul.msk.bf16.gmra.mxu2 %vm1532_vm10, %v6776_v49  ;;  %v4751_v49 = vrot.slane %v4749_v40, 1 }
 0x394   : > { %5600 = vst.msk [vmem:[%s8312_s27 + $0x10] sm:$0xf] %vm246_vm4, %v5568_v42  ;;  %v5469_v37 = vadd.f32 %v5354_v14, %v5130_v39  ;;  %v4745_v14 = vshrl.u32 %v8359_v55, 16  ;;  %v5195_v42 = vsel %vm1980_vm11, %v5192_v58, %v5194_v43 }
 0x395   : > { %v3767_v28 = vpop.f32.mrf.mxu1 }
 0x396   : > { %v4260_v3 = vpop.f32.mrf.mxu2  ;;  %v5360_v8 = vpop.f32.mrf.mxu0  ;;  %v5505_v6 = vadd.f32 %v8296_v46, %v5469_v37  ;;  %6613 = vmatmul.msk.bf16.gmra.mxu3 %vm1532_vm10, %v4744_v62  ;;  %v4747_v56 = vor.u32 %v4745_v14, %v4743_v27  ;;  %v6998_v27 = vld [vmem:[#allocation2 + $0x90] sm:$0xff] }
 0x397   : > { %v3603_v62 = vrot.slane %v6998_v27, 1 }
 0x398   : > { %v5537_v9 = vmax.f32 %v5505_v6, 0.0  ;;  %v4752_v55 = vsel %vm1271_vm9, %v4747_v56, %v4751_v49  ;;  %v4753_v6 = vshrl.u32 %v8373_v63, 16 }
 0x399   : > { %6647 = vmatmul.msk.bf16.gmra.mxu0 %vm1532_vm10, %v5193_v54  ;;  %v5018_v30 = vpop.f32.mrf.mxu3  ;;  %v3604_v54 = vsel %vm1980_vm11, %v3601_v11, %v3603_v62 }
 0x39a   : > { %v5569_v36 = vpack.c.bf16 %v5537_v9, %v5537_v9  ;;  %v4755_v40 = vor.u32 %v4753_v6, %v4751_v49 }
 0x39c   : > { %5601 = vst.msk [vmem:[%s8312_s27 + $0x14] sm:$0xf] %vm246_vm4, %v5569_v36  ;;  %v8405_v36 = vld [vmem:[#allocation2 + $0xa8] sm:$0xff] }
 0x39d   : > { %v3769_v16 = vpop.f32.mrf.mxu1  ;;  %v5196_v63 = vrot.slane %v8405_v36, 1 }
 0x39e   : > { %v4261_v17 = vpop.f32.mrf.mxu2  ;;  %v5362_v32 = vpop.f32.mrf.mxu0  ;;  %v3879_v44 = vadd.f32 %v3769_v16, %v8019_v21  ;;  %v4757_v21 = vshll.u32 %v8391_v61, 16  ;;  %v6778_v16 = vld [vmem:[#allocation2 + $0x98] sm:$0xff] }
 0x39f   : > { %v5197_v49 = vsel %vm1980_vm11, %v5194_v43, %v5196_v63 }
 0x3a0   : > { %6296 = vmatmul.msk.bf16.gmra.mxu1 %vm1532_vm10, %v3602_v23  ;;  %v4759_v11 = vrot.slane %v4757_v21, 1  ;;  %v8423_v21 = vld [vmem:[#allocation2 + $0xb0] sm:$0xff] }
 0x3a1   : > { %v5019_v35 = vpop.f32.mrf.mxu3 }
 0x3a2   : > { %v4760_v56 = vsel %vm1271_vm9, %v4755_v40, %v4759_v11 }
 0x3a3   : > { %6457 = vmatmul.msk.bf16.gmra.mxu2 %vm1532_vm10, %v6777_v25 }
 0x3a5   : > { %v3771_v4 = vpop.f32.mrf.mxu1 }
 0x3a6   : > { %v4263_v0 = vpop.f32.mrf.mxu2  ;;  %v5365_v1 = vpop.f32.mrf.mxu0  ;;  %6614 = vmatmul.msk.bf16.gmra.mxu3 %vm1532_vm10, %v4752_v55  ;;  %v3880_v9 = vadd.f32 %v3771_v4, %v8026_v24 }
 0x3a7   : > { %v4373_v39 = vadd.f32 %v4263_v0, %v3879_v44  ;;  %v6999_v1 = vld [vmem:[#allocation2 + $0x98] sm:$0xff] }
 0x3a9   : > { %6648 = vmatmul.msk.bf16.gmra.mxu0 %vm1532_vm10, %v5195_v42  ;;  %v5021_v28 = vpop.f32.mrf.mxu3  ;;  %v3605_v42 = vrot.slane %v6999_v1, 1 }
 0x3aa   : > { %v5131_v37 = vadd.f32 %v5021_v28, %v4373_v39 }
 0x3ac   : > { %v5470_v60 = vadd.f32 %v5360_v8, %v5131_v37 }
 0x3ad   : > { %v3774_v3 = vpop.f32.mrf.mxu1 }
 0x3ae   : > { %v4265_v58 = vpop.f32.mrf.mxu2  ;;  %v5366_v30 = vpop.f32.mrf.mxu0  ;;  %v5506_v23 = vadd.f32 %v8296_v46, %v5470_v60  ;;  %v3606_v3 = vsel %vm1980_vm11, %v3603_v62, %v3605_v42  ;;  %v6779_v60 = vld [vmem:[#allocation2 + $0xa0] sm:$0xff] }
 0x3af   : > { %v4374_v14 = vadd.f32 %v4265_v58, %v3880_v9  ;;  %v5198_v30 = vrot.slane %v8423_v21, 1 }
 0x3b0   : > { %6297 = vmatmul.msk.bf16.gmra.mxu1 %vm1532_vm10, %v3604_v54  ;;  %v5538_v17 = vmax.f32 %v5506_v23, 0.0  ;;  %v4765_v54 = vshll.u32 %v8405_v36, 16 }
 0x3b1   : > { %v5023_v25 = vpop.f32.mrf.mxu3 }
 0x3b2   : > { %v5570_v24 = vpack.c.bf16 %v5538_v17, %v5538_v17  ;;  %v5132_v8 = vadd.f32 %v5023_v25, %v4374_v14  ;;  %v4767_v58 = vrot.slane %v4765_v54, 1  ;;  %v5199_v17 = vsel %vm1980_vm11, %v5196_v63, %v5198_v30 }
 0x3b3   : > { %6458 = vmatmul.msk.bf16.gmra.mxu2 %vm1532_vm10, %v6778_v16 }
 0x3b4   : > { %5602 = vst.msk [vmem:[%s8312_s27 + $0x18] sm:$0xf] %vm246_vm4, %v5570_v24  ;;  %v5471_v55 = vadd.f32 %v5362_v32, %v5132_v8  ;;  %v4761_v32 = vshrl.u32 %v8391_v61, 16 }
 0x3b5   : > { %v3775_v35 = vpop.f32.mrf.mxu1 }
 0x3b6   : > { %v4268_v4 = vpop.f32.mrf.mxu2  ;;  %v5368_v44 = vpop.f32.mrf.mxu0  ;;  %v5507_v0 = vadd.f32 %v8296_v46, %v5471_v55  ;;  %6615 = vmatmul.msk.bf16.gmra.mxu3 %vm1532_vm10, %v4760_v56  ;;  %v4763_v9 = vor.u32 %v4761_v32, %v4759_v11  ;;  %v7000_v11 = vld [vmem:[#allocation2 + $0xa0] sm:$0xff] }
 0x3b7   : > { %v3607_v24 = vrot.slane %v7000_v11, 1  ;;  %v4769_v4 = vshrl.u32 %v8405_v36, 16 }
 0x3b8   : > { %v5539_v39 = vmax.f32 %v5507_v0, 0.0  ;;  %v4768_v61 = vsel %vm1271_vm9, %v4763_v9, %v4767_v58 }
 0x3b9   : > { %6649 = vmatmul.msk.bf16.gmra.mxu0 %vm1532_vm10, %v5197_v49  ;;  %v5026_v27 = vpop.f32.mrf.mxu3  ;;  %v3608_v55 = vsel %vm1980_vm11, %v3605_v42, %v3607_v24 }
 0x3ba   : > { %v5571_v28 = vpack.c.bf16 %v5539_v39, %v5539_v39  ;;  %v8437_v39 = vld [vmem:[#allocation2 + $0xb8] sm:$0xff]  ;;  %v6780_v27 = vld [vmem:[#allocation2 + $0xa8] sm:$0xff] }
 0x3bb   : > { %v5200_v36 = vrot.slane %v8437_v39, 1 }
 0x3bc   : > { %5603 = vst.msk [vmem:[%s8312_s27 + $0x1c] sm:$0xf] %vm246_vm4, %v5571_v28 }
 0x3bd   : > { %v3777_v37 = vpop.f32.mrf.mxu1 }
 0x3be   : > { %v4269_v43 = vpop.f32.mrf.mxu2  ;;  %v5370_v6 = vpop.f32.mrf.mxu0  ;;  %v3881_v23 = vadd.f32 %v3777_v37, %v8038_v53  ;;  %v4773_v53 = vshll.u32 %v8423_v21, 16 }
 0x3c0   : > { %6298 = vmatmul.msk.bf16.gmra.mxu1 %vm1532_vm10, %v3606_v3  ;;  %v4771_v3 = vor.u32 %v4769_v4, %v4767_v58  ;;  %v4775_v42 = vrot.slane %v4773_v53, 1  ;;  %v5201_v58 = vsel %vm1980_vm11, %v5198_v30, %v5200_v36  ;;  %v6781_v4 = vld [vmem:[#allocation2 + $0xb0] sm:$0xff] }
 0x3c1   : > { %v5027_v16 = vpop.f32.mrf.mxu3 }
 0x3c2   : > { %v4776_v43 = vsel %vm1271_vm9, %v4771_v3, %v4775_v42 }
 0x3c3   : > { %6459 = vmatmul.msk.bf16.gmra.mxu2 %vm1532_vm10, %v6779_v60 }
 0x3c5   : > { %v3779_v62 = vpop.f32.mrf.mxu1 }
 0x3c6   : > { %v4271_v14 = vpop.f32.mrf.mxu2  ;;  %v5373_v40 = vpop.f32.mrf.mxu0  ;;  %6616 = vmatmul.msk.bf16.gmra.mxu3 %vm1532_vm10, %v4768_v61  ;;  %v3882_v0 = vadd.f32 %v3779_v62, %v8044_v47 }
 0x3c7   : > { %v4375_v25 = vadd.f32 %v4271_v14, %v3881_v23  ;;  %v7001_v23 = vld [vmem:[#allocation2 + $0xa8] sm:$0xff] }
 0x3c8   : > { %v3609_v14 = vrot.slane %v7001_v23, 1  ;;  %v6782_v23 = vld [vmem:[#allocation2 + $0xb8] sm:$0xff] }
 0x3c9   : > { %6650 = vmatmul.msk.bf16.gmra.mxu0 %vm1532_vm10, %v5199_v17  ;;  %v5029_v8 = vpop.f32.mrf.mxu3 }
 0x3ca   : > { %v5133_v56 = vadd.f32 %v5029_v8, %v4375_v25  ;;  %v3610_v8 = vsel %vm1980_vm11, %v3607_v24, %v3609_v14 }
 0x3cc   : > { %v5472_v49 = vadd.f32 %v5368_v44, %v5133_v56  ;;  %v4781_v56 = vshll.u32 %v8437_v39, 16 }
 0x3cd   : > { %v3782_v35 = vpop.f32.mrf.mxu1 }
 0x3ce   : > { %v4273_v63 = vpop.f32.mrf.mxu2  ;;  %v5374_v1 = vpop.f32.mrf.mxu0  ;;  %v5508_v28 = vadd.f32 %v8296_v46, %v5472_v49  ;;  %v4783_v49 = vrot.slane %v4781_v56, 1 }
 0x3cf   : > { %v4376_v37 = vadd.f32 %v4273_v63, %v3882_v0 }
 0x3d0   : > { %6299 = vmatmul.msk.bf16.gmra.mxu1 %vm1532_vm10, %v3608_v55  ;;  %v5540_v32 = vmax.f32 %v5508_v28, 0.0  ;;  %v8455_v55 = vld [vmem:[#allocation2 + $0xc0] sm:$0xff] }
 0x3d1   : > { %v5031_v54 = vpop.f32.mrf.mxu3  ;;  %v5202_v0 = vrot.slane %v8455_v55, 1 }
 0x3d2   : > { %v5572_v47 = vpack.c.bf16 %v5540_v32, %v5540_v32  ;;  %v5134_v44 = vadd.f32 %v5031_v54, %v4376_v37 }
 0x3d3   : > { %6460 = vmatmul.msk.bf16.gmra.mxu2 %vm1532_vm10, %v6780_v27  ;;  %v5203_v37 = vsel %vm1980_vm11, %v5200_v36, %v5202_v0 }
 0x3d4   : > { %5604 = vst.msk [vmem:[%s8312_s27 + $0x20] sm:$0xf] %vm246_vm4, %v5572_v47  ;;  %v5473_v9 = vadd.f32 %v5370_v6, %v5134_v44  ;;  %v4777_v6 = vshrl.u32 %v8423_v21, 16 }
 0x3d5   : > { %v3783_v60 = vpop.f32.mrf.mxu1 }
 0x3d6   : > { %v4276_v16 = vpop.f32.mrf.mxu2  ;;  %v5376_v61 = vpop.f32.mrf.mxu0  ;;  %v5509_v62 = vadd.f32 %v8296_v46, %v5473_v9  ;;  %6617 = vmatmul.msk.bf16.gmra.mxu3 %vm1532_vm10, %v4776_v43  ;;  %v4779_v53 = vor.u32 %v4777_v6, %v4775_v42  ;;  %v7002_v42 = vld [vmem:[#allocation2 + $0xb0] sm:$0xff]  ;;  %v4785_v60 = vshrl.u32 %v8437_v39, 16 }
 0x3d7   : > { %v3611_v32 = vrot.slane %v7002_v42, 1 }
 0x3d8   : > { %v5541_v40 = vmax.f32 %v5509_v62, 0.0  ;;  %v4784_v21 = vsel %vm1271_vm9, %v4779_v53, %v4783_v49  ;;  %v8469_v62 = vld [vmem:[#allocation2 + $0xc8] sm:$0xff] }
 0x3d9   : > { %6651 = vmatmul.msk.bf16.gmra.mxu0 %vm1532_vm10, %v5201_v58  ;;  %v5034_v17 = vpop.f32.mrf.mxu3  ;;  %v3612_v43 = vsel %vm1980_vm11, %v3609_v14, %v3611_v32  ;;  %v5204_v39 = vrot.slane %v8469_v62, 1  ;;  %v4797_v42 = vshll.u32 %v8469_v62, 16 }
 0x3da   : > { %v5573_v25 = vpack.c.bf16 %v5541_v40, %v5541_v40 }
 0x3dc   : > { %5605 = vst.msk [vmem:[%s8312_s27 + $0x24] sm:$0xf] %vm246_vm4, %v5573_v25  ;;  %v4787_v25 = vor.u32 %v4785_v60, %v4783_v49  ;;  %v5205_v49 = vsel %vm1980_vm11, %v5202_v0, %v5204_v39  ;;  %v4799_v60 = vrot.slane %v4797_v42, 1 }
 0x3dd   : > { %v3785_v11 = vpop.f32.mrf.mxu1 }
 0x3de   : > { %v4277_v30 = vpop.f32.mrf.mxu2  ;;  %v5378_v35 = vpop.f32.mrf.mxu0  ;;  %v3883_v1 = vadd.f32 %v3785_v11, %v8056_v18  ;;  %v4789_v18 = vshll.u32 %v8455_v55, 16 }
 0x3e0   : > { %6300 = vmatmul.msk.bf16.gmra.mxu1 %vm1532_vm10, %v3610_v8  ;;  %v4791_v14 = vrot.slane %v4789_v18, 1 }
 0x3e1   : > { %v5035_v63 = vpop.f32.mrf.mxu3 }
 0x3e2   : > { %v4792_v6 = vsel %vm1271_vm9, %v4787_v25, %v4791_v14 }
 0x3e3   : > { %6461 = vmatmul.msk.bf16.gmra.mxu2 %vm1532_vm10, %v6781_v4 }
 0x3e5   : > { %v3787_v24 = vpop.f32.mrf.mxu1 }
 0x3e6   : > { %v4279_v27 = vpop.f32.mrf.mxu2  ;;  %v5381_v28 = vpop.f32.mrf.mxu0  ;;  %6618 = vmatmul.msk.bf16.gmra.mxu3 %vm1532_vm10, %v4784_v21  ;;  %v3884_v16 = vadd.f32 %v3787_v24, %v8062_v31  ;;  %v7003_v21 = vld [vmem:[#allocation2 + $0xb8] sm:$0xff] }
 0x3e7   : > { %v4377_v3 = vadd.f32 %v4279_v27, %v3883_v1  ;;  %v3613_v24 = vrot.slane %v7003_v21, 1 }
 0x3e9   : > { %6652 = vmatmul.msk.bf16.gmra.mxu0 %vm1532_vm10, %v5203_v37  ;;  %v5037_v54 = vpop.f32.mrf.mxu3 }
 0x3ea   : > { %v5135_v47 = vadd.f32 %v5037_v54, %v4377_v3  ;;  %v3614_v3 = vsel %vm1980_vm11, %v3611_v32, %v3613_v24 }
 0x3ec   : > { %v5474_v9 = vadd.f32 %v5376_v61, %v5135_v47  ;;  %v8487_v47 = vld [vmem:[#allocation2 + $0xd0] sm:$0xff] }
 0x3ed   : > { %v3790_v44 = vpop.f32.mrf.mxu1  ;;  %v5206_v18 = vrot.slane %v8487_v47, 1 }
 0x3ee   : > { %v4281_v36 = vpop.f32.mrf.mxu2  ;;  %v5382_v58 = vpop.f32.mrf.mxu0  ;;  %v5510_v40 = vadd.f32 %v8296_v46, %v5474_v9  ;;  %v6783_v44 = vld [vmem:[#allocation2 + $0xc0] sm:$0xff] }
 0x3ef   : > { %v4378_v17 = vadd.f32 %v4281_v36, %v3884_v16 }
 0x3f0   : > { %6301 = vmatmul.msk.bf16.gmra.mxu1 %vm1532_vm10, %v3612_v43  ;;  %v5542_v11 = vmax.f32 %v5510_v40, 0.0 }
 0x3f1   : > { %v5039_v8 = vpop.f32.mrf.mxu3 }
 0x3f2   : > { %v5574_v31 = vpack.c.bf16 %v5542_v11, %v5542_v11  ;;  %v5136_v61 = vadd.f32 %v5039_v8, %v4378_v17  ;;  %v7004_v17 = vld [vmem:[#allocation2 + $0xc0] sm:$0xff] }
 0x3f3   : > { %6462 = vmatmul.msk.bf16.gmra.mxu2 %vm1532_vm10, %v6782_v23  ;;  %v5207_v23 = vsel %vm1980_vm11, %v5204_v39, %v5206_v18  ;;  %v3615_v25 = vrot.slane %v7004_v17, 1  ;;  %v8519_v17 = vld [vmem:[#allocation2 + $0xe0] sm:$0xff] }
 0x3f4   : > { %5606 = vst.msk [vmem:[%s8312_s27 + $0x28] sm:$0xf] %vm246_vm4, %v5574_v31  ;;  %v5475_v30 = vadd.f32 %v5378_v35, %v5136_v61  ;;  %v4793_v35 = vshrl.u32 %v8455_v55, 16  ;;  %v4801_v61 = vshrl.u32 %v8469_v62, 16 }
 0x3f5   : > { %v3791_v56 = vpop.f32.mrf.mxu1  ;;  %v3616_v31 = vsel %vm1980_vm11, %v3613_v24, %v3615_v25 }
 0x3f6   : > { %v4284_v4 = vpop.f32.mrf.mxu2  ;;  %v5384_v53 = vpop.f32.mrf.mxu0  ;;  %v5511_v63 = vadd.f32 %v8296_v46, %v5475_v30  ;;  %6619 = vmatmul.msk.bf16.gmra.mxu3 %vm1532_vm10, %v4792_v6  ;;  %v4795_v43 = vor.u32 %v4793_v35, %v4791_v14 }
 0x3f7   : > { %v8501_v4 = vld [vmem:[#allocation2 + $0xd8] sm:$0xff] }
 0x3f8   : > { %v5543_v1 = vmax.f32 %v5511_v63, 0.0  ;;  %v4800_v55 = vsel %vm1271_vm9, %v4795_v43, %v4799_v60  ;;  %v5208_v62 = vrot.slane %v8501_v4, 1 }
 0x3f9   : > { %6653 = vmatmul.msk.bf16.gmra.mxu0 %vm1532_vm10, %v5205_v49  ;;  %v5042_v27 = vpop.f32.mrf.mxu3  ;;  %v6784_v49 = vld [vmem:[#allocation2 + $0xc8] sm:$0xff] }
 0x3fa   : > { %v5575_v28 = vpack.c.bf16 %v5543_v1, %v5543_v1  ;;  %v4803_v1 = vor.u32 %v4801_v61, %v4799_v60  ;;  %v7005_v60 = vld [vmem:[#allocation2 + $0xc8] sm:$0xff] }
 0x3fc   : > { %5607 = vst.msk [vmem:[%s8312_s27 + $0x2c] sm:$0xf] %vm246_vm4, %v5575_v28 }
 0x3fd   : > { %v3793_v37 = vpop.f32.mrf.mxu1 }
 0x3fe   : > { %v4285_v0 = vpop.f32.mrf.mxu2  ;;  %v5386_v54 = vpop.f32.mrf.mxu0  ;;  %v3885_v16 = vadd.f32 %v3793_v37, %v8074_v51  ;;  %v4805_v51 = vshll.u32 %v8487_v47, 16 }
 0x400   : > { %6302 = vmatmul.msk.bf16.gmra.mxu1 %vm1532_vm10, %v3614_v3  ;;  %v4807_v24 = vrot.slane %v4805_v51, 1 }
 0x401   : > { %v5043_v9 = vpop.f32.mrf.mxu3 }
 0x402   : > { %v4808_v37 = vsel %vm1271_vm9, %v4803_v1, %v4807_v24  ;;  %v3617_v9 = vrot.slane %v7005_v60, 1 }
 0x403   : > { %6463 = vmatmul.msk.bf16.gmra.mxu2 %vm1532_vm10, %v6783_v44  ;;  %v5209_v44 = vsel %vm1980_vm11, %v5206_v18, %v5208_v62 }
 0x405   : > { %v3795_v32 = vpop.f32.mrf.mxu1 }
 0x406   : > { %v4287_v36 = vpop.f32.mrf.mxu2  ;;  %v5389_v58 = vpop.f32.mrf.mxu0  ;;  %6620 = vmatmul.msk.bf16.gmra.mxu3 %vm1532_vm10, %v4800_v55  ;;  %v3886_v56 = vadd.f32 %v3795_v32, %v8080_v50 }
 0x407   : > { %v4379_v40 = vadd.f32 %v4287_v36, %v3885_v16  ;;  %v3618_v58 = vsel %vm1980_vm11, %v3615_v25, %v3617_v9 }
 0x409   : > { %6654 = vmatmul.msk.bf16.gmra.mxu0 %vm1532_vm10, %v5207_v23  ;;  %v5045_v14 = vpop.f32.mrf.mxu3  ;;  %v4813_v23 = vshll.u32 %v8501_v4, 16 }
 0x40a   : > { %v5137_v11 = vadd.f32 %v5045_v14, %v4379_v40  ;;  %v6785_v14 = vld [vmem:[#allocation2 + $0xd0] sm:$0xff] }
 0x40c   : > { %v5476_v6 = vadd.f32 %v5384_v53, %v5137_v11 }
 0x40d   : > { %v3798_v8 = vpop.f32.mrf.mxu1 }
 0x40e   : > { %v4289_v39 = vpop.f32.mrf.mxu2  ;;  %v5390_v30 = vpop.f32.mrf.mxu0  ;;  %v5512_v63 = vadd.f32 %v8296_v46, %v5476_v6  ;;  %v4815_v8 = vrot.slane %v4813_v23, 1 }
 0x40f   : > { %v4380_v21 = vadd.f32 %v4289_v39, %v3886_v56 }
 0x410   : > { %6303 = vmatmul.msk.bf16.gmra.mxu1 %vm1532_vm10, %v3616_v31  ;;  %v5544_v27 = vmax.f32 %v5512_v63, 0.0  ;;  %v5210_v31 = vrot.slane %v8519_v17, 1 }
 0x411   : > { %v5047_v28 = vpop.f32.mrf.mxu3 }
 0x412   : > { %v5576_v50 = vpack.c.bf16 %v5544_v27, %v5544_v27  ;;  %v5138_v53 = vadd.f32 %v5047_v28, %v4380_v21  ;;  %v5211_v39 = vsel %vm1980_vm11, %v5208_v62, %v5210_v31  ;;  %v4817_v28 = vshrl.u32 %v8501_v4, 16 }
 0x413   : > { %6464 = vmatmul.msk.bf16.gmra.mxu2 %vm1532_vm10, %v6784_v49  ;;  %v7006_v49 = vld [vmem:[#allocation2 + $0xd0] sm:$0xff] }
 0x414   : > { %5608 = vst.msk [vmem:[%s8312_s27 + $0x30] sm:$0xf] %vm246_vm4, %v5576_v50  ;;  %v5477_v35 = vadd.f32 %v5386_v54, %v5138_v53  ;;  %v4809_v54 = vshrl.u32 %v8487_v47, 16  ;;  %v3619_v63 = vrot.slane %v7006_v49, 1 }
 0x415   : > { %v3799_v3 = vpop.f32.mrf.mxu1 }
 0x416   : > { %v4292_v42 = vpop.f32.mrf.mxu2  ;;  %v5392_v0 = vpop.f32.mrf.mxu0  ;;  %v5513_v43 = vadd.f32 %v8296_v46, %v5477_v35  ;;  %6621 = vmatmul.msk.bf16.gmra.mxu3 %vm1532_vm10, %v4808_v37  ;;  %v4811_v11 = vor.u32 %v4809_v54, %v4807_v24  ;;  %v3620_v27 = vsel %vm1980_vm11, %v3617_v9, %v3619_v63  ;;  %v8533_v3 = vld [vmem:[#allocation2 + $0xe8] sm:$0xff]  ;;  %v6786_v35 = vld [vmem:[#allocation2 + $0xd8] sm:$0xff] }
 0x417   : > { %v5212_v4 = vrot.slane %v8533_v3, 1 }
 0x418   : > { %v5545_v55 = vmax.f32 %v5513_v43, 0.0  ;;  %v4816_v47 = vsel %vm1271_vm9, %v4811_v11, %v4815_v8  ;;  %v4819_v43 = vor.u32 %v4817_v28, %v4815_v8 }
 0x419   : > { %6655 = vmatmul.msk.bf16.gmra.mxu0 %vm1532_vm10, %v5209_v44  ;;  %v5050_v32 = vpop.f32.mrf.mxu3  ;;  %v5213_v23 = vsel %vm1980_vm11, %v5210_v31, %v5212_v4 }
 0x41a   : > { %v5577_v16 = vpack.c.bf16 %v5545_v55, %v5545_v55 }
 0x41c   : > { %5609 = vst.msk [vmem:[%s8312_s27 + $0x34] sm:$0xf] %vm246_vm4, %v5577_v16 }
 0x41d   : > { %v3801_v36 = vpop.f32.mrf.mxu1 }
 0x41e   : > { %v4293_v18 = vpop.f32.mrf.mxu2  ;;  %v5394_v40 = vpop.f32.mrf.mxu0  ;;  %v3887_v51 = vadd.f32 %v3801_v36, %v8092_v41  ;;  %v4821_v41 = vshll.u32 %v8519_v17, 16 }
 0x420   : > { %6304 = vmatmul.msk.bf16.gmra.mxu1 %vm1532_vm10, %v3618_v58  ;;  %v4823_v60 = vrot.slane %v4821_v41, 1 }
 0x421   : > { %v5051_v61 = vpop.f32.mrf.mxu3 }
 0x422   : > { %v4824_v32 = vsel %vm1271_vm9, %v4819_v43, %v4823_v60 }
 0x423   : > { %6465 = vmatmul.msk.bf16.gmra.mxu2 %vm1532_vm10, %v6785_v14  ;;  %v7007_v14 = vld [vmem:[#allocation2 + $0xd8] sm:$0xff] }
 0x424   : > { %v3621_v11 = vrot.slane %v7007_v14, 1 }
 0x425   : > { %v3803_v25 = vpop.f32.mrf.mxu1 }
 0x426   : > { %v4295_v6 = vpop.f32.mrf.mxu2  ;;  %v5397_v56 = vpop.f32.mrf.mxu0  ;;  %6622 = vmatmul.msk.bf16.gmra.mxu3 %vm1532_vm10, %v4816_v47  ;;  %v3888_v53 = vadd.f32 %v3803_v25, %v8098_v45 }
 0x427   : > { %v4381_v30 = vadd.f32 %v4295_v6, %v3887_v51  ;;  %v3622_v51 = vsel %vm1980_vm11, %v3619_v63, %v3621_v11  ;;  %v4829_v6 = vshll.u32 %v8533_v3, 16 }
 0x429   : > { %6656 = vmatmul.msk.bf16.gmra.mxu0 %vm1532_vm10, %v5211_v39  ;;  %v5053_v21 = vpop.f32.mrf.mxu3  ;;  %v8551_v39 = vld [vmem:[#allocation2 + $0xf0] sm:$0xff] }
 0x42a   : > { %v5139_v1 = vadd.f32 %v5053_v21, %v4381_v30  ;;  %v6787_v30 = vld [vmem:[#allocation2 + $0xe0] sm:$0xff]  ;;  %v4831_v21 = vrot.slane %v4829_v6, 1  ;;  %v7010_v6 = vld [vmem:[#allocation2 + $0xe8] sm:$0xff] }
 0x42c   : > { %v5478_v50 = vadd.f32 %v5392_v0, %v5139_v1  ;;  %v5214_v1 = vrot.slane %v8551_v39, 1 }
 0x42d   : > { %v3806_v24 = vpop.f32.mrf.mxu1 }
 0x42e   : > { %v4297_v62 = vpop.f32.mrf.mxu2  ;;  %v5398_v37 = vpop.f32.mrf.mxu0  ;;  %v5514_v42 = vadd.f32 %v8296_v46, %v5478_v50  ;;  %v5215_v50 = vsel %vm1980_vm11, %v5212_v4, %v5214_v1 }
 0x42f   : > { %v4382_v44 = vadd.f32 %v4297_v62, %v3888_v53  ;;  %v7008_v62 = vld [vmem:[#allocation2 + $0xe0] sm:$0xff] }
 0x430   : > { %6305 = vmatmul.msk.bf16.gmra.mxu1 %vm1532_vm10, %v3620_v27  ;;  %v5546_v9 = vmax.f32 %v5514_v42, 0.0  ;;  %v3623_v37 = vrot.slane %v7008_v62, 1 }
 0x431   : > { %v5055_v55 = vpop.f32.mrf.mxu3 }
 0x432   : > { %v5578_v45 = vpack.c.bf16 %v5546_v9, %v5546_v9  ;;  %v5140_v0 = vadd.f32 %v5055_v55, %v4382_v44  ;;  %v3624_v43 = vsel %vm1980_vm11, %v3621_v11, %v3623_v37 }
 0x433   : > { %6466 = vmatmul.msk.bf16.gmra.mxu2 %vm1532_vm10, %v6786_v35 }
 0x434   : > { %5610 = vst.msk [vmem:[%s8312_s27 + $0x38] sm:$0xf] %vm246_vm4, %v5578_v45  ;;  %v5479_v36 = vadd.f32 %v5394_v40, %v5140_v0  ;;  %v4825_v40 = vshrl.u32 %v8519_v17, 16  ;;  %v8565_v0 = vld [vmem:[#allocation2 + $0xf8] sm:$0xff] }
 0x435   : > { %v3807_v16 = vpop.f32.mrf.mxu1 }
 0x436   : > { %v4300_v58 = vpop.f32.mrf.mxu2  ;;  %v5400_v54 = vpop.f32.mrf.mxu0  ;;  %v5515_v18 = vadd.f32 %v8296_v46, %v5479_v36  ;;  %6623 = vmatmul.msk.bf16.gmra.mxu3 %vm1532_vm10, %v4824_v32  ;;  %v4827_v49 = vor.u32 %v4825_v40, %v4823_v60  ;;  %v4833_v60 = vshrl.u32 %v8533_v3, 16  ;;  %v6788_v32 = vld [vmem:[#allocation2 + $0xe8] sm:$0xff]  ;;  %v5216_v3 = vrot.slane %v8565_v0, 1 }
 0x438   : > { %v5547_v8 = vmax.f32 %v5515_v18, 0.0  ;;  %v4832_v17 = vsel %vm1271_vm9, %v4827_v49, %v4831_v21  ;;  %v4835_v58 = vor.u32 %v4833_v60, %v4831_v21 }
 0x439   : > { %6657 = vmatmul.msk.bf16.gmra.mxu0 %vm1532_vm10, %v5213_v23  ;;  %v5058_v61 = vpop.f32.mrf.mxu3 }
 0x43a   : > { %v5579_v47 = vpack.c.bf16 %v5547_v8, %v5547_v8 }
 0x43c   : > { %5611 = vst.msk [vmem:[%s8312_s27 + $0x3c] sm:$0xf] %vm246_vm4, %v5579_v47 }
 0x43d   : > { %v3809_v25 = vpop.f32.mrf.mxu1 }
 0x43e   : > { %v4301_v31 = vpop.f32.mrf.mxu2  ;;  %v5402_v56 = vpop.f32.mrf.mxu0  ;;  %v3889_v27 = vadd.f32 %v3809_v25, %v8110_v59  ;;  %v4837_v59 = vshll.u32 %v8551_v39, 16  ;;  %v5217_v25 = vsel %vm1980_vm11, %v5214_v1, %v5216_v3  ;;  %v4841_v1 = vshrl.u32 %v8551_v39, 16 }
 0x43f   : > { %v3625_v31 = vrot.slane %v7010_v6, 1 }
 0x440   : > { %6306 = vmatmul.msk.bf16.gmra.mxu1 %vm1532_vm10, %v3622_v51  ;;  %v4839_v23 = vrot.slane %v4837_v59, 1  ;;  %v8578_v51 = vld [vmem:[%s8724_s3] ss:$0 sm:$0xff] }
 0x441   : > { %v5059_v24 = vpop.f32.mrf.mxu3 }
 0x442   : > { %v4840_v11 = vsel %vm1271_vm9, %v4835_v58, %v4839_v23  ;;  %v3626_v24 = vsel %vm1980_vm11, %v3623_v37, %v3625_v31 }
 0x443   : > { %6467 = vmatmul.msk.bf16.gmra.mxu2 %vm1532_vm10, %v6787_v30 }
 0x445   : > { %v3811_v63 = vpop.f32.mrf.mxu1 }
 0x446   : > { %v4303_v28 = vpop.f32.mrf.mxu2  ;;  %v5405_v41 = vpop.f32.mrf.mxu0  ;;  %6624 = vmatmul.msk.bf16.gmra.mxu3 %vm1532_vm10, %v4832_v17  ;;  %v3890_v55 = vadd.f32 %v3811_v63, %v8116_v48  ;;  %v4845_v17 = vshll.u32 %v8565_v0, 16 }
 0x447   : > { %v4383_v53 = vadd.f32 %v4303_v28, %v3889_v27  ;;  %v8588_v28 = vld [vmem:[#allocation2 + $0x100] sm:$0xff]  ;;  %v6789_v41 = vld [vmem:[#allocation2 + $0xf0] sm:$0xff] }
 0x448   : > { %v5218_v62 = vrot.slane %v8588_v28, 1 }
 0x449   : > { %6658 = vmatmul.msk.bf16.gmra.mxu0 %vm1532_vm10, %v5215_v50  ;;  %v5061_v35 = vpop.f32.mrf.mxu3  ;;  %v4843_v50 = vor.u32 %v4841_v1, %v4839_v23 }
 0x44a   : > { %v5141_v42 = vadd.f32 %v5061_v35, %v4383_v53  ;;  %v4847_v53 = vrot.slane %v4845_v17, 1  ;;  %v5219_v60 = vsel %vm1980_vm11, %v5216_v3, %v5218_v62  ;;  %v7012_v17 = vld [vmem:[#allocation2 + $0xf8] sm:$0xff] }
 0x44c   : > { %v5480_v9 = vadd.f32 %v5400_v54, %v5141_v42  ;;  %v4848_v39 = vsel %vm1271_vm9, %v4843_v50, %v4847_v53 }
 0x44d   : > { %v3814_v44 = vpop.f32.mrf.mxu1 }
 0x44e   : > { %v4305_v4 = vpop.f32.mrf.mxu2  ;;  %v5406_v45 = vpop.f32.mrf.mxu0  ;;  %v5516_v16 = vadd.f32 %v8296_v46, %v5480_v9  ;;  %v7011_v9 = vld [vmem:[#allocation2 + $0xf0] sm:$0xff] }
 0x44f   : > { %v4384_v36 = vadd.f32 %v4305_v4, %v3890_v55  ;;  %v3627_v55 = vrot.slane %v7011_v9, 1 }
 0x450   : > { %6307 = vmatmul.msk.bf16.gmra.mxu1 %vm1532_vm10, %v3624_v43  ;;  %v5548_v18 = vmax.f32 %v5516_v16, 0.0 }
 0x451   : > { %v5063_v14 = vpop.f32.mrf.mxu3  ;;  %v3628_v16 = vsel %vm1980_vm11, %v3625_v31, %v3627_v55 }
 0x452   : > { %v5580_v48 = vpack.c.bf16 %v5548_v18, %v5548_v18  ;;  %v5142_v54 = vadd.f32 %v5063_v14, %v4384_v36  ;;  %v4849_v36 = vshrl.u32 %v8565_v0, 16  ;;  %v8602_v14 = vld [vmem:[#allocation2 + $0x108] sm:$0xff] }
 0x453   : > { %6468 = vmatmul.msk.bf16.gmra.mxu2 %vm1532_vm10, %v6788_v32 }
 0x454   : > { %5612 = vst.msk [vmem:[%s8312_s27 + $0x40] sm:$0xf] %vm246_vm4, %v5580_v48  ;;  %v5481_v61 = vadd.f32 %v5402_v56, %v5142_v54  ;;  %v6790_v48 = vld [vmem:[#allocation2 + $0xf8] sm:$0xff] }
 0x455   : > { %v3815_v8 = vpop.f32.mrf.mxu1  ;;  %v369_v54 = vld [vmem:[#allocation2 + $0x118] sm:$0xf] }
 0x456   : > { %v4308_v46 = vpop.f32.mrf.mxu2  ;;  %v5408_v47 = vpop.f32.mrf.mxu0  ;;  %v5517_v40 = vadd.f32 %v8578_v51, %v5481_v61  ;;  %6625 = vmatmul.msk.bf16.gmra.mxu3 %vm1532_vm10, %v4840_v11  ;;  %v370_v0 = vsel %vm7097_vm6, 0, %v369_v54  ;;  %v4851_v61 = vor.u32 %v4849_v36, %v4847_v53 }
 0x457   : > { %371 = vst [vmem:[#allocation2 + $0x118] sm:$0xf] %v370_v0 }
 0x458   : > { %v5549_v30 = vmax.f32 %v5517_v40, 0.0 }
 0x459   : > { %6659 = vmatmul.msk.bf16.gmra.mxu0 %vm1532_vm10, %v5217_v25  ;;  %v5066_v56 = vpop.f32.mrf.mxu3 }
 0x45a   : > { %v5581_v49 = vpack.c.bf16 %v5549_v30, %v5549_v30 }
 0x45c   : > { %5613 = vst.msk [vmem:[%s8312_s27 + $0x44] sm:$0xf] %vm246_vm4, %v5581_v49 }
 0x45d   : > { %v3817_v21 = vpop.f32.mrf.mxu1 }
 0x45e   : > { %v4309_v63 = vpop.f32.mrf.mxu2  ;;  %v5410_v27 = vpop.f32.mrf.mxu0  ;;  %v3891_v42 = vadd.f32 %v3817_v21, %v8136_v22  ;;  %v4853_v22 = vshll.u32 %v8588_v28, 16  ;;  %v1037_v1 = vld [vmem:[#allocation2 + $0x118] sm:$0x1] }
 0x45f   : > { %v3629_v63 = vrot.slane %v7012_v17, 1 }
 0x460   : > { %6308 = vmatmul.msk.bf16.gmra.mxu1 %vm1532_vm10, %v3626_v24  ;;  %v4855_v46 = vrot.slane %v4853_v22, 1 }
 0x461   : > { %v5067_v35 = vpop.f32.mrf.mxu3 }
 0x462   : > { %v4856_v31 = vsel %vm1271_vm9, %v4851_v61, %v4855_v46  ;;  %v4865_v61 = vshrl.u32 %v8602_v14, 16 }
 0x463   : > { %6469 = vmatmul.msk.bf16.gmra.mxu2 %vm1532_vm10, %v6789_v41  ;;  %v8738_v41 = vld [vmem:[#allocation3_spill] sm:$0xff] }
 0x464   : > { %v1038_v50 = vsel %vm7090_vm3, %v8738_v41, %v1037_v1 }
 0x465   : > { %v3819_v37 = vpop.f32.mrf.mxu1  ;;  %1039 = vst [vmem:[#allocation2 + $0x118] sm:$0x1] %v1038_v50 }
 0x466   : > { %v4311_v44 = vpop.f32.mrf.mxu2  ;;  %v5413_v43 = vpop.f32.mrf.mxu0  ;;  %6626 = vmatmul.msk.bf16.gmra.mxu3 %vm1532_vm10, %v4848_v39  ;;  %v3892_v23 = vadd.f32 %v3819_v37, %v8142_v29  ;;  %v5220_v29 = vrot.slane %v8602_v14, 1  ;;  %v4857_v37 = vshrl.u32 %v8588_v28, 16 }
 0x467   : > { %v4385_v59 = vadd.f32 %v4311_v44, %v3891_v42  ;;  %v4861_v42 = vshll.u32 %v8602_v14, 16 }
 0x468   : > { %v5221_v21 = vsel %vm1980_vm11, %v5218_v62, %v5220_v29  ;;  %v3630_v62 = vsel %vm1980_vm11, %v3627_v55, %v3629_v63  ;;  %v4859_v9 = vor.u32 %v4857_v37, %v4855_v46 }
 0x469   : > { %6660 = vmatmul.msk.bf16.gmra.mxu0 %vm1532_vm10, %v5219_v60  ;;  %v5069_v4 = vpop.f32.mrf.mxu3  ;;  %v8625_v60 = vld [vmem:[#allocation2 + $0x110] sm:$0xff] }
 0x46a   : > { %v5143_v45 = vadd.f32 %v5069_v4, %v4385_v59  ;;  %v6791_v59 = vld [vmem:[#allocation2 + $0x100] sm:$0xff]  ;;  %v4863_v4 = vrot.slane %v4861_v42, 1  ;;  %v4869_v46 = vshll.u32 %v8625_v60, 16 }
 0x46c   : > { %v5482_v58 = vadd.f32 %v5408_v47, %v5143_v45  ;;  %v5222_v45 = vrot.slane %v8625_v60, 1  ;;  %v4864_v28 = vsel %vm1271_vm9, %v4859_v9, %v4863_v4 }
 0x46d   : > { %v3822_v32 = vpop.f32.mrf.mxu1 }
 0x46e   : > { %v4313_v18 = vpop.f32.mrf.mxu2  ;;  %v5414_v3 = vpop.f32.mrf.mxu0  ;;  %v5518_v11 = vadd.f32 %v8578_v51, %v5482_v58 }
 0x46f   : > { %v4386_v8 = vadd.f32 %v4313_v18, %v3892_v23  ;;  %v5223_v23 = vsel %vm1980_vm11, %v5220_v29, %v5222_v45 }
 0x470   : > { %6309 = vmatmul.msk.bf16.gmra.mxu1 %vm1532_vm10, %v3628_v16  ;;  %v5550_v47 = vmax.f32 %v5518_v11, 0.0  ;;  %v373_v16 = vld [vmem:[#allocation2 + $0x120] sm:$0x1] }
 0x471   : > { %v5071_v25 = vpop.f32.mrf.mxu3  ;;  %v374_v18 = vsel %vm7090_vm3, 0, %v373_v16  ;;  %v6793_v16 = vld [vmem:[#allocation2 + $0x110] sm:$0xff] }
 0x472   : > { %v5582_v40 = vpack.c.bf16 %v5550_v47, %v5550_v47  ;;  %v5144_v6 = vadd.f32 %v5071_v25, %v4386_v8  ;;  %375 = vst [vmem:[#allocation2 + $0x120] sm:$0x1] %v374_v18 }
 0x473   : > { %6470 = vmatmul.msk.bf16.gmra.mxu2 %vm1532_vm10, %v6790_v48  ;;  %v7013_v48 = vld [vmem:[#allocation2 + $0x100] sm:$0xff] }
 0x474   : > { %5614 = vst.msk [vmem:[%s8312_s27 + $0x48] sm:$0xf] %vm246_vm4, %v5582_v40  ;;  %v5483_v56 = vadd.f32 %v5410_v27, %v5144_v6  ;;  %v3631_v54 = vrot.slane %v7013_v48, 1  ;;  %v8641_v40 = vld [vmem:[#allocation2 + $0x118] sm:$0xff]  ;;  %v6792_v6 = vld [vmem:[#allocation2 + $0x108] sm:$0xff] }
 0x475   : > { %v3823_v30 = vpop.f32.mrf.mxu1  ;;  %v5224_v14 = vrot.slane %v8641_v40, 1 }
 0x476   : > { %v4316_v49 = vpop.f32.mrf.mxu2  ;;  %v5416_v5 = vpop.f32.mrf.mxu0  ;;  %v5519_v24 = vadd.f32 %v8578_v51, %v5483_v56  ;;  %6627 = vmatmul.msk.bf16.gmra.mxu3 %vm1532_vm10, %v4856_v31  ;;  %v4867_v56 = vor.u32 %v4865_v61, %v4863_v4  ;;  %v4873_v4 = vshrl.u32 %v8625_v60, 16 }
 0x477   : > { %v4871_v49 = vrot.slane %v4869_v46, 1 }
 0x478   : > { %v5551_v53 = vmax.f32 %v5519_v24, 0.0 }
 0x479   : > { %6661 = vmatmul.msk.bf16.gmra.mxu0 %vm1532_vm10, %v5221_v21  ;;  %v5074_v27 = vpop.f32.mrf.mxu3  ;;  %v4872_v1 = vsel %vm1271_vm9, %v4867_v56, %v4871_v49 }
 0x47a   : > { %v5583_v35 = vpack.c.bf16 %v5551_v53, %v5551_v53  ;;  %v5225_v53 = vsel %vm1980_vm11, %v5222_v45, %v5224_v14  ;;  %v4463_v27 = vld [vmem:[#allocation2 + $0x120] sm:$0x1]  ;;  %v4877_v45 = vshll.u32 %v8641_v40, 16 }
 0x47b   : > { %v4595_v42 = vunpack.c.l.b16 %v4463_v27 }
 0x47c   : > { %5615 = vst.msk [vmem:[%s8312_s27 + $0x4c] sm:$0xf] %vm246_vm4, %v5583_v35 }
 0x47d   : > { %v3825_v39 = vpop.f32.mrf.mxu1 }
 0x47e   : > { %v4317_v44 = vpop.f32.mrf.mxu2  ;;  %v5418_v43 = vpop.f32.mrf.mxu0  ;;  %v3893_v36 = vadd.f32 %v3825_v39, %v8161_v38  ;;  %v3632_v38 = vsel %vm1980_vm11, %v3629_v63, %v3631_v54  ;;  %v7014_v39 = vld [vmem:[#allocation2 + $0x108] sm:$0xff] }
 0x480   : > { %6310 = vmatmul.msk.bf16.gmra.mxu1 %vm1532_vm10, %v3630_v62  ;;  %v3633_v62 = vrot.slane %v7014_v39, 1 }
 0x481   : > { %v5075_v32 = vpop.f32.mrf.mxu3 }
 0x483   : > { %6471 = vmatmul.msk.bf16.gmra.mxu2 %vm1532_vm10, %v6791_v59 }
 0x485   : > { %v3827_v55 = vpop.f32.mrf.mxu1 }
 0x486   : > { %v4319_v22 = vpop.f32.mrf.mxu2  ;;  %v5421_v58 = vpop.f32.mrf.mxu0  ;;  %6628 = vmatmul.msk.bf16.gmra.mxu3 %vm1532_vm10, %v4864_v28  ;;  %v3894_v2 = vadd.f32 %v3827_v55, %v8167_v19  ;;  %v4628_v55 = vpack.c.b16 %v4595_v42, %v4595_v42 }
 0x487   : > { %v4387_v3 = vadd.f32 %v4319_v22, %v3893_v36  ;;  %v4875_v36 = vor.u32 %v4873_v4, %v4871_v49  ;;  %v4879_v22 = vrot.slane %v4877_v45, 1 }
 0x488   : > { %v5226_v58 = vrot.slane %v4628_v55, 1 }
 0x489   : > { %6662 = vmatmul.msk.bf16.gmra.mxu0 %vm1532_vm10, %v5223_v23  ;;  %v5077_v11 = vpop.f32.mrf.mxu3  ;;  %v4880_v18 = vsel %vm1271_vm9, %v4875_v36, %v4879_v22 }
 0x48a   : > { %v5145_v8 = vadd.f32 %v5077_v11, %v4387_v3  ;;  %v5227_v11 = vsel %vm1980_vm11, %v5224_v14, %v5226_v58 }
 0x48c   : > { %v5484_v47 = vadd.f32 %v5416_v5, %v5145_v8 }
 0x48d   : > { %v3830_v0 = vpop.f32.mrf.mxu1 }
 0x48e   : > { %v4321_v29 = vpop.f32.mrf.mxu2  ;;  %v5422_v25 = vpop.f32.mrf.mxu0  ;;  %v5520_v31 = vadd.f32 %v8578_v51, %v5484_v47  ;;  %v3635_v0 = vrot.slane %v8171_v26, 1 }
 0x48f   : > { %v4388_v30 = vadd.f32 %v4321_v29, %v3894_v2  ;;  %v4881_v2 = vshrl.u32 %v8641_v40, 16  ;;  %v4885_v29 = vshll.u32 %v4628_v55, 16 }
 0x490   : > { %6311 = vmatmul.msk.bf16.gmra.mxu1 %vm1532_vm10, %v3632_v38  ;;  %v5552_v21 = vmax.f32 %v5520_v31, 0.0  ;;  %v3636_v47 = vsel %vm1980_vm11, %v3633_v62, %v3635_v0 }
 0x491   : > { %v5079_v24 = vpop.f32.mrf.mxu3  ;;  %v4883_v26 = vor.u32 %v4881_v2, %v4879_v22 }
 0x492   : > { %v5584_v19 = vpack.c.bf16 %v5552_v21, %v5552_v21  ;;  %v5146_v5 = vadd.f32 %v5079_v24, %v4388_v30  ;;  %v6794_v30 = vld [vmem:[#allocation2 + $0x118] sm:$0xff]  ;;  %v4887_v21 = vrot.slane %v4885_v29, 1 }
 0x493   : > { %6472 = vmatmul.msk.bf16.gmra.mxu2 %vm1532_vm10, %v6792_v6 }
 0x494   : > { %5616 = vst.msk [vmem:[%s8312_s27 + $0x50] sm:$0xf] %vm246_vm4, %v5584_v19  ;;  %v5485_v63 = vadd.f32 %v5418_v43, %v5146_v5  ;;  %v3634_v43 = vsel %vm1980_vm11, %v3631_v54, %v3633_v62 }
 0x495   : > { %v3831_v17 = vpop.f32.mrf.mxu1 }
 0x496   : > { %v4324_v41 = vpop.f32.mrf.mxu2  ;;  %v5424_v50 = vpop.f32.mrf.mxu0  ;;  %v5521_v35 = vadd.f32 %v8578_v51, %v5485_v63  ;;  %6629 = vmatmul.msk.bf16.gmra.mxu3 %vm1532_vm10, %v4872_v1 }
 0x498   : > { %v5553_v37 = vmax.f32 %v5521_v35, 0.0 }
 0x499   : > { %6663 = vmatmul.msk.bf16.gmra.mxu0 %vm1532_vm10, %v5225_v53  ;;  %v5082_v44 = vpop.f32.mrf.mxu3 }
 0x49a   : > { %v5585_v59 = vpack.c.bf16 %v5553_v37, %v5553_v37 }
 0x49c   : > { %5617 = vst.msk [vmem:[%s8312_s27 + $0x54] sm:$0xf] %vm246_vm4, %v5585_v59 }
 0x49d   : > { %v3833_v9 = vpop.f32.mrf.mxu1 }
 0x49e   : > { %v4325_v32 = vpop.f32.mrf.mxu2  ;;  %v5426_v28 = vpop.f32.mrf.mxu0  ;;  %v3895_v60 = vadd.f32 %v3833_v9, %v8185_v33 }
 0x4a0   : > { %6312 = vmatmul.msk.bf16.gmra.mxu1 %vm1532_vm10, %v3634_v43 }
 0x4a1   : > { %v5083_v23 = vpop.f32.mrf.mxu3 }
 0x4a3   : > { %6473 = vmatmul.msk.bf16.gmra.mxu2 %vm1532_vm10, %v6793_v16 }
 0x4a5   : > { %v3835_v3 = vpop.f32.mrf.mxu1 }
 0x4a6   : > { %v4327_v48 = vpop.f32.mrf.mxu2  ;;  %v5429_v54 = vpop.f32.mrf.mxu0  ;;  %6630 = vmatmul.msk.bf16.gmra.mxu3 %vm1532_vm10, %v4880_v18  ;;  %v3896_v25 = vadd.f32 %v3835_v3, %v8192_v20  ;;  %v4888_v20 = vsel %vm1271_vm9, %v4883_v26, %v4887_v21 }
 0x4a7   : > { %v4389_v8 = vadd.f32 %v4327_v48, %v3895_v60 }
 0x4a9   : > { %6664 = vmatmul.msk.bf16.gmra.mxu0 %vm1532_vm10, %v5227_v11  ;;  %v5085_v38 = vpop.f32.mrf.mxu3 }
 0x4aa   : > { %v5147_v61 = vadd.f32 %v5085_v38, %v4389_v8 }
 0x4ac   : > { %v5486_v33 = vadd.f32 %v5424_v50, %v5147_v61 }
 0x4ad   : > { %v3838_v46 = vpop.f32.mrf.mxu1 }
 0x4ae   : > { %v4329_v6 = vpop.f32.mrf.mxu2  ;;  %v5430_v31 = vpop.f32.mrf.mxu0  ;;  %v5522_v56 = vadd.f32 %v8578_v51, %v5486_v33 }
 0x4af   : > { %v4390_v49 = vadd.f32 %v4329_v6, %v3896_v25 }
 0x4b0   : > { %6313 = vmatmul.msk.bf16.gmra.mxu1 %vm1532_vm10, %v3636_v47  ;;  %v5554_v14 = vmax.f32 %v5522_v56, 0.0 }
 0x4b1   : > { %v5087_v24 = vpop.f32.mrf.mxu3 }
 0x4b2   : > { %v5586_v40 = vpack.c.bf16 %v5554_v14, %v5554_v14  ;;  %v5148_v19 = vadd.f32 %v5087_v24, %v4390_v49 }
 0x4b3   : > { %6474 = vmatmul.msk.bf16.gmra.mxu2 %vm1532_vm10, %v6794_v30 }
 0x4b4   : > { %5618 = vst.msk [vmem:[%s8312_s27 + $0x58] sm:$0xf] %vm246_vm4, %v5586_v40  ;;  %v5487_v1 = vadd.f32 %v5426_v28, %v5148_v19 }
 0x4b5   : > { %v3839_v5 = vpop.f32.mrf.mxu1 }
 0x4b6   : > { %v4332_v17 = vpop.f32.mrf.mxu2  ;;  %v5432_v63 = vpop.f32.mrf.mxu0  ;;  %v5523_v41 = vadd.f32 %v8578_v51, %v5487_v1  ;;  %6631 = vmatmul.msk.bf16.gmra.mxu3 %vm1532_vm10, %v4888_v20 }
 0x4b8   : > { %v5555_v50 = vmax.f32 %v5523_v41, 0.0 }
 0x4b9   : > { %v5090_v53 = vpop.f32.mrf.mxu3 }
 0x4ba   : > { %v5587_v27 = vpack.c.bf16 %v5555_v50, %v5555_v50 }
 0x4bc   : > { %5619 = vst.msk [vmem:[%s8312_s27 + $0x5c] sm:$0xf] %vm246_vm4, %v5587_v27 }
 0x4bd   : > { %v3841_v35 = vpop.f32.mrf.mxu1 }
 0x4be   : > { %v4333_v39 = vpop.f32.mrf.mxu2  ;;  %v5434_v62 = vpop.f32.mrf.mxu0  ;;  %v3897_v44 = vadd.f32 %v3841_v35, %v8208_v7 }
 0x4c1   : > { %v5091_v37 = vpop.f32.mrf.mxu3 }
 0x4c5   : > { %v3843_v42 = vpop.f32.mrf.mxu1 }
 0x4c6   : > { %v4335_v59 = vpop.f32.mrf.mxu2  ;;  %v5437_v9 = vpop.f32.mrf.mxu0  ;;  %v3898_v55 = vadd.f32 %v3843_v42, %v8214_v13 }
 0x4c7   : > { %v4391_v43 = vadd.f32 %v4335_v59, %v3897_v44 }
 0x4c9   : > { %v5093_v4 = vpop.f32.mrf.mxu3 }
 0x4ca   : > { %v5149_v45 = vadd.f32 %v5093_v4, %v4391_v43 }
 0x4cc   : > { %v5488_v28 = vadd.f32 %v5432_v63, %v5149_v45 }
 0x4cd   : > { %v3846_v32 = vpop.f32.mrf.mxu1 }
 0x4ce   : > { %v4337_v16 = vpop.f32.mrf.mxu2  ;;  %v5438_v36 = vpop.f32.mrf.mxu0  ;;  %v5524_v22 = vadd.f32 %v8578_v51, %v5488_v28 }
 0x4cf   : > { %v4392_v58 = vadd.f32 %v4337_v16, %v3898_v55 }
 0x4d0   : > { %v5556_v23 = vmax.f32 %v5524_v22, 0.0 }
 0x4d1   : > { %v5095_v18 = vpop.f32.mrf.mxu3 }
 0x4d2   : > { %v5588_v3 = vpack.c.bf16 %v5556_v23, %v5556_v23  ;;  %v5150_v7 = vadd.f32 %v5095_v18, %v4392_v58 }
 0x4d4   : > { %5620 = vst.msk [vmem:[%s8312_s27 + $0x60] sm:$0xf] %vm246_vm4, %v5588_v3  ;;  %v5489_v48 = vadd.f32 %v5434_v62, %v5150_v7 }
 0x4d5   : > { %v3847_v60 = vpop.f32.mrf.mxu1 }
 0x4d6   : > { %v4340_v54 = vpop.f32.mrf.mxu2  ;;  %v5440_v11 = vpop.f32.mrf.mxu0  ;;  %v5525_v8 = vadd.f32 %v8578_v51, %v5489_v48 }
 0x4d8   : > { %v5557_v0 = vmax.f32 %v5525_v8, 0.0 }
 0x4d9   : > { %v5098_v13 = vpop.f32.mrf.mxu3 }
 0x4da   : > { %v5589_v38 = vpack.c.bf16 %v5557_v0, %v5557_v0 }
 0x4dc   : > { %5621 = vst.msk [vmem:[%s8312_s27 + $0x64] sm:$0xf] %vm246_vm4, %v5589_v38 }
 0x4dd   : > { %v3849_v61 = vpop.f32.mrf.mxu1 }
 0x4de   : > { %v4341_v46 = vpop.f32.mrf.mxu2  ;;  %v5442_v47 = vpop.f32.mrf.mxu0  ;;  %v3899_v33 = vadd.f32 %v3849_v61, %v8228_v34 }
 0x4e1   : > { %v5099_v2 = vpop.f32.mrf.mxu3 }
 0x4e5   : > { %v3851_v29 = vpop.f32.mrf.mxu1 }
 0x4e6   : > { %v4343_v25 = vpop.f32.mrf.mxu2  ;;  %v5445_v6 = vpop.f32.mrf.mxu0  ;;  %v3900_v21 = vadd.f32 %v3851_v29, %v8234_v12 }
 0x4e7   : > { %v4393_v31 = vadd.f32 %v4343_v25, %v3899_v33 }
 0x4e9   : > { %v5101_v30 = vpop.f32.mrf.mxu3 }
 0x4ea   : > { %v5151_v56 = vadd.f32 %v5101_v30, %v4393_v31 }
 0x4ec   : > { %v5490_v26 = vadd.f32 %v5440_v11, %v5151_v56 }
 0x4ed   : > { %v3854_v49 = vpop.f32.mrf.mxu1 }
 0x4ee   : > { %v4345_v14 = vpop.f32.mrf.mxu2  ;;  %v5446_v24 = vpop.f32.mrf.mxu0  ;;  %v5526_v40 = vadd.f32 %v8578_v51, %v5490_v26 }
 0x4ef   : > { %v4394_v19 = vadd.f32 %v4345_v14, %v3900_v21 }
 0x4f0   : > { %v5558_v20 = vmax.f32 %v5526_v40, 0.0 }
 0x4f1   : > { %v5103_v5 = vpop.f32.mrf.mxu3 }
 0x4f2   : > { %v5590_v1 = vpack.c.bf16 %v5558_v20, %v5558_v20  ;;  %v5152_v34 = vadd.f32 %v5103_v5, %v4394_v19 }
 0x4f4   : > { %5622 = vst.msk [vmem:[%s8312_s27 + $0x68] sm:$0xf] %vm246_vm4, %v5590_v1  ;;  %v5491_v63 = vadd.f32 %v5442_v47, %v5152_v34 }
 0x4f5   : > { %v3855_v17 = vpop.f32.mrf.mxu1 }
 0x4f6   : > { %v4348_v41 = vpop.f32.mrf.mxu2  ;;  %v5448_v50 = vpop.f32.mrf.mxu0  ;;  %v5527_v53 = vadd.f32 %v8578_v51, %v5491_v63 }
 0x4f8   : > { %v5559_v27 = vmax.f32 %v5527_v53, 0.0 }
 0x4f9   : > { %v5106_v12 = vpop.f32.mrf.mxu3 }
 0x4fa   : > { %v5591_v35 = vpack.c.bf16 %v5559_v27, %v5559_v27 }
 0x4fc   : > { %5623 = vst.msk [vmem:[%s8312_s27 + $0x6c] sm:$0xf] %vm246_vm4, %v5591_v35 }
 0x4fd   : > { %v3857_v39 = vpop.f32.mrf.mxu1 }
 0x4fe   : > { %v4349_v62 = vpop.f32.mrf.mxu2  ;;  %v5450_v37 = vpop.f32.mrf.mxu0  ;;  %v3901_v59 = vadd.f32 %v3857_v39, %v8248_v10 }
 0x501   : > { %v5107_v42 = vpop.f32.mrf.mxu3 }
 0x505   : > { %v3859_v44 = vpop.f32.mrf.mxu1 }
 0x506   : > { %v4351_v9 = vpop.f32.mrf.mxu2  ;;  %v5453_v43 = vpop.f32.mrf.mxu0  ;;  %v3902_v16 = vadd.f32 %v3859_v44, %v8254_v57 }
 0x507   : > { %v4395_v4 = vadd.f32 %v4351_v9, %v3901_v59 }
 0x509   : > { %v5109_v45 = vpop.f32.mrf.mxu3 }
 0x50a   : > { %v5153_v32 = vadd.f32 %v5109_v45, %v4395_v4 }
 0x50c   : > { %v5492_v55 = vadd.f32 %v5448_v50, %v5153_v32 }
 0x50d   : > { %v3862_v28 = vpop.f32.mrf.mxu1 }
 0x50e   : > { %v4353_v36 = vpop.f32.mrf.mxu2  ;;  %v5454_v22 = vpop.f32.mrf.mxu0  ;;  %v5528_v58 = vadd.f32 %v8578_v51, %v5492_v55 }
 0x50f   : > { %v4396_v23 = vadd.f32 %v4353_v36, %v3902_v16 }
 0x510   : > { %v5560_v18 = vmax.f32 %v5528_v58, 0.0 }
 0x511   : > { %v5111_v3 = vpop.f32.mrf.mxu3 }
 0x512   : > { %v5592_v7 = vpack.c.bf16 %v5560_v18, %v5560_v18  ;;  %v5154_v10 = vadd.f32 %v5111_v3, %v4396_v23 }
 0x514   : > { %5624 = vst.msk [vmem:[%s8312_s27 + $0x70] sm:$0xf] %vm246_vm4, %v5592_v7  ;;  %v5493_v48 = vadd.f32 %v5450_v37, %v5154_v10 }
 0x515   : > { %v3863_v60 = vpop.f32.mrf.mxu1 }
 0x516   : > { %v4356_v54 = vpop.f32.mrf.mxu2  ;;  %v5456_v11 = vpop.f32.mrf.mxu0  ;;  %v5529_v8 = vadd.f32 %v8578_v51, %v5493_v48 }
 0x518   : > { %v5561_v0 = vmax.f32 %v5529_v8, 0.0 }
 0x519   : > { %v5114_v57 = vpop.f32.mrf.mxu3 }
 0x51a   : > { %v5593_v13 = vpack.c.bf16 %v5561_v0, %v5561_v0 }
 0x51c   : > { %5625 = vst.msk [vmem:[%s8312_s27 + $0x74] sm:$0xf] %vm246_vm4, %v5593_v13 }
 0x51d   : > { %v3865_v38 = vpop.f32.mrf.mxu1 }
 0x51e   : > { %v4357_v61 = vpop.f32.mrf.mxu2  ;;  %v5458_v46 = vpop.f32.mrf.mxu0  ;;  %v3903_v29 = vadd.f32 %v3865_v38, %v8270_v15 }
 0x521   : > { %v5115_v47 = vpop.f32.mrf.mxu3 }
 0x525   : > { %v3867_v2 = vpop.f32.mrf.mxu1 }
 0x526   : > { %v4359_v33 = vpop.f32.mrf.mxu2  ;;  %v5461_v25 = vpop.f32.mrf.mxu0  ;;  %v3904_v26 = vadd.f32 %v3867_v2, %v8277_v52 }
 0x527   : > { %v4397_v6 = vadd.f32 %v4359_v33, %v3903_v29 }
 0x529   : > { %v5117_v31 = vpop.f32.mrf.mxu3 }
 0x52a   : > { %v5155_v30 = vadd.f32 %v5117_v31, %v4397_v6 }
 0x52c   : > { %v5494_v49 = vadd.f32 %v5456_v11, %v5155_v30 }
 0x52d   : > { %v3870_v56 = vpop.f32.mrf.mxu1 }
 0x52e   : > { %v4361_v21 = vpop.f32.mrf.mxu2  ;;  %v5462_v14 = vpop.f32.mrf.mxu0  ;;  %v5530_v24 = vadd.f32 %v8578_v51, %v5494_v49 }
 0x52f   : > { %v4398_v40 = vadd.f32 %v4361_v21, %v3904_v26 }
 0x530   : > { %v5562_v19 = vmax.f32 %v5530_v24, 0.0 }
 0x531   : > { %v5119_v20 = vpop.f32.mrf.mxu3 }
 0x532   : > { %v5594_v5 = vpack.c.bf16 %v5562_v19, %v5562_v19  ;;  %v5156_v15 = vadd.f32 %v5119_v20, %v4398_v40 }
 0x534   : > { %5626 = vst.msk [vmem:[%s8312_s27 + $0x78] sm:$0xf] %vm246_vm4, %v5594_v5  ;;  %v5495_v34 = vadd.f32 %v5458_v46, %v5156_v15 }
 0x535   : > { %v3871_v1 = vpop.f32.mrf.mxu1 }
 0x536   : > { %v4364_v17 = vpop.f32.mrf.mxu2  ;;  %v5531_v63 = vadd.f32 %v8578_v51, %v5495_v34 }
 0x538   : > { %v5563_v41 = vmax.f32 %v5531_v63, 0.0 }
 0x539   : > { %v5122_v50 = vpop.f32.mrf.mxu3 }
 0x53a   : > { %v5595_v52 = vpack.c.bf16 %v5563_v41, %v5563_v41 }
 0x53c   : > { %5627 = vst.msk [vmem:[%s8312_s27 + $0x7c] sm:$0xf] %vm246_vm4, %v5595_v52 }
 0x53e   : > { %v4365_v53 = vpop.f32.mrf.mxu2 }
 0x541   : > { %v5123_v27 = vpop.f32.mrf.mxu3 }
 0x542 PF: > { %s14_s17 = sadd.s32 1, %s7037_s17   ;;  %s8739_s15 = smov %s7033_s16 }
 0x543   : > { %p11_p5 = scmp.ge.s32.totalorder %s14_s17, 4   ;;  %s8740_s16 = smov %s8742_s18 }
 0x545   :  { %13 = sbr.rel (!%p11_p5) target bundleno = 2 (0x2), region = 80 }

</bundles_post_ra>
